<compile_context>
chip_gen: v7x
topology: tpu7x:2x2x1
jax: 0.10.0
libtpu: 0.0.40
codegen_flags: <defaults>
</compile_context>

<pallas_src>
import functools

import jax
import jax.numpy as jnp
from jax import lax
from jax.experimental import pallas as pl
from jax.experimental.pallas import tpu as pltpu


# Row tiles for the projection / MLP matmuls: big enough that the [D,3D] and
# [D,I]/[I,D] weights are streamed only ~ceil(M/TILE_ROWS) times per layer,
# small enough that per-step VMEM (~16-20 MiB at D=1024, I=4096) fits v7x.
TILE_ROWS = 1024
TILE_N = 512            # output-column tile (multiple of 128)
TILE_I = 512            # MLP intermediate (reduction) tile
LN_TILE_ROWS = 1024     # standalone layernorm row tile
ATTN_LANE_TARGET = 512  # max lanes (= heads * head_dim) per attention grid step
# 48 MiB: more than the 32 MiB scoped default (helps v5e/v6e pipelining) while
# staying clear of v7x's 64 MiB physical VMEM.
VMEM_LIMIT = 48 * 1024 * 1024


def _dim_tile(dim, target):
    """Non-reduction axes: full dim if small, else the target tile (partial tail OK)."""
    return dim if dim <= target else target


def _reduction_tile(dim, target):
    """Reduction axes must divide exactly (padding would corrupt the accumulation)."""
    if dim <= target:
        return dim
    t = target
    while dim % t != 0:
        t //= 2
        if t < 128:
            return dim   # no clean power-of-two tile -> no tiling (guarded by caller)
    return t


# ------------------------- Pallas kernels -------------------------

def _layernorm_kernel(x_ref, g_ref, b_ref, o_ref, *, eps):
    x = x_ref[...].astype(jnp.float32)
    mu = jnp.mean(x, axis=-1, keepdims=True)
    xc = x - mu
    var = jnp.mean(xc * xc, axis=-1, keepdims=True)
    y = xc * lax.rsqrt(var + eps)
    y = y * g_ref[...].astype(jnp.float32) + b_ref[...].astype(jnp.float32)
    o_ref[...] = y.astype(o_ref.dtype)


def layernorm(x, g, b, eps):
    """x: [M, D] -> LayerNorm(x), tiled over rows."""
    M, D = x.shape
    tm = _dim_tile(M, LN_TILE_ROWS)
    return pl.pallas_call(
        functools.partial(_layernorm_kernel, eps=eps),
        out_shape=jax.ShapeDtypeStruct((M, D), x.dtype),
        grid=(pl.cdiv(M, tm),),
        in_specs=[pl.BlockSpec((tm, D), lambda m: (m, 0)),
                  pl.BlockSpec((1, D), lambda m: (0, 0)),
                  pl.BlockSpec((1, D), lambda m: (0, 0))],
        out_specs=pl.BlockSpec((tm, D), lambda m: (m, 0)),
        compiler_params=pltpu.CompilerParams(
            dimension_semantics=("parallel",),
            vmem_limit_bytes=VMEM_LIMIT),
    )(x, g.reshape(1, D), b.reshape(1, D))


def _ln_matmul_kernel(x_ref, g_ref, bln_ref, w_ref, b_ref, o_ref, xln_ref, *, eps):
    # out = LayerNorm(x) @ w + b for one (tm, tn) output tile; K = full D.
    # LayerNorm result is computed once per row tile (n == 0) and cached in VMEM.
    @pl.when(pl.program_id(1) == 0)
    def _():
        x = x_ref[...].astype(jnp.float32)
        mu = jnp.mean(x, axis=-1, keepdims=True)
        xc = x - mu
        var = jnp.mean(xc * xc, axis=-1, keepdims=True)
        xln = xc * lax.rsqrt(var + eps)
        xln = xln * g_ref[...].astype(jnp.float32) + bln_ref[...].astype(jnp.float32)
        xln_ref[...] = xln.astype(xln_ref.dtype)

    acc = jnp.dot(xln_ref[...], w_ref[...], preferred_element_type=jnp.float32)
    o_ref[...] = (acc + b_ref[...].astype(jnp.float32)).astype(o_ref.dtype)


def ln_matmul(x, g, bln, w, b, eps):
    """Fused LayerNorm(x) @ w + b.  x: [M, D], w: [D, N] -> [M, N]."""
    M, D = x.shape
    N = w.shape[1]
    tm = _dim_tile(M, TILE_ROWS)
    tn = _dim_tile(N, TILE_N)
    itemsize = x.dtype.itemsize
    ce = pl.CostEstimate(
        flops=int(2 * M * D * N + 8 * M * D),
        transcendentals=int(M),
        bytes_accessed=int((M * D + pl.cdiv(M, tm) * D * N + M * N) * itemsize))
    return pl.pallas_call(
        functools.partial(_ln_matmul_kernel, eps=eps),
        out_shape=jax.ShapeDtypeStruct((M, N), x.dtype),
        grid=(pl.cdiv(M, tm), pl.cdiv(N, tn)),
        in_specs=[pl.BlockSpec((tm, D), lambda m, n: (m, 0)),
                  pl.BlockSpec((1, D), lambda m, n: (0, 0)),
                  pl.BlockSpec((1, D), lambda m, n: (0, 0)),
                  pl.BlockSpec((D, tn), lambda m, n: (0, n)),
                  pl.BlockSpec((1, tn), lambda m, n: (0, n))],
        out_specs=pl.BlockSpec((tm, tn), lambda m, n: (m, n)),
        scratch_shapes=[pltpu.VMEM((tm, D), w.dtype)],   # cached LayerNorm(x)
        compiler_params=pltpu.CompilerParams(
            # n carries the xln-scratch dependency (computed at n == 0), so it
            # must stay "arbitrary"; m is safe to shard across TensorCores.
            dimension_semantics=("parallel", "arbitrary"),
            vmem_limit_bytes=VMEM_LIMIT),
        cost_estimate=ce,
    )(x, g.reshape(1, D), bln.reshape(1, D), w, b.reshape(1, N))


def _matmul_bias_res_kernel(x_ref, w_ref, b_ref, res_ref, o_ref):
    acc = jnp.dot(x_ref[...], w_ref[...], preferred_element_type=jnp.float32)
    acc = acc + b_ref[...].astype(jnp.float32) + res_ref[...].astype(jnp.float32)
    o_ref[...] = acc.astype(o_ref.dtype)


def matmul_bias_residual(x, w, b, residual):
    """x: [M, D], w: [D, N], residual: [M, N] -> residual + x @ w + b.
    Full-D contraction per step (near-peak MXU depth), residual in epilogue."""
    M, D = x.shape
    N = w.shape[1]
    tm = _dim_tile(M, TILE_ROWS)
    tn = _dim_tile(N, TILE_N)
    itemsize = x.dtype.itemsize
    ce = pl.CostEstimate(
        flops=int(2 * M * D * N),
        transcendentals=0,
        bytes_accessed=int((M * D + pl.cdiv(M, tm) * D * N + 2 * M * N) * itemsize))
    return pl.pallas_call(
        _matmul_bias_res_kernel,
        out_shape=jax.ShapeDtypeStruct((M, N), residual.dtype),
        grid=(pl.cdiv(M, tm), pl.cdiv(N, tn)),
        in_specs=[pl.BlockSpec((tm, D), lambda m, n: (m, 0)),
                  pl.BlockSpec((D, tn), lambda m, n: (0, n)),
                  pl.BlockSpec((1, tn), lambda m, n: (0, n)),
                  pl.BlockSpec((tm, tn), lambda m, n: (m, n))],
        out_specs=pl.BlockSpec((tm, tn), lambda m, n: (m, n)),
        compiler_params=pltpu.CompilerParams(
            dimension_semantics=("parallel", "parallel"),
            vmem_limit_bytes=VMEM_LIMIT),
        cost_estimate=ce,
    )(x, w, b.reshape(1, N), residual)


def _attn_heads_compute(q, k, v, o_ref, *, scale, hblk, hd):
    # q, k, v: (S, hblk*hd) slabs holding `hblk` heads side by side along lanes.
    outs = []
    for h in range(hblk):                       # static unroll over heads in the block
        sl = slice(h * hd, (h + 1) * hd)
        s = lax.dot_general(q[:, sl], k[:, sl], (((1,), (1,)), ((), ())),
                            preferred_element_type=jnp.float32)
        s = s * scale
        m = jnp.max(s, axis=-1, keepdims=True)
        p = jnp.exp(s - m)
        denom = jnp.sum(p, axis=-1, keepdims=True)
        o = jnp.dot(p.astype(v.dtype), v[:, sl], preferred_element_type=jnp.float32)
        outs.append(o / denom)                  # exact normalization on (S, hd) only
    out = outs[0] if len(outs) == 1 else jnp.concatenate(outs, axis=-1)
    o_ref[...] = out.astype(o_ref.dtype)


def _attention_kernel(q_ref, k_ref, v_ref, o_ref, *, scale, hblk, hd):
    _attn_heads_compute(q_ref[...], k_ref[...], v_ref[...], o_ref,
                        scale=scale, hblk=hblk, hd=hd)


def _attention_fullrow_kernel(qkv_ref, o_ref, *, scale, n_heads, hd, d):
    blk = qkv_ref[...]
    _attn_heads_compute(blk[:, :d], blk[:, d:2 * d], blk[:, 2 * d:], o_ref,
                        scale=scale, hblk=n_heads, hd=hd)


def _attn_head_block(n_heads, hd, lane_target):
    """Largest divisor of n_heads whose lane width (hblk*hd) is a multiple of 128
    and <= lane_target.  Returns 0 if none exists (use the full-row fallback)."""
    best = 0
    for hblk in range(1, n_heads + 1):
        if n_heads % hblk:
            continue
        lanes = hblk * hd
        if lanes % 128 == 0 and lanes <= max(128, lane_target):
            best = hblk
    return best


def attention_from_qkv(qkv, n_heads, scale):
    """qkv: [B, S, 3D] with columns laid out as [Q | K | V] (head-major within each).
    Returns softmax(QK^T * scale) V as [B, S, D], already head-concatenated so the
    output projection can consume it directly (no HBM transpose anywhere)."""
    B, S, threeD = qkv.shape
    D = threeD // 3
    hd = D // n_heads
    hblk = _attn_head_block(n_heads, hd, ATTN_LANE_TARGET)
    itemsize = qkv.dtype.itemsize
    ce = pl.CostEstimate(
        flops=int(4 * B * n_heads * S * S * hd),
        transcendentals=int(B * n_heads * S * S),
        bytes_accessed=int(4 * B * S * D * itemsize))

    if hblk == 0:
        # Tiny head_dim: no 128-lane-aligned head group exists.  Read the full
        # [S, 3D] row block (always layout-legal) and slice Q/K/V in-kernel.
        return pl.pallas_call(
            functools.partial(_attention_fullrow_kernel, scale=scale,
                              n_heads=n_heads, hd=hd, d=D),
            out_shape=jax.ShapeDtypeStruct((B, S, D), qkv.dtype),
            grid=(B,),
            in_specs=[pl.BlockSpec((None, S, threeD), lambda b: (b, 0, 0))],
            out_specs=pl.BlockSpec((None, S, D), lambda b: (b, 0, 0)),
            compiler_params=pltpu.CompilerParams(
                dimension_semantics=("parallel",),
                vmem_limit_bytes=VMEM_LIMIT),
            cost_estimate=ce,
        )(qkv)

    groups = n_heads // hblk
    lanes = hblk * hd
    # Column-block indices (block width = lanes): head-group g of Q sits at block g,
    # of K at block (groups + g), of V at block (2*groups + g).
    q_spec = pl.BlockSpec((None, S, lanes), lambda b, g: (b, 0, g))
    k_spec = pl.BlockSpec((None, S, lanes), lambda b, g: (b, 0, groups + g))
    v_spec = pl.BlockSpec((None, S, lanes), lambda b, g: (b, 0, 2 * groups + g))
    return pl.pallas_call(
        functools.partial(_attention_kernel, scale=scale, hblk=hblk, hd=hd),
        out_shape=jax.ShapeDtypeStruct((B, S, D), qkv.dtype),
        grid=(B, groups),
        in_specs=[q_spec, k_spec, v_spec],
        out_specs=pl.BlockSpec((None, S, lanes), lambda b, g: (b, 0, g)),
        compiler_params=pltpu.CompilerParams(
            dimension_semantics=("parallel", "parallel"),
            vmem_limit_bytes=VMEM_LIMIT),
        cost_estimate=ce,
    )(qkv, qkv, qkv)


def _mlp_kernel(x_ref, g_ref, bln_ref, w1_ref, b1_ref, w2_ref, b2_ref,
                o_ref, xln_ref, acc_ref, *, eps):
    # out = x + quick_gelu(LayerNorm(x) @ w1 + b1) @ w2 + b2, tiled over I.
    i = pl.program_id(1)

    @pl.when(i == 0)
    def _():
        x = x_ref[...].astype(jnp.float32)
        mu = jnp.mean(x, axis=-1, keepdims=True)
        xc = x - mu
        var = jnp.mean(xc * xc, axis=-1, keepdims=True)
        xln = xc * lax.rsqrt(var + eps)
        xln = xln * g_ref[...].astype(jnp.float32) + bln_ref[...].astype(jnp.float32)
        xln_ref[...] = xln.astype(xln_ref.dtype)
        acc_ref[...] = jnp.zeros_like(acc_ref)

    h = jnp.dot(xln_ref[...], w1_ref[...], preferred_element_type=jnp.float32)
    h = h + b1_ref[...].astype(jnp.float32)
    h = h * jax.nn.sigmoid(1.702 * h)                 # quick_gelu (CLIP default)
    acc_ref[...] += jnp.dot(h.astype(w2_ref.dtype), w2_ref[...],
                            preferred_element_type=jnp.float32)

    @pl.when(i == pl.num_programs(1) - 1)
    def _():
        o_ref[...] = (acc_ref[...] + b2_ref[...].astype(jnp.float32)
                      + x_ref[...].astype(jnp.float32)).astype(o_ref.dtype)


def mlp_block(x, g, bln, w1, b1, w2, b2, eps):
    """x: [M, D] -> x + quick_gelu(LN(x) @ w1 + b1) @ w2 + b2 (residual fused)."""
    M, D = x.shape
    I = w1.shape[1]
    tm = _dim_tile(M, TILE_ROWS)
    ti = _reduction_tile(I, TILE_I)
    assert I % ti == 0
    # Guard against the full-I fallback silently blowing VMEM for odd sizes.
    assert 2 * (D * ti + ti * D) * w1.dtype.itemsize <= VMEM_LIMIT, (
        "MLP intermediate size has no clean tile; weight blocks would overflow VMEM")
    itemsize = x.dtype.itemsize
    ce = pl.CostEstimate(
        flops=int(4 * M * D * I + 12 * M * D),
        transcendentals=int(M * I + M),
        bytes_accessed=int((2 * M * D + pl.cdiv(M, tm) * 2 * D * I) * itemsize))
    return pl.pallas_call(
        functools.partial(_mlp_kernel, eps=eps),
        out_shape=jax.ShapeDtypeStruct((M, D), x.dtype),
        grid=(pl.cdiv(M, tm), I // ti),
        in_specs=[pl.BlockSpec((tm, D), lambda m, i: (m, 0)),    # x (also residual)
                  pl.BlockSpec((1, D), lambda m, i: (0, 0)),     # ln2 gamma
                  pl.BlockSpec((1, D), lambda m, i: (0, 0)),     # ln2 beta
                  pl.BlockSpec((D, ti), lambda m, i: (0, i)),    # fc1 weight
                  pl.BlockSpec((1, ti), lambda m, i: (0, i)),    # fc1 bias
                  pl.BlockSpec((ti, D), lambda m, i: (i, 0)),    # fc2 weight
                  pl.BlockSpec((1, D), lambda m, i: (0, 0))],    # fc2 bias
        out_specs=pl.BlockSpec((tm, D), lambda m, i: (m, 0)),
        scratch_shapes=[pltpu.VMEM((tm, D), w1.dtype),           # LN(x), staged at i==0
                        pltpu.VMEM((tm, D), jnp.float32)],       # f32 accumulator
        compiler_params=pltpu.CompilerParams(
            dimension_semantics=("parallel", "arbitrary"),
            vmem_limit_bytes=VMEM_LIMIT),
        cost_estimate=ce,
    )(x, g.reshape(1, D), bln.reshape(1, D), w1, b1.reshape(1, I), w2, b2.reshape(1, D))


def _patch_embed_kernel(x_ref, w_ref, pos_ref, o_ref):
    acc = jnp.dot(x_ref[...], w_ref[...], preferred_element_type=jnp.float32)
    o_ref[...] = (acc + pos_ref[...].astype(jnp.float32)).astype(o_ref.dtype)


def patch_embed(x, w, pos):
    """x: [B, Np, C*P*P] patches, w: [C*P*P, D], pos: [Np, D] -> x @ w + pos.
    Small fraction of total time; the pos-embed add stays fused in the epilogue."""
    B, Np, CPP = x.shape
    D = w.shape[1]
    tn = _dim_tile(D, TILE_N)
    ce = pl.CostEstimate(
        flops=int(2 * B * Np * CPP * D),
        transcendentals=0,
        bytes_accessed=int((B * Np * CPP + CPP * D + B * Np * D) * x.dtype.itemsize))
    return pl.pallas_call(
        _patch_embed_kernel,
        out_shape=jax.ShapeDtypeStruct((B, Np, D), x.dtype),
        grid=(B, pl.cdiv(D, tn)),
        in_specs=[pl.BlockSpec((None, Np, CPP), lambda b, n: (b, 0, 0)),
                  pl.BlockSpec((CPP, tn), lambda b, n: (0, n)),
                  pl.BlockSpec((Np, tn), lambda b, n: (0, n))],
        out_specs=pl.BlockSpec((None, Np, tn), lambda b, n: (b, 0, n)),
        compiler_params=pltpu.CompilerParams(
            dimension_semantics=("parallel", "parallel"),
            vmem_limit_bytes=VMEM_LIMIT),
        cost_estimate=ce,
    )(x, w, pos)


# ------------------------- parameters -------------------------

def init_params(key, cfg):
    dtype = cfg.get("dtype", jnp.bfloat16)
    D = cfg["hidden_size"]
    C = cfg["num_channels"]
    P = cfg["patch_size"]
    I = cfg["intermediate_size"]
    L = cfg["num_hidden_layers"]
    num_positions = (cfg["image_size"] // P) ** 2 + 1

    keys = jax.random.split(key, 3 + L)

    def nrm(k, shape, scale=0.02):
        return (scale * jax.random.normal(k, shape)).astype(dtype)

    ones = lambda s: jnp.ones(s, dtype)
    zeros = lambda s: jnp.zeros(s, dtype)

    params = {
        # CLIPVisionEmbeddings
        "class_embedding": nrm(keys[0], (D,)),
        # Conv2d weight [D, C, P, P] (bias=False), stored pre-flattened as
        # [C*P*P, D] in (c, kh, kw) patch order so the conv becomes a matmul.
        "patch_weight": nrm(keys[1], (C * P * P, D)),
        # nn.Embedding(num_positions, D) with position_ids = arange.
        "position_embedding": nrm(keys[2], (num_positions, D)),
        "pre_ln_g": ones((D,)), "pre_ln_b": zeros((D,)),
        "post_ln_g": ones((D,)), "post_ln_b": zeros((D,)),
        "layers": [],
    }
    for l in range(L):
        lk = jax.random.split(keys[3 + l], 6)
        qw, kw, vw = nrm(lk[0], (D, D)), nrm(lk[1], (D, D)), nrm(lk[2], (D, D))
        params["layers"].append({
            "ln1_g": ones((D,)), "ln1_b": zeros((D,)),
            "ln2_g": ones((D,)), "ln2_b": zeros((D,)),
            # fused QKV projection: columns [0:D]=Q, [D:2D]=K, [2D:3D]=V
            "qkv_w": jnp.concatenate([qw, kw, vw], axis=1),
            "qkv_b": zeros((3 * D,)),
            "o_w": nrm(lk[3], (D, D)), "o_b": zeros((D,)),
            "fc1_w": nrm(lk[4], (D, I)), "fc1_b": zeros((I,)),
            "fc2_w": nrm(lk[5], (I, D)), "fc2_b": zeros((D,)),
        })
    return params


# ------------------------- forward -------------------------

def clip_vision_transformer(pixel_values, params, cfg, cross_image_pos_embed=None):
    # TODO(synk): output_attentions / output_hidden_states / return_dict /
    # interpolate_pos_encoding are not implemented; returns (last_hidden_state, pooled).
    P = cfg["patch_size"]
    D = cfg["hidden_size"]
    eps = cfg["layer_norm_eps"]
    nH = cfg["num_attention_heads"]
    hd = D // nH
    scale = hd ** -0.5
    dtype = params["class_embedding"].dtype

    B, C, H, W = pixel_values.shape
    Hn, Wn = H // P, W // P
    Np = Hn * Wn
    S = Np + 1
    M = B * S

    # --- CLIPVisionEmbeddings ---
    # Conv2d(kernel=stride=P, bias=False) == per-patch matmul; pos-embed add fused.
    x = pixel_values.reshape(B, C, Hn, P, Wn, P)
    x = jnp.transpose(x, (0, 2, 4, 1, 3, 5)).reshape(B, Np, C * P * P).astype(dtype)
    pos = params["position_embedding"]                        # [S, D]
    patch = patch_embed(x, params["patch_weight"], pos[1:])   # [B, Np, D]
    cls = (params["class_embedding"].astype(jnp.float32)
           + pos[0].astype(jnp.float32)).astype(dtype)
    h = jnp.concatenate([jnp.broadcast_to(cls[None, None, :], (B, 1, D)), patch],
                        axis=1)                               # [B, S, D]

    if cross_image_pos_embed is not None:
        assert cross_image_pos_embed.shape[-1] == D
        h = (h.astype(jnp.float32)
             + cross_image_pos_embed.astype(jnp.float32)).astype(dtype)

    # --- pre_layrnorm ---
    h = layernorm(h.reshape(M, D), params["pre_ln_g"], params["pre_ln_b"],
                  eps).reshape(B, S, D)

    # --- CLIPEncoder ---
    for layer in params["layers"]:
        residual = h
        # LN1 + fused QKV projection (LayerNorm cached across N tiles).
        qkv = ln_matmul(h.reshape(M, D), layer["ln1_g"], layer["ln1_b"],
                        layer["qkv_w"], layer["qkv_b"], eps)           # [M, 3D]
        # Multi-head attention reading head groups straight out of the qkv slab;
        # output is already [B, S, D] head-concatenated (no HBM transpose).
        attn = attention_from_qkv(qkv.reshape(B, S, 3 * D), nH, scale)  # [B, S, D]
        # Output projection: full-D contraction, residual fused in epilogue.
        h = matmul_bias_residual(attn.reshape(M, D), layer["o_w"], layer["o_b"],
                                 residual.reshape(M, D)).reshape(B, S, D)
        # MLP block: LN2 + fc1 + quick_gelu + fc2 (+residual), one fused kernel.
        h = mlp_block(h.reshape(M, D), layer["ln2_g"], layer["ln2_b"],
                      layer["fc1_w"], layer["fc1_b"],
                      layer["fc2_w"], layer["fc2_b"], eps).reshape(B, S, D)

    last_hidden_state = h                                              # [B, S, D]
    pooled = layernorm(h[:, 0, :], params["post_ln_g"], params["post_ln_b"], eps)
    return last_hidden_state, pooled


# ------------------------- pure-JAX reference (for validation) -------------------------

def _reference_forward(pixel_values, params, cfg):
    P = cfg["patch_size"]
    D = cfg["hidden_size"]
    eps = cfg["layer_norm_eps"]
    nH = cfg["num_attention_heads"]
    hd = D // nH
    scale = hd ** -0.5
    dtype = params["class_embedding"].dtype
    B, C, H, W = pixel_values.shape
    Hn, Wn = H // P, W // P
    Np = Hn * Wn

    def ln(x, g, b):
        x = x.astype(jnp.float32)
        mu = jnp.mean(x, -1, keepdims=True)
        var = jnp.mean((x - mu) ** 2, -1, keepdims=True)
        return ((x - mu) * lax.rsqrt(var + eps) * g.astype(jnp.float32)
                + b.astype(jnp.float32))

    f32 = lambda a: a.astype(jnp.float32)
    x = pixel_values.reshape(B, C, Hn, P, Wn, P)
    x = jnp.transpose(x, (0, 2, 4, 1, 3, 5)).reshape(B, Np, C * P * P).astype(dtype)
    pos = f32(params["position_embedding"])
    patch = f32(x) @ f32(params["patch_weight"]) + pos[1:]
    cls = f32(params["class_embedding"]) + pos[0]
    h = jnp.concatenate([jnp.broadcast_to(cls[None, None, :], (B, 1, D)), patch], 1)
    h = ln(h, params["pre_ln_g"], params["pre_ln_b"])
    for layer in params["layers"]:
        res = h
        x1 = ln(h, layer["ln1_g"], layer["ln1_b"])
        qkv = x1 @ f32(layer["qkv_w"]) + f32(layer["qkv_b"])
        q, k, v = jnp.split(qkv, 3, axis=-1)
        q = q.reshape(B, -1, nH, hd).transpose(0, 2, 1, 3)
        k = k.reshape(B, -1, nH, hd).transpose(0, 2, 1, 3)
        v = v.reshape(B, -1, nH, hd).transpose(0, 2, 1, 3)
        s = jnp.einsum("bhqd,bhkd->bhqk", q, k) * scale
        p = jax.nn.softmax(s, axis=-1)
        a = jnp.einsum("bhqk,bhkd->bhqd", p, v).transpose(0, 2, 1, 3).reshape(B, -1, D)
        h = res + a @ f32(layer["o_w"]) + f32(layer["o_b"])
        res = h
        x2 = ln(h, layer["ln2_g"], layer["ln2_b"])
        m = x2 @ f32(layer["fc1_w"]) + f32(layer["fc1_b"])
        m = m * jax.nn.sigmoid(1.702 * m)
        h = res + m @ f32(layer["fc2_w"]) + f32(layer["fc2_b"])
    pooled = ln(h[:, 0, :], params["post_ln_g"], params["post_ln_b"])
    return h, pooled


# ------------------------- demo -------------------------

if __name__ == "__main__":
    cfg = dict(
        hidden_size=256,            # head_dim 64 -> 2 heads (128 lanes) per head group
        intermediate_size=1024,
        num_hidden_layers=2,
        num_attention_heads=4,
        num_channels=3,
        image_size=32,
        patch_size=8,               # 16 patches + CLS = 17 tokens
        layer_norm_eps=1e-5,
        dtype=jnp.bfloat16,
    )
    key = jax.random.PRNGKey(0)
    pkey, xkey = jax.random.split(key)
    params = init_params(pkey, cfg)

    B = 2
    pixel_values = jax.random.normal(
        xkey, (B, cfg["num_channels"], cfg["image_size"], cfg["image_size"]),
        dtype=jnp.float32)

    fwd = jax.jit(functools.partial(clip_vision_transformer, cfg=cfg))
    last_hidden, pooled = fwd(pixel_values, params)
    jax.block_until_ready((last_hidden, pooled))

    S = (cfg["image_size"] // cfg["patch_size"]) ** 2 + 1
    assert last_hidden.shape == (B, S, cfg["hidden_size"])
    assert pooled.shape == (B, cfg["hidden_size"])
    assert jnp.all(jnp.isfinite(last_hidden.astype(jnp.float32)))
    assert jnp.all(jnp.isfinite(pooled.astype(jnp.float32)))

    # Validate against a pure-JAX f32 reference (bf16 kernel path => loose tolerance).
    ref_last, ref_pooled = _reference_forward(pixel_values, params, cfg)
    assert jnp.allclose(last_hidden.astype(jnp.float32), ref_last, atol=0.1, rtol=0.1)
    assert jnp.allclose(pooled.astype(jnp.float32), ref_pooled, atol=0.1, rtol=0.1)

    print("KERNEL_OK")
</pallas_src>

<mosaic_0001>
module attributes {stable_mosaic.version = 11 : i64} {
  func.func @_layernorm_kernel(%arg0: i32, %arg1: memref<34x256xbf16, #tpu.memory_space<vmem>>, %arg2: memref<1x256xbf16, #tpu.memory_space<vmem>>, %arg3: memref<1x256xbf16, #tpu.memory_space<vmem>>, %arg4: memref<34x256xbf16, #tpu.memory_space<vmem>>) attributes {dimension_semantics = [#tpu.dimension_semantics<parallel>], iteration_bounds = array<i64: 1>, scalar_prefetch = 0 : i64, scratch_operands = 0 : i64, tpu.core_type = #tpu.core_type<tc>, window_params = [{transform_indices = @transform_0, window_bounds = array<i64: 34, 256>}, {pipeline_mode = #tpu.pipeline_mode<synchronous>, transform_indices = @transform_1, window_bounds = array<i64: 1, 256>}, {pipeline_mode = #tpu.pipeline_mode<synchronous>, transform_indices = @transform_2, window_bounds = array<i64: 1, 256>}, {transform_indices = @transform_3, window_bounds = array<i64: 34, 256>}]} {
    %c0 = arith.constant 0 : index
    %c0_0 = arith.constant 0 : index
    %0 = vector.load %arg1[%c0, %c0_0] : memref<34x256xbf16, #tpu.memory_space<vmem>>, vector<34x256xbf16>
    %1 = arith.extf %0 : vector<34x256xbf16> to vector<34x256xf32>
    %cst = arith.constant dense<0.000000e+00> : vector<34xf32>
    %2 = vector.multi_reduction <add>, %1, %cst [1] : vector<34x256xf32> to vector<34xf32>
    %3 = vector.shape_cast %2 : vector<34xf32> to vector<34x1xf32>
    %cst_1 = arith.constant 2.560000e+02 : f32
    %4 = vector.broadcast %cst_1 : f32 to vector<34x1xf32>
    %5 = arith.divf %3, %4 : vector<34x1xf32>
    %6 = vector.broadcast %5 : vector<34x1xf32> to vector<34x256xf32>
    %7 = arith.subf %1, %6 : vector<34x256xf32>
    %8 = arith.mulf %7, %7 : vector<34x256xf32>
    %cst_2 = arith.constant dense<0.000000e+00> : vector<34xf32>
    %9 = vector.multi_reduction <add>, %8, %cst_2 [1] : vector<34x256xf32> to vector<34xf32>
    %10 = vector.shape_cast %9 : vector<34xf32> to vector<34x1xf32>
    %cst_3 = arith.constant 2.560000e+02 : f32
    %11 = vector.broadcast %cst_3 : f32 to vector<34x1xf32>
    %12 = arith.divf %10, %11 : vector<34x1xf32>
    %cst_4 = arith.constant 9.99999974E-6 : f32
    %13 = vector.broadcast %cst_4 : f32 to vector<34x1xf32>
    %14 = arith.addf %12, %13 : vector<34x1xf32>
    %15 = math.rsqrt %14 : vector<34x1xf32>
    %16 = vector.broadcast %15 : vector<34x1xf32> to vector<34x256xf32>
    %17 = arith.mulf %7, %16 : vector<34x256xf32>
    %c0_5 = arith.constant 0 : index
    %c0_6 = arith.constant 0 : index
    %18 = vector.load %arg2[%c0_5, %c0_6] : memref<1x256xbf16, #tpu.memory_space<vmem>>, vector<1x256xbf16>
    %19 = arith.extf %18 : vector<1x256xbf16> to vector<1x256xf32>
    %20 = vector.broadcast %19 : vector<1x256xf32> to vector<34x256xf32>
    %21 = arith.mulf %17, %20 : vector<34x256xf32>
    %c0_7 = arith.constant 0 : index
    %c0_8 = arith.constant 0 : index
    %22 = vector.load %arg3[%c0_7, %c0_8] : memref<1x256xbf16, #tpu.memory_space<vmem>>, vector<1x256xbf16>
    %23 = arith.extf %22 : vector<1x256xbf16> to vector<1x256xf32>
    %24 = vector.broadcast %23 : vector<1x256xf32> to vector<34x256xf32>
    %25 = arith.addf %21, %24 : vector<34x256xf32>
    %26 = arith.truncf %25 : vector<34x256xf32> to vector<34x256xbf16>
    %c0_9 = arith.constant 0 : index
    %c0_10 = arith.constant 0 : index
    %27 = vector.load %arg4[%c0_9, %c0_10] : memref<34x256xbf16, #tpu.memory_space<vmem>>, vector<34x256xbf16>
    tpu.vector_store %arg4[%c0_9, %c0_10], %26 {strides = array<i32>} : memref<34x256xbf16, #tpu.memory_space<vmem>>, vector<34x256xbf16>,
    return
  }
  func.func @transform_0(%arg0: i32) -> (i32, i32) {
    %c0_i32 = arith.constant 0 : i32
    %c0_i32_0 = arith.constant 0 : i32
    return %arg0, %c0_i32 : i32, i32
  }
  func.func @transform_1(%arg0: i32) -> (i32, i32) {
    %c0_i32 = arith.constant 0 : i32
    %c0_i32_0 = arith.constant 0 : i32
    %c0_i32_1 = arith.constant 0 : i32
    return %c0_i32, %c0_i32_0 : i32, i32
  }
  func.func @transform_2(%arg0: i32) -> (i32, i32) {
    %c0_i32 = arith.constant 0 : i32
    %c0_i32_0 = arith.constant 0 : i32
    %c0_i32_1 = arith.constant 0 : i32
    return %c0_i32, %c0_i32_0 : i32, i32
  }
  func.func @transform_3(%arg0: i32) -> (i32, i32) {
    %c0_i32 = arith.constant 0 : i32
    %c0_i32_0 = arith.constant 0 : i32
    return %arg0, %c0_i32 : i32, i32
  }
}

module attributes {stable_mosaic.version = 11 : i64} {
  func.func @_patch_embed_kernel(%arg0: i32, %arg1: i32, %arg2: memref<1x16x192xbf16, #tpu.memory_space<vmem>>, %arg3: memref<192x256xbf16, #tpu.memory_space<vmem>>, %arg4: memref<16x256xbf16, #tpu.memory_space<vmem>>, %arg5: memref<1x16x256xbf16, #tpu.memory_space<vmem>>) attributes {dimension_semantics = [#tpu.dimension_semantics<parallel>, #tpu.dimension_semantics<parallel>], iteration_bounds = array<i64: 2, 1>, scalar_prefetch = 0 : i64, scratch_operands = 0 : i64, tpu.core_type = #tpu.core_type<tc>, window_params = [{transform_indices = @transform_0, window_bounds = array<i64: 1, 16, 192>}, {transform_indices = @transform_1, window_bounds = array<i64: 192, 256>}, {transform_indices = @transform_2, window_bounds = array<i64: 16, 256>}, {transform_indices = @transform_3, window_bounds = array<i64: 1, 16, 256>}]} {
    %c0 = arith.constant 0 : index
    %c0_0 = arith.constant 0 : index
    %c0_1 = arith.constant 0 : index
    %0 = vector.load %arg2[%c0, %c0_0, %c0_1] : memref<1x16x192xbf16, #tpu.memory_space<vmem>>, vector<1x16x192xbf16>
    %1 = vector.shape_cast %0 : vector<1x16x192xbf16> to vector<16x192xbf16>
    %c0_2 = arith.constant 0 : index
    %c0_3 = arith.constant 0 : index
    %2 = vector.load %arg3[%c0_2, %c0_3] : memref<192x256xbf16, #tpu.memory_space<vmem>>, vector<192x256xbf16>
    %cst = arith.constant dense<0.000000e+00> : vector<16x256xf32>
    %3 = tpu.matmul %1, %2, %cst {dimension_numbers = #tpu.dot_dimension_numbers<[1], [0], [0], [1], [0, 0, 1, 1], [], []>} : vector<16x192xbf16>, vector<192x256xbf16>, vector<16x256xf32> -> vector<16x256xf32>
    %c0_4 = arith.constant 0 : index
    %c0_5 = arith.constant 0 : index
    %4 = vector.load %arg4[%c0_4, %c0_5] : memref<16x256xbf16, #tpu.memory_space<vmem>>, vector<16x256xbf16>
    %5 = arith.extf %4 : vector<16x256xbf16> to vector<16x256xf32>
    %6 = arith.addf %3, %5 : vector<16x256xf32>
    %7 = arith.truncf %6 : vector<16x256xf32> to vector<16x256xbf16>
    %c0_6 = arith.constant 0 : index
    %c0_7 = arith.constant 0 : index
    %c0_8 = arith.constant 0 : index
    %8 = vector.load %arg5[%c0_6, %c0_7, %c0_8] : memref<1x16x256xbf16, #tpu.memory_space<vmem>>, vector<1x16x256xbf16>
    %9 = vector.shape_cast %8 : vector<1x16x256xbf16> to vector<16x256xbf16>
    %10 = vector.shape_cast %7 : vector<16x256xbf16> to vector<1x16x256xbf16>
    tpu.vector_store %arg5[%c0_6, %c0_7, %c0_8], %10 {strides = array<i32>} : memref<1x16x256xbf16, #tpu.memory_space<vmem>>, vector<1x16x256xbf16>,
    return
  }
  func.func @transform_0(%arg0: i32, %arg1: i32) -> (i32, i32, i32) {
    %c0_i32 = arith.constant 0 : i32
    %c0_i32_0 = arith.constant 0 : i32
    %c0_i32_1 = arith.constant 0 : i32
    return %arg0, %c0_i32, %c0_i32_0 : i32, i32, i32
  }
  func.func @transform_1(%arg0: i32, %arg1: i32) -> (i32, i32) {
    %c0_i32 = arith.constant 0 : i32
    %c0_i32_0 = arith.constant 0 : i32
    return %c0_i32, %arg1 : i32, i32
  }
  func.func @transform_2(%arg0: i32, %arg1: i32) -> (i32, i32) {
    %c0_i32 = arith.constant 0 : i32
    %c0_i32_0 = arith.constant 0 : i32
    return %c0_i32, %arg1 : i32, i32
  }
  func.func @transform_3(%arg0: i32, %arg1: i32) -> (i32, i32, i32) {
    %c0_i32 = arith.constant 0 : i32
    %c0_i32_0 = arith.constant 0 : i32
    return %arg0, %c0_i32, %arg1 : i32, i32, i32
  }
}

module attributes {stable_mosaic.version = 11 : i64} {
  func.func @_ln_matmul_kernel(%arg0: i32, %arg1: i32, %arg2: memref<34x256xbf16, #tpu.memory_space<vmem>>, %arg3: memref<1x256xbf16, #tpu.memory_space<vmem>>, %arg4: memref<1x256xbf16, #tpu.memory_space<vmem>>, %arg5: memref<256x512xbf16, #tpu.memory_space<vmem>>, %arg6: memref<1x512xbf16, #tpu.memory_space<vmem>>, %arg7: memref<34x512xbf16, #tpu.memory_space<vmem>>, %arg8: memref<34x256xbf16, #tpu.memory_space<vmem>>) attributes {dimension_semantics = [#tpu.dimension_semantics<parallel>, #tpu.dimension_semantics<arbitrary>], iteration_bounds = array<i64: 1, 2>, scalar_prefetch = 0 : i64, scratch_operands = 1 : i64, tpu.core_type = #tpu.core_type<tc>, window_params = [{transform_indices = @transform_0, window_bounds = array<i64: 34, 256>}, {pipeline_mode = #tpu.pipeline_mode<synchronous>, transform_indices = @transform_1, window_bounds = array<i64: 1, 256>}, {pipeline_mode = #tpu.pipeline_mode<synchronous>, transform_indices = @transform_2, window_bounds = array<i64: 1, 256>}, {transform_indices = @transform_3, window_bounds = array<i64: 256, 512>}, {transform_indices = @transform_4, window_bounds = array<i64: 1, 512>}, {transform_indices = @transform_5, window_bounds = array<i64: 34, 512>}]} {
    %c0_i32 = arith.constant 0 : i32
    %0 = arith.cmpi eq, %arg1, %c0_i32 : i32
    %1 = arith.extui %0 : i1 to i32
    %c0_i32_0 = arith.constant 0 : i32
    %2 = arith.cmpi ne, %1, %c0_i32_0 : i32
    scf.if %2 {
      %c0_8 = arith.constant 0 : index
      %c0_9 = arith.constant 0 : index
      %12 = vector.load %arg2[%c0_8, %c0_9] : memref<34x256xbf16, #tpu.memory_space<vmem>>, vector<34x256xbf16>
      %13 = arith.extf %12 : vector<34x256xbf16> to vector<34x256xf32>
      %cst_10 = arith.constant dense<0.000000e+00> : vector<34xf32>
      %14 = vector.multi_reduction <add>, %13, %cst_10 [1] : vector<34x256xf32> to vector<34xf32>
      %15 = vector.shape_cast %14 : vector<34xf32> to vector<34x1xf32>
      %cst_11 = arith.constant 2.560000e+02 : f32
      %16 = vector.broadcast %cst_11 : f32 to vector<34x1xf32>
      %17 = arith.divf %15, %16 : vector<34x1xf32>
      %18 = vector.broadcast %17 : vector<34x1xf32> to vector<34x256xf32>
      %19 = arith.subf %13, %18 : vector<34x256xf32>
      %20 = arith.mulf %19, %19 : vector<34x256xf32>
      %cst_12 = arith.constant dense<0.000000e+00> : vector<34xf32>
      %21 = vector.multi_reduction <add>, %20, %cst_12 [1] : vector<34x256xf32> to vector<34xf32>
      %22 = vector.shape_cast %21 : vector<34xf32> to vector<34x1xf32>
      %cst_13 = arith.constant 2.560000e+02 : f32
      %23 = vector.broadcast %cst_13 : f32 to vector<34x1xf32>
      %24 = arith.divf %22, %23 : vector<34x1xf32>
      %cst_14 = arith.constant 9.99999974E-6 : f32
      %25 = vector.broadcast %cst_14 : f32 to vector<34x1xf32>
      %26 = arith.addf %24, %25 : vector<34x1xf32>
      %27 = math.rsqrt %26 : vector<34x1xf32>
      %28 = vector.broadcast %27 : vector<34x1xf32> to vector<34x256xf32>
      %29 = arith.mulf %19, %28 : vector<34x256xf32>
      %c0_15 = arith.constant 0 : index
      %c0_16 = arith.constant 0 : index
      %30 = vector.load %arg3[%c0_15, %c0_16] : memref<1x256xbf16, #tpu.memory_space<vmem>>, vector<1x256xbf16>
      %31 = arith.extf %30 : vector<1x256xbf16> to vector<1x256xf32>
      %32 = vector.broadcast %31 : vector<1x256xf32> to vector<34x256xf32>
      %33 = arith.mulf %29, %32 : vector<34x256xf32>
      %c0_17 = arith.constant 0 : index
      %c0_18 = arith.constant 0 : index
      %34 = vector.load %arg4[%c0_17, %c0_18] : memref<1x256xbf16, #tpu.memory_space<vmem>>, vector<1x256xbf16>
      %35 = arith.extf %34 : vector<1x256xbf16> to vector<1x256xf32>
      %36 = vector.broadcast %35 : vector<1x256xf32> to vector<34x256xf32>
      %37 = arith.addf %33, %36 : vector<34x256xf32>
      %38 = arith.truncf %37 : vector<34x256xf32> to vector<34x256xbf16>
      %c0_19 = arith.constant 0 : index
      %c0_20 = arith.constant 0 : index
      %39 = vector.load %arg8[%c0_19, %c0_20] : memref<34x256xbf16, #tpu.memory_space<vmem>>, vector<34x256xbf16>
      tpu.vector_store %arg8[%c0_19, %c0_20], %38 {strides = array<i32>} : memref<34x256xbf16, #tpu.memory_space<vmem>>, vector<34x256xbf16>,
    } else {
    }
    %c0 = arith.constant 0 : index
    %c0_1 = arith.constant 0 : index
    %3 = vector.load %arg8[%c0, %c0_1] : memref<34x256xbf16, #tpu.memory_space<vmem>>, vector<34x256xbf16>
    %c0_2 = arith.constant 0 : index
    %c0_3 = arith.constant 0 : index
    %4 = vector.load %arg5[%c0_2, %c0_3] : memref<256x512xbf16, #tpu.memory_space<vmem>>, vector<256x512xbf16>
    %cst = arith.constant dense<0.000000e+00> : vector<34x512xf32>
    %5 = tpu.matmul %3, %4, %cst {dimension_numbers = #tpu.dot_dimension_numbers<[1], [0], [0], [1], [0, 0, 1, 1], [], []>} : vector<34x256xbf16>, vector<256x512xbf16>, vector<34x512xf32> -> vector<34x512xf32>
    %c0_4 = arith.constant 0 : index
    %c0_5 = arith.constant 0 : index
    %6 = vector.load %arg6[%c0_4, %c0_5] : memref<1x512xbf16, #tpu.memory_space<vmem>>, vector<1x512xbf16>
    %7 = arith.extf %6 : vector<1x512xbf16> to vector<1x512xf32>
    %8 = vector.broadcast %7 : vector<1x512xf32> to vector<34x512xf32>
    %9 = arith.addf %5, %8 : vector<34x512xf32>
    %10 = arith.truncf %9 : vector<34x512xf32> to vector<34x512xbf16>
    %c0_6 = arith.constant 0 : index
    %c0_7 = arith.constant 0 : index
    %11 = vector.load %arg7[%c0_6, %c0_7] : memref<34x512xbf16, #tpu.memory_space<vmem>>, vector<34x512xbf16>
    tpu.vector_store %arg7[%c0_6, %c0_7], %10 {strides = array<i32>} : memref<34x512xbf16, #tpu.memory_space<vmem>>, vector<34x512xbf16>,
    return
  }
  func.func @transform_0(%arg0: i32, %arg1: i32) -> (i32, i32) {
    %c0_i32 = arith.constant 0 : i32
    %c0_i32_0 = arith.constant 0 : i32
    return %arg0, %c0_i32 : i32, i32
  }
  func.func @transform_1(%arg0: i32, %arg1: i32) -> (i32, i32) {
    %c0_i32 = arith.constant 0 : i32
    %c0_i32_0 = arith.constant 0 : i32
    %c0_i32_1 = arith.constant 0 : i32
    return %c0_i32, %c0_i32_0 : i32, i32
  }
  func.func @transform_2(%arg0: i32, %arg1: i32) -> (i32, i32) {
    %c0_i32 = arith.constant 0 : i32
    %c0_i32_0 = arith.constant 0 : i32
    %c0_i32_1 = arith.constant 0 : i32
    return %c0_i32, %c0_i32_0 : i32, i32
  }
  func.func @transform_3(%arg0: i32, %arg1: i32) -> (i32, i32) {
    %c0_i32 = arith.constant 0 : i32
    %c0_i32_0 = arith.constant 0 : i32
    return %c0_i32, %arg1 : i32, i32
  }
  func.func @transform_4(%arg0: i32, %arg1: i32) -> (i32, i32) {
    %c0_i32 = arith.constant 0 : i32
    %c0_i32_0 = arith.constant 0 : i32
    return %c0_i32, %arg1 : i32, i32
  }
  func.func @transform_5(%arg0: i32, %arg1: i32) -> (i32, i32) {
    %c0_i32 = arith.constant 0 : i32
    return %arg0, %arg1 : i32, i32
  }
}

module attributes {stable_mosaic.version = 11 : i64} {
  func.func @_attention_kernel(%arg0: i32, %arg1: i32, %arg2: memref<1x17x256xbf16, #tpu.memory_space<vmem>>, %arg3: memref<1x17x256xbf16, #tpu.memory_space<vmem>>, %arg4: memref<1x17x256xbf16, #tpu.memory_space<vmem>>, %arg5: memref<1x17x256xbf16, #tpu.memory_space<vmem>>) attributes {dimension_semantics = [#tpu.dimension_semantics<parallel>, #tpu.dimension_semantics<parallel>], iteration_bounds = array<i64: 2, 1>, scalar_prefetch = 0 : i64, scratch_operands = 0 : i64, tpu.core_type = #tpu.core_type<tc>, window_params = [{transform_indices = @transform_0, window_bounds = array<i64: 1, 17, 256>}, {transform_indices = @transform_1, window_bounds = array<i64: 1, 17, 256>}, {transform_indices = @transform_2, window_bounds = array<i64: 1, 17, 256>}, {transform_indices = @transform_3, window_bounds = array<i64: 1, 17, 256>}]} {
    %c0 = arith.constant 0 : index
    %c0_0 = arith.constant 0 : index
    %c0_1 = arith.constant 0 : index
    %0 = vector.load %arg2[%c0, %c0_0, %c0_1] : memref<1x17x256xbf16, #tpu.memory_space<vmem>>, vector<1x17x256xbf16>
    %1 = vector.shape_cast %0 : vector<1x17x256xbf16> to vector<17x256xbf16>
    %c0_2 = arith.constant 0 : index
    %c0_3 = arith.constant 0 : index
    %c0_4 = arith.constant 0 : index
    %2 = vector.load %arg3[%c0_2, %c0_3, %c0_4] : memref<1x17x256xbf16, #tpu.memory_space<vmem>>, vector<1x17x256xbf16>
    %3 = vector.shape_cast %2 : vector<1x17x256xbf16> to vector<17x256xbf16>
    %c0_5 = arith.constant 0 : index
    %c0_6 = arith.constant 0 : index
    %c0_7 = arith.constant 0 : index
    %4 = vector.load %arg4[%c0_5, %c0_6, %c0_7] : memref<1x17x256xbf16, #tpu.memory_space<vmem>>, vector<1x17x256xbf16>
    %5 = vector.shape_cast %4 : vector<1x17x256xbf16> to vector<17x256xbf16>
    %6 = vector.extract_strided_slice %1 {offsets = [0, 0], sizes = [17, 64], strides = [1, 1]} : vector<17x256xbf16> to vector<17x64xbf16>
    %7 = vector.extract_strided_slice %3 {offsets = [0, 0], sizes = [17, 64], strides = [1, 1]} : vector<17x256xbf16> to vector<17x64xbf16>
    %cst = arith.constant dense<0.000000e+00> : vector<17x17xf32>
    %8 = tpu.matmul %6, %7, %cst {dimension_numbers = #tpu.dot_dimension_numbers<[1], [1], [0], [0], [0, 0, 1, 0], [], []>} : vector<17x64xbf16>, vector<17x64xbf16>, vector<17x17xf32> -> vector<17x17xf32>
    %cst_8 = arith.constant 1.250000e-01 : f32
    %9 = vector.broadcast %cst_8 : f32 to vector<17x17xf32>
    %10 = arith.mulf %8, %9 : vector<17x17xf32>
    %cst_9 = arith.constant dense<0xFF800000> : vector<17xf32>
    %11 = vector.multi_reduction <maximumf>, %10, %cst_9 [1] : vector<17x17xf32> to vector<17xf32>
    %12 = vector.shape_cast %11 : vector<17xf32> to vector<17x1xf32>
    %13 = vector.broadcast %12 : vector<17x1xf32> to vector<17x17xf32>
    %14 = arith.subf %10, %13 : vector<17x17xf32>
    %15 = math.exp %14 : vector<17x17xf32>
    %cst_10 = arith.constant dense<0.000000e+00> : vector<17xf32>
    %16 = vector.multi_reduction <add>, %15, %cst_10 [1] : vector<17x17xf32> to vector<17xf32>
    %17 = vector.shape_cast %16 : vector<17xf32> to vector<17x1xf32>
    %18 = arith.truncf %15 : vector<17x17xf32> to vector<17x17xbf16>
    %19 = vector.extract_strided_slice %5 {offsets = [0, 0], sizes = [17, 64], strides = [1, 1]} : vector<17x256xbf16> to vector<17x64xbf16>
    %cst_11 = arith.constant dense<0.000000e+00> : vector<17x64xf32>
    %20 = tpu.matmul %18, %19, %cst_11 {dimension_numbers = #tpu.dot_dimension_numbers<[1], [0], [0], [1], [0, 0, 1, 1], [], []>} : vector<17x17xbf16>, vector<17x64xbf16>, vector<17x64xf32> -> vector<17x64xf32>
    %21 = vector.broadcast %17 : vector<17x1xf32> to vector<17x64xf32>
    %22 = arith.divf %20, %21 : vector<17x64xf32>
    %23 = vector.extract_strided_slice %1 {offsets = [0, 64], sizes = [17, 64], strides = [1, 1]} : vector<17x256xbf16> to vector<17x64xbf16>
    %24 = vector.extract_strided_slice %3 {offsets = [0, 64], sizes = [17, 64], strides = [1, 1]} : vector<17x256xbf16> to vector<17x64xbf16>
    %cst_12 = arith.constant dense<0.000000e+00> : vector<17x17xf32>
    %25 = tpu.matmul %23, %24, %cst_12 {dimension_numbers = #tpu.dot_dimension_numbers<[1], [1], [0], [0], [0, 0, 1, 0], [], []>} : vector<17x64xbf16>, vector<17x64xbf16>, vector<17x17xf32> -> vector<17x17xf32>
    %cst_13 = arith.constant 1.250000e-01 : f32
    %26 = vector.broadcast %cst_13 : f32 to vector<17x17xf32>
    %27 = arith.mulf %25, %26 : vector<17x17xf32>
    %cst_14 = arith.constant dense<0xFF800000> : vector<17xf32>
    %28 = vector.multi_reduction <maximumf>, %27, %cst_14 [1] : vector<17x17xf32> to vector<17xf32>
    %29 = vector.shape_cast %28 : vector<17xf32> to vector<17x1xf32>
    %30 = vector.broadcast %29 : vector<17x1xf32> to vector<17x17xf32>
    %31 = arith.subf %27, %30 : vector<17x17xf32>
    %32 = math.exp %31 : vector<17x17xf32>
    %cst_15 = arith.constant dense<0.000000e+00> : vector<17xf32>
    %33 = vector.multi_reduction <add>, %32, %cst_15 [1] : vector<17x17xf32> to vector<17xf32>
    %34 = vector.shape_cast %33 : vector<17xf32> to vector<17x1xf32>
    %35 = arith.truncf %32 : vector<17x17xf32> to vector<17x17xbf16>
    %36 = vector.extract_strided_slice %5 {offsets = [0, 64], sizes = [17, 64], strides = [1, 1]} : vector<17x256xbf16> to vector<17x64xbf16>
    %cst_16 = arith.constant dense<0.000000e+00> : vector<17x64xf32>
    %37 = tpu.matmul %35, %36, %cst_16 {dimension_numbers = #tpu.dot_dimension_numbers<[1], [0], [0], [1], [0, 0, 1, 1], [], []>} : vector<17x17xbf16>, vector<17x64xbf16>, vector<17x64xf32> -> vector<17x64xf32>
    %38 = vector.broadcast %34 : vector<17x1xf32> to vector<17x64xf32>
    %39 = arith.divf %37, %38 : vector<17x64xf32>
    %40 = vector.extract_strided_slice %1 {offsets = [0, 128], sizes = [17, 64], strides = [1, 1]} : vector<17x256xbf16> to vector<17x64xbf16>
    %41 = vector.extract_strided_slice %3 {offsets = [0, 128], sizes = [17, 64], strides = [1, 1]} : vector<17x256xbf16> to vector<17x64xbf16>
    %cst_17 = arith.constant dense<0.000000e+00> : vector<17x17xf32>
    %42 = tpu.matmul %40, %41, %cst_17 {dimension_numbers = #tpu.dot_dimension_numbers<[1], [1], [0], [0], [0, 0, 1, 0], [], []>} : vector<17x64xbf16>, vector<17x64xbf16>, vector<17x17xf32> -> vector<17x17xf32>
    %cst_18 = arith.constant 1.250000e-01 : f32
    %43 = vector.broadcast %cst_18 : f32 to vector<17x17xf32>
    %44 = arith.mulf %42, %43 : vector<17x17xf32>
    %cst_19 = arith.constant dense<0xFF800000> : vector<17xf32>
    %45 = vector.multi_reduction <maximumf>, %44, %cst_19 [1] : vector<17x17xf32> to vector<17xf32>
    %46 = vector.shape_cast %45 : vector<17xf32> to vector<17x1xf32>
    %47 = vector.broadcast %46 : vector<17x1xf32> to vector<17x17xf32>
    %48 = arith.subf %44, %47 : vector<17x17xf32>
    %49 = math.exp %48 : vector<17x17xf32>
    %cst_20 = arith.constant dense<0.000000e+00> : vector<17xf32>
    %50 = vector.multi_reduction <add>, %49, %cst_20 [1] : vector<17x17xf32> to vector<17xf32>
    %51 = vector.shape_cast %50 : vector<17xf32> to vector<17x1xf32>
    %52 = arith.truncf %49 : vector<17x17xf32> to vector<17x17xbf16>
    %53 = vector.extract_strided_slice %5 {offsets = [0, 128], sizes = [17, 64], strides = [1, 1]} : vector<17x256xbf16> to vector<17x64xbf16>
    %cst_21 = arith.constant dense<0.000000e+00> : vector<17x64xf32>
    %54 = tpu.matmul %52, %53, %cst_21 {dimension_numbers = #tpu.dot_dimension_numbers<[1], [0], [0], [1], [0, 0, 1, 1], [], []>} : vector<17x17xbf16>, vector<17x64xbf16>, vector<17x64xf32> -> vector<17x64xf32>
    %55 = vector.broadcast %51 : vector<17x1xf32> to vector<17x64xf32>
    %56 = arith.divf %54, %55 : vector<17x64xf32>
    %57 = vector.extract_strided_slice %1 {offsets = [0, 192], sizes = [17, 64], strides = [1, 1]} : vector<17x256xbf16> to vector<17x64xbf16>
    %58 = vector.extract_strided_slice %3 {offsets = [0, 192], sizes = [17, 64], strides = [1, 1]} : vector<17x256xbf16> to vector<17x64xbf16>
    %cst_22 = arith.constant dense<0.000000e+00> : vector<17x17xf32>
    %59 = tpu.matmul %57, %58, %cst_22 {dimension_numbers = #tpu.dot_dimension_numbers<[1], [1], [0], [0], [0, 0, 1, 0], [], []>} : vector<17x64xbf16>, vector<17x64xbf16>, vector<17x17xf32> -> vector<17x17xf32>
    %cst_23 = arith.constant 1.250000e-01 : f32
    %60 = vector.broadcast %cst_23 : f32 to vector<17x17xf32>
    %61 = arith.mulf %59, %60 : vector<17x17xf32>
    %cst_24 = arith.constant dense<0xFF800000> : vector<17xf32>
    %62 = vector.multi_reduction <maximumf>, %61, %cst_24 [1] : vector<17x17xf32> to vector<17xf32>
    %63 = vector.shape_cast %62 : vector<17xf32> to vector<17x1xf32>
    %64 = vector.broadcast %63 : vector<17x1xf32> to vector<17x17xf32>
    %65 = arith.subf %61, %64 : vector<17x17xf32>
    %66 = math.exp %65 : vector<17x17xf32>
    %cst_25 = arith.constant dense<0.000000e+00> : vector<17xf32>
    %67 = vector.multi_reduction <add>, %66, %cst_25 [1] : vector<17x17xf32> to vector<17xf32>
    %68 = vector.shape_cast %67 : vector<17xf32> to vector<17x1xf32>
    %69 = arith.truncf %66 : vector<17x17xf32> to vector<17x17xbf16>
    %70 = vector.extract_strided_slice %5 {offsets = [0, 192], sizes = [17, 64], strides = [1, 1]} : vector<17x256xbf16> to vector<17x64xbf16>
    %cst_26 = arith.constant dense<0.000000e+00> : vector<17x64xf32>
    %71 = tpu.matmul %69, %70, %cst_26 {dimension_numbers = #tpu.dot_dimension_numbers<[1], [0], [0], [1], [0, 0, 1, 1], [], []>} : vector<17x17xbf16>, vector<17x64xbf16>, vector<17x64xf32> -> vector<17x64xf32>
    %72 = vector.broadcast %68 : vector<17x1xf32> to vector<17x64xf32>
    %73 = arith.divf %71, %72 : vector<17x64xf32>
    %74 = tpu.concatenate %22, %39, %56, %73 in 1 : vector<17x64xf32>, vector<17x64xf32>, vector<17x64xf32>, vector<17x64xf32> -> vector<17x256xf32>
    %75 = arith.truncf %74 : vector<17x256xf32> to vector<17x256xbf16>
    %c0_27 = arith.constant 0 : index
    %c0_28 = arith.constant 0 : index
    %c0_29 = arith.constant 0 : index
    %76 = vector.load %arg5[%c0_27, %c0_28, %c0_29] : memref<1x17x256xbf16, #tpu.memory_space<vmem>>, vector<1x17x256xbf16>
    %77 = vector.shape_cast %76 : vector<1x17x256xbf16> to vector<17x256xbf16>
    %78 = vector.shape_cast %75 : vector<17x256xbf16> to vector<1x17x256xbf16>
    tpu.vector_store %arg5[%c0_27, %c0_28, %c0_29], %78 {strides = array<i32>} : memref<1x17x256xbf16, #tpu.memory_space<vmem>>, vector<1x17x256xbf16>,
    return
  }
  func.func @transform_0(%arg0: i32, %arg1: i32) -> (i32, i32, i32) {
    %c0_i32 = arith.constant 0 : i32
    %c0_i32_0 = arith.constant 0 : i32
    return %arg0, %c0_i32, %arg1 : i32, i32, i32
  }
  func.func @transform_1(%arg0: i32, %arg1: i32) -> (i32, i32, i32) {
    %c1_i32 = arith.constant 1 : i32
    %0 = arith.addi %c1_i32, %arg1 : i32
    %c0_i32 = arith.constant 0 : i32
    %c0_i32_0 = arith.constant 0 : i32
    return %arg0, %c0_i32, %0 : i32, i32, i32
  }
  func.func @transform_2(%arg0: i32, %arg1: i32) -> (i32, i32, i32) {
    %c2_i32 = arith.constant 2 : i32
    %0 = arith.addi %c2_i32, %arg1 : i32
    %c0_i32 = arith.constant 0 : i32
    %c0_i32_0 = arith.constant 0 : i32
    return %arg0, %c0_i32, %0 : i32, i32, i32
  }
  func.func @transform_3(%arg0: i32, %arg1: i32) -> (i32, i32, i32) {
    %c0_i32 = arith.constant 0 : i32
    %c0_i32_0 = arith.constant 0 : i32
    return %arg0, %c0_i32, %arg1 : i32, i32, i32
  }
}

module attributes {stable_mosaic.version = 11 : i64} {
  func.func @_matmul_bias_res_kernel(%arg0: i32, %arg1: i32, %arg2: memref<34x256xbf16, #tpu.memory_space<vmem>>, %arg3: memref<256x256xbf16, #tpu.memory_space<vmem>>, %arg4: memref<1x256xbf16, #tpu.memory_space<vmem>>, %arg5: memref<34x256xbf16, #tpu.memory_space<vmem>>, %arg6: memref<34x256xbf16, #tpu.memory_space<vmem>>) attributes {dimension_semantics = [#tpu.dimension_semantics<parallel>, #tpu.dimension_semantics<parallel>], iteration_bounds = array<i64: 1, 1>, scalar_prefetch = 0 : i64, scratch_operands = 0 : i64, tpu.core_type = #tpu.core_type<tc>, window_params = [{transform_indices = @transform_0, window_bounds = array<i64: 34, 256>}, {transform_indices = @transform_1, window_bounds = array<i64: 256, 256>}, {transform_indices = @transform_2, window_bounds = array<i64: 1, 256>}, {transform_indices = @transform_3, window_bounds = array<i64: 34, 256>}, {transform_indices = @transform_4, window_bounds = array<i64: 34, 256>}]} {
    %c0 = arith.constant 0 : index
    %c0_0 = arith.constant 0 : index
    %0 = vector.load %arg2[%c0, %c0_0] : memref<34x256xbf16, #tpu.memory_space<vmem>>, vector<34x256xbf16>
    %c0_1 = arith.constant 0 : index
    %c0_2 = arith.constant 0 : index
    %1 = vector.load %arg3[%c0_1, %c0_2] : memref<256x256xbf16, #tpu.memory_space<vmem>>, vector<256x256xbf16>
    %cst = arith.constant dense<0.000000e+00> : vector<34x256xf32>
    %2 = tpu.matmul %0, %1, %cst {dimension_numbers = #tpu.dot_dimension_numbers<[1], [0], [0], [1], [0, 0, 1, 1], [], []>} : vector<34x256xbf16>, vector<256x256xbf16>, vector<34x256xf32> -> vector<34x256xf32>
    %c0_3 = arith.constant 0 : index
    %c0_4 = arith.constant 0 : index
    %3 = vector.load %arg4[%c0_3, %c0_4] : memref<1x256xbf16, #tpu.memory_space<vmem>>, vector<1x256xbf16>
    %4 = arith.extf %3 : vector<1x256xbf16> to vector<1x256xf32>
    %5 = vector.broadcast %4 : vector<1x256xf32> to vector<34x256xf32>
    %6 = arith.addf %2, %5 : vector<34x256xf32>
    %c0_5 = arith.constant 0 : index
    %c0_6 = arith.constant 0 : index
    %7 = vector.load %arg5[%c0_5, %c0_6] : memref<34x256xbf16, #tpu.memory_space<vmem>>, vector<34x256xbf16>
    %8 = arith.extf %7 : vector<34x256xbf16> to vector<34x256xf32>
    %9 = arith.addf %6, %8 : vector<34x256xf32>
    %10 = arith.truncf %9 : vector<34x256xf32> to vector<34x256xbf16>
    %c0_7 = arith.constant 0 : index
    %c0_8 = arith.constant 0 : index
    %11 = vector.load %arg6[%c0_7, %c0_8] : memref<34x256xbf16, #tpu.memory_space<vmem>>, vector<34x256xbf16>
    tpu.vector_store %arg6[%c0_7, %c0_8], %10 {strides = array<i32>} : memref<34x256xbf16, #tpu.memory_space<vmem>>, vector<34x256xbf16>,
    return
  }
  func.func @transform_0(%arg0: i32, %arg1: i32) -> (i32, i32) {
    %c0_i32 = arith.constant 0 : i32
    %c0_i32_0 = arith.constant 0 : i32
    return %arg0, %c0_i32 : i32, i32
  }
  func.func @transform_1(%arg0: i32, %arg1: i32) -> (i32, i32) {
    %c0_i32 = arith.constant 0 : i32
    %c0_i32_0 = arith.constant 0 : i32
    return %c0_i32, %arg1 : i32, i32
  }
  func.func @transform_2(%arg0: i32, %arg1: i32) -> (i32, i32) {
    %c0_i32 = arith.constant 0 : i32
    %c0_i32_0 = arith.constant 0 : i32
    return %c0_i32, %arg1 : i32, i32
  }
  func.func @transform_3(%arg0: i32, %arg1: i32) -> (i32, i32) {
    %c0_i32 = arith.constant 0 : i32
    return %arg0, %arg1 : i32, i32
  }
  func.func @transform_4(%arg0: i32, %arg1: i32) -> (i32, i32) {
    %c0_i32 = arith.constant 0 : i32
    return %arg0, %arg1 : i32, i32
  }
}

module attributes {stable_mosaic.version = 11 : i64} {
  func.func @_mlp_kernel(%arg0: i32, %arg1: i32, %arg2: memref<34x256xbf16, #tpu.memory_space<vmem>>, %arg3: memref<1x256xbf16, #tpu.memory_space<vmem>>, %arg4: memref<1x256xbf16, #tpu.memory_space<vmem>>, %arg5: memref<256x512xbf16, #tpu.memory_space<vmem>>, %arg6: memref<1x512xbf16, #tpu.memory_space<vmem>>, %arg7: memref<512x256xbf16, #tpu.memory_space<vmem>>, %arg8: memref<1x256xbf16, #tpu.memory_space<vmem>>, %arg9: memref<34x256xbf16, #tpu.memory_space<vmem>>, %arg10: memref<34x256xbf16, #tpu.memory_space<vmem>>, %arg11: memref<34x256xf32, #tpu.memory_space<vmem>>) attributes {dimension_semantics = [#tpu.dimension_semantics<parallel>, #tpu.dimension_semantics<arbitrary>], iteration_bounds = array<i64: 1, 2>, scalar_prefetch = 0 : i64, scratch_operands = 2 : i64, tpu.core_type = #tpu.core_type<tc>, window_params = [{transform_indices = @transform_0, window_bounds = array<i64: 34, 256>}, {pipeline_mode = #tpu.pipeline_mode<synchronous>, transform_indices = @transform_1, window_bounds = array<i64: 1, 256>}, {pipeline_mode = #tpu.pipeline_mode<synchronous>, transform_indices = @transform_2, window_bounds = array<i64: 1, 256>}, {transform_indices = @transform_3, window_bounds = array<i64: 256, 512>}, {transform_indices = @transform_4, window_bounds = array<i64: 1, 512>}, {transform_indices = @transform_5, window_bounds = array<i64: 512, 256>}, {pipeline_mode = #tpu.pipeline_mode<synchronous>, transform_indices = @transform_6, window_bounds = array<i64: 1, 256>}, {transform_indices = @transform_7, window_bounds = array<i64: 34, 256>}]} {
    %c0_i32 = arith.constant 0 : i32
    %0 = arith.cmpi eq, %arg1, %c0_i32 : i32
    %1 = arith.extui %0 : i1 to i32
    %c0_i32_0 = arith.constant 0 : i32
    %2 = arith.cmpi ne, %1, %c0_i32_0 : i32
    scf.if %2 {
      %c0_16 = arith.constant 0 : index
      %c0_17 = arith.constant 0 : index
      %27 = vector.load %arg2[%c0_16, %c0_17] : memref<34x256xbf16, #tpu.memory_space<vmem>>, vector<34x256xbf16>
      %28 = arith.extf %27 : vector<34x256xbf16> to vector<34x256xf32>
      %cst_18 = arith.constant dense<0.000000e+00> : vector<34xf32>
      %29 = vector.multi_reduction <add>, %28, %cst_18 [1] : vector<34x256xf32> to vector<34xf32>
      %30 = vector.shape_cast %29 : vector<34xf32> to vector<34x1xf32>
      %cst_19 = arith.constant 2.560000e+02 : f32
      %31 = vector.broadcast %cst_19 : f32 to vector<34x1xf32>
      %32 = arith.divf %30, %31 : vector<34x1xf32>
      %33 = vector.broadcast %32 : vector<34x1xf32> to vector<34x256xf32>
      %34 = arith.subf %28, %33 : vector<34x256xf32>
      %35 = arith.mulf %34, %34 : vector<34x256xf32>
      %cst_20 = arith.constant dense<0.000000e+00> : vector<34xf32>
      %36 = vector.multi_reduction <add>, %35, %cst_20 [1] : vector<34x256xf32> to vector<34xf32>
      %37 = vector.shape_cast %36 : vector<34xf32> to vector<34x1xf32>
      %cst_21 = arith.constant 2.560000e+02 : f32
      %38 = vector.broadcast %cst_21 : f32 to vector<34x1xf32>
      %39 = arith.divf %37, %38 : vector<34x1xf32>
      %cst_22 = arith.constant 9.99999974E-6 : f32
      %40 = vector.broadcast %cst_22 : f32 to vector<34x1xf32>
      %41 = arith.addf %39, %40 : vector<34x1xf32>
      %42 = math.rsqrt %41 : vector<34x1xf32>
      %43 = vector.broadcast %42 : vector<34x1xf32> to vector<34x256xf32>
      %44 = arith.mulf %34, %43 : vector<34x256xf32>
      %c0_23 = arith.constant 0 : index
      %c0_24 = arith.constant 0 : index
      %45 = vector.load %arg3[%c0_23, %c0_24] : memref<1x256xbf16, #tpu.memory_space<vmem>>, vector<1x256xbf16>
      %46 = arith.extf %45 : vector<1x256xbf16> to vector<1x256xf32>
      %47 = vector.broadcast %46 : vector<1x256xf32> to vector<34x256xf32>
      %48 = arith.mulf %44, %47 : vector<34x256xf32>
      %c0_25 = arith.constant 0 : index
      %c0_26 = arith.constant 0 : index
      %49 = vector.load %arg4[%c0_25, %c0_26] : memref<1x256xbf16, #tpu.memory_space<vmem>>, vector<1x256xbf16>
      %50 = arith.extf %49 : vector<1x256xbf16> to vector<1x256xf32>
      %51 = vector.broadcast %50 : vector<1x256xf32> to vector<34x256xf32>
      %52 = arith.addf %48, %51 : vector<34x256xf32>
      %53 = arith.truncf %52 : vector<34x256xf32> to vector<34x256xbf16>
      %c0_27 = arith.constant 0 : index
      %c0_28 = arith.constant 0 : index
      %54 = vector.load %arg10[%c0_27, %c0_28] : memref<34x256xbf16, #tpu.memory_space<vmem>>, vector<34x256xbf16>
      tpu.vector_store %arg10[%c0_27, %c0_28], %53 {strides = array<i32>} : memref<34x256xbf16, #tpu.memory_space<vmem>>, vector<34x256xbf16>,
      %cst_29 = arith.constant 0.000000e+00 : f32
      %55 = vector.broadcast %cst_29 : f32 to vector<34x256xf32>
      %c0_30 = arith.constant 0 : index
      %c0_31 = arith.constant 0 : index
      %56 = vector.load %arg11[%c0_30, %c0_31] : memref<34x256xf32, #tpu.memory_space<vmem>>, vector<34x256xf32>
      tpu.vector_store %arg11[%c0_30, %c0_31], %55 {strides = array<i32>} : memref<34x256xf32, #tpu.memory_space<vmem>>, vector<34x256xf32>,
    } else {
    }
    %c0 = arith.constant 0 : index
    %c0_1 = arith.constant 0 : index
    %3 = vector.load %arg10[%c0, %c0_1] : memref<34x256xbf16, #tpu.memory_space<vmem>>, vector<34x256xbf16>
    %c0_2 = arith.constant 0 : index
    %c0_3 = arith.constant 0 : index
    %4 = vector.load %arg5[%c0_2, %c0_3] : memref<256x512xbf16, #tpu.memory_space<vmem>>, vector<256x512xbf16>
    %cst = arith.constant dense<0.000000e+00> : vector<34x512xf32>
    %5 = tpu.matmul %3, %4, %cst {dimension_numbers = #tpu.dot_dimension_numbers<[1], [0], [0], [1], [0, 0, 1, 1], [], []>} : vector<34x256xbf16>, vector<256x512xbf16>, vector<34x512xf32> -> vector<34x512xf32>
    %c0_4 = arith.constant 0 : index
    %c0_5 = arith.constant 0 : index
    %6 = vector.load %arg6[%c0_4, %c0_5] : memref<1x512xbf16, #tpu.memory_space<vmem>>, vector<1x512xbf16>
    %7 = arith.extf %6 : vector<1x512xbf16> to vector<1x512xf32>
    %8 = vector.broadcast %7 : vector<1x512xf32> to vector<34x512xf32>
    %9 = arith.addf %5, %8 : vector<34x512xf32>
    %cst_6 = arith.constant 1.702000e+00 : f32
    %10 = vector.broadcast %cst_6 : f32 to vector<34x512xf32>
    %11 = arith.mulf %10, %9 : vector<34x512xf32>
    %12 = arith.negf %11 : vector<34x512xf32>
    %13 = math.exp %12 : vector<34x512xf32>
    %cst_7 = arith.constant 1.000000e+00 : f32
    %14 = vector.broadcast %cst_7 : f32 to vector<34x512xf32>
    %15 = arith.addf %14, %13 : vector<34x512xf32>
    %16 = arith.divf %14, %15 : vector<34x512xf32>
    %17 = arith.mulf %9, %16 : vector<34x512xf32>
    %c0_8 = arith.constant 0 : index
    %c0_9 = arith.constant 0 : index
    %18 = vector.load %arg11[%c0_8, %c0_9] : memref<34x256xf32, #tpu.memory_space<vmem>>, vector<34x256xf32>
    %19 = arith.truncf %17 : vector<34x512xf32> to vector<34x512xbf16>
    %c0_10 = arith.constant 0 : index
    %c0_11 = arith.constant 0 : index
    %20 = vector.load %arg7[%c0_10, %c0_11] : memref<512x256xbf16, #tpu.memory_space<vmem>>, vector<512x256xbf16>
    %cst_12 = arith.constant dense<0.000000e+00> : vector<34x256xf32>
    %21 = tpu.matmul %19, %20, %cst_12 {dimension_numbers = #tpu.dot_dimension_numbers<[1], [0], [0], [1], [0, 0, 1, 1], [], []>} : vector<34x512xbf16>, vector<512x256xbf16>, vector<34x256xf32> -> vector<34x256xf32>
    %22 = arith.addf %18, %21 : vector<34x256xf32>
    %c0_13 = arith.constant 0 : index
    %c0_14 = arith.constant 0 : index
    %23 = vector.load %arg11[%c0_13, %c0_14] : memref<34x256xf32, #tpu.memory_space<vmem>>, vector<34x256xf32>
    tpu.vector_store %arg11[%c0_13, %c0_14], %22 {strides = array<i32>} : memref<34x256xf32, #tpu.memory_space<vmem>>, vector<34x256xf32>,
    %c1_i32 = arith.constant 1 : i32
    %24 = arith.cmpi eq, %arg1, %c1_i32 : i32
    %25 = arith.extui %24 : i1 to i32
    %c0_i32_15 = arith.constant 0 : i32
    %26 = arith.cmpi ne, %25, %c0_i32_15 : i32
    scf.if %26 {
      %c0_16 = arith.constant 0 : index
      %c0_17 = arith.constant 0 : index
      %27 = vector.load %arg11[%c0_16, %c0_17] : memref<34x256xf32, #tpu.memory_space<vmem>>, vector<34x256xf32>
      %c0_18 = arith.constant 0 : index
      %c0_19 = arith.constant 0 : index
      %28 = vector.load %arg8[%c0_18, %c0_19] : memref<1x256xbf16, #tpu.memory_space<vmem>>, vector<1x256xbf16>
      %29 = arith.extf %28 : vector<1x256xbf16> to vector<1x256xf32>
      %30 = vector.broadcast %29 : vector<1x256xf32> to vector<34x256xf32>
      %31 = arith.addf %27, %30 : vector<34x256xf32>
      %c0_20 = arith.constant 0 : index
      %c0_21 = arith.constant 0 : index
      %32 = vector.load %arg2[%c0_20, %c0_21] : memref<34x256xbf16, #tpu.memory_space<vmem>>, vector<34x256xbf16>
      %33 = arith.extf %32 : vector<34x256xbf16> to vector<34x256xf32>
      %34 = arith.addf %31, %33 : vector<34x256xf32>
      %35 = arith.truncf %34 : vector<34x256xf32> to vector<34x256xbf16>
      %c0_22 = arith.constant 0 : index
      %c0_23 = arith.constant 0 : index
      %36 = vector.load %arg9[%c0_22, %c0_23] : memref<34x256xbf16, #tpu.memory_space<vmem>>, vector<34x256xbf16>
      tpu.vector_store %arg9[%c0_22, %c0_23], %35 {strides = array<i32>} : memref<34x256xbf16, #tpu.memory_space<vmem>>, vector<34x256xbf16>,
    } else {
    }
    return
  }
  func.func @transform_0(%arg0: i32, %arg1: i32) -> (i32, i32) {
    %c0_i32 = arith.constant 0 : i32
    %c0_i32_0 = arith.constant 0 : i32
    return %arg0, %c0_i32 : i32, i32
  }
  func.func @transform_1(%arg0: i32, %arg1: i32) -> (i32, i32) {
    %c0_i32 = arith.constant 0 : i32
    %c0_i32_0 = arith.constant 0 : i32
    %c0_i32_1 = arith.constant 0 : i32
    return %c0_i32, %c0_i32_0 : i32, i32
  }
  func.func @transform_2(%arg0: i32, %arg1: i32) -> (i32, i32) {
    %c0_i32 = arith.constant 0 : i32
    %c0_i32_0 = arith.constant 0 : i32
    %c0_i32_1 = arith.constant 0 : i32
    return %c0_i32, %c0_i32_0 : i32, i32
  }
  func.func @transform_3(%arg0: i32, %arg1: i32) -> (i32, i32) {
    %c0_i32 = arith.constant 0 : i32
    %c0_i32_0 = arith.constant 0 : i32
    return %c0_i32, %arg1 : i32, i32
  }
  func.func @transform_4(%arg0: i32, %arg1: i32) -> (i32, i32) {
    %c0_i32 = arith.constant 0 : i32
    %c0_i32_0 = arith.constant 0 : i32
    return %c0_i32, %arg1 : i32, i32
  }
  func.func @transform_5(%arg0: i32, %arg1: i32) -> (i32, i32) {
    %c0_i32 = arith.constant 0 : i32
    %c0_i32_0 = arith.constant 0 : i32
    return %arg1, %c0_i32 : i32, i32
  }
  func.func @transform_6(%arg0: i32, %arg1: i32) -> (i32, i32) {
    %c0_i32 = arith.constant 0 : i32
    %c0_i32_0 = arith.constant 0 : i32
    %c0_i32_1 = arith.constant 0 : i32
    return %c0_i32, %c0_i32_0 : i32, i32
  }
  func.func @transform_7(%arg0: i32, %arg1: i32) -> (i32, i32) {
    %c0_i32 = arith.constant 0 : i32
    %c0_i32_0 = arith.constant 0 : i32
    return %arg0, %c0_i32 : i32, i32
  }
}

module attributes {stable_mosaic.version = 11 : i64} {
  func.func @_layernorm_kernel(%arg0: i32, %arg1: memref<2x256xbf16, #tpu.memory_space<vmem>>, %arg2: memref<1x256xbf16, #tpu.memory_space<vmem>>, %arg3: memref<1x256xbf16, #tpu.memory_space<vmem>>, %arg4: memref<2x256xbf16, #tpu.memory_space<vmem>>) attributes {dimension_semantics = [#tpu.dimension_semantics<parallel>], iteration_bounds = array<i64: 1>, scalar_prefetch = 0 : i64, scratch_operands = 0 : i64, tpu.core_type = #tpu.core_type<tc>, window_params = [{transform_indices = @transform_0, window_bounds = array<i64: 2, 256>}, {pipeline_mode = #tpu.pipeline_mode<synchronous>, transform_indices = @transform_1, window_bounds = array<i64: 1, 256>}, {pipeline_mode = #tpu.pipeline_mode<synchronous>, transform_indices = @transform_2, window_bounds = array<i64: 1, 256>}, {transform_indices = @transform_3, window_bounds = array<i64: 2, 256>}]} {
    %c0 = arith.constant 0 : index
    %c0_0 = arith.constant 0 : index
    %0 = vector.load %arg1[%c0, %c0_0] : memref<2x256xbf16, #tpu.memory_space<vmem>>, vector<2x256xbf16>
    %1 = arith.extf %0 : vector<2x256xbf16> to vector<2x256xf32>
    %cst = arith.constant dense<0.000000e+00> : vector<2xf32>
    %2 = vector.multi_reduction <add>, %1, %cst [1] : vector<2x256xf32> to vector<2xf32>
    %3 = vector.shape_cast %2 : vector<2xf32> to vector<2x1xf32>
    %cst_1 = arith.constant 2.560000e+02 : f32
    %4 = vector.broadcast %cst_1 : f32 to vector<2x1xf32>
    %5 = arith.divf %3, %4 : vector<2x1xf32>
    %6 = vector.broadcast %5 : vector<2x1xf32> to vector<2x256xf32>
    %7 = arith.subf %1, %6 : vector<2x256xf32>
    %8 = arith.mulf %7, %7 : vector<2x256xf32>
    %cst_2 = arith.constant dense<0.000000e+00> : vector<2xf32>
    %9 = vector.multi_reduction <add>, %8, %cst_2 [1] : vector<2x256xf32> to vector<2xf32>
    %10 = vector.shape_cast %9 : vector<2xf32> to vector<2x1xf32>
    %cst_3 = arith.constant 2.560000e+02 : f32
    %11 = vector.broadcast %cst_3 : f32 to vector<2x1xf32>
    %12 = arith.divf %10, %11 : vector<2x1xf32>
    %cst_4 = arith.constant 9.99999974E-6 : f32
    %13 = vector.broadcast %cst_4 : f32 to vector<2x1xf32>
    %14 = arith.addf %12, %13 : vector<2x1xf32>
    %15 = math.rsqrt %14 : vector<2x1xf32>
    %16 = vector.broadcast %15 : vector<2x1xf32> to vector<2x256xf32>
    %17 = arith.mulf %7, %16 : vector<2x256xf32>
    %c0_5 = arith.constant 0 : index
    %c0_6 = arith.constant 0 : index
    %18 = vector.load %arg2[%c0_5, %c0_6] : memref<1x256xbf16, #tpu.memory_space<vmem>>, vector<1x256xbf16>
    %19 = arith.extf %18 : vector<1x256xbf16> to vector<1x256xf32>
    %20 = vector.broadcast %19 : vector<1x256xf32> to vector<2x256xf32>
    %21 = arith.mulf %17, %20 : vector<2x256xf32>
    %c0_7 = arith.constant 0 : index
    %c0_8 = arith.constant 0 : index
    %22 = vector.load %arg3[%c0_7, %c0_8] : memref<1x256xbf16, #tpu.memory_space<vmem>>, vector<1x256xbf16>
    %23 = arith.extf %22 : vector<1x256xbf16> to vector<1x256xf32>
    %24 = vector.broadcast %23 : vector<1x256xf32> to vector<2x256xf32>
    %25 = arith.addf %21, %24 : vector<2x256xf32>
    %26 = arith.truncf %25 : vector<2x256xf32> to vector<2x256xbf16>
    %c0_9 = arith.constant 0 : index
    %c0_10 = arith.constant 0 : index
    %27 = vector.load %arg4[%c0_9, %c0_10] : memref<2x256xbf16, #tpu.memory_space<vmem>>, vector<2x256xbf16>
    tpu.vector_store %arg4[%c0_9, %c0_10], %26 {strides = array<i32>} : memref<2x256xbf16, #tpu.memory_space<vmem>>, vector<2x256xbf16>,
    return
  }
  func.func @transform_0(%arg0: i32) -> (i32, i32) {
    %c0_i32 = arith.constant 0 : i32
    %c0_i32_0 = arith.constant 0 : i32
    return %arg0, %c0_i32 : i32, i32
  }
  func.func @transform_1(%arg0: i32) -> (i32, i32) {
    %c0_i32 = arith.constant 0 : i32
    %c0_i32_0 = arith.constant 0 : i32
    %c0_i32_1 = arith.constant 0 : i32
    return %c0_i32, %c0_i32_0 : i32, i32
  }
  func.func @transform_2(%arg0: i32) -> (i32, i32) {
    %c0_i32 = arith.constant 0 : i32
    %c0_i32_0 = arith.constant 0 : i32
    %c0_i32_1 = arith.constant 0 : i32
    return %c0_i32, %c0_i32_0 : i32, i32
  }
  func.func @transform_3(%arg0: i32) -> (i32, i32) {
    %c0_i32 = arith.constant 0 : i32
    %c0_i32_0 = arith.constant 0 : i32
    return %arg0, %c0_i32 : i32, i32
  }
}

</mosaic_0001>

<bundles_post_ra>
// kernel: clip_vision_transformer.11
= control target key start
LH: loop header
LB: loop body
LE: loop exit
PB: predicated region body
PF: predicated region fallthrough
CT: control target
= control target key end

     0   :  { %s725_s12 = smov 0   ;;  %s727_s13 = smov 0   ;;  %s847_s0 = inlined_call_operand.vmem [shape: bf16[2,16,192], index: 0, kind: input, shape index: {}]   ;;  %s848_s1 = inlined_call_operand.vmem [shape: bf16[192,256], index: 1, kind: input, shape index: {}]   ;;  %s849_s2 = inlined_call_operand.vmem [shape: bf16[16,256], index: 2, kind: input, shape index: {}]   ;;  %s850_s3 = inlined_call_operand.vmem [shape: bf16[2,16,256], index: 3, kind: output, shape index: {}]  }
   0x1   :  { %s729_s14 = smov 0  }
   0x2 LB: > { %s25_s15 = sadd.s32 1, %s699_s13  ;;  %p578_p0 = scmp.ge.s32.totalorder %s703_s14, 1  ;;  %s703_s14 = sphi %s729_s14, %s13_s14   ;;  %s699_s13 = sphi %s727_s13, %s852_s13   ;;  %s695_s12 = sphi %s725_s12, %s851_s12  }
   0x3   : > { %p27_p1 = scmp.ge.s32.totalorder %s25_s15, 2  ;;  %p173_p2 = scmp.lt.s32.totalorder %s703_s14, 3 }
   0x5   : > { %s854_s15 = smov (%p27_p1, %s25_s15), 0  ;;  %p174_p3 = pnand %p578_p0, %p173_p2 }
   0x6   : > { %v642_v0 = vld [vmem:[%s848_s1 + $0x4] ss:$8 sps:$4 sm:$0xff] (!%p174_p3)   ;;  %v644_v1 = vld [vmem:[%s848_s1] ss:$8 sps:$4 sm:$0xff] (!%p174_p3)   ;;  %v645_v2 = vld [vmem:[%s848_s1 + $0x14] ss:$8 sps:$4 sm:$0xff] (!%p174_p3)  }
   0x7   : > { %177 = sbr.rel (%p174_p3) target bundleno = 275 (0x113), region = 32  ;;  %404 = vmatprep.subr.bf16.mxu0 (!%p174_p3), %v642_v0  ;;  %v647_v3 = vld [vmem:[%s848_s1 + $0x10] ss:$8 sps:$4 sm:$0xff] (!%p174_p3)   ;;  %p211_p4 = scmp.lt.s32.totalorder (!%p174_p3), %s695_s12, 1  ;;  %v648_v4 = vld [vmem:[%s848_s1 + $0x24] ss:$8 sps:$4 sm:$0xff] (!%p174_p3)  }
   0x8   : > { %405 = vmatpush1.bf16.msra.mxu0 (!%p174_p3), %v644_v1  ;;  %v650_v5 = vld [vmem:[%s848_s1 + $0x20] ss:$8 sps:$4 sm:$0xff] (!%p174_p3)   ;;  %v651_v6 = vld [vmem:[%s848_s1 + $0x34] ss:$8 sps:$4 sm:$0xff] (!%p174_p3)   ;;  %v653_v7 = vld [vmem:[%s848_s1 + $0x30] ss:$8 sps:$4 sm:$0xff] (!%p174_p3)  }
   0x9   : > { %406 = vmatprep.subr.bf16.mxu0 (!%p174_p3), %v645_v2  ;;  %v654_v8 = vld [vmem:[%s848_s1 + $0x44] ss:$8 sps:$4 sm:$0xff] (!%p174_p3)   ;;  %v656_v9 = vld [vmem:[%s848_s1 + $0x40] ss:$8 sps:$4 sm:$0xff] (!%p174_p3)   ;;  %v657_v10 = vld [vmem:[%s848_s1 + $0x54] ss:$8 sps:$4 sm:$0xff] (!%p174_p3)  }
   0xa   : > { %vm400_vm0 = vcmask (!%p174_p3), 523264   ;;  %v659_v12 = vld [vmem:[%s848_s1 + $0x50] ss:$8 sps:$4 sm:$0xff] (!%p174_p3)   ;;  %v660_v13 = vld [vmem:[%s848_s1 + $0x64] ss:$8 sps:$4 sm:$0xff] (!%p174_p3)  }
   0xb   : > { %v662_v14 = vld [vmem:[%s848_s1 + $0x60] ss:$8 sps:$4 sm:$0xff] (!%p174_p3)   ;;  %v663_v15 = vld [vmem:[%s848_s1 + $0x74] ss:$8 sps:$4 sm:$0xff] (!%p174_p3)   ;;  %v665_v16 = vld [vmem:[%s848_s1 + $0x70] ss:$8 sps:$4 sm:$0xff] (!%p174_p3)  }
   0xc   : > { %407 = vmatpush1.bf16.msra.mxu0 (!%p174_p3), %v647_v3  ;;  %v666_v17 = vld [vmem:[%s848_s1 + $0x84] ss:$8 sps:$4 sm:$0xff] (!%p174_p3)   ;;  %v668_v18 = vld [vmem:[%s848_s1 + $0x80] ss:$8 sps:$4 sm:$0xff] (!%p174_p3)   ;;  %v669_v19 = vld [vmem:[%s848_s1 + $0x94] ss:$8 sps:$4 sm:$0xff] (!%p174_p3)  }
   0xd   : > { %408 = vmatprep.subr.bf16.mxu0 (!%p174_p3), %v648_v4  ;;  %v671_v20 = vld [vmem:[%s848_s1 + $0x90] ss:$8 sps:$4 sm:$0xff] (!%p174_p3)   ;;  %v672_v21 = vld [vmem:[%s848_s1 + $0xa4] ss:$8 sps:$4 sm:$0xff] (!%p174_p3)   ;;  %v674_v22 = vld [vmem:[%s848_s1 + $0xa0] ss:$8 sps:$4 sm:$0xff] (!%p174_p3)  }
   0xe   : > { %s856_s12 = smov (!%p211_p4, %s695_s12), 1  ;;  %v675_v23 = vld [vmem:[%s848_s1 + $0xb4] ss:$8 sps:$4 sm:$0xff]   ;;  %v677_v24 = vld [vmem:[%s848_s1 + $0xb0] ss:$8 sps:$4 sm:$0xff]   ;;  %v265_v26 = vld [vmem:[%s849_s2] sm:$0xff] }
   0xf   : > { %s614_s5 = sshll.u32 %s856_s12, 4  ;;  %v266_v27 = vld [vmem:[%s849_s2 + $0x8] sm:$0xff]  ;;  %v267_v28 = vunpack.c.l.bf16 %v265_v26  ;;  %v268_v29 = vunpack.c.h.bf16 %v265_v26 }
  0x10   : > { %409 = vmatpush1.bf16.msra.mxu0 %v650_v5  ;;  %s778_s10 = scalar_lea.vmem %s847_s0, %s614_s5  ;;  %v269_v30 = vunpack.c.l.bf16 %v266_v27  ;;  %v270_v32 = vunpack.c.h.bf16 %v266_v27  ;;  %s236_s29 = scalar_lea.vmem %s850_s3, %s614_s5 }
  0x11   : > { %410 = vmatprep.subr.bf16.mxu0 %v651_v6  ;;  %v680_v11 = vld [vmem:[%s778_s10 + $0x4] ss:$8 sps:$4 sm:$0xff]   ;;  %v678_v25 = vld [vmem:[%s778_s10] ss:$8 sps:$4 sm:$0xff]  }
  0x12   : > { %609 = vmatprep.mubr.msk.bf16.mxu0 %vm400_vm0, %v680_v11 }
  0x14   : > { %411 = vmatpush1.bf16.msra.mxu0 %v653_v7 }
  0x15   : > { %412 = vmatprep.subr.bf16.mxu0 %v654_v8 }
  0x18   : > { %413 = vmatpush1.bf16.msra.mxu0 %v656_v9 }
  0x19   : > { %414 = vmatprep.subr.bf16.mxu0 %v657_v10 }
  0x1c   : > { %415 = vmatpush1.bf16.msra.mxu0 %v659_v12 }
  0x1d   : > { %416 = vmatprep.subr.bf16.mxu0 %v660_v13 }
  0x20   : > { %417 = vmatpush1.bf16.msra.mxu0 %v662_v14 }
  0x21   : > { %418 = vmatprep.subr.bf16.mxu0 %v663_v15 }
  0x24   : > { %419 = vmatpush1.bf16.msra.mxu0 %v665_v16 }
  0x25   : > { %420 = vmatprep.subr.bf16.mxu0 %v666_v17 }
  0x28   : > { %421 = vmatpush1.bf16.msra.mxu0 %v668_v18 }
  0x29   : > { %422 = vmatprep.subr.bf16.mxu0 %v669_v19 }
  0x2c   : > { %423 = vmatpush1.bf16.msra.mxu0 %v671_v20 }
  0x2d   : > { %424 = vmatprep.subr.bf16.mxu0 %v672_v21 }
  0x30   : > { %425 = vmatpush1.bf16.msra.mxu0 %v674_v22 }
  0x31   : > { %426 = vmatprep.subr.bf16.mxu0 %v675_v23 }
  0x34   : > { %427 = vmatpush1.bf16.msra.mxu0 %v677_v24 }
  0x37   : > { %437 = vmatmul.mubr.bf16.vlgmr.msra.gmra.mrb[0].mxu0 %v678_v25 }
 0x10a   : > { %v438_v31 = vpop.f32.mrb[0].mxu0 }
 0x10b   : > { %v439_v33 = vadd.f32 %v438_v31, %v267_v28  ;;  %v440_v34 = vpop.f32.mrb[1].mxu0 }
 0x10c   : > { %v441_v35 = vadd.f32 %v440_v34, %v268_v29  ;;  %v442_v36 = vpop.f32.mrb[2].mxu0 }
 0x10d   : > { %v443_v37 = vadd.f32 %v442_v36, %v269_v30  ;;  %v444_v38 = vpop.f32.mrb[3].mxu0 }
 0x10e   : > { %v616_v39 = vpack.c.bf16 %v441_v35, %v439_v33  ;;  %v445_v40 = vadd.f32 %v444_v38, %v270_v32 }
 0x110   : > { %459 = vst [vmem:[%s236_s29] sm:$0xff] %v616_v39  ;;  %v617_v41 = vpack.c.bf16 %v445_v40, %v443_v37 }
 0x112   : > { %460 = vst [vmem:[%s236_s29 + $0x8] sm:$0xff] %v617_v41 }
 0x113 PF: > { %s13_s14 = sadd.s32 1, %s703_s14   ;;  %s851_s12 = smov %s699_s13 }
 0x114   : > { %p10_p5 = scmp.ge.s32.totalorder %s13_s14, 4   ;;  %s852_s13 = smov %s854_s15 }
 0x116   :  { %12 = sbr.rel (!%p10_p5) target bundleno = 2 (0x2), region = 68 }

// kernel: clip_vision_transformer.12
= control target key start
LH: loop header
LB: loop body
LE: loop exit
PB: predicated region body
PF: predicated region fallthrough
CT: control target
= control target key end

     0   :  { %vm41_vm0 = vcmask 1041408   ;;  %v118_v59 = vlaneseq  ;;  %s348_s0 = inlined_call_operand.vmem [shape: bf16[34,256], index: 0, kind: input, shape index: {}]   ;;  %s349_s1 = inlined_call_operand.vmem [shape: bf16[1,256], index: 1, kind: input, shape index: {}]   ;;  %s350_s2 = inlined_call_operand.vmem [shape: bf16[1,256], index: 2, kind: input, shape index: {}]   ;;  %s351_s3 = inlined_call_operand.vmem [shape: bf16[34,256], index: 3, kind: output, shape index: {}]  }
   0x1   :  { %v15_v0 = vld [vmem:[%s348_s0 + $0x8] sm:$0xff]  ;;  %v14_v1 = vld [vmem:[%s348_s0] sm:$0xff]  ;;  %v16_v2 = vld [vmem:[%s348_s0 + $0x10] sm:$0xff] }
   0x2   :  { %v21_v3 = vunpack.c.l.bf16 %v15_v0  ;;  %v22_v4 = vunpack.c.h.bf16 %v15_v0  ;;  %v19_v5 = vunpack.c.l.bf16 %v14_v1  ;;  %v20_v6 = vunpack.c.h.bf16 %v14_v1  ;;  %v18_v7 = vld [vmem:[%s348_s0 + $0x20] sm:$0x11]  ;;  %v17_v12 = vld [vmem:[%s348_s0 + $0x18] sm:$0xff] }
   0x3   :  { %v23_v8 = vunpack.c.l.bf16 %v16_v2  ;;  %v24_v9 = vunpack.c.h.bf16 %v16_v2  ;;  %v27_v10 = vunpack.c.l.bf16 %v18_v7  ;;  %v28_v11 = vunpack.c.h.bf16 %v18_v7  ;;  %v115_v1 = vld [vmem:[%s349_s1] sm:$0x3] }
   0x4   :  { %v32_v13 = vadd.f32 %v22_v4, %v21_v3  ;;  %v29_v14 = vadd.f32 %v20_v6, %v19_v5  ;;  %v25_v19 = vunpack.c.l.bf16 %v17_v12  ;;  %v26_v20 = vunpack.c.h.bf16 %v17_v12 }
   0x5   :  { %v42_v15 = vsel %vm41_vm0, %v27_v10, 0.0  ;;  %v43_v16 = vsel %vm41_vm0, %v28_v11, 0.0  ;;  %v35_v17 = vadd.f32 %v24_v9, %v23_v8  ;;  %v119_v0 = vshrl.u32 %v118_v59, 7 }
   0x6   :  { %33 = vadd.xlane.f32.xlu1 %v32_v13  ;;  %30 = vadd.xlane.f32.xlu0 %v29_v14  ;;  %v44_v18 = vadd.f32 %v43_v16, %v42_v15  ;;  %v38_v21 = vadd.f32 %v26_v20, %v25_v19  ;;  %v116_v7 = vunpack.c.l.bf16 %v115_v1 }
   0xa   :  { %36 = vadd.xlane.f32.xlu1 %v35_v17  ;;  %45 = vadd.xlane.f32.xlu0 %v44_v18 }
   0xe   :  { %39 = vadd.xlane.f32.xlu0 %v38_v21 }
  0x93   :  { %v34_v22 = vpop.xlane.xlu1 %33  ;;  %v31_v23 = vpop.xlane.xlu0 %30 }
  0x94   :  { %v49_v24 = vmul.f32 0.00390625, %v34_v22  ;;  %v48_v25 = vmul.f32 0.00390625, %v31_v23 }
  0x96   :  { %v275_v26 = vsub.f32 %v21_v3, %v49_v24  ;;  %v277_v27 = vsub.f32 %v22_v4, %v49_v24  ;;  %v279_v28 = vsub.f32 %v19_v5, %v48_v25  ;;  %v281_v29 = vsub.f32 %v20_v6, %v48_v25  ;;  %v146_v5 = vld [vmem:[%s350_s2] sm:$0x3] }
  0x97   :  { %v37_v30 = vpop.xlane.xlu1 %36  ;;  %v46_v31 = vpop.xlane.xlu0 %45  ;;  %v147_v12 = vunpack.c.l.bf16 %v146_v5 }
  0x98   :  { %v50_v32 = vmul.f32 0.00390625, %v37_v30  ;;  %v52_v33 = vmul.f32 0.00390625, %v46_v31  ;;  %v65_v34 = vmul.f32 %v275_v26, %v275_v26  ;;  %v66_v35 = vmul.f32 %v277_v27, %v277_v27 }
  0x99   :  { %v63_v36 = vmul.f32 %v279_v28, %v279_v28  ;;  %v64_v37 = vmul.f32 %v281_v29, %v281_v29 }
  0x9a   :  { %v291_v38 = vsub.f32 %v23_v8, %v50_v32  ;;  %v293_v39 = vsub.f32 %v24_v9, %v50_v32  ;;  %v295_v40 = vsub.f32 %v27_v10, %v52_v33  ;;  %v297_v41 = vsub.f32 %v28_v11, %v52_v33 }
  0x9b   :  { %v40_v42 = vpop.xlane.xlu0 %39  ;;  %v76_v43 = vadd.f32 %v66_v35, %v65_v34  ;;  %v73_v44 = vadd.f32 %v64_v37, %v63_v36  ;;  %v120_v8 = vsub.s32 0, %v119_v0  ;;  %v124_v9 = vsub.s32 2, %v119_v0 }
  0x9c   :  { %v51_v45 = vmul.f32 0.00390625, %v40_v42  ;;  %v67_v46 = vmul.f32 %v291_v38, %v291_v38  ;;  %v68_v47 = vmul.f32 %v293_v39, %v293_v39  ;;  %v71_v48 = vmul.f32 %v295_v40, %v295_v40 }
  0x9d   :  { %77 = vadd.xlane.f32.xlu0 %v76_v43  ;;  %74 = vadd.xlane.f32.xlu1 %v73_v44  ;;  %v72_v49 = vmul.f32 %v297_v41, %v297_v41  ;;  %v121_v16 = vrot.slane %v116_v7, %v120_v8  ;;  %v125_v17 = vrot.slane %v116_v7, %v124_v9 }
  0x9e   :  { %v307_v50 = vsub.f32 %v25_v19, %v51_v45  ;;  %v309_v51 = vsub.f32 %v26_v20, %v51_v45  ;;  %v79_v52 = vadd.f32 %v68_v47, %v67_v46  ;;  %v85_v53 = vsel %vm41_vm0, %v71_v48, 0.0 }
  0x9f   :  { %v86_v54 = vsel %vm41_vm0, %v72_v49, 0.0  ;;  %v152_v20 = vrot.slane %v147_v12, %v120_v8  ;;  %v156_v21 = vrot.slane %v147_v12, %v124_v9  ;;  %v131_v22 = vrot.slane %v121_v16, %v120_v8 }
  0xa0   :  { %v69_v55 = vmul.f32 %v307_v50, %v307_v50  ;;  %v70_v56 = vmul.f32 %v309_v51, %v309_v51  ;;  %v87_v58 = vadd.f32 %v86_v54, %v85_v53  ;;  %v135_v23 = vrot.slane %v125_v17, %v120_v8 }
  0xa1   :  { %80 = vadd.xlane.f32.xlu1 %v79_v52  ;;  %v162_v30 = vrot.slane %v152_v20, %v120_v8  ;;  %v166_v31 = vrot.slane %v156_v21, %v120_v8 }
  0xa2   :  { %v82_v57 = vadd.f32 %v70_v56, %v69_v55 }
  0xa4   :  { %83 = vadd.xlane.f32.xlu0 %v82_v57 }
  0xa5   :  { %88 = vadd.xlane.f32.xlu1 %v87_v58 }
 0x12a   :  { %v75_v60 = vpop.xlane.xlu1 %74  ;;  %v78_v61 = vpop.xlane.xlu0 %77 }
 0x12b   :  { %v90_v62 = vmul.f32 0.00390625, %v75_v60  ;;  %v91_v63 = vmul.f32 0.00390625, %v78_v61 }
 0x12d   :  { %v95_v2 = vadd.f32 1e-05, %v90_v62  ;;  %v96_v3 = vadd.f32 1e-05, %v91_v63 }
 0x12e   :  { %v81_v4 = vpop.xlane.xlu1 %80 }
 0x12f   :  { %228 = vrsqrt.f32 %v95_v2  ;;  %v92_v6 = vmul.f32 0.00390625, %v81_v4 }
 0x130   :  { %230 = vrsqrt.f32 %v96_v3 }
 0x131   :  { %v97_v10 = vadd.f32 1e-05, %v92_v6  ;;  %v84_v11 = vpop.xlane.xlu0 %83 }
 0x132   :  { %v89_v13 = vpop.xlane.xlu1 %88  ;;  %v93_v14 = vmul.f32 0.00390625, %v84_v11 }
 0x133   :  { %232 = vrsqrt.f32 %v97_v10  ;;  %v94_v15 = vmul.f32 0.00390625, %v89_v13 }
 0x134   :  { %v98_v18 = vadd.f32 1e-05, %v93_v14 }
 0x135   :  { %v99_v19 = vadd.f32 1e-05, %v94_v15 }
 0x136   :  { %234 = vrsqrt.f32 %v98_v18 }
 0x137   :  { %236 = vrsqrt.f32 %v99_v19 }
 0x139   :  { %v229_v24 = vpop.eup %228 }
 0x13a   :  { %v231_v25 = vpop.eup %230  ;;  %v105_v32 = vmul.f32 %v229_v24, %v279_v28  ;;  %v106_v33 = vmul.f32 %v229_v24, %v281_v29 }
 0x13b   :  { %v107_v34 = vmul.f32 %v231_v25, %v275_v26  ;;  %v108_v35 = vmul.f32 %v231_v25, %v277_v27 }
 0x13c   :  { %v136_v36 = vmul.f32 %v131_v22, %v105_v32  ;;  %v137_v37 = vmul.f32 %v135_v23, %v106_v33 }
 0x13d   :  { %v233_v42 = vpop.eup %232  ;;  %v138_v43 = vmul.f32 %v131_v22, %v107_v34  ;;  %v139_v44 = vmul.f32 %v135_v23, %v108_v35 }
 0x13e   :  { %v167_v45 = vadd.f32 %v162_v30, %v136_v36  ;;  %v168_v46 = vadd.f32 %v166_v31, %v137_v37  ;;  %v109_v47 = vmul.f32 %v233_v42, %v291_v38  ;;  %v110_v48 = vmul.f32 %v233_v42, %v293_v39 }
 0x13f   :  { %v169_v49 = vadd.f32 %v162_v30, %v138_v43  ;;  %v170_v52 = vadd.f32 %v166_v31, %v139_v44 }
 0x140   :  { %v235_v28 = vpop.eup %234  ;;  %v223_v53 = vpack.c.bf16 %v168_v46, %v167_v45  ;;  %v140_v29 = vmul.f32 %v131_v22, %v109_v47  ;;  %v141_v54 = vmul.f32 %v135_v23, %v110_v48 }
 0x141   :  { %v237_v26 = vpop.eup %236  ;;  %v224_v55 = vpack.c.bf16 %v170_v52, %v169_v49  ;;  %v111_v27 = vmul.f32 %v235_v28, %v307_v50  ;;  %v112_v56 = vmul.f32 %v235_v28, %v309_v51 }
 0x142   :  { %209 = vst [vmem:[%s351_s3] sm:$0xff] %v223_v53  ;;  %v171_v57 = vadd.f32 %v162_v30, %v140_v29  ;;  %v172_v38 = vadd.f32 %v166_v31, %v141_v54  ;;  %v113_v39 = vmul.f32 %v237_v26, %v295_v40  ;;  %v114_v58 = vmul.f32 %v237_v26, %v297_v41 }
 0x143   :  { %210 = vst [vmem:[%s351_s3 + $0x8] sm:$0xff] %v224_v55  ;;  %v142_v59 = vmul.f32 %v131_v22, %v111_v27  ;;  %v143_v60 = vmul.f32 %v135_v23, %v112_v56 }
 0x144   :  { %v225_v61 = vpack.c.bf16 %v172_v38, %v171_v57  ;;  %v144_v50 = vmul.f32 %v131_v22, %v113_v39  ;;  %v145_v62 = vmul.f32 %v135_v23, %v114_v58 }
 0x145   :  { %v173_v51 = vadd.f32 %v162_v30, %v142_v59  ;;  %v174_v63 = vadd.f32 %v166_v31, %v143_v60 }
 0x146   :  { %211 = vst [vmem:[%s351_s3 + $0x10] sm:$0xff] %v225_v61  ;;  %v175_v0 = vadd.f32 %v162_v30, %v144_v50  ;;  %v176_v1 = vadd.f32 %v166_v31, %v145_v62 }
 0x147   :  { %v226_v40 = vpack.c.bf16 %v174_v63, %v173_v51 }
 0x148   :  { %v227_v2 = vpack.c.bf16 %v176_v1, %v175_v0 }
 0x149   :  { %212 = vst [vmem:[%s351_s3 + $0x18] sm:$0xff] %v226_v40 }
 0x14a   :  { %213 = vst [vmem:[%s351_s3 + $0x20] sm:$0x11] %v227_v2 }

// kernel: clip_vision_transformer.13
= control target key start
LH: loop header
LB: loop body
LE: loop exit
PB: predicated region body
PF: predicated region fallthrough
CT: control target
= control target key end

     0   :  { %s4931_s0 = inlined_call_operand.vmem [shape: bf16[34,256], index: 0, kind: input, shape index: {}]   ;;  %s4932_s1 = inlined_call_operand.vmem [shape: bf16[1,256], index: 1, kind: input, shape index: {}]   ;;  %s4933_s2 = inlined_call_operand.vmem [shape: bf16[1,256], index: 2, kind: input, shape index: {}]   ;;  %s4934_s3 = inlined_call_operand.vmem [shape: bf16[256,768], index: 3, kind: input, shape index: {}]   ;;  %s4935_s4 = inlined_call_operand.vmem [shape: bf16[1,768], index: 4, kind: input, shape index: {}]   ;;  %s4936_s5 = inlined_call_operand.vmem [shape: bf16[34,768], index: 5, kind: output, shape index: {}]  }
   0x1   :  { %4938 = sst [smem:[#allocation6_spill]] %s4934_s3 }
   0x2   :  { %s3509_s18 = smov 0   ;;  %s3511_s19 = smov 0  }
   0x3   :  { %s3513_s20 = smov 0   ;;  %s3515_s21 = smov 0  }
   0x4   :  { %s3517_s22 = smov 0  }
   0x5 LB: > { %s24_s23 = sadd.s32 1, %s3341_s21  ;;  %s2591_s24 = sadd.s32 4294967295, %s3345_s22   ;;  %s3345_s22 = sphi %s3517_s22, %s15_s22   ;;  %s3341_s21 = sphi %s3515_s21, %s4978_s21   ;;  %s3337_s20 = sphi %s3513_s20, %s4977_s20   ;;  %s3333_s19 = sphi %s3511_s19, %s4976_s19   ;;  %s3329_s18 = sphi %s3509_s18, %s4975_s18  }
   0x6   : > { %p25_p0 = scmp.ge.s32.totalorder %s24_s23, 2  ;;  %p109_p1 = scmp.ne.s32.totalorder %s3333_s19, %s3329_s18 }
   0x7   : > { %p110_p2 = scmp.eq.s32.totalorder %s3345_s22, 0  ;;  %p167_p4 = scmp.eq.s32.totalorder %s2591_s24, 1 }
   0x8   : > { %s4980_s23 = smov (%p25_p0, %s24_s23), 0  ;;  %s102_s26 = sadd.s32 1, %s3333_s19 }
   0x9   : > { %4939 = sst [smem:[#allocation5_spill]] %s4980_s23  ;;  %p111_p3 = por %p110_p2, %p109_p1 }
   0xa   : > { %s99_s25 = ssub.s32 %s3341_s21, %s4980_s23  ;;  %p3544_p6 = por %p167_p4, %p109_p1 }
   0xb   : > { %p100_p5 = scmp.eq.s32.totalorder %s99_s25, 0  ;;  %p2595_p7 = scmp.ge.s32.totalorder %s3345_s22, 2 }
   0xd   : > { %s3549_s28 = scalar_select %p100_p5, %s3333_s19, %s102_s26  }
   0xe   : > { %205 = sbr.rel (%p2595_p7) target bundleno = 263 (0x107), region = 28 }
  0x15   : > { %208 = sbr.rel (!%p111_p3) target bundleno = 263 (0x107), region = 32  ;;  %s210_s29 = sand.u32 (%p111_p3), 1, %s3333_s19  }
  0x16   : > { %s2597_s30 = sshll.u32 (%p111_p3), %s3341_s21, 2  ;;  %s2596_s6 = sshll.u32 (%p111_p3), %s210_s29, 9 }
  0x17   : > { %s214_s7 = ssub.s32 (%p111_p3), 6, %s2597_s30  ;;  %s2739_s8 = sshll.u32 (%p111_p3), %s3341_s21, 4 }
  0x18   : > { %p215_p8 = scmp.lt.s32.totalorder (%p111_p3), %s214_s7, 4  ;;  %s4941_s3 = sld [smem:[#allocation6_spill]] (%p111_p3) }
  0x19   : > { %s3562_s14 = scalar_lea.vmem (%p111_p3), [#allocation3], %s2596_s6  }
  0x1c   : > { %s4982_s7 = smov (!%p215_p8, %s214_s7), 4 }
  0x1d   : > { %s2598_s12 = sshll.u32 %s4982_s7, 11  ;;  %s3560_s13 = sshll.u32 %s4982_s7, 2 }
  0x1e   : > { %s3558_s11 = scalar_lea.vmem %s4941_s3, %s2739_s8   ;;  %p2602_p9 = scmp.eq.s32.totalorder %s2598_s12, 0 }
  0x1f   : > { %p225_p10 = scmp.lt.u32.totalorder (!%p2602_p9), %s3560_s13, 8 }
  0x20   : > { %224 = sbr.rel (%p2602_p9) target bundleno = 263 (0x107), region = 36 }
  0x27   : > { %228 = sbr.rel (%p225_p10) target bundleno = 228 (0xe4), region = 40  ;;  %s3566_s15 = sand.u32 (!%p225_p10), 7, %s3560_s13  }
  0x28   : > { %p306_p11 = scmp.eq.s32.totalorder (!%p225_p10), %s3566_s15, 0  ;;  %p2603_p12 = scmp.ne.s32.totalorder (!%p225_p10), %s3566_s15, 0 }
  0x2e   : > { %309 = sbr.rel (%p2603_p12) target bundleno = 120 (0x78), region = 55  ;;  %s310_s16 = sshrl.u32 (!%p2603_p12), %s3560_s13, 3 }
  0x2f   : > { %s3573_s17 = sshrl.u32 (!%p2603_p12), %s310_s16, 1 }
  0x30   : > { %p2604_p13 = scmp.le.s32.totalorder (!%p2603_p12), %s3573_s17, 0 }
  0x35   : > { %2440 = sbr.rel (%p2604_p13) target bundleno = 93 (0x5d), region = 247  ;;  %s4942_s24 = smov (!%p2604_p13), %s3562_s14 }
  0x36   : > { %s4943_s25 = smov (!%p2604_p13), %s3558_s11  ;;  %s3582_s26 = smov (!%p2604_p13), 0  }
  0x37   : > { %s3584_s29 = smov (!%p2604_p13), 0  }
  0x3c LB: >> { %v323_v0 = vld [vmem:[%s3353_s25] sm:$0xff]  ;;  %v325_v1 = vld [vmem:[%s3353_s25 + $0x8] sm:$0xff]  ;;  %v327_v2 = vld [vmem:[%s3353_s25 + $0x18] sm:$0xff]  ;;  %s451_s30 = sadd.s32 1, %s3357_s26  ;;  %s317_s29 = sadd.s32 1, %s3361_s29   ;;  %s3361_s29 = sphi %s3584_s29, %s317_s29   ;;  %s3357_s26 = sphi %s3582_s26, %s4946_s26   ;;  %s3353_s25 = sphi %s4943_s25, %s4945_s25   ;;  %s3349_s24 = sphi %s4942_s24, %s4944_s24  }
  0x3d   : >> { %324 = vst [vmem:[%s3349_s24] sm:$0xff] %v323_v0  ;;  %326 = vst [vmem:[%s3349_s24 + $0x8] sm:$0xff] %v325_v1  ;;  %v329_v3 = vld [vmem:[%s3353_s25 + $0x20] sm:$0xff]  ;;  %v331_v4 = vld [vmem:[%s3353_s25 + $0x30] sm:$0xff]  ;;  %p452_p0 = scmp.ge.s32.totalorder %s451_s30, %s3573_s17  ;;  %p316_p1 = scmp.ge.s32.totalorder %s317_s29, %s3573_s17 }
  0x3e   : >> { %328 = vst [vmem:[%s3349_s24 + $0x10] sm:$0xff] %v327_v2  ;;  %v333_v5 = vld [vmem:[%s3353_s25 + $0x38] sm:$0xff]  ;;  %330 = vst [vmem:[%s3349_s24 + $0x18] sm:$0xff] %v329_v3  ;;  %v335_v6 = vld [vmem:[%s3353_s25 + $0x48] sm:$0xff] }
  0x3f   : >> { %332 = vst [vmem:[%s3349_s24 + $0x20] sm:$0xff] %v331_v4  ;;  %334 = vst [vmem:[%s3349_s24 + $0x28] sm:$0xff] %v333_v5  ;;  %v337_v7 = vld [vmem:[%s3353_s25 + $0x50] sm:$0xff]  ;;  %v339_v8 = vld [vmem:[%s3353_s25 + $0x60] sm:$0xff]  ;;  %s4984_s30 = smov (%p452_p0, %s451_s30), 0 }
  0x40   : >> { %336 = vst [vmem:[%s3349_s24 + $0x30] sm:$0xff] %v335_v6  ;;  %338 = vst [vmem:[%s3349_s24 + $0x38] sm:$0xff] %v337_v7  ;;  %v341_v9 = vld [vmem:[%s3353_s25 + $0x68] sm:$0xff]  ;;  %v343_v10 = vld [vmem:[%s3353_s25 + $0x78] sm:$0xff]  ;;  %s2605_s6 = sshll.u32 %s4984_s30, 4  ;;  %s4946_s26 = smov %s4984_s30 }
  0x41   : >> { %340 = vst [vmem:[%s3349_s24 + $0x40] sm:$0xff] %v339_v8  ;;  %v345_v11 = vld [vmem:[%s3353_s25 + $0x80] sm:$0xff]  ;;  %342 = vst [vmem:[%s3349_s24 + $0x48] sm:$0xff] %v341_v9  ;;  %v347_v12 = vld [vmem:[%s3353_s25 + $0x90] sm:$0xff]  ;;  %s3640_s7 = scalar_lea.vmem %s3558_s11, %s2605_s6   ;;  %s3643_s8 = scalar_lea.vmem %s3562_s14, %s2605_s6 [#allocation3]  }
  0x42   : >> { %344 = vst [vmem:[%s3349_s24 + $0x50] sm:$0xff] %v343_v10  ;;  %346 = vst [vmem:[%s3349_s24 + $0x58] sm:$0xff] %v345_v11  ;;  %v349_v13 = vld [vmem:[%s3353_s25 + $0x98] sm:$0xff]  ;;  %v351_v14 = vld [vmem:[%s3353_s25 + $0xa8] sm:$0xff] }
  0x43   : >> { %348 = vst [vmem:[%s3349_s24 + $0x60] sm:$0xff] %v347_v12  ;;  %350 = vst [vmem:[%s3349_s24 + $0x68] sm:$0xff] %v349_v13  ;;  %v353_v15 = vld [vmem:[%s3353_s25 + $0xb0] sm:$0xff]  ;;  %v355_v16 = vld [vmem:[%s3353_s25 + $0xc0] sm:$0xff] }
  0x44   : >> { %352 = vst [vmem:[%s3349_s24 + $0x70] sm:$0xff] %v351_v14  ;;  %v357_v17 = vld [vmem:[%s3353_s25 + $0xc8] sm:$0xff]  ;;  %354 = vst [vmem:[%s3349_s24 + $0x78] sm:$0xff] %v353_v15  ;;  %v359_v18 = vld [vmem:[%s3353_s25 + $0xd8] sm:$0xff] }
  0x45   : >> { %356 = vst [vmem:[%s3349_s24 + $0x80] sm:$0xff] %v355_v16  ;;  %358 = vst [vmem:[%s3349_s24 + $0x88] sm:$0xff] %v357_v17  ;;  %v361_v19 = vld [vmem:[%s3353_s25 + $0xe0] sm:$0xff]  ;;  %v363_v20 = vld [vmem:[%s3353_s25 + $0xf0] sm:$0xff] }
  0x46   : >> { %360 = vst [vmem:[%s3349_s24 + $0x90] sm:$0xff] %v359_v18  ;;  %362 = vst [vmem:[%s3349_s24 + $0x98] sm:$0xff] %v361_v19  ;;  %v365_v21 = vld [vmem:[%s3353_s25 + $0xf8] sm:$0xff]  ;;  %v367_v22 = vld [vmem:[%s3353_s25 + $0x108] sm:$0xff] }
  0x47   : >> { %364 = vst [vmem:[%s3349_s24 + $0xa0] sm:$0xff] %v363_v20  ;;  %v369_v23 = vld [vmem:[%s3353_s25 + $0x110] sm:$0xff]  ;;  %366 = vst [vmem:[%s3349_s24 + $0xa8] sm:$0xff] %v365_v21  ;;  %v371_v24 = vld [vmem:[%s3353_s25 + $0x120] sm:$0xff] }
  0x48   : >> { %368 = vst [vmem:[%s3349_s24 + $0xb0] sm:$0xff] %v367_v22  ;;  %370 = vst [vmem:[%s3349_s24 + $0xb8] sm:$0xff] %v369_v23  ;;  %v373_v25 = vld [vmem:[%s3353_s25 + $0x128] sm:$0xff]  ;;  %v375_v26 = vld [vmem:[%s3353_s25 + $0x138] sm:$0xff] }
  0x49   : >> { %372 = vst [vmem:[%s3349_s24 + $0xc0] sm:$0xff] %v371_v24  ;;  %374 = vst [vmem:[%s3349_s24 + $0xc8] sm:$0xff] %v373_v25  ;;  %v377_v27 = vld [vmem:[%s3353_s25 + $0x140] sm:$0xff]  ;;  %v379_v28 = vld [vmem:[%s3353_s25 + $0x150] sm:$0xff] }
  0x4a   : >> { %376 = vst [vmem:[%s3349_s24 + $0xd0] sm:$0xff] %v375_v26  ;;  %v381_v29 = vld [vmem:[%s3353_s25 + $0x158] sm:$0xff]  ;;  %378 = vst [vmem:[%s3349_s24 + $0xd8] sm:$0xff] %v377_v27  ;;  %v383_v30 = vld [vmem:[%s3353_s25 + $0x168] sm:$0xff] }
  0x4b   : >> { %380 = vst [vmem:[%s3349_s24 + $0xe0] sm:$0xff] %v379_v28  ;;  %382 = vst [vmem:[%s3349_s24 + $0xe8] sm:$0xff] %v381_v29  ;;  %v385_v31 = vld [vmem:[%s3353_s25 + $0x170] sm:$0xff]  ;;  %v387_v32 = vld [vmem:[%s3353_s25 + $0x180] sm:$0xff] }
  0x4c   : >> { %384 = vst [vmem:[%s3349_s24 + $0xf0] sm:$0xff] %v383_v30  ;;  %386 = vst [vmem:[%s3349_s24 + $0xf8] sm:$0xff] %v385_v31  ;;  %v389_v33 = vld [vmem:[%s3353_s25 + $0x188] sm:$0xff]  ;;  %v391_v34 = vld [vmem:[%s3353_s25 + $0x198] sm:$0xff] }
  0x4d   : >> { %388 = vst [vmem:[%s3349_s24 + $0x100] sm:$0xff] %v387_v32  ;;  %v393_v35 = vld [vmem:[%s3353_s25 + $0x1a0] sm:$0xff]  ;;  %390 = vst [vmem:[%s3349_s24 + $0x108] sm:$0xff] %v389_v33  ;;  %v395_v36 = vld [vmem:[%s3353_s25 + $0x1b0] sm:$0xff] }
  0x4e   : >> { %392 = vst [vmem:[%s3349_s24 + $0x110] sm:$0xff] %v391_v34  ;;  %394 = vst [vmem:[%s3349_s24 + $0x118] sm:$0xff] %v393_v35  ;;  %v397_v37 = vld [vmem:[%s3353_s25 + $0x1b8] sm:$0xff]  ;;  %v399_v38 = vld [vmem:[%s3353_s25 + $0x1c8] sm:$0xff] }
  0x4f   : >> { %396 = vst [vmem:[%s3349_s24 + $0x120] sm:$0xff] %v395_v36  ;;  %398 = vst [vmem:[%s3349_s24 + $0x128] sm:$0xff] %v397_v37  ;;  %v401_v39 = vld [vmem:[%s3353_s25 + $0x1d0] sm:$0xff]  ;;  %v403_v40 = vld [vmem:[%s3353_s25 + $0x1e0] sm:$0xff] }
  0x50   : >> { %400 = vst [vmem:[%s3349_s24 + $0x130] sm:$0xff] %v399_v38  ;;  %v405_v41 = vld [vmem:[%s3353_s25 + $0x1e8] sm:$0xff]  ;;  %402 = vst [vmem:[%s3349_s24 + $0x138] sm:$0xff] %v401_v39  ;;  %v407_v42 = vld [vmem:[%s3353_s25 + $0x1f8] sm:$0xff] }
  0x51   : >> { %404 = vst [vmem:[%s3349_s24 + $0x140] sm:$0xff] %v403_v40  ;;  %406 = vst [vmem:[%s3349_s24 + $0x148] sm:$0xff] %v405_v41  ;;  %v409_v43 = vld [vmem:[%s3353_s25 + $0x200] sm:$0xff]  ;;  %v411_v44 = vld [vmem:[%s3353_s25 + $0x210] sm:$0xff] }
  0x52   : >> { %408 = vst [vmem:[%s3349_s24 + $0x150] sm:$0xff] %v407_v42  ;;  %410 = vst [vmem:[%s3349_s24 + $0x158] sm:$0xff] %v409_v43  ;;  %v413_v45 = vld [vmem:[%s3353_s25 + $0x218] sm:$0xff]  ;;  %v415_v46 = vld [vmem:[%s3353_s25 + $0x228] sm:$0xff] }
  0x53   : >> { %412 = vst [vmem:[%s3349_s24 + $0x160] sm:$0xff] %v411_v44  ;;  %v417_v47 = vld [vmem:[%s3353_s25 + $0x230] sm:$0xff]  ;;  %414 = vst [vmem:[%s3349_s24 + $0x168] sm:$0xff] %v413_v45  ;;  %v419_v48 = vld [vmem:[%s3353_s25 + $0x240] sm:$0xff] }
  0x54   : >> { %416 = vst [vmem:[%s3349_s24 + $0x170] sm:$0xff] %v415_v46  ;;  %418 = vst [vmem:[%s3349_s24 + $0x178] sm:$0xff] %v417_v47  ;;  %v421_v49 = vld [vmem:[%s3353_s25 + $0x248] sm:$0xff]  ;;  %v423_v50 = vld [vmem:[%s3353_s25 + $0x258] sm:$0xff] }
  0x55   : >> { %420 = vst [vmem:[%s3349_s24 + $0x180] sm:$0xff] %v419_v48  ;;  %422 = vst [vmem:[%s3349_s24 + $0x188] sm:$0xff] %v421_v49  ;;  %v425_v51 = vld [vmem:[%s3353_s25 + $0x260] sm:$0xff]  ;;  %v427_v52 = vld [vmem:[%s3353_s25 + $0x270] sm:$0xff] }
  0x56   : >> { %424 = vst [vmem:[%s3349_s24 + $0x190] sm:$0xff] %v423_v50  ;;  %v429_v53 = vld [vmem:[%s3353_s25 + $0x278] sm:$0xff]  ;;  %426 = vst [vmem:[%s3349_s24 + $0x198] sm:$0xff] %v425_v51  ;;  %v431_v54 = vld [vmem:[%s3353_s25 + $0x288] sm:$0xff]  ;;  %319 = sbr.rel (!%p316_p1) target bundleno = 60 (0x3c), region = 253 }
  0x57   : >> { %428 = vst [vmem:[%s3349_s24 + $0x1a0] sm:$0xff] %v427_v52  ;;  %430 = vst [vmem:[%s3349_s24 + $0x1a8] sm:$0xff] %v429_v53  ;;  %v433_v55 = vld [vmem:[%s3353_s25 + $0x290] sm:$0xff]  ;;  %v435_v56 = vld [vmem:[%s3353_s25 + $0x2a0] sm:$0xff] }
  0x58   : >> { %432 = vst [vmem:[%s3349_s24 + $0x1b0] sm:$0xff] %v431_v54  ;;  %434 = vst [vmem:[%s3349_s24 + $0x1b8] sm:$0xff] %v433_v55  ;;  %v437_v57 = vld [vmem:[%s3353_s25 + $0x2a8] sm:$0xff]  ;;  %v439_v58 = vld [vmem:[%s3353_s25 + $0x2b8] sm:$0xff] }
  0x59   : >> { %436 = vst [vmem:[%s3349_s24 + $0x1c0] sm:$0xff] %v435_v56  ;;  %v441_v59 = vld [vmem:[%s3353_s25 + $0x2c0] sm:$0xff]  ;;  %438 = vst [vmem:[%s3349_s24 + $0x1c8] sm:$0xff] %v437_v57  ;;  %v443_v60 = vld [vmem:[%s3353_s25 + $0x2d0] sm:$0xff] }
  0x5a   : >> { %440 = vst [vmem:[%s3349_s24 + $0x1d0] sm:$0xff] %v439_v58  ;;  %442 = vst [vmem:[%s3349_s24 + $0x1d8] sm:$0xff] %v441_v59  ;;  %v445_v61 = vld [vmem:[%s3353_s25 + $0x2d8] sm:$0xff]  ;;  %v447_v62 = vld [vmem:[%s3353_s25 + $0x2e8] sm:$0xff] }
  0x5b   : >> { %444 = vst [vmem:[%s3349_s24 + $0x1e0] sm:$0xff] %v443_v60  ;;  %446 = vst [vmem:[%s3349_s24 + $0x1e8] sm:$0xff] %v445_v61  ;;  %v449_v63 = vld [vmem:[%s3353_s25 + $0x2f0] sm:$0xff]  ;;  %s4945_s25 = smov %s3640_s7 }
  0x5c   : >> { %448 = vst [vmem:[%s3349_s24 + $0x1f0] sm:$0xff] %v447_v62  ;;  %450 = vst [vmem:[%s3349_s24 + $0x1f8] sm:$0xff] %v449_v63  ;;  %s4944_s24 = smov %s3643_s8 }
  0x5d PF: > { %s3749_s9 = sand.u32 1, %s310_s16   ;;  %s2740_s10 = sshll.u32 %s3573_s17, 8 }
  0x5e   : > { %s462_s12 = sshra.s32 %s2740_s10, 4  ;;  %p2610_p2 = scmp.le.s32.totalorder %s3749_s9, 0 }
  0x5f   : > { %s3753_s6 = scalar_lea.vmem %s3558_s11, %s462_s12   ;;  %s3756_s8 = scalar_lea.vmem %s3562_s14, %s462_s12 [#allocation3]  }
  0x60   : > { %2454 = sbr.rel (%p2610_p2) target bundleno = 120 (0x78), region = 258  ;;  %s4947_s24 = smov (!%p2610_p2), %s3756_s8 }
  0x61   : > { %s4948_s25 = smov (!%p2610_p2), %s3753_s6  ;;  %s3765_s26 = smov (!%p2610_p2), 0  }
  0x62   : > { %s3767_s29 = smov (!%p2610_p2), 0  }
  0x67 LB: >> { %v478_v0 = vld [vmem:[%s3369_s25] sm:$0xff]  ;;  %v480_v1 = vld [vmem:[%s3369_s25 + $0x18] sm:$0xff]  ;;  %v482_v2 = vld [vmem:[%s3369_s25 + $0x30] sm:$0xff]  ;;  %s542_s16 = sadd.s32 1, %s3373_s26  ;;  %s472_s29 = sadd.s32 1, %s3377_s29   ;;  %s3377_s29 = sphi %s3767_s29, %s472_s29   ;;  %s3373_s26 = sphi %s3765_s26, %s4951_s26   ;;  %s3369_s25 = sphi %s4948_s25, %s4950_s25   ;;  %s3365_s24 = sphi %s4947_s24, %s4949_s24  }
  0x68   : >> { %479 = vst [vmem:[%s3365_s24] sm:$0xff] %v478_v0  ;;  %481 = vst [vmem:[%s3365_s24 + $0x10] sm:$0xff] %v480_v1  ;;  %v484_v3 = vld [vmem:[%s3369_s25 + $0x48] sm:$0xff]  ;;  %v486_v4 = vld [vmem:[%s3369_s25 + $0x60] sm:$0xff]  ;;  %p543_p3 = scmp.ge.s32.totalorder %s542_s16, %s3749_s9  ;;  %p471_p4 = scmp.ge.s32.totalorder %s472_s29, %s3749_s9 }
  0x69   : >> { %483 = vst [vmem:[%s3365_s24 + $0x20] sm:$0xff] %v482_v2  ;;  %v488_v5 = vld [vmem:[%s3369_s25 + $0x78] sm:$0xff]  ;;  %485 = vst [vmem:[%s3365_s24 + $0x30] sm:$0xff] %v484_v3  ;;  %v490_v6 = vld [vmem:[%s3369_s25 + $0x90] sm:$0xff] }
  0x6a   : >> { %487 = vst [vmem:[%s3365_s24 + $0x40] sm:$0xff] %v486_v4  ;;  %489 = vst [vmem:[%s3365_s24 + $0x50] sm:$0xff] %v488_v5  ;;  %v492_v7 = vld [vmem:[%s3369_s25 + $0xa8] sm:$0xff]  ;;  %v494_v8 = vld [vmem:[%s3369_s25 + $0xc0] sm:$0xff]  ;;  %s4986_s16 = smov (%p543_p3, %s542_s16), 0 }
  0x6b   : >> { %491 = vst [vmem:[%s3365_s24 + $0x60] sm:$0xff] %v490_v6  ;;  %493 = vst [vmem:[%s3365_s24 + $0x70] sm:$0xff] %v492_v7  ;;  %v496_v9 = vld [vmem:[%s3369_s25 + $0xd8] sm:$0xff]  ;;  %v498_v10 = vld [vmem:[%s3369_s25 + $0xf0] sm:$0xff]  ;;  %s2611_s17 = sshll.u32 %s4986_s16, 3  ;;  %s4951_s26 = smov %s4986_s16 }
  0x6c   : >> { %495 = vst [vmem:[%s3365_s24 + $0x80] sm:$0xff] %v494_v8  ;;  %v500_v11 = vld [vmem:[%s3369_s25 + $0x108] sm:$0xff]  ;;  %497 = vst [vmem:[%s3365_s24 + $0x90] sm:$0xff] %v496_v9  ;;  %v502_v12 = vld [vmem:[%s3369_s25 + $0x120] sm:$0xff]  ;;  %s3823_s30 = scalar_lea.vmem %s3753_s6, %s2611_s17   ;;  %s548_s7 = scalar_lea.vmem %s3756_s8, %s2611_s17 [#allocation3]  }
  0x6d   : >> { %499 = vst [vmem:[%s3365_s24 + $0xa0] sm:$0xff] %v498_v10  ;;  %501 = vst [vmem:[%s3365_s24 + $0xb0] sm:$0xff] %v500_v11  ;;  %v504_v13 = vld [vmem:[%s3369_s25 + $0x138] sm:$0xff]  ;;  %v506_v14 = vld [vmem:[%s3369_s25 + $0x150] sm:$0xff] }
  0x6e   : >> { %503 = vst [vmem:[%s3365_s24 + $0xc0] sm:$0xff] %v502_v12  ;;  %505 = vst [vmem:[%s3365_s24 + $0xd0] sm:$0xff] %v504_v13  ;;  %v508_v15 = vld [vmem:[%s3369_s25 + $0x168] sm:$0xff]  ;;  %v510_v16 = vld [vmem:[%s3369_s25 + $0x180] sm:$0xff] }
  0x6f   : >> { %507 = vst [vmem:[%s3365_s24 + $0xe0] sm:$0xff] %v506_v14  ;;  %v512_v17 = vld [vmem:[%s3369_s25 + $0x198] sm:$0xff]  ;;  %509 = vst [vmem:[%s3365_s24 + $0xf0] sm:$0xff] %v508_v15  ;;  %v514_v18 = vld [vmem:[%s3369_s25 + $0x1b0] sm:$0xff] }
  0x70   : >> { %511 = vst [vmem:[%s3365_s24 + $0x100] sm:$0xff] %v510_v16  ;;  %513 = vst [vmem:[%s3365_s24 + $0x110] sm:$0xff] %v512_v17  ;;  %v516_v19 = vld [vmem:[%s3369_s25 + $0x1c8] sm:$0xff]  ;;  %v518_v20 = vld [vmem:[%s3369_s25 + $0x1e0] sm:$0xff] }
  0x71   : >> { %515 = vst [vmem:[%s3365_s24 + $0x120] sm:$0xff] %v514_v18  ;;  %517 = vst [vmem:[%s3365_s24 + $0x130] sm:$0xff] %v516_v19  ;;  %v520_v21 = vld [vmem:[%s3369_s25 + $0x1f8] sm:$0xff]  ;;  %v522_v22 = vld [vmem:[%s3369_s25 + $0x210] sm:$0xff]  ;;  %474 = sbr.rel (!%p471_p4) target bundleno = 103 (0x67), region = 264 }
  0x72   : >> { %519 = vst [vmem:[%s3365_s24 + $0x140] sm:$0xff] %v518_v20  ;;  %v524_v23 = vld [vmem:[%s3369_s25 + $0x228] sm:$0xff]  ;;  %521 = vst [vmem:[%s3365_s24 + $0x150] sm:$0xff] %v520_v21  ;;  %v526_v24 = vld [vmem:[%s3369_s25 + $0x240] sm:$0xff] }
  0x73   : >> { %523 = vst [vmem:[%s3365_s24 + $0x160] sm:$0xff] %v522_v22  ;;  %525 = vst [vmem:[%s3365_s24 + $0x170] sm:$0xff] %v524_v23  ;;  %v528_v25 = vld [vmem:[%s3369_s25 + $0x258] sm:$0xff]  ;;  %v530_v26 = vld [vmem:[%s3369_s25 + $0x270] sm:$0xff] }
  0x74   : >> { %527 = vst [vmem:[%s3365_s24 + $0x180] sm:$0xff] %v526_v24  ;;  %529 = vst [vmem:[%s3365_s24 + $0x190] sm:$0xff] %v528_v25  ;;  %v532_v27 = vld [vmem:[%s3369_s25 + $0x288] sm:$0xff]  ;;  %v534_v28 = vld [vmem:[%s3369_s25 + $0x2a0] sm:$0xff] }
  0x75   : >> { %531 = vst [vmem:[%s3365_s24 + $0x1a0] sm:$0xff] %v530_v26  ;;  %v536_v29 = vld [vmem:[%s3369_s25 + $0x2b8] sm:$0xff]  ;;  %533 = vst [vmem:[%s3365_s24 + $0x1b0] sm:$0xff] %v532_v27  ;;  %v538_v30 = vld [vmem:[%s3369_s25 + $0x2d0] sm:$0xff] }
  0x76   : >> { %535 = vst [vmem:[%s3365_s24 + $0x1c0] sm:$0xff] %v534_v28  ;;  %537 = vst [vmem:[%s3365_s24 + $0x1d0] sm:$0xff] %v536_v29  ;;  %v540_v31 = vld [vmem:[%s3369_s25 + $0x2e8] sm:$0xff]  ;;  %s4950_s25 = smov %s3823_s30 }
  0x77   : >> { %539 = vst [vmem:[%s3365_s24 + $0x1e0] sm:$0xff] %v538_v30  ;;  %541 = vst [vmem:[%s3365_s24 + $0x1f0] sm:$0xff] %v540_v31  ;;  %s4949_s24 = smov %s548_s7 }
  0x78 PF: > { %551 = sbr.rel (%p306_p11) target bundleno = 228 (0xe4), region = 73  ;;  %s553_s10 = ssub.s32 (!%p306_p11), %s3560_s13, %s3566_s15 }
  0x79   : > { %s557_s12 = sshrl.u32 (!%p306_p11), %s3560_s13, 3  ;;  %s3869_s17 = scalar_lea.vmem (!%p306_p11), %s3558_s11, %s553_s10 }
  0x7a   : > { %s3872_s30 = scalar_lea.vmem (!%p306_p11), %s3562_s14, %s553_s10 [#allocation3]  ;;  %s3876_s29 = sshrl.u32 (!%p306_p11), %s557_s12, 1 }
  0x7b   : > { %p2613_p5 = scmp.le.s32.totalorder (!%p306_p11), %s3876_s29, 0 }
  0x7f   : > { %2468 = sbr.rel (%p2613_p5) target bundleno = 167 (0xa7), region = 269  ;;  %s4952_s9 = smov (!%p2613_p5), %s3562_s14 }
  0x80   : > { %s4953_s6 = smov (!%p2613_p5), %s3558_s11  ;;  %s3885_s8 = smov (!%p2613_p5), 0  }
  0x81   : > { %s3887_s24 = smov (!%p2613_p5), 0  }
  0x86 LB: >> { %v570_v32 = vld [vmem:[%s3385_s6] sm:$0xff]  ;;  %v572_v33 = vld [vmem:[%s3385_s6 + $0x8] sm:$0xff]  ;;  %v574_v34 = vld [vmem:[%s3385_s6 + $0x18] sm:$0xff]  ;;  %s698_s25 = sadd.s32 1, %s3389_s8  ;;  %s564_s24 = sadd.s32 1, %s3393_s24   ;;  %s3393_s24 = sphi %s3887_s24, %s564_s24   ;;  %s3389_s8 = sphi %s3885_s8, %s4956_s8   ;;  %s3385_s6 = sphi %s4953_s6, %s4955_s6   ;;  %s3381_s9 = sphi %s4952_s9, %s4954_s9  }
  0x87   : >> { %571 = vst [vmem:[%s3381_s9] sm:$0xff] %v570_v32  ;;  %573 = vst [vmem:[%s3381_s9 + $0x8] sm:$0xff] %v572_v33  ;;  %v576_v35 = vld [vmem:[%s3385_s6 + $0x20] sm:$0xff]  ;;  %v578_v36 = vld [vmem:[%s3385_s6 + $0x30] sm:$0xff]  ;;  %p699_p7 = scmp.ge.s32.totalorder %s698_s25, %s3876_s29  ;;  %p563_p8 = scmp.ge.s32.totalorder %s564_s24, %s3876_s29 }
  0x88   : >> { %575 = vst [vmem:[%s3381_s9 + $0x10] sm:$0xff] %v574_v34  ;;  %v580_v37 = vld [vmem:[%s3385_s6 + $0x38] sm:$0xff]  ;;  %577 = vst [vmem:[%s3381_s9 + $0x18] sm:$0xff] %v576_v35  ;;  %v582_v38 = vld [vmem:[%s3385_s6 + $0x48] sm:$0xff] }
  0x89   : >> { %579 = vst [vmem:[%s3381_s9 + $0x20] sm:$0xff] %v578_v36  ;;  %581 = vst [vmem:[%s3381_s9 + $0x28] sm:$0xff] %v580_v37  ;;  %v584_v39 = vld [vmem:[%s3385_s6 + $0x50] sm:$0xff]  ;;  %v586_v40 = vld [vmem:[%s3385_s6 + $0x60] sm:$0xff]  ;;  %s4988_s25 = smov (%p699_p7, %s698_s25), 0 }
  0x8a   : >> { %583 = vst [vmem:[%s3381_s9 + $0x30] sm:$0xff] %v582_v38  ;;  %585 = vst [vmem:[%s3381_s9 + $0x38] sm:$0xff] %v584_v39  ;;  %v588_v41 = vld [vmem:[%s3385_s6 + $0x68] sm:$0xff]  ;;  %v590_v42 = vld [vmem:[%s3385_s6 + $0x78] sm:$0xff]  ;;  %s2614_s26 = sshll.u32 %s4988_s25, 4  ;;  %s4956_s8 = smov %s4988_s25 }
  0x8b   : >> { %587 = vst [vmem:[%s3381_s9 + $0x40] sm:$0xff] %v586_v40  ;;  %v592_v43 = vld [vmem:[%s3385_s6 + $0x80] sm:$0xff]  ;;  %589 = vst [vmem:[%s3381_s9 + $0x48] sm:$0xff] %v588_v41  ;;  %v594_v44 = vld [vmem:[%s3385_s6 + $0x90] sm:$0xff]  ;;  %s3943_s16 = scalar_lea.vmem %s3558_s11, %s2614_s26   ;;  %s3946_s7 = scalar_lea.vmem %s3562_s14, %s2614_s26 [#allocation3]  }
  0x8c   : >> { %591 = vst [vmem:[%s3381_s9 + $0x50] sm:$0xff] %v590_v42  ;;  %593 = vst [vmem:[%s3381_s9 + $0x58] sm:$0xff] %v592_v43  ;;  %v596_v45 = vld [vmem:[%s3385_s6 + $0x98] sm:$0xff]  ;;  %v598_v46 = vld [vmem:[%s3385_s6 + $0xa8] sm:$0xff] }
  0x8d   : >> { %595 = vst [vmem:[%s3381_s9 + $0x60] sm:$0xff] %v594_v44  ;;  %597 = vst [vmem:[%s3381_s9 + $0x68] sm:$0xff] %v596_v45  ;;  %v600_v47 = vld [vmem:[%s3385_s6 + $0xb0] sm:$0xff]  ;;  %v602_v48 = vld [vmem:[%s3385_s6 + $0xc0] sm:$0xff] }
  0x8e   : >> { %599 = vst [vmem:[%s3381_s9 + $0x70] sm:$0xff] %v598_v46  ;;  %v604_v49 = vld [vmem:[%s3385_s6 + $0xc8] sm:$0xff]  ;;  %601 = vst [vmem:[%s3381_s9 + $0x78] sm:$0xff] %v600_v47  ;;  %v606_v50 = vld [vmem:[%s3385_s6 + $0xd8] sm:$0xff] }
  0x8f   : >> { %603 = vst [vmem:[%s3381_s9 + $0x80] sm:$0xff] %v602_v48  ;;  %605 = vst [vmem:[%s3381_s9 + $0x88] sm:$0xff] %v604_v49  ;;  %v608_v51 = vld [vmem:[%s3385_s6 + $0xe0] sm:$0xff]  ;;  %v610_v52 = vld [vmem:[%s3385_s6 + $0xf0] sm:$0xff] }
  0x90   : >> { %607 = vst [vmem:[%s3381_s9 + $0x90] sm:$0xff] %v606_v50  ;;  %609 = vst [vmem:[%s3381_s9 + $0x98] sm:$0xff] %v608_v51  ;;  %v612_v53 = vld [vmem:[%s3385_s6 + $0xf8] sm:$0xff]  ;;  %v614_v54 = vld [vmem:[%s3385_s6 + $0x108] sm:$0xff] }
  0x91   : >> { %611 = vst [vmem:[%s3381_s9 + $0xa0] sm:$0xff] %v610_v52  ;;  %v616_v55 = vld [vmem:[%s3385_s6 + $0x110] sm:$0xff]  ;;  %613 = vst [vmem:[%s3381_s9 + $0xa8] sm:$0xff] %v612_v53  ;;  %v618_v56 = vld [vmem:[%s3385_s6 + $0x120] sm:$0xff] }
  0x92   : >> { %615 = vst [vmem:[%s3381_s9 + $0xb0] sm:$0xff] %v614_v54  ;;  %617 = vst [vmem:[%s3381_s9 + $0xb8] sm:$0xff] %v616_v55  ;;  %v620_v57 = vld [vmem:[%s3385_s6 + $0x128] sm:$0xff]  ;;  %v622_v58 = vld [vmem:[%s3385_s6 + $0x138] sm:$0xff] }
  0x93   : >> { %619 = vst [vmem:[%s3381_s9 + $0xc0] sm:$0xff] %v618_v56  ;;  %621 = vst [vmem:[%s3381_s9 + $0xc8] sm:$0xff] %v620_v57  ;;  %v624_v59 = vld [vmem:[%s3385_s6 + $0x140] sm:$0xff]  ;;  %v626_v60 = vld [vmem:[%s3385_s6 + $0x150] sm:$0xff] }
  0x94   : >> { %623 = vst [vmem:[%s3381_s9 + $0xd0] sm:$0xff] %v622_v58  ;;  %v628_v61 = vld [vmem:[%s3385_s6 + $0x158] sm:$0xff]  ;;  %625 = vst [vmem:[%s3381_s9 + $0xd8] sm:$0xff] %v624_v59  ;;  %v630_v62 = vld [vmem:[%s3385_s6 + $0x168] sm:$0xff] }
  0x95   : >> { %627 = vst [vmem:[%s3381_s9 + $0xe0] sm:$0xff] %v626_v60  ;;  %629 = vst [vmem:[%s3381_s9 + $0xe8] sm:$0xff] %v628_v61  ;;  %v632_v63 = vld [vmem:[%s3385_s6 + $0x170] sm:$0xff]  ;;  %v634_v0 = vld [vmem:[%s3385_s6 + $0x180] sm:$0xff] }
  0x96   : >> { %631 = vst [vmem:[%s3381_s9 + $0xf0] sm:$0xff] %v630_v62  ;;  %633 = vst [vmem:[%s3381_s9 + $0xf8] sm:$0xff] %v632_v63  ;;  %v636_v1 = vld [vmem:[%s3385_s6 + $0x188] sm:$0xff]  ;;  %v638_v2 = vld [vmem:[%s3385_s6 + $0x198] sm:$0xff] }
  0x97   : >> { %635 = vst [vmem:[%s3381_s9 + $0x100] sm:$0xff] %v634_v0  ;;  %v640_v3 = vld [vmem:[%s3385_s6 + $0x1a0] sm:$0xff]  ;;  %637 = vst [vmem:[%s3381_s9 + $0x108] sm:$0xff] %v636_v1  ;;  %v642_v4 = vld [vmem:[%s3385_s6 + $0x1b0] sm:$0xff] }
  0x98   : >> { %639 = vst [vmem:[%s3381_s9 + $0x110] sm:$0xff] %v638_v2  ;;  %641 = vst [vmem:[%s3381_s9 + $0x118] sm:$0xff] %v640_v3  ;;  %v644_v5 = vld [vmem:[%s3385_s6 + $0x1b8] sm:$0xff]  ;;  %v646_v6 = vld [vmem:[%s3385_s6 + $0x1c8] sm:$0xff] }
  0x99   : >> { %643 = vst [vmem:[%s3381_s9 + $0x120] sm:$0xff] %v642_v4  ;;  %645 = vst [vmem:[%s3381_s9 + $0x128] sm:$0xff] %v644_v5  ;;  %v648_v7 = vld [vmem:[%s3385_s6 + $0x1d0] sm:$0xff]  ;;  %v650_v8 = vld [vmem:[%s3385_s6 + $0x1e0] sm:$0xff] }
  0x9a   : >> { %647 = vst [vmem:[%s3381_s9 + $0x130] sm:$0xff] %v646_v6  ;;  %v652_v9 = vld [vmem:[%s3385_s6 + $0x1e8] sm:$0xff]  ;;  %649 = vst [vmem:[%s3381_s9 + $0x138] sm:$0xff] %v648_v7  ;;  %v654_v10 = vld [vmem:[%s3385_s6 + $0x1f8] sm:$0xff] }
  0x9b   : >> { %651 = vst [vmem:[%s3381_s9 + $0x140] sm:$0xff] %v650_v8  ;;  %653 = vst [vmem:[%s3381_s9 + $0x148] sm:$0xff] %v652_v9  ;;  %v656_v11 = vld [vmem:[%s3385_s6 + $0x200] sm:$0xff]  ;;  %v658_v12 = vld [vmem:[%s3385_s6 + $0x210] sm:$0xff] }
  0x9c   : >> { %655 = vst [vmem:[%s3381_s9 + $0x150] sm:$0xff] %v654_v10  ;;  %657 = vst [vmem:[%s3381_s9 + $0x158] sm:$0xff] %v656_v11  ;;  %v660_v13 = vld [vmem:[%s3385_s6 + $0x218] sm:$0xff]  ;;  %v662_v14 = vld [vmem:[%s3385_s6 + $0x228] sm:$0xff] }
  0x9d   : >> { %659 = vst [vmem:[%s3381_s9 + $0x160] sm:$0xff] %v658_v12  ;;  %v664_v15 = vld [vmem:[%s3385_s6 + $0x230] sm:$0xff]  ;;  %661 = vst [vmem:[%s3381_s9 + $0x168] sm:$0xff] %v660_v13  ;;  %v666_v16 = vld [vmem:[%s3385_s6 + $0x240] sm:$0xff] }
  0x9e   : >> { %663 = vst [vmem:[%s3381_s9 + $0x170] sm:$0xff] %v662_v14  ;;  %665 = vst [vmem:[%s3381_s9 + $0x178] sm:$0xff] %v664_v15  ;;  %v668_v17 = vld [vmem:[%s3385_s6 + $0x248] sm:$0xff]  ;;  %v670_v18 = vld [vmem:[%s3385_s6 + $0x258] sm:$0xff] }
  0x9f   : >> { %667 = vst [vmem:[%s3381_s9 + $0x180] sm:$0xff] %v666_v16  ;;  %669 = vst [vmem:[%s3381_s9 + $0x188] sm:$0xff] %v668_v17  ;;  %v672_v19 = vld [vmem:[%s3385_s6 + $0x260] sm:$0xff]  ;;  %v674_v20 = vld [vmem:[%s3385_s6 + $0x270] sm:$0xff] }
  0xa0   : >> { %671 = vst [vmem:[%s3381_s9 + $0x190] sm:$0xff] %v670_v18  ;;  %v676_v21 = vld [vmem:[%s3385_s6 + $0x278] sm:$0xff]  ;;  %673 = vst [vmem:[%s3381_s9 + $0x198] sm:$0xff] %v672_v19  ;;  %v678_v22 = vld [vmem:[%s3385_s6 + $0x288] sm:$0xff]  ;;  %566 = sbr.rel (!%p563_p8) target bundleno = 134 (0x86), region = 275 }
  0xa1   : >> { %675 = vst [vmem:[%s3381_s9 + $0x1a0] sm:$0xff] %v674_v20  ;;  %677 = vst [vmem:[%s3381_s9 + $0x1a8] sm:$0xff] %v676_v21  ;;  %v680_v23 = vld [vmem:[%s3385_s6 + $0x290] sm:$0xff]  ;;  %v682_v24 = vld [vmem:[%s3385_s6 + $0x2a0] sm:$0xff] }
  0xa2   : >> { %679 = vst [vmem:[%s3381_s9 + $0x1b0] sm:$0xff] %v678_v22  ;;  %681 = vst [vmem:[%s3381_s9 + $0x1b8] sm:$0xff] %v680_v23  ;;  %v684_v25 = vld [vmem:[%s3385_s6 + $0x2a8] sm:$0xff]  ;;  %v686_v26 = vld [vmem:[%s3385_s6 + $0x2b8] sm:$0xff] }
  0xa3   : >> { %683 = vst [vmem:[%s3381_s9 + $0x1c0] sm:$0xff] %v682_v24  ;;  %v688_v27 = vld [vmem:[%s3385_s6 + $0x2c0] sm:$0xff]  ;;  %685 = vst [vmem:[%s3381_s9 + $0x1c8] sm:$0xff] %v684_v25  ;;  %v690_v28 = vld [vmem:[%s3385_s6 + $0x2d0] sm:$0xff] }
  0xa4   : >> { %687 = vst [vmem:[%s3381_s9 + $0x1d0] sm:$0xff] %v686_v26  ;;  %689 = vst [vmem:[%s3381_s9 + $0x1d8] sm:$0xff] %v688_v27  ;;  %v692_v29 = vld [vmem:[%s3385_s6 + $0x2d8] sm:$0xff]  ;;  %v694_v30 = vld [vmem:[%s3385_s6 + $0x2e8] sm:$0xff] }
  0xa5   : >> { %691 = vst [vmem:[%s3381_s9 + $0x1e0] sm:$0xff] %v690_v28  ;;  %693 = vst [vmem:[%s3381_s9 + $0x1e8] sm:$0xff] %v692_v29  ;;  %v696_v31 = vld [vmem:[%s3385_s6 + $0x2f0] sm:$0xff]  ;;  %s4955_s6 = smov %s3943_s16 }
  0xa6   : >> { %695 = vst [vmem:[%s3381_s9 + $0x1f0] sm:$0xff] %v694_v30  ;;  %697 = vst [vmem:[%s3381_s9 + $0x1f8] sm:$0xff] %v696_v31  ;;  %s4954_s9 = smov %s3946_s7 }
  0xa7 PF: > { %s4052_s10 = sand.u32 1, %s557_s12   ;;  %s2742_s26 = sshll.u32 %s3876_s29, 8 }
  0xa8   : > { %s709_s3 = sshra.s32 %s2742_s26, 4  ;;  %p2619_p9 = scmp.le.s32.totalorder %s4052_s10, 0 }
  0xa9   : > { %s4056_s23 = scalar_lea.vmem %s3558_s11, %s709_s3   ;;  %s4059_s7 = scalar_lea.vmem %s3562_s14, %s709_s3 [#allocation3]  }
  0xaa   : > { %2482 = sbr.rel (%p2619_p9) target bundleno = 194 (0xc2), region = 280  ;;  %s4957_s9 = smov (!%p2619_p9), %s4059_s7 }
  0xab   : > { %s4958_s6 = smov (!%p2619_p9), %s4056_s23  ;;  %s4068_s8 = smov (!%p2619_p9), 0  }
  0xac   : > { %s4070_s24 = smov (!%p2619_p9), 0  }
  0xb1 LB: >> { %v725_v32 = vld [vmem:[%s3401_s6] sm:$0xff]  ;;  %v727_v33 = vld [vmem:[%s3401_s6 + $0x18] sm:$0xff]  ;;  %v729_v34 = vld [vmem:[%s3401_s6 + $0x30] sm:$0xff]  ;;  %s789_s3 = sadd.s32 1, %s3405_s8  ;;  %s719_s24 = sadd.s32 1, %s3409_s24   ;;  %s3409_s24 = sphi %s4070_s24, %s719_s24   ;;  %s3405_s8 = sphi %s4068_s8, %s4961_s8   ;;  %s3401_s6 = sphi %s4958_s6, %s4960_s6   ;;  %s3397_s9 = sphi %s4957_s9, %s4959_s9  }
  0xb2   : >> { %726 = vst [vmem:[%s3397_s9] sm:$0xff] %v725_v32  ;;  %728 = vst [vmem:[%s3397_s9 + $0x10] sm:$0xff] %v727_v33  ;;  %v731_v35 = vld [vmem:[%s3401_s6 + $0x48] sm:$0xff]  ;;  %v733_v36 = vld [vmem:[%s3401_s6 + $0x60] sm:$0xff]  ;;  %p790_p10 = scmp.ge.s32.totalorder %s789_s3, %s4052_s10  ;;  %p718_p11 = scmp.ge.s32.totalorder %s719_s24, %s4052_s10 }
  0xb3   : >> { %730 = vst [vmem:[%s3397_s9 + $0x20] sm:$0xff] %v729_v34  ;;  %v735_v37 = vld [vmem:[%s3401_s6 + $0x78] sm:$0xff]  ;;  %732 = vst [vmem:[%s3397_s9 + $0x30] sm:$0xff] %v731_v35  ;;  %v737_v38 = vld [vmem:[%s3401_s6 + $0x90] sm:$0xff] }
  0xb4   : >> { %734 = vst [vmem:[%s3397_s9 + $0x40] sm:$0xff] %v733_v36  ;;  %736 = vst [vmem:[%s3397_s9 + $0x50] sm:$0xff] %v735_v37  ;;  %v739_v39 = vld [vmem:[%s3401_s6 + $0xa8] sm:$0xff]  ;;  %v741_v40 = vld [vmem:[%s3401_s6 + $0xc0] sm:$0xff]  ;;  %s4990_s3 = smov (%p790_p10, %s789_s3), 0 }
  0xb5   : >> { %738 = vst [vmem:[%s3397_s9 + $0x60] sm:$0xff] %v737_v38  ;;  %740 = vst [vmem:[%s3397_s9 + $0x70] sm:$0xff] %v739_v39  ;;  %v743_v41 = vld [vmem:[%s3401_s6 + $0xd8] sm:$0xff]  ;;  %v745_v42 = vld [vmem:[%s3401_s6 + $0xf0] sm:$0xff]  ;;  %s2620_s12 = sshll.u32 %s4990_s3, 3  ;;  %s4961_s8 = smov %s4990_s3 }
  0xb6   : >> { %742 = vst [vmem:[%s3397_s9 + $0x80] sm:$0xff] %v741_v40  ;;  %v747_v43 = vld [vmem:[%s3401_s6 + $0x108] sm:$0xff]  ;;  %744 = vst [vmem:[%s3397_s9 + $0x90] sm:$0xff] %v743_v41  ;;  %v749_v44 = vld [vmem:[%s3401_s6 + $0x120] sm:$0xff]  ;;  %s4126_s29 = scalar_lea.vmem %s4056_s23, %s2620_s12   ;;  %s795_s25 = scalar_lea.vmem %s4059_s7, %s2620_s12 [#allocation3]  }
  0xb7   : >> { %746 = vst [vmem:[%s3397_s9 + $0xa0] sm:$0xff] %v745_v42  ;;  %748 = vst [vmem:[%s3397_s9 + $0xb0] sm:$0xff] %v747_v43  ;;  %v751_v45 = vld [vmem:[%s3401_s6 + $0x138] sm:$0xff]  ;;  %v753_v46 = vld [vmem:[%s3401_s6 + $0x150] sm:$0xff] }
  0xb8   : >> { %750 = vst [vmem:[%s3397_s9 + $0xc0] sm:$0xff] %v749_v44  ;;  %752 = vst [vmem:[%s3397_s9 + $0xd0] sm:$0xff] %v751_v45  ;;  %v755_v47 = vld [vmem:[%s3401_s6 + $0x168] sm:$0xff]  ;;  %v757_v48 = vld [vmem:[%s3401_s6 + $0x180] sm:$0xff] }
  0xb9   : >> { %754 = vst [vmem:[%s3397_s9 + $0xe0] sm:$0xff] %v753_v46  ;;  %v759_v49 = vld [vmem:[%s3401_s6 + $0x198] sm:$0xff]  ;;  %756 = vst [vmem:[%s3397_s9 + $0xf0] sm:$0xff] %v755_v47  ;;  %v761_v50 = vld [vmem:[%s3401_s6 + $0x1b0] sm:$0xff] }
  0xba   : >> { %758 = vst [vmem:[%s3397_s9 + $0x100] sm:$0xff] %v757_v48  ;;  %760 = vst [vmem:[%s3397_s9 + $0x110] sm:$0xff] %v759_v49  ;;  %v763_v51 = vld [vmem:[%s3401_s6 + $0x1c8] sm:$0xff]  ;;  %v765_v52 = vld [vmem:[%s3401_s6 + $0x1e0] sm:$0xff] }
  0xbb   : >> { %762 = vst [vmem:[%s3397_s9 + $0x120] sm:$0xff] %v761_v50  ;;  %764 = vst [vmem:[%s3397_s9 + $0x130] sm:$0xff] %v763_v51  ;;  %v767_v53 = vld [vmem:[%s3401_s6 + $0x1f8] sm:$0xff]  ;;  %v769_v54 = vld [vmem:[%s3401_s6 + $0x210] sm:$0xff]  ;;  %721 = sbr.rel (!%p718_p11) target bundleno = 177 (0xb1), region = 286 }
  0xbc   : >> { %766 = vst [vmem:[%s3397_s9 + $0x140] sm:$0xff] %v765_v52  ;;  %v771_v55 = vld [vmem:[%s3401_s6 + $0x228] sm:$0xff]  ;;  %768 = vst [vmem:[%s3397_s9 + $0x150] sm:$0xff] %v767_v53  ;;  %v773_v56 = vld [vmem:[%s3401_s6 + $0x240] sm:$0xff] }
  0xbd   : >> { %770 = vst [vmem:[%s3397_s9 + $0x160] sm:$0xff] %v769_v54  ;;  %772 = vst [vmem:[%s3397_s9 + $0x170] sm:$0xff] %v771_v55  ;;  %v775_v57 = vld [vmem:[%s3401_s6 + $0x258] sm:$0xff]  ;;  %v777_v58 = vld [vmem:[%s3401_s6 + $0x270] sm:$0xff] }
  0xbe   : >> { %774 = vst [vmem:[%s3397_s9 + $0x180] sm:$0xff] %v773_v56  ;;  %776 = vst [vmem:[%s3397_s9 + $0x190] sm:$0xff] %v775_v57  ;;  %v779_v59 = vld [vmem:[%s3401_s6 + $0x288] sm:$0xff]  ;;  %v781_v60 = vld [vmem:[%s3401_s6 + $0x2a0] sm:$0xff] }
  0xbf   : >> { %778 = vst [vmem:[%s3397_s9 + $0x1a0] sm:$0xff] %v777_v58  ;;  %v783_v61 = vld [vmem:[%s3401_s6 + $0x2b8] sm:$0xff]  ;;  %780 = vst [vmem:[%s3397_s9 + $0x1b0] sm:$0xff] %v779_v59  ;;  %v785_v62 = vld [vmem:[%s3401_s6 + $0x2d0] sm:$0xff] }
  0xc0   : >> { %782 = vst [vmem:[%s3397_s9 + $0x1c0] sm:$0xff] %v781_v60  ;;  %784 = vst [vmem:[%s3397_s9 + $0x1d0] sm:$0xff] %v783_v61  ;;  %v787_v63 = vld [vmem:[%s3401_s6 + $0x2e8] sm:$0xff]  ;;  %s4960_s6 = smov %s4126_s29 }
  0xc1   : >> { %786 = vst [vmem:[%s3397_s9 + $0x1e0] sm:$0xff] %v785_v62  ;;  %788 = vst [vmem:[%s3397_s9 + $0x1f0] sm:$0xff] %v787_v63  ;;  %s4959_s9 = smov %s795_s25 }
  0xc2 PF: > { %s3475_s16 = smov 0  }
  0xc3   : > { %s4167_s26 = sshllo.u32 %s3475_s16, %s3566_s15 }
  0xc4   : > { %v805_v0 = vld [vmem:[%s3869_s17] sm:%s4167_s26]  ;;  %v807_v1 = vld [vmem:[%s3869_s17 + $0x18] sm:%s4167_s26] }
  0xc5   : > { %806 = vst [vmem:[%s3872_s30] sm:%s4167_s26] %v805_v0  ;;  %808 = vst [vmem:[%s3872_s30 + $0x10] sm:%s4167_s26] %v807_v1 }
  0xc6   : > { %v809_v2 = vld [vmem:[%s3869_s17 + $0x30] sm:%s4167_s26]  ;;  %v811_v3 = vld [vmem:[%s3869_s17 + $0x48] sm:%s4167_s26] }
  0xc7   : > { %810 = vst [vmem:[%s3872_s30 + $0x20] sm:%s4167_s26] %v809_v2  ;;  %812 = vst [vmem:[%s3872_s30 + $0x30] sm:%s4167_s26] %v811_v3 }
  0xc8   : > { %v813_v4 = vld [vmem:[%s3869_s17 + $0x60] sm:%s4167_s26]  ;;  %v815_v5 = vld [vmem:[%s3869_s17 + $0x78] sm:%s4167_s26] }
  0xc9   : > { %814 = vst [vmem:[%s3872_s30 + $0x40] sm:%s4167_s26] %v813_v4  ;;  %816 = vst [vmem:[%s3872_s30 + $0x50] sm:%s4167_s26] %v815_v5 }
  0xca   : > { %v817_v6 = vld [vmem:[%s3869_s17 + $0x90] sm:%s4167_s26]  ;;  %v819_v7 = vld [vmem:[%s3869_s17 + $0xa8] sm:%s4167_s26] }
  0xcb   : > { %818 = vst [vmem:[%s3872_s30 + $0x60] sm:%s4167_s26] %v817_v6  ;;  %820 = vst [vmem:[%s3872_s30 + $0x70] sm:%s4167_s26] %v819_v7 }
  0xcc   : > { %v821_v8 = vld [vmem:[%s3869_s17 + $0xc0] sm:%s4167_s26]  ;;  %v823_v9 = vld [vmem:[%s3869_s17 + $0xd8] sm:%s4167_s26] }
  0xcd   : > { %822 = vst [vmem:[%s3872_s30 + $0x80] sm:%s4167_s26] %v821_v8  ;;  %824 = vst [vmem:[%s3872_s30 + $0x90] sm:%s4167_s26] %v823_v9 }
  0xce   : > { %v825_v10 = vld [vmem:[%s3869_s17 + $0xf0] sm:%s4167_s26]  ;;  %v827_v11 = vld [vmem:[%s3869_s17 + $0x108] sm:%s4167_s26] }
  0xcf   : > { %826 = vst [vmem:[%s3872_s30 + $0xa0] sm:%s4167_s26] %v825_v10  ;;  %828 = vst [vmem:[%s3872_s30 + $0xb0] sm:%s4167_s26] %v827_v11 }
  0xd0   : > { %v829_v12 = vld [vmem:[%s3869_s17 + $0x120] sm:%s4167_s26]  ;;  %v831_v13 = vld [vmem:[%s3869_s17 + $0x138] sm:%s4167_s26] }
  0xd1   : > { %830 = vst [vmem:[%s3872_s30 + $0xc0] sm:%s4167_s26] %v829_v12  ;;  %832 = vst [vmem:[%s3872_s30 + $0xd0] sm:%s4167_s26] %v831_v13 }
  0xd2   : > { %v833_v14 = vld [vmem:[%s3869_s17 + $0x150] sm:%s4167_s26]  ;;  %v835_v15 = vld [vmem:[%s3869_s17 + $0x168] sm:%s4167_s26] }
  0xd3   : > { %834 = vst [vmem:[%s3872_s30 + $0xe0] sm:%s4167_s26] %v833_v14  ;;  %836 = vst [vmem:[%s3872_s30 + $0xf0] sm:%s4167_s26] %v835_v15 }
  0xd4   : > { %v837_v16 = vld [vmem:[%s3869_s17 + $0x180] sm:%s4167_s26]  ;;  %v839_v17 = vld [vmem:[%s3869_s17 + $0x198] sm:%s4167_s26] }
  0xd5   : > { %838 = vst [vmem:[%s3872_s30 + $0x100] sm:%s4167_s26] %v837_v16  ;;  %840 = vst [vmem:[%s3872_s30 + $0x110] sm:%s4167_s26] %v839_v17 }
  0xd6   : > { %v841_v18 = vld [vmem:[%s3869_s17 + $0x1b0] sm:%s4167_s26]  ;;  %v843_v19 = vld [vmem:[%s3869_s17 + $0x1c8] sm:%s4167_s26] }
  0xd7   : > { %842 = vst [vmem:[%s3872_s30 + $0x120] sm:%s4167_s26] %v841_v18  ;;  %844 = vst [vmem:[%s3872_s30 + $0x130] sm:%s4167_s26] %v843_v19 }
  0xd8   : > { %v845_v20 = vld [vmem:[%s3869_s17 + $0x1e0] sm:%s4167_s26]  ;;  %v847_v21 = vld [vmem:[%s3869_s17 + $0x1f8] sm:%s4167_s26] }
  0xd9   : > { %846 = vst [vmem:[%s3872_s30 + $0x140] sm:%s4167_s26] %v845_v20  ;;  %848 = vst [vmem:[%s3872_s30 + $0x150] sm:%s4167_s26] %v847_v21 }
  0xda   : > { %v849_v22 = vld [vmem:[%s3869_s17 + $0x210] sm:%s4167_s26]  ;;  %v851_v23 = vld [vmem:[%s3869_s17 + $0x228] sm:%s4167_s26] }
  0xdb   : > { %850 = vst [vmem:[%s3872_s30 + $0x160] sm:%s4167_s26] %v849_v22  ;;  %852 = vst [vmem:[%s3872_s30 + $0x170] sm:%s4167_s26] %v851_v23 }
  0xdc   : > { %v853_v24 = vld [vmem:[%s3869_s17 + $0x240] sm:%s4167_s26]  ;;  %v855_v25 = vld [vmem:[%s3869_s17 + $0x258] sm:%s4167_s26] }
  0xdd   : > { %854 = vst [vmem:[%s3872_s30 + $0x180] sm:%s4167_s26] %v853_v24  ;;  %856 = vst [vmem:[%s3872_s30 + $0x190] sm:%s4167_s26] %v855_v25 }
  0xde   : > { %v857_v26 = vld [vmem:[%s3869_s17 + $0x270] sm:%s4167_s26]  ;;  %v859_v27 = vld [vmem:[%s3869_s17 + $0x288] sm:%s4167_s26] }
  0xdf   : > { %858 = vst [vmem:[%s3872_s30 + $0x1a0] sm:%s4167_s26] %v857_v26  ;;  %860 = vst [vmem:[%s3872_s30 + $0x1b0] sm:%s4167_s26] %v859_v27 }
  0xe0   : > { %v861_v28 = vld [vmem:[%s3869_s17 + $0x2a0] sm:%s4167_s26]  ;;  %v863_v29 = vld [vmem:[%s3869_s17 + $0x2b8] sm:%s4167_s26] }
  0xe1   : > { %862 = vst [vmem:[%s3872_s30 + $0x1c0] sm:%s4167_s26] %v861_v28  ;;  %864 = vst [vmem:[%s3872_s30 + $0x1d0] sm:%s4167_s26] %v863_v29 }
  0xe2   : > { %v865_v30 = vld [vmem:[%s3869_s17 + $0x2d0] sm:%s4167_s26]  ;;  %v867_v31 = vld [vmem:[%s3869_s17 + $0x2e8] sm:%s4167_s26] }
  0xe3   : > { %866 = vst [vmem:[%s3872_s30 + $0x1e0] sm:%s4167_s26] %v865_v30  ;;  %868 = vst [vmem:[%s3872_s30 + $0x1f0] sm:%s4167_s26] %v867_v31 }
  0xe4 PF: > { %p2622_p12 = scmp.ge.u32.totalorder %s3560_s13, 8 }
  0xe5   : > { %s3476_s23 = smov (!%p2622_p12), 0  }
  0xe6   : > { %231 = sbr.rel (%p2622_p12) target bundleno = 263 (0x107), region = 44  ;;  %s4299_s15 = sshllo.u32 (!%p2622_p12), %s3476_s23, %s3560_s13 }
  0xe7   : > { %v241_v32 = vld [vmem:[%s3558_s11] sm:%s4299_s15] (!%p2622_p12)  ;;  %v243_v33 = vld [vmem:[%s3558_s11 + $0x18] sm:%s4299_s15] (!%p2622_p12) }
  0xe8   : > { %242 = vst [vmem:[%s3562_s14] sm:%s4299_s15] (!%p2622_p12), %v241_v32  ;;  %244 = vst [vmem:[%s3562_s14 + $0x10] sm:%s4299_s15] (!%p2622_p12), %v243_v33 }
  0xe9   : > { %v245_v34 = vld [vmem:[%s3558_s11 + $0x30] sm:%s4299_s15] (!%p2622_p12)  ;;  %v247_v35 = vld [vmem:[%s3558_s11 + $0x48] sm:%s4299_s15] (!%p2622_p12) }
  0xea   : > { %246 = vst [vmem:[%s3562_s14 + $0x20] sm:%s4299_s15] (!%p2622_p12), %v245_v34  ;;  %248 = vst [vmem:[%s3562_s14 + $0x30] sm:%s4299_s15] (!%p2622_p12), %v247_v35 }
  0xeb   : > { %v249_v36 = vld [vmem:[%s3558_s11 + $0x60] sm:%s4299_s15] (!%p2622_p12)  ;;  %v251_v37 = vld [vmem:[%s3558_s11 + $0x78] sm:%s4299_s15] (!%p2622_p12) }
  0xec   : > { %250 = vst [vmem:[%s3562_s14 + $0x40] sm:%s4299_s15] (!%p2622_p12), %v249_v36  ;;  %252 = vst [vmem:[%s3562_s14 + $0x50] sm:%s4299_s15] (!%p2622_p12), %v251_v37 }
  0xed   : > { %v253_v38 = vld [vmem:[%s3558_s11 + $0x90] sm:%s4299_s15]  ;;  %v255_v39 = vld [vmem:[%s3558_s11 + $0xa8] sm:%s4299_s15] }
  0xee   : > { %254 = vst [vmem:[%s3562_s14 + $0x60] sm:%s4299_s15] %v253_v38  ;;  %256 = vst [vmem:[%s3562_s14 + $0x70] sm:%s4299_s15] %v255_v39 }
  0xef   : > { %v257_v40 = vld [vmem:[%s3558_s11 + $0xc0] sm:%s4299_s15]  ;;  %v259_v41 = vld [vmem:[%s3558_s11 + $0xd8] sm:%s4299_s15] }
  0xf0   : > { %258 = vst [vmem:[%s3562_s14 + $0x80] sm:%s4299_s15] %v257_v40  ;;  %260 = vst [vmem:[%s3562_s14 + $0x90] sm:%s4299_s15] %v259_v41 }
  0xf1   : > { %v261_v42 = vld [vmem:[%s3558_s11 + $0xf0] sm:%s4299_s15]  ;;  %v263_v43 = vld [vmem:[%s3558_s11 + $0x108] sm:%s4299_s15] }
  0xf2   : > { %262 = vst [vmem:[%s3562_s14 + $0xa0] sm:%s4299_s15] %v261_v42  ;;  %264 = vst [vmem:[%s3562_s14 + $0xb0] sm:%s4299_s15] %v263_v43 }
  0xf3   : > { %v265_v44 = vld [vmem:[%s3558_s11 + $0x120] sm:%s4299_s15]  ;;  %v267_v45 = vld [vmem:[%s3558_s11 + $0x138] sm:%s4299_s15] }
  0xf4   : > { %266 = vst [vmem:[%s3562_s14 + $0xc0] sm:%s4299_s15] %v265_v44  ;;  %268 = vst [vmem:[%s3562_s14 + $0xd0] sm:%s4299_s15] %v267_v45 }
  0xf5   : > { %v269_v46 = vld [vmem:[%s3558_s11 + $0x150] sm:%s4299_s15]  ;;  %v271_v47 = vld [vmem:[%s3558_s11 + $0x168] sm:%s4299_s15] }
  0xf6   : > { %270 = vst [vmem:[%s3562_s14 + $0xe0] sm:%s4299_s15] %v269_v46  ;;  %272 = vst [vmem:[%s3562_s14 + $0xf0] sm:%s4299_s15] %v271_v47 }
  0xf7   : > { %v273_v48 = vld [vmem:[%s3558_s11 + $0x180] sm:%s4299_s15]  ;;  %v275_v49 = vld [vmem:[%s3558_s11 + $0x198] sm:%s4299_s15] }
  0xf8   : > { %274 = vst [vmem:[%s3562_s14 + $0x100] sm:%s4299_s15] %v273_v48  ;;  %276 = vst [vmem:[%s3562_s14 + $0x110] sm:%s4299_s15] %v275_v49 }
  0xf9   : > { %v277_v50 = vld [vmem:[%s3558_s11 + $0x1b0] sm:%s4299_s15]  ;;  %v279_v51 = vld [vmem:[%s3558_s11 + $0x1c8] sm:%s4299_s15] }
  0xfa   : > { %278 = vst [vmem:[%s3562_s14 + $0x120] sm:%s4299_s15] %v277_v50  ;;  %280 = vst [vmem:[%s3562_s14 + $0x130] sm:%s4299_s15] %v279_v51 }
  0xfb   : > { %v281_v52 = vld [vmem:[%s3558_s11 + $0x1e0] sm:%s4299_s15]  ;;  %v283_v53 = vld [vmem:[%s3558_s11 + $0x1f8] sm:%s4299_s15] }
  0xfc   : > { %282 = vst [vmem:[%s3562_s14 + $0x140] sm:%s4299_s15] %v281_v52  ;;  %284 = vst [vmem:[%s3562_s14 + $0x150] sm:%s4299_s15] %v283_v53 }
  0xfd   : > { %v285_v54 = vld [vmem:[%s3558_s11 + $0x210] sm:%s4299_s15]  ;;  %v287_v55 = vld [vmem:[%s3558_s11 + $0x228] sm:%s4299_s15] }
  0xfe   : > { %286 = vst [vmem:[%s3562_s14 + $0x160] sm:%s4299_s15] %v285_v54  ;;  %288 = vst [vmem:[%s3562_s14 + $0x170] sm:%s4299_s15] %v287_v55 }
  0xff   : > { %v289_v56 = vld [vmem:[%s3558_s11 + $0x240] sm:%s4299_s15]  ;;  %v291_v57 = vld [vmem:[%s3558_s11 + $0x258] sm:%s4299_s15] }
 0x100   : > { %290 = vst [vmem:[%s3562_s14 + $0x180] sm:%s4299_s15] %v289_v56  ;;  %292 = vst [vmem:[%s3562_s14 + $0x190] sm:%s4299_s15] %v291_v57 }
 0x101   : > { %v293_v58 = vld [vmem:[%s3558_s11 + $0x270] sm:%s4299_s15]  ;;  %v295_v59 = vld [vmem:[%s3558_s11 + $0x288] sm:%s4299_s15] }
 0x102   : > { %294 = vst [vmem:[%s3562_s14 + $0x1a0] sm:%s4299_s15] %v293_v58  ;;  %296 = vst [vmem:[%s3562_s14 + $0x1b0] sm:%s4299_s15] %v295_v59 }
 0x103   : > { %v297_v60 = vld [vmem:[%s3558_s11 + $0x2a0] sm:%s4299_s15]  ;;  %v299_v61 = vld [vmem:[%s3558_s11 + $0x2b8] sm:%s4299_s15] }
 0x104   : > { %298 = vst [vmem:[%s3562_s14 + $0x1c0] sm:%s4299_s15] %v297_v60  ;;  %300 = vst [vmem:[%s3562_s14 + $0x1d0] sm:%s4299_s15] %v299_v61 }
 0x105   : > { %v301_v62 = vld [vmem:[%s3558_s11 + $0x2d0] sm:%s4299_s15]  ;;  %v303_v63 = vld [vmem:[%s3558_s11 + $0x2e8] sm:%s4299_s15] }
 0x106   : > { %302 = vst [vmem:[%s3562_s14 + $0x1e0] sm:%s4299_s15] %v301_v62  ;;  %304 = vst [vmem:[%s3562_s14 + $0x1f0] sm:%s4299_s15] %v303_v63 }
 0x107 PF: > { %p2623_p13 = scmp.ge.s32.totalorder %s3345_s22, 1  ;;  %p887_p0 = scmp.lt.s32.totalorder %s3345_s22, 3 }
 0x109   : > { %p888_p1 = pnand %p2623_p13, %p887_p0 }
 0x10a   : > { %s894_s13 = sand.u32 (!%p888_p1), 1, %s3329_s18   ;;  %s4433_s17 = sshll.u32 (!%p888_p1), %s3337_s20, 2 }
 0x10b   : > { %891 = sbr.rel (%p888_p1) target bundleno = 1038 (0x40e), region = 102  ;;  %s2624_s11 = sshll.u32 (!%p888_p1), %s894_s13, 9 }
 0x10c   : > { %s2764_s30 = smul.u32 (!%p888_p1), 80, %s894_s13  ;;  %p951_p2 = scmp.lt.s32.totalorder (!%p888_p1), %s4433_s17, 5 }
 0x10d   : > { %s4443_s6 = scalar_lea.vmem (!%p888_p1), [#allocation3], %s2624_s11  ;;  %p2626_p3 = scmp.ne.s32.totalorder (!%p888_p1), %s3337_s20, 0 }
 0x10e   : > { %s4445_s8 = scalar_lea.vmem (!%p888_p1), [#allocation4], %s2764_s30  }
 0x112   : > { %s4437_s14 = scalar_select %p951_p2, %s4433_s17, 5 }
 0x113   : > { %968 = sbr.rel (%p2626_p3) target bundleno = 605 (0x25d), region = 110  ;;  %v970_v0 = vld [vmem:[%s4931_s0 + $0x8] sm:$0xff] (!%p2626_p3)  ;;  %v969_v1 = vld [vmem:[%s4931_s0] sm:$0xff] (!%p2626_p3)  ;;  %v971_v2 = vld [vmem:[%s4931_s0 + $0x10] sm:$0xff] (!%p2626_p3)  ;;  %vm996_vm0 = vcmask (!%p2626_p3), 1041408   ;;  %v1073_v59 = vlaneseq (!%p2626_p3) }
 0x114   : > { %s953_s9 = scalar_lea.vmem %s4935_s4, %s4437_s14  ;;  %v976_v3 = vunpack.c.l.bf16 (!%p2626_p3), %v970_v0  ;;  %v977_v4 = vunpack.c.h.bf16 (!%p2626_p3), %v970_v0  ;;  %v974_v5 = vunpack.c.l.bf16 (!%p2626_p3), %v969_v1  ;;  %v975_v6 = vunpack.c.h.bf16 (!%p2626_p3), %v969_v1  ;;  %v973_v7 = vld [vmem:[%s4931_s0 + $0x20] sm:$0x11] (!%p2626_p3)  ;;  %v972_v12 = vld [vmem:[%s4931_s0 + $0x18] sm:$0xff] (!%p2626_p3) }
 0x115   : > { %v978_v8 = vunpack.c.l.bf16 (!%p2626_p3), %v971_v2  ;;  %v979_v9 = vunpack.c.h.bf16 (!%p2626_p3), %v971_v2  ;;  %v982_v10 = vunpack.c.l.bf16 (!%p2626_p3), %v973_v7  ;;  %v983_v11 = vunpack.c.h.bf16 (!%p2626_p3), %v973_v7  ;;  %v1070_v1 = vld [vmem:[%s4932_s1] sm:$0x3] (!%p2626_p3) }
 0x116   : > { %v987_v13 = vadd.f32 (!%p2626_p3), %v977_v4, %v976_v3  ;;  %v984_v14 = vadd.f32 (!%p2626_p3), %v975_v6, %v974_v5  ;;  %v980_v19 = vunpack.c.l.bf16 (!%p2626_p3), %v972_v12  ;;  %v981_v20 = vunpack.c.h.bf16 (!%p2626_p3), %v972_v12 }
 0x117   : > { %v997_v15 = vsel (!%p2626_p3), %vm996_vm0, %v982_v10, 0.0  ;;  %v998_v16 = vsel (!%p2626_p3), %vm996_vm0, %v983_v11, 0.0  ;;  %v990_v17 = vadd.f32 (!%p2626_p3), %v979_v9, %v978_v8  ;;  %v1074_v0 = vshrl.u32 (!%p2626_p3), %v1073_v59, 7 }
 0x118   : > { %988 = vadd.xlane.f32.xlu1 (!%p2626_p3), %v987_v13  ;;  %985 = vadd.xlane.f32.xlu0 (!%p2626_p3), %v984_v14  ;;  %v999_v18 = vadd.f32 (!%p2626_p3), %v998_v16, %v997_v15  ;;  %v993_v21 = vadd.f32 (!%p2626_p3), %v981_v20, %v980_v19  ;;  %v1071_v7 = vunpack.c.l.bf16 (!%p2626_p3), %v1070_v1 }
 0x11c   : > { %991 = vadd.xlane.f32.xlu1 %v990_v17  ;;  %1000 = vadd.xlane.f32.xlu0 %v999_v18 }
 0x120   : > { %994 = vadd.xlane.f32.xlu0 %v993_v21 }
 0x1a5   : > { %v989_v22 = vpop.xlane.xlu1 %988  ;;  %v986_v23 = vpop.xlane.xlu0 %985 }
 0x1a6   : > { %v1004_v24 = vmul.f32 0.00390625, %v989_v22  ;;  %v1003_v25 = vmul.f32 0.00390625, %v986_v23 }
 0x1a8   : > { %v4465_v26 = vsub.f32 %v976_v3, %v1004_v24  ;;  %v4467_v27 = vsub.f32 %v977_v4, %v1004_v24  ;;  %v4469_v28 = vsub.f32 %v974_v5, %v1003_v25  ;;  %v4471_v29 = vsub.f32 %v975_v6, %v1003_v25  ;;  %v1101_v5 = vld [vmem:[%s4933_s2] sm:$0x3] }
 0x1a9   : > { %v992_v30 = vpop.xlane.xlu1 %991  ;;  %v1001_v31 = vpop.xlane.xlu0 %1000  ;;  %v1102_v12 = vunpack.c.l.bf16 %v1101_v5 }
 0x1aa   : > { %v1005_v32 = vmul.f32 0.00390625, %v992_v30  ;;  %v1007_v33 = vmul.f32 0.00390625, %v1001_v31  ;;  %v1020_v34 = vmul.f32 %v4465_v26, %v4465_v26  ;;  %v1021_v35 = vmul.f32 %v4467_v27, %v4467_v27 }
 0x1ab   : > { %v1018_v36 = vmul.f32 %v4469_v28, %v4469_v28  ;;  %v1019_v37 = vmul.f32 %v4471_v29, %v4471_v29 }
 0x1ac   : > { %v4481_v38 = vsub.f32 %v978_v8, %v1005_v32  ;;  %v4483_v39 = vsub.f32 %v979_v9, %v1005_v32  ;;  %v4485_v40 = vsub.f32 %v982_v10, %v1007_v33  ;;  %v4487_v41 = vsub.f32 %v983_v11, %v1007_v33 }
 0x1ad   : > { %v995_v42 = vpop.xlane.xlu0 %994  ;;  %v1031_v43 = vadd.f32 %v1021_v35, %v1020_v34  ;;  %v1028_v44 = vadd.f32 %v1019_v37, %v1018_v36  ;;  %v1075_v8 = vsub.s32 0, %v1074_v0  ;;  %v1079_v9 = vsub.s32 2, %v1074_v0 }
 0x1ae   : > { %v1006_v45 = vmul.f32 0.00390625, %v995_v42  ;;  %v1022_v46 = vmul.f32 %v4481_v38, %v4481_v38  ;;  %v1023_v47 = vmul.f32 %v4483_v39, %v4483_v39  ;;  %v1026_v48 = vmul.f32 %v4485_v40, %v4485_v40 }
 0x1af   : > { %1032 = vadd.xlane.f32.xlu0 %v1031_v43  ;;  %1029 = vadd.xlane.f32.xlu1 %v1028_v44  ;;  %v1027_v49 = vmul.f32 %v4487_v41, %v4487_v41  ;;  %v1076_v16 = vrot.slane %v1071_v7, %v1075_v8  ;;  %v1080_v17 = vrot.slane %v1071_v7, %v1079_v9 }
 0x1b0   : > { %v4497_v50 = vsub.f32 %v980_v19, %v1006_v45  ;;  %v4499_v51 = vsub.f32 %v981_v20, %v1006_v45  ;;  %v1034_v52 = vadd.f32 %v1023_v47, %v1022_v46  ;;  %v1040_v53 = vsel %vm996_vm0, %v1026_v48, 0.0 }
 0x1b1   : > { %v1041_v54 = vsel %vm996_vm0, %v1027_v49, 0.0  ;;  %v1107_v20 = vrot.slane %v1102_v12, %v1075_v8  ;;  %v1111_v21 = vrot.slane %v1102_v12, %v1079_v9  ;;  %v1086_v22 = vrot.slane %v1076_v16, %v1075_v8 }
 0x1b2   : > { %v1024_v55 = vmul.f32 %v4497_v50, %v4497_v50  ;;  %v1025_v56 = vmul.f32 %v4499_v51, %v4499_v51  ;;  %v1042_v58 = vadd.f32 %v1041_v54, %v1040_v53  ;;  %v1090_v23 = vrot.slane %v1080_v17, %v1075_v8 }
 0x1b3   : > { %1035 = vadd.xlane.f32.xlu1 %v1034_v52  ;;  %v1117_v30 = vrot.slane %v1107_v20, %v1075_v8  ;;  %v1121_v31 = vrot.slane %v1111_v21, %v1075_v8 }
 0x1b4   : > { %v1037_v57 = vadd.f32 %v1025_v56, %v1024_v55 }
 0x1b6   : > { %1038 = vadd.xlane.f32.xlu0 %v1037_v57 }
 0x1b7   : > { %1043 = vadd.xlane.f32.xlu1 %v1042_v58 }
 0x23c   : > { %v1030_v60 = vpop.xlane.xlu1 %1029  ;;  %v1033_v61 = vpop.xlane.xlu0 %1032 }
 0x23d   : > { %v1045_v62 = vmul.f32 0.00390625, %v1030_v60  ;;  %v1046_v63 = vmul.f32 0.00390625, %v1033_v61 }
 0x23f   : > { %v1050_v2 = vadd.f32 1e-05, %v1045_v62  ;;  %v1051_v3 = vadd.f32 1e-05, %v1046_v63 }
 0x240   : > { %v1036_v4 = vpop.xlane.xlu1 %1035 }
 0x241   : > { %3065 = vrsqrt.f32 %v1050_v2  ;;  %v1047_v6 = vmul.f32 0.00390625, %v1036_v4 }
 0x242   : > { %3067 = vrsqrt.f32 %v1051_v3 }
 0x243   : > { %v1052_v10 = vadd.f32 1e-05, %v1047_v6  ;;  %v1039_v11 = vpop.xlane.xlu0 %1038 }
 0x244   : > { %v1044_v13 = vpop.xlane.xlu1 %1043  ;;  %v1048_v14 = vmul.f32 0.00390625, %v1039_v11 }
 0x245   : > { %3069 = vrsqrt.f32 %v1052_v10  ;;  %v1049_v15 = vmul.f32 0.00390625, %v1044_v13 }
 0x246   : > { %v1053_v18 = vadd.f32 1e-05, %v1048_v14 }
 0x247   : > { %v1054_v19 = vadd.f32 1e-05, %v1049_v15 }
 0x248   : > { %3071 = vrsqrt.f32 %v1053_v18 }
 0x249   : > { %3073 = vrsqrt.f32 %v1054_v19 }
 0x24b   : > { %v3066_v24 = vpop.eup %3065 }
 0x24c   : > { %v3068_v25 = vpop.eup %3067  ;;  %v1060_v32 = vmul.f32 %v3066_v24, %v4469_v28  ;;  %v1061_v33 = vmul.f32 %v3066_v24, %v4471_v29 }
 0x24d   : > { %v1062_v34 = vmul.f32 %v3068_v25, %v4465_v26  ;;  %v1063_v35 = vmul.f32 %v3068_v25, %v4467_v27 }
 0x24e   : > { %v1091_v36 = vmul.f32 %v1086_v22, %v1060_v32  ;;  %v1092_v37 = vmul.f32 %v1090_v23, %v1061_v33 }
 0x24f   : > { %v3070_v42 = vpop.eup %3069  ;;  %v1093_v43 = vmul.f32 %v1086_v22, %v1062_v34  ;;  %v1094_v44 = vmul.f32 %v1090_v23, %v1063_v35 }
 0x250   : > { %v1122_v45 = vadd.f32 %v1117_v30, %v1091_v36  ;;  %v1123_v46 = vadd.f32 %v1121_v31, %v1092_v37  ;;  %v1064_v47 = vmul.f32 %v3070_v42, %v4481_v38  ;;  %v1065_v48 = vmul.f32 %v3070_v42, %v4483_v39 }
 0x251   : > { %v1124_v49 = vadd.f32 %v1117_v30, %v1093_v43  ;;  %v1125_v52 = vadd.f32 %v1121_v31, %v1094_v44 }
 0x252   : > { %v3072_v28 = vpop.eup %3071  ;;  %v2744_v53 = vpack.c.bf16 %v1123_v46, %v1122_v45  ;;  %v1095_v29 = vmul.f32 %v1086_v22, %v1064_v47  ;;  %v1096_v54 = vmul.f32 %v1090_v23, %v1065_v48 }
 0x253   : > { %v3074_v26 = vpop.eup %3073  ;;  %v2745_v55 = vpack.c.bf16 %v1125_v52, %v1124_v49  ;;  %v1066_v27 = vmul.f32 %v3072_v28, %v4497_v50  ;;  %v1067_v56 = vmul.f32 %v3072_v28, %v4499_v51 }
 0x254   : > { %1164 = vst [vmem:[#allocation2] sm:$0xff] %v2744_v53  ;;  %v1126_v57 = vadd.f32 %v1117_v30, %v1095_v29  ;;  %v1127_v58 = vadd.f32 %v1121_v31, %v1096_v54  ;;  %v1068_v59 = vmul.f32 %v3074_v26, %v4485_v40  ;;  %v1069_v38 = vmul.f32 %v3074_v26, %v4487_v41 }
 0x255   : > { %1165 = vst [vmem:[#allocation2 + $0x8] sm:$0xff] %v2745_v55  ;;  %v1097_v39 = vmul.f32 %v1086_v22, %v1066_v27  ;;  %v1098_v60 = vmul.f32 %v1090_v23, %v1067_v56 }
 0x256   : > { %v2746_v61 = vpack.c.bf16 %v1127_v58, %v1126_v57  ;;  %v1099_v62 = vmul.f32 %v1086_v22, %v1068_v59  ;;  %v1100_v63 = vmul.f32 %v1090_v23, %v1069_v38 }
 0x257   : > { %v1128_v0 = vadd.f32 %v1117_v30, %v1097_v39  ;;  %v1129_v1 = vadd.f32 %v1121_v31, %v1098_v60 }
 0x258   : > { %1166 = vst [vmem:[#allocation2 + $0x10] sm:$0xff] %v2746_v61  ;;  %v1130_v2 = vadd.f32 %v1117_v30, %v1099_v62  ;;  %v1131_v50 = vadd.f32 %v1121_v31, %v1100_v63 }
 0x259   : > { %v2747_v3 = vpack.c.bf16 %v1129_v1, %v1128_v0 }
 0x25a   : > { %v2748_v51 = vpack.c.bf16 %v1131_v50, %v1130_v2 }
 0x25b   : > { %1167 = vst [vmem:[#allocation2 + $0x18] sm:$0xff] %v2747_v3 }
 0x25c   : > { %1168 = vst [vmem:[#allocation2 + $0x20] sm:$0x11] %v2748_v51 }
 0x25d PF: > { %v3075_v40 = vld [vmem:[%s4443_s6 + $0x4] ss:$16 sps:$4 sm:$0xff]   ;;  %v3077_v41 = vld [vmem:[%s4443_s6 + $0xc] ss:$16 sps:$4 sm:$0xff]   ;;  %v3079_v4 = vld [vmem:[%s4443_s6] ss:$16 sps:$4 sm:$0xff]  }
 0x25e   : > { %1624 = vmatprep.subr.bf16.mxu0 %v3075_v40  ;;  %v3080_v5 = vld [vmem:[%s4443_s6 + $0x8] ss:$16 sps:$4 sm:$0xff]   ;;  %1685 = vmatprep.subr.bf16.mxu1 %v3077_v41  ;;  %v3081_v6 = vld [vmem:[%s4443_s6 + $0x24] ss:$16 sps:$4 sm:$0xff]   ;;  %v3083_v7 = vld [vmem:[%s4443_s6 + $0x2c] ss:$16 sps:$4 sm:$0xff]  }
 0x25f   : > { %1625 = vmatpush1.bf16.msra.mxu0 %v3079_v4  ;;  %1686 = vmatpush1.bf16.msra.mxu1 %v3080_v5  ;;  %v3085_v8 = vld [vmem:[%s4443_s6 + $0x20] ss:$16 sps:$4 sm:$0xff]   ;;  %v3086_v9 = vld [vmem:[%s4443_s6 + $0x28] ss:$16 sps:$4 sm:$0xff]   ;;  %v3087_v10 = vld [vmem:[%s4443_s6 + $0x44] ss:$16 sps:$4 sm:$0xff]  }
 0x260   : > { %1626 = vmatprep.subr.bf16.mxu0 %v3081_v6  ;;  %1687 = vmatprep.subr.bf16.mxu1 %v3083_v7  ;;  %v3089_v11 = vld [vmem:[%s4443_s6 + $0x4c] ss:$16 sps:$4 sm:$0xff]   ;;  %v3091_v12 = vld [vmem:[%s4443_s6 + $0x40] ss:$16 sps:$4 sm:$0xff]   ;;  %v3092_v13 = vld [vmem:[%s4443_s6 + $0x48] ss:$16 sps:$4 sm:$0xff]  }
 0x261   : > { %v3093_v14 = vld [vmem:[%s4443_s6 + $0x64] ss:$16 sps:$4 sm:$0xff]   ;;  %v3095_v15 = vld [vmem:[%s4443_s6 + $0x6c] ss:$16 sps:$4 sm:$0xff]   ;;  %v3097_v16 = vld [vmem:[%s4443_s6 + $0x60] ss:$16 sps:$4 sm:$0xff]  }
 0x262   : > { %v3098_v17 = vld [vmem:[%s4443_s6 + $0x68] ss:$16 sps:$4 sm:$0xff]   ;;  %v3099_v18 = vld [vmem:[%s4443_s6 + $0x84] ss:$16 sps:$4 sm:$0xff]   ;;  %v3101_v19 = vld [vmem:[%s4443_s6 + $0x8c] ss:$16 sps:$4 sm:$0xff]  }
 0x263   : > { %1627 = vmatpush1.bf16.msra.mxu0 %v3085_v8  ;;  %1688 = vmatpush1.bf16.msra.mxu1 %v3086_v9  ;;  %v3103_v20 = vld [vmem:[%s4443_s6 + $0x80] ss:$16 sps:$4 sm:$0xff]   ;;  %v3104_v21 = vld [vmem:[%s4443_s6 + $0x88] ss:$16 sps:$4 sm:$0xff]   ;;  %v3105_v22 = vld [vmem:[%s4443_s6 + $0xa4] ss:$16 sps:$4 sm:$0xff]   ;;  %v1241_v9 = vlaneseq }
 0x264   : > { %1628 = vmatprep.subr.bf16.mxu0 %v3087_v10  ;;  %1689 = vmatprep.subr.bf16.mxu1 %v3089_v11  ;;  %v3107_v23 = vld [vmem:[%s4443_s6 + $0xac] ss:$16 sps:$4 sm:$0xff]   ;;  %v3109_v24 = vld [vmem:[%s4443_s6 + $0xa0] ss:$16 sps:$4 sm:$0xff]   ;;  %v3110_v25 = vld [vmem:[%s4443_s6 + $0xa8] ss:$16 sps:$4 sm:$0xff]  }
 0x265   : > { %v3111_v30 = vld [vmem:[%s4443_s6 + $0xc4] ss:$16 sps:$4 sm:$0xff]   ;;  %v3113_v31 = vld [vmem:[%s4443_s6 + $0xcc] ss:$16 sps:$4 sm:$0xff]   ;;  %v3115_v32 = vld [vmem:[%s4443_s6 + $0xc0] ss:$16 sps:$4 sm:$0xff]  }
 0x266   : > { %v3116_v33 = vld [vmem:[%s4443_s6 + $0xc8] ss:$16 sps:$4 sm:$0xff]   ;;  %v3117_v34 = vld [vmem:[%s4443_s6 + $0xe4] ss:$16 sps:$4 sm:$0xff]   ;;  %v3119_v35 = vld [vmem:[%s4443_s6 + $0xec] ss:$16 sps:$4 sm:$0xff]  }
 0x267   : > { %1629 = vmatpush1.bf16.msra.mxu0 %v3091_v12  ;;  %1690 = vmatpush1.bf16.msra.mxu1 %v3092_v13  ;;  %v3121_v36 = vld [vmem:[%s4443_s6 + $0xe0] ss:$16 sps:$4 sm:$0xff]   ;;  %v3122_v37 = vld [vmem:[%s4443_s6 + $0xe8] ss:$16 sps:$4 sm:$0xff]   ;;  %v3123_v42 = vld [vmem:[%s4443_s6 + $0x104] ss:$16 sps:$4 sm:$0xff]  }
 0x268   : > { %1630 = vmatprep.subr.bf16.mxu0 %v3093_v14  ;;  %1691 = vmatprep.subr.bf16.mxu1 %v3095_v15  ;;  %v3125_v43 = vld [vmem:[%s4443_s6 + $0x10c] ss:$16 sps:$4 sm:$0xff]   ;;  %v3127_v44 = vld [vmem:[%s4443_s6 + $0x100] ss:$16 sps:$4 sm:$0xff]   ;;  %v3128_v45 = vld [vmem:[%s4443_s6 + $0x108] ss:$16 sps:$4 sm:$0xff]  }
 0x269   : > { %v3129_v46 = vld [vmem:[%s4443_s6 + $0x124] ss:$16 sps:$4 sm:$0xff]   ;;  %v3131_v47 = vld [vmem:[%s4443_s6 + $0x12c] ss:$16 sps:$4 sm:$0xff]   ;;  %v3133_v48 = vld [vmem:[%s4443_s6 + $0x120] ss:$16 sps:$4 sm:$0xff]  }
 0x26a   : > { %v3134_v49 = vld [vmem:[%s4443_s6 + $0x128] ss:$16 sps:$4 sm:$0xff]   ;;  %v3135_v52 = vld [vmem:[%s4443_s6 + $0x144] ss:$16 sps:$4 sm:$0xff]   ;;  %v3137_v28 = vld [vmem:[%s4443_s6 + $0x14c] ss:$16 sps:$4 sm:$0xff]  }
 0x26b   : > { %1631 = vmatpush1.bf16.msra.mxu0 %v3097_v16  ;;  %1692 = vmatpush1.bf16.msra.mxu1 %v3098_v17  ;;  %v3139_v53 = vld [vmem:[%s4443_s6 + $0x140] ss:$16 sps:$4 sm:$0xff]   ;;  %v3140_v29 = vld [vmem:[%s4443_s6 + $0x148] ss:$16 sps:$4 sm:$0xff]   ;;  %v3141_v54 = vld [vmem:[%s4443_s6 + $0x164] ss:$16 sps:$4 sm:$0xff]  }
 0x26c   : > { %1632 = vmatprep.subr.bf16.mxu0 %v3099_v18  ;;  %1693 = vmatprep.subr.bf16.mxu1 %v3101_v19  ;;  %v3143_v26 = vld [vmem:[%s4443_s6 + $0x16c] ss:$16 sps:$4 sm:$0xff]   ;;  %v3145_v55 = vld [vmem:[%s4443_s6 + $0x160] ss:$16 sps:$4 sm:$0xff]   ;;  %v3146_v56 = vld [vmem:[%s4443_s6 + $0x168] ss:$16 sps:$4 sm:$0xff]  }
 0x26d   : > { %v3173_v27 = vld [vmem:[#allocation2 + $0x4] ss:$8 sps:$4 sm:$0xff]   ;;  %v3151_v59 = vld [vmem:[%s4443_s6 + $0x180] ss:$16 sps:$4 sm:$0xff]   ;;  %v3152_v38 = vld [vmem:[%s4443_s6 + $0x188] ss:$16 sps:$4 sm:$0xff]  }
 0x26e   : > { %v3147_v57 = vld [vmem:[%s4443_s6 + $0x184] ss:$16 sps:$4 sm:$0xff]   ;;  %v3149_v58 = vld [vmem:[%s4443_s6 + $0x18c] ss:$16 sps:$4 sm:$0xff]   ;;  %1656 = vmatprep.mubr.bf16.mxu0 %v3173_v27  ;;  %1717 = vmatprep.mubr.bf16.mxu1 %v3173_v27  ;;  %v3157_v61 = vld [vmem:[%s4443_s6 + $0x1a0] ss:$16 sps:$4 sm:$0xff]  }
 0x26f   : > { %1633 = vmatpush1.bf16.msra.mxu0 %v3103_v20  ;;  %1694 = vmatpush1.bf16.msra.mxu1 %v3104_v21  ;;  %v3153_v39 = vld [vmem:[%s4443_s6 + $0x1a4] ss:$16 sps:$4 sm:$0xff]   ;;  %v3155_v60 = vld [vmem:[%s4443_s6 + $0x1ac] ss:$16 sps:$4 sm:$0xff]   ;;  %v3158_v62 = vld [vmem:[%s4443_s6 + $0x1a8] ss:$16 sps:$4 sm:$0xff]  }
 0x270   : > { %1634 = vmatprep.subr.bf16.mxu0 %v3105_v22  ;;  %1695 = vmatprep.subr.bf16.mxu1 %v3107_v23  ;;  %v3159_v63 = vld [vmem:[%s4443_s6 + $0x1c4] ss:$16 sps:$4 sm:$0xff]   ;;  %v3161_v0 = vld [vmem:[%s4443_s6 + $0x1cc] ss:$16 sps:$4 sm:$0xff]   ;;  %v3163_v1 = vld [vmem:[%s4443_s6 + $0x1c0] ss:$16 sps:$4 sm:$0xff]  }
 0x271   : > { %v3164_v2 = vld [vmem:[%s4443_s6 + $0x1c8] ss:$16 sps:$4 sm:$0xff]   ;;  %v3165_v50 = vld [vmem:[%s4443_s6 + $0x1e4] ss:$16 sps:$4 sm:$0xff]   ;;  %v3167_v3 = vld [vmem:[%s4443_s6 + $0x1ec] ss:$16 sps:$4 sm:$0xff]  }
 0x272   : > { %v3169_v51 = vld [vmem:[%s4443_s6 + $0x1e0] ss:$16 sps:$4 sm:$0xff]   ;;  %v3170_v40 = vld [vmem:[%s4443_s6 + $0x1e8] ss:$16 sps:$4 sm:$0xff]   ;;  %v3174_v4 = vld [vmem:[#allocation2 + $0x14] ss:$8 sps:$4 sm:$0xff]  }
 0x273   : > { %1635 = vmatpush1.bf16.msra.mxu0 %v3109_v24  ;;  %1696 = vmatpush1.bf16.msra.mxu1 %v3110_v25  ;;  %v3171_v41 = vld [vmem:[#allocation2] ss:$8 sps:$4 sm:$0xff]   ;;  %v3176_v6 = vld [vmem:[#allocation2 + $0x10] ss:$8 sps:$4 sm:$0xff]   ;;  %v1242_v10 = vshrl.u32 %v1241_v9, 7  ;;  %s1829_s14 = ssub.s32 (%p3544_p6), 6, %s4433_s17 }
 0x274   : > { %1636 = vmatprep.subr.bf16.mxu0 %v3111_v30  ;;  %1697 = vmatprep.subr.bf16.mxu1 %v3113_v31  ;;  %v1173_v5 = vld [vmem:[#allocation2 + $0x20] sm:$0x11]  ;;  %p1830_p4 = scmp.lt.s32.totalorder (%p3544_p6), %s1829_s14, 4 }
 0x275   : > { %v2637_v7 = vcombine.high %v1173_v5, %v1173_v5  ;;  %v2636_v8 = vcombine.low %v1173_v5, %v1173_v5  ;;  %v1238_v11 = vld [vmem:[%s953_s9] sm:$0xf]  ;;  %v1243_v13 = vsub.s32 0, %v1242_v10  ;;  %v1251_v14 = vsub.s32 4, %v1242_v10  ;;  %s2759_s9 = sshll.u32 (%p3544_p6), %s3337_s20, 4 }
 0x276   : > { %v1239_v12 = vunpack.c.l.bf16 %v1238_v11  ;;  %v1247_v15 = vsub.s32 2, %v1242_v10  ;;  %v1255_v16 = vsub.s32 6, %v1242_v10  ;;  %s4609_s3 = scalar_lea.vmem (%p3544_p6), %s4936_s5, %s2759_s9  }
 0x277   : > { %1637 = vmatpush1.bf16.msra.mxu0 %v3115_v32  ;;  %1698 = vmatpush1.bf16.msra.mxu1 %v3116_v33 }
 0x278   : > { %1638 = vmatprep.subr.bf16.mxu0 %v3117_v34  ;;  %1699 = vmatprep.subr.bf16.mxu1 %v3119_v35  ;;  %v1244_v17 = vrot.slane %v1239_v12, %v1243_v13  ;;  %v1252_v18 = vrot.slane %v1239_v12, %v1251_v14  ;;  %v1248_v19 = vrot.slane %v1239_v12, %v1247_v15 }
 0x279   : > { %v1256_v20 = vrot.slane %v1239_v12, %v1255_v16 }
 0x27a   : > { %v1264_v21 = vrot.slane %v1244_v17, %v1243_v13  ;;  %v1272_v22 = vrot.slane %v1252_v18, %v1243_v13  ;;  %v1268_v23 = vrot.slane %v1248_v19, %v1243_v13 }
 0x27b   : > { %1639 = vmatpush1.bf16.msra.mxu0 %v3121_v36  ;;  %1700 = vmatpush1.bf16.msra.mxu1 %v3122_v37  ;;  %v1276_v24 = vrot.slane %v1256_v20, %v1243_v13 }
 0x27c   : > { %1640 = vmatprep.subr.bf16.mxu0 %v3123_v42  ;;  %1701 = vmatprep.subr.bf16.mxu1 %v3125_v43 }
 0x27f   : > { %1641 = vmatpush1.bf16.msra.mxu0 %v3127_v44  ;;  %1702 = vmatpush1.bf16.msra.mxu1 %v3128_v45 }
 0x280   : > { %1642 = vmatprep.subr.bf16.mxu0 %v3129_v46  ;;  %1703 = vmatprep.subr.bf16.mxu1 %v3131_v47 }
 0x283   : > { %1643 = vmatpush1.bf16.msra.mxu0 %v3133_v48  ;;  %1704 = vmatpush1.bf16.msra.mxu1 %v3134_v49 }
 0x284   : > { %1644 = vmatprep.subr.bf16.mxu0 %v3135_v52  ;;  %1705 = vmatprep.subr.bf16.mxu1 %v3137_v28 }
 0x287   : > { %1645 = vmatpush1.bf16.msra.mxu0 %v3139_v53  ;;  %1706 = vmatpush1.bf16.msra.mxu1 %v3140_v29 }
 0x288   : > { %1646 = vmatprep.subr.bf16.mxu0 %v3141_v54  ;;  %1707 = vmatprep.subr.bf16.mxu1 %v3143_v26 }
 0x28b   : > { %1647 = vmatpush1.bf16.msra.mxu0 %v3145_v55  ;;  %1708 = vmatpush1.bf16.msra.mxu1 %v3146_v56 }
 0x28c   : > { %1648 = vmatprep.subr.bf16.mxu0 %v3147_v57  ;;  %1709 = vmatprep.subr.bf16.mxu1 %v3149_v58 }
 0x28f   : > { %1649 = vmatpush1.bf16.msra.mxu0 %v3151_v59  ;;  %1710 = vmatpush1.bf16.msra.mxu1 %v3152_v38 }
 0x290   : > { %1650 = vmatprep.subr.bf16.mxu0 %v3153_v39  ;;  %1711 = vmatprep.subr.bf16.mxu1 %v3155_v60 }
 0x293   : > { %1651 = vmatpush1.bf16.msra.mxu0 %v3157_v61  ;;  %1712 = vmatpush1.bf16.msra.mxu1 %v3158_v62 }
 0x294   : > { %1652 = vmatprep.subr.bf16.mxu0 %v3159_v63  ;;  %1713 = vmatprep.subr.bf16.mxu1 %v3161_v0 }
 0x297   : > { %1653 = vmatpush1.bf16.msra.mxu0 %v3163_v1  ;;  %1714 = vmatpush1.bf16.msra.mxu1 %v3164_v2 }
 0x298   : > { %1654 = vmatprep.subr.bf16.mxu0 %v3165_v50  ;;  %1715 = vmatprep.subr.bf16.mxu1 %v3167_v3 }
 0x29b   : > { %1655 = vmatpush1.bf16.msra.mxu0 %v3169_v51  ;;  %1716 = vmatpush1.bf16.msra.mxu1 %v3170_v40 }
 0x29e   : > { %1657 = vmatmul.mubr.bf16.vlgmr.msra.gmra.mrb[0].mxu0 %v3171_v41  ;;  %1718 = vmatmul.mubr.bf16.vlgmr.msra.gmra.mrb[0].mxu1 %v3171_v41 }
 0x29f   : > { %1666 = vmatprep.mubr.bf16.mxu0 %v3174_v4  ;;  %1727 = vmatprep.mubr.bf16.mxu1 %v3174_v4 }
 0x2a6   : > { %1667 = vmatmul.mubr.bf16.gmra.mrb[4].mxu0 %v3176_v6  ;;  %1728 = vmatmul.mubr.bf16.gmra.mrb[4].mxu1 %v3176_v6 }
 0x2a7   : > { %1676 = vmatprep.mubr.bf16.mxu0 %v2637_v7  ;;  %1737 = vmatprep.mubr.bf16.mxu1 %v2637_v7 }
 0x2ae   : > { %1677 = vmatmul.mubr.bf16.gmra.mrb[8].mxu0 %v2636_v8  ;;  %1738 = vmatmul.mubr.bf16.gmra.mrb[8].mxu1 %v2636_v8 }
 0x371   : > { %v1658_v25 = vpop.f32.mrb[0].mxu0  ;;  %v1719_v30 = vpop.f32.mrb[0].mxu1 }
 0x372   : > { %v1659_v31 = vadd.f32 %v1658_v25, %v1264_v21  ;;  %v1720_v32 = vadd.f32 %v1719_v30, %v1272_v22  ;;  %v1660_v33 = vpop.f32.mrb[1].mxu0  ;;  %v1721_v34 = vpop.f32.mrb[1].mxu1 }
 0x373   : > { %v1661_v35 = vadd.f32 %v1660_v33, %v1268_v23  ;;  %v1722_v36 = vadd.f32 %v1721_v34, %v1276_v24  ;;  %v1662_v37 = vpop.f32.mrb[2].mxu0  ;;  %v1723_v42 = vpop.f32.mrb[2].mxu1 }
 0x374   : > { %v1663_v43 = vadd.f32 %v1662_v37, %v1264_v21  ;;  %v1724_v44 = vadd.f32 %v1723_v42, %v1272_v22  ;;  %v1664_v45 = vpop.f32.mrb[3].mxu0  ;;  %v1725_v46 = vpop.f32.mrb[3].mxu1 }
 0x375   : > { %v2749_v47 = vpack.c.bf16 %v1661_v35, %v1659_v31  ;;  %v2750_v48 = vpack.c.bf16 %v1722_v36, %v1720_v32  ;;  %v1665_v49 = vadd.f32 %v1664_v45, %v1268_v23  ;;  %v1726_v52 = vadd.f32 %v1725_v46, %v1276_v24 }
 0x377   : > { %1810 = vst [vmem:[%s4445_s8] sm:$0xff] %v2749_v47  ;;  %1811 = vst [vmem:[%s4445_s8 + $0x8] sm:$0xff] %v2750_v48  ;;  %v2751_v28 = vpack.c.bf16 %v1665_v49, %v1663_v43  ;;  %v2752_v53 = vpack.c.bf16 %v1726_v52, %v1724_v44 }
 0x379   : > { %1812 = vst [vmem:[%s4445_s8 + $0x10] sm:$0xff] %v2751_v28  ;;  %1813 = vst [vmem:[%s4445_s8 + $0x18] sm:$0xff] %v2752_v53  ;;  %v1668_v29 = vpop.f32.mrb[4].mxu0  ;;  %v1729_v54 = vpop.f32.mrb[4].mxu1 }
 0x37a   : > { %v1669_v26 = vadd.f32 %v1668_v29, %v1264_v21  ;;  %v1730_v55 = vadd.f32 %v1729_v54, %v1272_v22  ;;  %v1670_v27 = vpop.f32.mrb[5].mxu0  ;;  %v1731_v56 = vpop.f32.mrb[5].mxu1 }
 0x37b   : > { %v1671_v57 = vadd.f32 %v1670_v27, %v1268_v23  ;;  %v1732_v58 = vadd.f32 %v1731_v56, %v1276_v24  ;;  %v1672_v59 = vpop.f32.mrb[6].mxu0  ;;  %v1733_v38 = vpop.f32.mrb[6].mxu1 }
 0x37c   : > { %v1673_v39 = vadd.f32 %v1672_v59, %v1264_v21  ;;  %v1734_v60 = vadd.f32 %v1733_v38, %v1272_v22  ;;  %v1674_v61 = vpop.f32.mrb[7].mxu0  ;;  %v1735_v62 = vpop.f32.mrb[7].mxu1 }
 0x37d   : > { %v2753_v63 = vpack.c.bf16 %v1671_v57, %v1669_v26  ;;  %v2754_v0 = vpack.c.bf16 %v1732_v58, %v1730_v55  ;;  %v1675_v1 = vadd.f32 %v1674_v61, %v1268_v23  ;;  %v1736_v2 = vadd.f32 %v1735_v62, %v1276_v24 }
 0x37f   : > { %1814 = vst [vmem:[%s4445_s8 + $0x20] sm:$0xff] %v2753_v63  ;;  %1815 = vst [vmem:[%s4445_s8 + $0x28] sm:$0xff] %v2754_v0  ;;  %v2755_v50 = vpack.c.bf16 %v1675_v1, %v1673_v39  ;;  %v2756_v3 = vpack.c.bf16 %v1736_v2, %v1734_v60 }
 0x381   : > { %1816 = vst [vmem:[%s4445_s8 + $0x30] sm:$0xff] %v2755_v50  ;;  %1817 = vst [vmem:[%s4445_s8 + $0x38] sm:$0xff] %v2756_v3  ;;  %v1678_v51 = vpop.f32.mrb[8].mxu0  ;;  %v1739_v40 = vpop.f32.mrb[8].mxu1  ;;  %1826 = sbr.rel (!%p3544_p6) target bundleno = 1038 (0x40e), region = 114 }
 0x382   : > { %v1679_v41 = vadd.f32 %v1678_v51, %v1264_v21  ;;  %v1740_v4 = vadd.f32 %v1739_v40, %v1272_v22  ;;  %v1680_v5 = vpop.f32.mrb[9].mxu0  ;;  %v1741_v6 = vpop.f32.mrb[9].mxu1 }
 0x383   : > { %v1681_v7 = vadd.f32 %v1680_v5, %v1268_v23  ;;  %v1742_v8 = vadd.f32 %v1741_v6, %v1276_v24  ;;  %v1682_v9 = vpop.f32.mrb[10].mxu0  ;;  %v1743_v10 = vpop.f32.mrb[10].mxu1 }
 0x384   : > { %v1683_v11 = vpop.f32.mrb[11].mxu0  ;;  %v1744_v12 = vpop.f32.mrb[11].mxu1 }
 0x385   : > { %v2757_v13 = vpack.c.bf16 %v1681_v7, %v1679_v41  ;;  %v2758_v14 = vpack.c.bf16 %v1742_v8, %v1740_v4 }
 0x387   : > { %1818 = vst [vmem:[%s4445_s8 + $0x40] sm:$0x11] %v2757_v13  ;;  %1819 = vst [vmem:[%s4445_s8 + $0x48] sm:$0x11] %v2758_v14 }
 0x388   : > { %s4992_s14 = smov (!%p1830_p4, %s1829_s14), 4 }
 0x389   : > { %s1832_s12 = smul.u32 320, %s4992_s14  ;;  %s4611_s29 = sshll.u32 %s4992_s14, 2 }
 0x38b   : > { %p2716_p5 = scmp.eq.s32.totalorder %s1832_s12, 0 }
 0x38c   : > { %p1842_p7 = scmp.lt.u32.totalorder (!%p2716_p5), %s4611_s29, 8 }
 0x38d   : > { %1841 = sbr.rel (%p2716_p5) target bundleno = 1038 (0x40e), region = 118 }
 0x394   : > { %1845 = sbr.rel (%p1842_p7) target bundleno = 1029 (0x405), region = 122  ;;  %s4615_s27 = sand.u32 (!%p1842_p7), 7, %s4611_s29  }
 0x395   : > { %p1869_p6 = scmp.eq.s32.totalorder (!%p1842_p7), %s4615_s27, 0  ;;  %p2717_p8 = scmp.ne.s32.totalorder (!%p1842_p7), %s4615_s27, 0 }
 0x39b   : > { %1872 = sbr.rel (%p2717_p8) target bundleno = 972 (0x3cc), region = 137  ;;  %s1873_s20 = sshrl.u32 (!%p2717_p8), %s4611_s29, 3 }
 0x39c   : > { %s4622_s17 = sshrl.u32 (!%p2717_p8), %s1873_s20, 4 }
 0x39d   : > { %p2718_p9 = scmp.le.s32.totalorder (!%p2717_p8), %s4622_s17, 0 }
 0x3a2   : > { %2496 = sbr.rel (%p2718_p9) target bundleno = 952 (0x3b8), region = 291  ;;  %s4962_s25 = smov (!%p2718_p9), %s4609_s3 }
 0x3a3   : > { %s4963_s16 = smov (!%p2718_p9), %s4445_s8  ;;  %s4631_s26 = smov (!%p2718_p9), 0  }
 0x3a4   : > { %s4633_s23 = smov (!%p2718_p9), 0  }
 0x3a9 LB: >> { %v1886_v15 = vld [vmem:[%s3417_s16] sm:$0xff]  ;;  %v1888_v16 = vld [vmem:[%s3417_s16 + $0x8] sm:$0xff]  ;;  %v1890_v17 = vld [vmem:[%s3417_s16 + $0x10] sm:$0xff]  ;;  %s2046_s15 = sadd.s32 1, %s3421_s26  ;;  %s1880_s23 = sadd.s32 1, %s3425_s23   ;;  %s3425_s23 = sphi %s4633_s23, %s1880_s23   ;;  %s3421_s26 = sphi %s4631_s26, %s4964_s26   ;;  %s3417_s16 = sphi %s4963_s16, %s2051_s16   ;;  %s3413_s25 = sphi %s4962_s25, %s2052_s25  }
 0x3aa   : >> { %1887 = vst [vmem:[%s3413_s25] sm:$0xff] %v1886_v15  ;;  %1889 = vst [vmem:[%s3413_s25 + $0x8] sm:$0xff] %v1888_v16  ;;  %v1920_v18 = vld [vmem:[%s3417_s16 + $0x18] sm:$0xff]  ;;  %v1922_v19 = vld [vmem:[%s3417_s16 + $0x20] sm:$0xff]  ;;  %p2047_p10 = scmp.ge.s32.totalorder %s2046_s15, %s4622_s17  ;;  %p1879_p11 = scmp.ge.s32.totalorder %s1880_s23, %s4622_s17 }
 0x3ab   : >> { %1891 = vst [vmem:[%s3413_s25 + $0x10] sm:$0xff] %v1890_v17  ;;  %1919 = vst [vmem:[%s3413_s25 + $0x18] sm:$0xff] %v1890_v17  ;;  %v1952_v20 = vld [vmem:[%s3417_s16 + $0x28] sm:$0xff]  ;;  %v1954_v21 = vld [vmem:[%s3417_s16 + $0x30] sm:$0xff] }
 0x3ac   : >> { %1921 = vst [vmem:[%s3413_s25 + $0x20] sm:$0xff] %v1920_v18  ;;  %1923 = vst [vmem:[%s3413_s25 + $0x28] sm:$0xff] %v1922_v19  ;;  %v1984_v22 = vld [vmem:[%s3417_s16 + $0x38] sm:$0xff]  ;;  %v1986_v23 = vld [vmem:[%s3417_s16 + $0x40] sm:$0xff]  ;;  %s4994_s15 = smov (%p2047_p10, %s2046_s15), 0 }
 0x3ad   : >> { %1951 = vst [vmem:[%s3413_s25 + $0x30] sm:$0xff] %v1922_v19  ;;  %1953 = vst [vmem:[%s3413_s25 + $0x38] sm:$0xff] %v1952_v20  ;;  %v2016_v24 = vld [vmem:[%s3417_s16 + $0x48] sm:$0xff]  ;;  %v2018_v25 = vld [vmem:[%s3417_s16 + $0x50] sm:$0xff]  ;;  %s2719_s13 = sshll.u32 %s4994_s15, 7  ;;  %s4964_s26 = smov %s4994_s15 }
 0x3ae   : >> { %1955 = vst [vmem:[%s3413_s25 + $0x40] sm:$0xff] %v1954_v21  ;;  %1983 = vst [vmem:[%s3413_s25 + $0x48] sm:$0xff] %v1954_v21  ;;  %v2020_v30 = vld [vmem:[%s3417_s16 + $0x58] sm:$0xff]  ;;  %v2022_v31 = vld [vmem:[%s3417_s16 + $0x60] sm:$0xff] }
 0x3af   : >> { %1985 = vst [vmem:[%s3413_s25 + $0x50] sm:$0xff] %v1984_v22  ;;  %1987 = vst [vmem:[%s3413_s25 + $0x58] sm:$0xff] %v1986_v23  ;;  %v2024_v32 = vld [vmem:[%s3417_s16 + $0x68] sm:$0xff]  ;;  %v2026_v33 = vld [vmem:[%s3417_s16 + $0x70] sm:$0xff] }
 0x3b0   : >> { %2015 = vst [vmem:[%s3413_s25 + $0x60] sm:$0xff] %v1986_v23  ;;  %2017 = vst [vmem:[%s3413_s25 + $0x68] sm:$0xff] %v2016_v24  ;;  %v2028_v34 = vld [vmem:[%s3417_s16 + $0x78] sm:$0xff]  ;;  %v2030_v35 = vld [vmem:[%s3417_s16 + $0x80] sm:$0xff] }
 0x3b1   : >> { %2019 = vst [vmem:[%s3413_s25 + $0x70] sm:$0xff] %v2018_v25  ;;  %2021 = vst [vmem:[%s3413_s25 + $0x78] sm:$0xff] %v2020_v30  ;;  %v2032_v36 = vld [vmem:[%s3417_s16 + $0x88] sm:$0xff]  ;;  %v2034_v37 = vld [vmem:[%s3417_s16 + $0x90] sm:$0xff]  ;;  %1882 = sbr.rel (!%p1879_p11) target bundleno = 937 (0x3a9), region = 297 }
 0x3b2   : >> { %2023 = vst [vmem:[%s3413_s25 + $0x80] sm:$0xff] %v2022_v31  ;;  %2025 = vst [vmem:[%s3413_s25 + $0x88] sm:$0xff] %v2024_v32  ;;  %v2036_v42 = vld [vmem:[%s3417_s16 + $0x98] sm:$0xff]  ;;  %v2038_v43 = vld [vmem:[%s3417_s16 + $0xa0] sm:$0xff] }
 0x3b3   : >> { %2027 = vst [vmem:[%s3413_s25 + $0x90] sm:$0xff] %v2026_v33  ;;  %2029 = vst [vmem:[%s3413_s25 + $0x98] sm:$0xff] %v2028_v34  ;;  %v2040_v44 = vld [vmem:[%s3417_s16 + $0xa8] sm:$0xff]  ;;  %v2042_v45 = vld [vmem:[%s3417_s16 + $0xb0] sm:$0xff] }
 0x3b4   : >> { %2031 = vst [vmem:[%s3413_s25 + $0xa0] sm:$0xff] %v2030_v35  ;;  %2033 = vst [vmem:[%s3413_s25 + $0xa8] sm:$0xff] %v2032_v36  ;;  %v2044_v46 = vld [vmem:[%s3417_s16 + $0xb8] sm:$0xff]  ;;  %s2051_s16 = scalar_lea.vmem %s4445_s8, %s2719_s13 [#allocation4]  }
 0x3b5   : >> { %2035 = vst [vmem:[%s3413_s25 + $0xb0] sm:$0xff] %v2034_v37  ;;  %2037 = vst [vmem:[%s3413_s25 + $0xb8] sm:$0xff] %v2036_v42 }
 0x3b6   : >> { %2039 = vst [vmem:[%s3413_s25 + $0xc0] sm:$0xff] %v2038_v43  ;;  %2041 = vst [vmem:[%s3413_s25 + $0xc8] sm:$0xff] %v2040_v44 }
 0x3b7   : >> { %2043 = vst [vmem:[%s3413_s25 + $0xd0] sm:$0xff] %v2042_v45  ;;  %2045 = vst [vmem:[%s3413_s25 + $0xd8] sm:$0xff] %v2044_v46  ;;  %s2052_s25 = scalar_lea.vmem %s4609_s3, %s2719_s13  }
 0x3b8 PF: > { %s4715_s11 = sand.u32 15, %s1873_s20   ;;  %s2760_s30 = sshll.u32 %s4622_s17, 11 }
 0x3b9   : > { %s2057_s10 = sshra.s32 %s2760_s30, 4  ;;  %p2724_p12 = scmp.le.s32.totalorder %s4715_s11, 0 }
 0x3ba   : > { %s4719_s7 = scalar_lea.vmem %s4445_s8, %s2057_s10 [#allocation4]   ;;  %s4722_s6 = scalar_lea.vmem %s4609_s3, %s2057_s10  }
 0x3bb   : > { %2510 = sbr.rel (%p2724_p12) target bundleno = 972 (0x3cc), region = 302  ;;  %s4965_s14 = smov (!%p2724_p12), %s4722_s6 }
 0x3bc   : > { %s4966_s9 = smov (!%p2724_p12), %s4719_s7  ;;  %s4731_s18 = smov (!%p2724_p12), 0  }
 0x3bd   : > { %s4733_s24 = smov (!%p2724_p12), 0  }
 0x3c2 LB: >> { %v2073_v47 = vld [vmem:[%s3433_s9] sm:$0xff]  ;;  %v2075_v48 = vld [vmem:[%s3433_s9 + $0x10] sm:$0xff]  ;;  %s2083_s12 = sadd.s32 1, %s3437_s18  ;;  %s2067_s24 = sadd.s32 1, %s3441_s24   ;;  %s3441_s24 = sphi %s4733_s24, %s2067_s24   ;;  %s3437_s18 = sphi %s4731_s18, %s4967_s18   ;;  %s3433_s9 = sphi %s4966_s9, %s2088_s9   ;;  %s3429_s14 = sphi %s4965_s14, %s2089_s14  }
 0x3c3   : >> { %v2077_v49 = vld [vmem:[%s3433_s9 + $0x20] sm:$0xff]  ;;  %2074 = vst [vmem:[%s3429_s14] sm:$0xff] %v2073_v47  ;;  %2076 = vst [vmem:[%s3429_s14 + $0x18] sm:$0xff] %v2075_v48  ;;  %v2079_v52 = vld [vmem:[%s3433_s9 + $0x30] sm:$0xff]  ;;  %p2084_p13 = scmp.ge.s32.totalorder %s2083_s12, %s4715_s11  ;;  %p2066_p0 = scmp.ge.s32.totalorder %s2067_s24, %s4715_s11 }
 0x3c4   : >> { %2078 = vst [vmem:[%s3429_s14 + $0x30] sm:$0xff] %v2077_v49  ;;  %v2081_v28 = vld [vmem:[%s3433_s9 + $0x40] sm:$0xff]  ;;  %2080 = vst [vmem:[%s3429_s14 + $0x48] sm:$0xff] %v2079_v52 }
 0x3c5   : >> { %2082 = vst [vmem:[%s3429_s14 + $0x60] sm:$0xff] %v2081_v28  ;;  %s4996_s12 = smov (%p2084_p13, %s2083_s12), 0  ;;  %2069 = sbr.rel (!%p2066_p0) target bundleno = 962 (0x3c2), region = 308 }
 0x3c6   : >> { %s2725_s20 = sshll.u32 %s4996_s12, 3  ;;  %s4967_s18 = smov %s4996_s12 }
 0x3c7   : >> { %s2088_s9 = scalar_lea.vmem %s4719_s7, %s2725_s20 [#allocation4]   ;;  %s2089_s14 = scalar_lea.vmem %s4722_s6, %s2725_s20  }
 0x3cc PF: > { %2092 = sbr.rel (%p1869_p6) target bundleno = 1029 (0x405), region = 155  ;;  %s2094_s17 = ssub.s32 (!%p1869_p6), %s4611_s29, %s4615_s27 }
 0x3cd   : > { %s2098_s25 = sshrl.u32 (!%p1869_p6), %s4611_s29, 3  ;;  %s4757_s16 = scalar_lea.vmem (!%p1869_p6), %s4445_s8, %s2094_s17 [#allocation4] }
 0x3ce   : > { %s4760_s26 = scalar_lea.vmem (!%p1869_p6), %s4609_s3, %s2094_s17  ;;  %s4764_s23 = sshrl.u32 (!%p1869_p6), %s2098_s25, 4 }
 0x3cf   : > { %p2727_p1 = scmp.le.s32.totalorder (!%p1869_p6), %s4764_s23, 0 }
 0x3d3   : > { %2524 = sbr.rel (%p2727_p1) target bundleno = 1001 (0x3e9), region = 313  ;;  %s4968_s15 = smov (!%p2727_p1), %s4609_s3 }
 0x3d4   : > { %s4969_s13 = smov (!%p2727_p1), %s4445_s8  ;;  %s4773_s11 = smov (!%p2727_p1), 0  }
 0x3d5   : > { %s4775_s30 = smov (!%p2727_p1), 0  }
 0x3da LB: >> { %v2111_v53 = vld [vmem:[%s3449_s13] sm:$0xff]  ;;  %v2113_v29 = vld [vmem:[%s3449_s13 + $0x8] sm:$0xff]  ;;  %v2115_v54 = vld [vmem:[%s3449_s13 + $0x10] sm:$0xff]  ;;  %s2271_s10 = sadd.s32 1, %s3453_s11  ;;  %s2105_s30 = sadd.s32 1, %s3457_s30   ;;  %s3457_s30 = sphi %s4775_s30, %s2105_s30   ;;  %s3453_s11 = sphi %s4773_s11, %s4970_s11   ;;  %s3449_s13 = sphi %s4969_s13, %s2276_s13   ;;  %s3445_s15 = sphi %s4968_s15, %s2277_s15  }
 0x3db   : >> { %2112 = vst [vmem:[%s3445_s15] sm:$0xff] %v2111_v53  ;;  %2114 = vst [vmem:[%s3445_s15 + $0x8] sm:$0xff] %v2113_v29  ;;  %v2145_v26 = vld [vmem:[%s3449_s13 + $0x18] sm:$0xff]  ;;  %v2147_v55 = vld [vmem:[%s3449_s13 + $0x20] sm:$0xff]  ;;  %p2272_p2 = scmp.ge.s32.totalorder %s2271_s10, %s4764_s23  ;;  %p2104_p3 = scmp.ge.s32.totalorder %s2105_s30, %s4764_s23 }
 0x3dc   : >> { %2116 = vst [vmem:[%s3445_s15 + $0x10] sm:$0xff] %v2115_v54  ;;  %2144 = vst [vmem:[%s3445_s15 + $0x18] sm:$0xff] %v2115_v54  ;;  %v2177_v27 = vld [vmem:[%s3449_s13 + $0x28] sm:$0xff]  ;;  %v2179_v56 = vld [vmem:[%s3449_s13 + $0x30] sm:$0xff] }
 0x3dd   : >> { %2146 = vst [vmem:[%s3445_s15 + $0x20] sm:$0xff] %v2145_v26  ;;  %2148 = vst [vmem:[%s3445_s15 + $0x28] sm:$0xff] %v2147_v55  ;;  %v2209_v57 = vld [vmem:[%s3449_s13 + $0x38] sm:$0xff]  ;;  %v2211_v58 = vld [vmem:[%s3449_s13 + $0x40] sm:$0xff]  ;;  %s4998_s10 = smov (%p2272_p2, %s2271_s10), 0 }
 0x3de   : >> { %2176 = vst [vmem:[%s3445_s15 + $0x30] sm:$0xff] %v2147_v55  ;;  %2178 = vst [vmem:[%s3445_s15 + $0x38] sm:$0xff] %v2177_v27  ;;  %v2241_v59 = vld [vmem:[%s3449_s13 + $0x48] sm:$0xff]  ;;  %v2243_v38 = vld [vmem:[%s3449_s13 + $0x50] sm:$0xff]  ;;  %s2728_s7 = sshll.u32 %s4998_s10, 7  ;;  %s4970_s11 = smov %s4998_s10 }
 0x3df   : >> { %2180 = vst [vmem:[%s3445_s15 + $0x40] sm:$0xff] %v2179_v56  ;;  %2208 = vst [vmem:[%s3445_s15 + $0x48] sm:$0xff] %v2179_v56  ;;  %v2245_v39 = vld [vmem:[%s3449_s13 + $0x58] sm:$0xff]  ;;  %v2247_v60 = vld [vmem:[%s3449_s13 + $0x60] sm:$0xff] }
 0x3e0   : >> { %2210 = vst [vmem:[%s3445_s15 + $0x50] sm:$0xff] %v2209_v57  ;;  %2212 = vst [vmem:[%s3445_s15 + $0x58] sm:$0xff] %v2211_v58  ;;  %v2249_v61 = vld [vmem:[%s3449_s13 + $0x68] sm:$0xff]  ;;  %v2251_v62 = vld [vmem:[%s3449_s13 + $0x70] sm:$0xff] }
 0x3e1   : >> { %2240 = vst [vmem:[%s3445_s15 + $0x60] sm:$0xff] %v2211_v58  ;;  %2242 = vst [vmem:[%s3445_s15 + $0x68] sm:$0xff] %v2241_v59  ;;  %v2253_v63 = vld [vmem:[%s3449_s13 + $0x78] sm:$0xff]  ;;  %v2255_v0 = vld [vmem:[%s3449_s13 + $0x80] sm:$0xff] }
 0x3e2   : >> { %2244 = vst [vmem:[%s3445_s15 + $0x70] sm:$0xff] %v2243_v38  ;;  %2246 = vst [vmem:[%s3445_s15 + $0x78] sm:$0xff] %v2245_v39  ;;  %v2257_v1 = vld [vmem:[%s3449_s13 + $0x88] sm:$0xff]  ;;  %v2259_v2 = vld [vmem:[%s3449_s13 + $0x90] sm:$0xff]  ;;  %2107 = sbr.rel (!%p2104_p3) target bundleno = 986 (0x3da), region = 319 }
 0x3e3   : >> { %2248 = vst [vmem:[%s3445_s15 + $0x80] sm:$0xff] %v2247_v60  ;;  %2250 = vst [vmem:[%s3445_s15 + $0x88] sm:$0xff] %v2249_v61  ;;  %v2261_v50 = vld [vmem:[%s3449_s13 + $0x98] sm:$0xff]  ;;  %v2263_v3 = vld [vmem:[%s3449_s13 + $0xa0] sm:$0xff] }
 0x3e4   : >> { %2252 = vst [vmem:[%s3445_s15 + $0x90] sm:$0xff] %v2251_v62  ;;  %2254 = vst [vmem:[%s3445_s15 + $0x98] sm:$0xff] %v2253_v63  ;;  %v2265_v51 = vld [vmem:[%s3449_s13 + $0xa8] sm:$0xff]  ;;  %v2267_v40 = vld [vmem:[%s3449_s13 + $0xb0] sm:$0xff] }
 0x3e5   : >> { %2256 = vst [vmem:[%s3445_s15 + $0xa0] sm:$0xff] %v2255_v0  ;;  %2258 = vst [vmem:[%s3445_s15 + $0xa8] sm:$0xff] %v2257_v1  ;;  %v2269_v41 = vld [vmem:[%s3449_s13 + $0xb8] sm:$0xff]  ;;  %s2276_s13 = scalar_lea.vmem %s4445_s8, %s2728_s7 [#allocation4]  }
 0x3e6   : >> { %2260 = vst [vmem:[%s3445_s15 + $0xb0] sm:$0xff] %v2259_v2  ;;  %2262 = vst [vmem:[%s3445_s15 + $0xb8] sm:$0xff] %v2261_v50 }
 0x3e7   : >> { %2264 = vst [vmem:[%s3445_s15 + $0xc0] sm:$0xff] %v2263_v3  ;;  %2266 = vst [vmem:[%s3445_s15 + $0xc8] sm:$0xff] %v2265_v51 }
 0x3e8   : >> { %2268 = vst [vmem:[%s3445_s15 + $0xd0] sm:$0xff] %v2267_v40  ;;  %2270 = vst [vmem:[%s3445_s15 + $0xd8] sm:$0xff] %v2269_v41  ;;  %s2277_s15 = scalar_lea.vmem %s4609_s3, %s2728_s7  }
 0x3e9 PF: > { %s4857_s6 = sand.u32 15, %s2098_s25   ;;  %s2762_s14 = sshll.u32 %s4764_s23, 11 }
 0x3ea   : > { %s2282_s9 = sshra.s32 %s2762_s14, 4  ;;  %p2733_p4 = scmp.le.s32.totalorder %s4857_s6, 0 }
 0x3eb   : > { %s4861_s18 = scalar_lea.vmem %s4445_s8, %s2282_s9 [#allocation4]   ;;  %s4864_s24 = scalar_lea.vmem %s4609_s3, %s2282_s9  }
 0x3ec   : > { %2538 = sbr.rel (%p2733_p4) target bundleno = 1021 (0x3fd), region = 324  ;;  %s4971_s12 = smov (!%p2733_p4), %s4864_s24 }
 0x3ed   : > { %s4972_s20 = smov (!%p2733_p4), %s4861_s18  ;;  %s4873_s17 = smov (!%p2733_p4), 0  }
 0x3ee   : > { %s4875_s15 = smov (!%p2733_p4), 0  }
 0x3f3 LB: >> { %v2298_v4 = vld [vmem:[%s3465_s20] sm:$0xff]  ;;  %v2300_v5 = vld [vmem:[%s3465_s20 + $0x10] sm:$0xff]  ;;  %s2308_s25 = sadd.s32 1, %s3469_s17  ;;  %s2292_s15 = sadd.s32 1, %s3473_s15   ;;  %s3473_s15 = sphi %s4875_s15, %s2292_s15   ;;  %s3469_s17 = sphi %s4873_s17, %s4973_s17   ;;  %s3465_s20 = sphi %s4972_s20, %s2313_s20   ;;  %s3461_s12 = sphi %s4971_s12, %s2314_s12  }
 0x3f4   : >> { %v2302_v6 = vld [vmem:[%s3465_s20 + $0x20] sm:$0xff]  ;;  %2299 = vst [vmem:[%s3461_s12] sm:$0xff] %v2298_v4  ;;  %2301 = vst [vmem:[%s3461_s12 + $0x18] sm:$0xff] %v2300_v5  ;;  %v2304_v7 = vld [vmem:[%s3465_s20 + $0x30] sm:$0xff]  ;;  %p2309_p5 = scmp.ge.s32.totalorder %s2308_s25, %s4857_s6  ;;  %p2291_p7 = scmp.ge.s32.totalorder %s2292_s15, %s4857_s6 }
 0x3f5   : >> { %2303 = vst [vmem:[%s3461_s12 + $0x30] sm:$0xff] %v2302_v6  ;;  %v2306_v8 = vld [vmem:[%s3465_s20 + $0x40] sm:$0xff]  ;;  %2305 = vst [vmem:[%s3461_s12 + $0x48] sm:$0xff] %v2304_v7 }
 0x3f6   : >> { %2307 = vst [vmem:[%s3461_s12 + $0x60] sm:$0xff] %v2306_v8  ;;  %s5000_s25 = smov (%p2309_p5, %s2308_s25), 0  ;;  %2294 = sbr.rel (!%p2291_p7) target bundleno = 1011 (0x3f3), region = 330 }
 0x3f7   : >> { %s2734_s23 = sshll.u32 %s5000_s25, 3  ;;  %s4973_s17 = smov %s5000_s25 }
 0x3f8   : >> { %s2313_s20 = scalar_lea.vmem %s4861_s18, %s2734_s23 [#allocation4]   ;;  %s2314_s12 = scalar_lea.vmem %s4864_s24, %s2734_s23  }
 0x3fd PF: > { %s3477_s13 = smov 0  }
 0x3fe   : > { %s2315_s11 = sshllo.u32 %s3477_s13, %s4615_s27 }
 0x3ff   : > { %v2324_v9 = vld [vmem:[%s4757_s16] sm:%s2315_s11]  ;;  %v2326_v10 = vld [vmem:[%s4757_s16 + $0x10] sm:%s2315_s11] }
 0x400   : > { %2325 = vst [vmem:[%s4760_s26] sm:%s2315_s11] %v2324_v9  ;;  %2327 = vst [vmem:[%s4760_s26 + $0x18] sm:%s2315_s11] %v2326_v10 }
 0x401   : > { %v2328_v11 = vld [vmem:[%s4757_s16 + $0x20] sm:%s2315_s11]  ;;  %v2330_v12 = vld [vmem:[%s4757_s16 + $0x30] sm:%s2315_s11] }
 0x402   : > { %2329 = vst [vmem:[%s4760_s26 + $0x30] sm:%s2315_s11] %v2328_v11  ;;  %2331 = vst [vmem:[%s4760_s26 + $0x48] sm:%s2315_s11] %v2330_v12 }
 0x403   : > { %v2332_v13 = vld [vmem:[%s4757_s16 + $0x40] sm:%s2315_s11] }
 0x404   : > { %2333 = vst [vmem:[%s4760_s26 + $0x60] sm:%s2315_s11] %v2332_v13 }
 0x405 PF: > { %p2736_p6 = scmp.ge.u32.totalorder %s4611_s29, 8 }
 0x406   : > { %s3478_s30 = smov (!%p2736_p6), 0  }
 0x407   : > { %1848 = sbr.rel (%p2736_p6) target bundleno = 1038 (0x40e), region = 126  ;;  %s1849_s27 = sshllo.u32 (!%p2736_p6), %s3478_s30, %s4611_s29 }
 0x408   : > { %v1858_v14 = vld [vmem:[%s4445_s8] sm:%s1849_s27] (!%p2736_p6)  ;;  %v1860_v15 = vld [vmem:[%s4445_s8 + $0x10] sm:%s1849_s27] (!%p2736_p6) }
 0x409   : > { %1859 = vst [vmem:[%s4609_s3] sm:%s1849_s27] (!%p2736_p6), %v1858_v14  ;;  %1861 = vst [vmem:[%s4609_s3 + $0x18] sm:%s1849_s27] (!%p2736_p6), %v1860_v15 }
 0x40a   : > { %v1862_v16 = vld [vmem:[%s4445_s8 + $0x20] sm:%s1849_s27] (!%p2736_p6)  ;;  %v1864_v17 = vld [vmem:[%s4445_s8 + $0x30] sm:%s1849_s27] (!%p2736_p6) }
 0x40b   : > { %1863 = vst [vmem:[%s4609_s3 + $0x30] sm:%s1849_s27] (!%p2736_p6), %v1862_v16  ;;  %1865 = vst [vmem:[%s4609_s3 + $0x48] sm:%s1849_s27] (!%p2736_p6), %v1864_v17 }
 0x40c   : > { %v1866_v18 = vld [vmem:[%s4445_s8 + $0x40] sm:%s1849_s27] (!%p2736_p6) }
 0x40d   : > { %1867 = vst [vmem:[%s4609_s3 + $0x60] sm:%s1849_s27] (!%p2736_p6), %v1866_v18 }
 0x40e PF: > { %s15_s22 = sadd.s32 1, %s3345_s22   ;;  %s4974_s29 = sld [smem:[#allocation5_spill]] }
 0x40f   : > { %p12_p8 = scmp.ge.s32.totalorder %s15_s22, 4   ;;  %s4975_s18 = smov %s3333_s19 }
 0x410   : > { %s4976_s19 = smov %s3549_s28  ;;  %s4977_s20 = smov %s3341_s21 }
 0x411   :  { %14 = sbr.rel (!%p12_p8) target bundleno = 5 (0x5), region = 341 }
 0x414   : > { %s4978_s21 = smov %s4974_s29 }

// kernel: clip_vision_transformer.14
= control target key start
LH: loop header
LB: loop body
LE: loop exit
PB: predicated region body
PF: predicated region fallthrough
CT: control target
= control target key end

     0   :  { %s1628_s12 = smov 0   ;;  %s1630_s13 = smov 0   ;;  %s1915_s0 = inlined_call_operand.vmem [shape: bf16[2,17,768], index: 0, kind: input, shape index: {}, may-alias: {0,1,2}]   ;;  %s1916_s1 = inlined_call_operand.vmem [shape: bf16[2,17,768], index: 1, kind: input, shape index: {}, may-alias: {0,1,2}]   ;;  %s1917_s2 = inlined_call_operand.vmem [shape: bf16[2,17,768], index: 2, kind: input, shape index: {}, may-alias: {0,1,2}]   ;;  %s1918_s3 = inlined_call_operand.vmem [shape: bf16[2,17,256], index: 3, kind: output, shape index: {}]  }
   0x1   :  { %s1632_s14 = smov 0   ;;  %s1634_s15 = smov 0  }
   0x2   :  { %s1636_s16 = smov 0  }
   0x3 LB: > { %s25_s17 = sadd.s32 1, %s1600_s15  ;;  %p41_p1 = scmp.ne.s32.totalorder %s1592_s13, %s1588_s12  ;;  %s1604_s16 = sphi %s1636_s16, %s13_s16   ;;  %s1600_s15 = sphi %s1634_s15, %s1927_s15   ;;  %s1596_s14 = sphi %s1632_s14, %s1926_s14   ;;  %s1592_s13 = sphi %s1630_s13, %s1925_s13   ;;  %s1588_s12 = sphi %s1628_s12, %s1924_s12  }
   0x4   : > { %p27_p0 = scmp.ge.s32.totalorder %s25_s17, 2  ;;  %p42_p2 = scmp.eq.s32.totalorder %s1604_s16, 0 }
   0x5   : > { %s34_s20 = sadd.s32 1, %s1592_s13  ;;  %p1288_p5 = scmp.ge.s32.totalorder %s1604_s16, 2 }
   0x6   : > { %s1929_s17 = smov (%p27_p0, %s25_s17), 0  ;;  %p1659_p3 = por %p42_p2, %p41_p1 }
   0x7   : > { %s29_s19 = ssub.s32 %s1600_s15, %s1929_s17  ;;  %155 = sbr.rel (%p1288_p5) target bundleno = 35 (0x23), region = 16 }
   0x8   : > { %p32_p4 = scmp.eq.s32.totalorder %s29_s19, 0 }
   0xa   : > { %s1667_s21 = scalar_select %p32_p4, %s1592_s13, %s34_s20  }
   0xe   : > { %158 = sbr.rel (!%p1659_p3) target bundleno = 21 (0x15), region = 20  ;;  %s160_s22 = sand.u32 (%p1659_p3), 1, %s1592_s13  }
   0xf   : > { %s1441_s23 = smul.u32 (%p1659_p3), 72, %s1600_s15 }
  0x10   : > { %s1440_s24 = smul.u32 (%p1659_p3), 24, %s160_s22 }
  0x11   : > { %s167_s27 = scalar_lea.vmem (%p1659_p3), %s1915_s0, %s1441_s23 }
  0x12   : > { %v199_v0 = vld [vmem:[%s167_s27] sm:$0xff] (%p1659_p3)  ;;  %v201_v1 = vld [vmem:[%s167_s27 + $0x18] sm:$0xff] (%p1659_p3)  ;;  %v203_v2 = vld [vmem:[%s167_s27 + $0x30] sm:$0xff] (%p1659_p3)  ;;  %s162_s28 = scalar_lea.vmem (%p1659_p3), [#allocation2], %s1440_s24 }
  0x13   : > { %200 = vst [vmem:[%s162_s28] sm:$0xff] (%p1659_p3), %v199_v0  ;;  %202 = vst [vmem:[%s162_s28 + $0x8] sm:$0xff] (%p1659_p3), %v201_v1 }
  0x14   : > { %204 = vst [vmem:[%s162_s28 + $0x10] sm:$0xff] (%p1659_p3), %v203_v2 }
  0x15 PF: > { %210 = sbr.rel (!%p1659_p3) target bundleno = 28 (0x1c), region = 58  ;;  %s212_s29 = sand.u32 (%p1659_p3), 1, %s1592_s13  }
  0x16   : > { %s1290_s30 = smul.u32 (%p1659_p3), 72, %s1600_s15 }
  0x17   : > { %s1442_s4 = smul.u32 (%p1659_p3), 24, %s212_s29 }
  0x18   : > { %s1194_s7 = scalar_lea.vmem (%p1659_p3), %s1916_s1, %s1290_s30 }
  0x19   : > { %v1291_v3 = vld [vmem:[%s1194_s7 + $0x8] sm:$0xff] (%p1659_p3)  ;;  %v1292_v4 = vld [vmem:[%s1194_s7 + $0x20] sm:$0xff] (%p1659_p3)  ;;  %v1293_v5 = vld [vmem:[%s1194_s7 + $0x38] sm:$0xff] (%p1659_p3)  ;;  %s214_s8 = scalar_lea.vmem (%p1659_p3), [#allocation3], %s1442_s4 }
  0x1a   : > { %253 = vst [vmem:[%s214_s8] sm:$0xff] (%p1659_p3), %v1291_v3  ;;  %255 = vst [vmem:[%s214_s8 + $0x8] sm:$0xff] (%p1659_p3), %v1292_v4 }
  0x1b   : > { %257 = vst [vmem:[%s214_s8 + $0x10] sm:$0xff] (%p1659_p3), %v1293_v5 }
  0x1c PF: > { %263 = sbr.rel (!%p1659_p3) target bundleno = 35 (0x23), region = 96  ;;  %s265_s9 = sand.u32 (%p1659_p3), 1, %s1592_s13  }
  0x1d   : > { %s1294_s10 = smul.u32 (%p1659_p3), 72, %s1600_s15 }
  0x1e   : > { %s1443_s11 = smul.u32 (%p1659_p3), 24, %s265_s9 }
  0x1f   : > { %s1202_s22 = scalar_lea.vmem (%p1659_p3), %s1917_s2, %s1294_s10 }
  0x20   : > { %v1295_v6 = vld [vmem:[%s1202_s22 + $0x10] sm:$0xff] (%p1659_p3)  ;;  %v1296_v7 = vld [vmem:[%s1202_s22 + $0x28] sm:$0xff] (%p1659_p3)  ;;  %v1297_v8 = vld [vmem:[%s1202_s22 + $0x40] sm:$0xff] (%p1659_p3)  ;;  %s267_s23 = scalar_lea.vmem (%p1659_p3), [#allocation4], %s1443_s11 }
  0x21   : > { %306 = vst [vmem:[%s267_s23] sm:$0xff] (%p1659_p3), %v1295_v6  ;;  %308 = vst [vmem:[%s267_s23 + $0x8] sm:$0xff] (%p1659_p3), %v1296_v7 }
  0x22   : > { %310 = vst [vmem:[%s267_s23 + $0x10] sm:$0xff] (%p1659_p3), %v1297_v8 }
  0x23 PF: > { %p1298_p6 = scmp.ge.s32.totalorder %s1604_s16, 1  ;;  %p315_p7 = scmp.lt.s32.totalorder %s1604_s16, 3 }
  0x25   : > { %p316_p8 = pnand %p1298_p6, %p315_p7 }
  0x26   : > { %s322_s18 = sand.u32 (!%p316_p8), 1, %s1588_s12   ;;  %vm412_vm0 = vcmask (!%p316_p8), 523264   ;;  %vm483_vm1 = vcmask (!%p316_p8), 131072   ;;  %vm476_vm2 = vcmask (!%p316_p8), 138240   ;;  %s1606_s12 = smov (!%p316_p8), 64   ;;  %vm522_vm3 = vcmask (!%p316_p8), 1040384  }
  0x27   : > { %319 = sbr.rel (%p316_p8) target bundleno = 1967 (0x7af), region = 134  ;;  %v1607_v30 = vmov (!%p316_p8), 0   ;;  %p377_p9 = scmp.lt.s32.totalorder (!%p316_p8), %s1596_s14, 1  ;;  %vm1142_vm4 = vsmask.f32 (!%p316_p8), 256  ;;  %vm1144_vm5 = vcmask (!%p316_p8), 1044484  }
  0x28   : > { %s1694_s24 = smul.u32 (!%p316_p8), 24, %s322_s18  ;;  %v1735_v31 = vsel (!%p316_p8), %vm522_vm3, 65535, %v1607_v30  ;;  %vm1145_vm6 = vsmask.f32 (!%p316_p8), 4352  ;;  %vm1873_vm7 = vmand (!%p316_p8), %vm522_vm3, %vm1142_vm4 }
  0x29   : > { %vm1877_vm8 = vmand (!%p316_p8), %vm1144_vm5, %vm1145_vm6 }
  0x2a   : > { %s1697_s25 = scalar_lea.vmem (!%p316_p8), [#allocation3], %s1694_s24  ;;  %s1704_s26 = scalar_lea.vmem (!%p316_p8), [#allocation2], %s1694_s24  ;;  %vm1147_vm9 = vmor (!%p316_p8), %vm1877_vm8, %vm1873_vm7 }
  0x2b   : > { %v1503_v9 = vld [vmem:[%s1697_s25] ss:$8 sps:$4 sm:$0xff] (!%p316_p8)   ;;  %v1701_v10 = vld [vmem:[%s1697_s25 + $0x10] sm:$0x11] (!%p316_p8)  ;;  %s1726_s27 = scalar_lea.vmem (!%p316_p8), [#allocation4], %s1694_s24 }
  0x2c   : > { %1432 = vmatprep.subr.msk.bf16.mxu0 (!%p316_p8), %vm412_vm0, %v1503_v9  ;;  %v420_v11 = vsel (!%p316_p8), %vm412_vm0, %v1503_v9, 0  ;;  %v1303_v12 = vcombine.low (!%p316_p8), %v1701_v10, %v1701_v10  ;;  %v1507_v13 = vld [vmem:[%s1704_s26] ss:$8 sps:$4 sm:$0xff] (!%p316_p8)   ;;  %v1715_v15 = vld [vmem:[%s1704_s26 + $0x10] sm:$0x11] (!%p316_p8) }
  0x2d   : > { %1369 = vmatpush3.bf16.xpose.msra.mxu0 (!%p316_p8), %v420_v11  ;;  %1372 = vmatprep.mubr.msk.bf16.mxu0 (!%p316_p8), %vm412_vm0, %v1507_v13  ;;  %v1301_v16 = vcombine.low (!%p316_p8), %v1715_v15, %v1715_v15  ;;  %v1512_v27 = vld [vmem:[%s1726_s27] ss:$8 sps:$4 sm:$0xff] (!%p316_p8)   ;;  %v1730_v28 = vld [vmem:[%s1726_s27 + $0x10] sm:$0x11] (!%p316_p8) }
  0x2e   : > { %1433 = vmatprep.subr.msk.bf16.mxu0 %vm412_vm0, %v1303_v12  ;;  %v423_v14 = vsel %vm412_vm0, %v1303_v12, 0  ;;  %1376 = vmatprep.subr.bf16.mxu1 %v1512_v27  ;;  %v1307_v29 = vcombine.low %v1730_v28, %v1730_v28  ;;  %s1931_s14 = smov (!%p377_p9, %s1596_s14), 1 }
  0x2f   : > { %1377 = vmatpush3.bf16.msra.mxu1 %v1512_v27  ;;  %s1445_s28 = smul.u32 24, %s1931_s14 }
  0x30   : > { %v526_v32 = vand.u32 %v1307_v29, %v1735_v31 }
  0x31   : > { %s384_s14 = scalar_lea.vmem %s1918_s3, %s1445_s28 }
  0x32   : > { %1378 = vmatprep.subr.bf16.mxu1 %v526_v32 }
  0x33   : > { %1379 = vmatpush3.bf16.msra.mxu1 %v526_v32 }
  0x35   : > { %1371 = vmatpush3.bf16.xpose.msra.mxu0 %v423_v14 }
  0x3c   : > { %1373 = vmatmul.mubr.msk.bf16.vlgmr.msra.gmra.mrb[0].mxu0 %vm412_vm0, %v1301_v16 }
 0x10f   : > { %v1374_v17 = vpop.f32.mrb[0].mxu0 }
 0x110   : > { %v475_v18 = vmul.f32 0.125, %v1374_v17  ;;  %v459_v19 = vpop.f32.mrb[1].mxu0  ;;  %v1505_v17 = vld [vmem:[%s1697_s25 + $0x4] ss:$8 sps:$4 sm:$0xff]  }
 0x111   : > { %v473_v20 = vmul.f32 0.125, %v459_v19  ;;  %v1375_v21 = vpop.f32.mrb[2].mxu0 }
 0x112   : > { %v462_v22 = vpop.f32.mrb[3].mxu0  ;;  %v484_v23 = vsel %vm483_vm1, %v475_v18, -inf  ;;  %v1509_v21 = vld [vmem:[%s1704_s26 + $0x4] ss:$8 sps:$4 sm:$0xff]  }
 0x113   : > { %v474_v24 = vmul.f32 0.125, %v462_v22  ;;  %485 = vmax.xlane.f32.xlu1 %v484_v23  ;;  %v477_v25 = vsel %vm476_vm2, %v473_v20, -inf }
 0x114   : > { %478 = vmax.xlane.f32.xlu0 %v477_v25  ;;  %v1317_v25 = vcombine.high %v1701_v10, %v1701_v10 }
 0x115   : > { %v480_v26 = vsel %vm476_vm2, %v474_v24, -inf }
 0x118   : > { %481 = vmax.xlane.f32.xlu0 %v480_v26  ;;  %v770_v26 = vsel %vm412_vm0, %v1317_v25, 0 }
 0x124   : > { %586 = vrot.lane.b32.xlu1 %v1503_v9, %s1606_s12 }
 0x128   : > { %582 = vrot.lane.b32.xlu1 %v1507_v13, %s1606_s12 }
 0x12c   : > { %584 = vrot.lane.b32.xlu1 %v1301_v16, %s1606_s12 }
 0x12e   : > { %588 = vrot.lane.b32.xlu0 %v1303_v12, %s1606_s12 }
 0x1a0   : > { %v486_v33 = vpop.xlane.xlu1 %485 }
 0x1a1   : > { %v489_v34 = vsub.f32 %v475_v18, %v486_v33  ;;  %v479_v35 = vpop.xlane.xlu0 %478 }
 0x1a2   : > { %v487_v36 = vsub.f32 %v473_v20, %v479_v35 }
 0x1a3   : > { %v494_v37 = vmul.f32 1.442695, %v489_v34 }
 0x1a4   : > { %v587_v38 = vpop.permute.xlu1 %586  ;;  %v490_v39 = vmul.f32 1.442695, %v487_v36 }
 0x1a5   : > { %v482_v40 = vpop.xlane.xlu0 %481  ;;  %1434 = vmatprep.subr.msk.bf16.mxu1 %vm412_vm0, %v587_v38  ;;  %1518 = vpow2.f32 %v494_v37  ;;  %v597_v47 = vsel %vm412_vm0, %v587_v38, 0 }
 0x1a6   : > { %v488_v41 = vsub.f32 %v474_v24, %v482_v40  ;;  %1520 = vpow2.f32 %v490_v39  ;;  %v767_v24 = vsel %vm412_vm0, %v1505_v17, 0 }
 0x1a8   : > { %v492_v42 = vmul.f32 1.442695, %v488_v41  ;;  %v583_v49 = vpop.permute.xlu1 %582 }
 0x1a9   : > { %v589_v50 = vpop.permute.xlu0 %588 }
 0x1aa   : > { %1522 = vpow2.f32 %v492_v42  ;;  %v600_v51 = vsel %vm412_vm0, %v589_v50, 0  ;;  %v1516_v42 = vld [vmem:[%s1726_s27 + $0x4] ss:$8 sps:$4 sm:$0xff]  }
 0x1ac   : > { %v585_v52 = vpop.permute.xlu1 %584 }
 0x1af   : > { %v1741_v43 = vpop.eup %1518 }
 0x1b0   : > { %v1743_v44 = vpop.eup %1520  ;;  %v506_v48 = vpack.c.bf16 %v1741_v43, %v1741_v43 }
 0x1b4   : > { %v1745_v45 = vpop.eup %1522 }
 0x1b5   : > { %v505_v46 = vpack.c.bf16 %v1745_v45, %v1743_v44 }
 0x1b7   : > { %1380 = vmatprep.mubr.msk.bf16.mxu1 %vm476_vm2, %v505_v46  ;;  %v1321_v46 = vcombine.high %v1730_v28, %v1730_v28 }
 0x1b8   : > { %1381 = vmatmul.mubr.msk.bf16.vlgmr.msra.gmra.mrb[0].mxu1 %vm476_vm2, %v506_v48 }
 0x1b9   : > { %1385 = vmatpush3.bf16.xpose.msra.mxu1 %v597_v47  ;;  %1388 = vmatprep.mubr.msk.bf16.mxu1 %vm412_vm0, %v583_v49  ;;  %v865_v47 = vand.u32 %v1321_v46, %v1735_v31 }
 0x1ba   : > { %1435 = vmatprep.subr.msk.bf16.mxu1 %vm412_vm0, %v589_v50 }
 0x1c1   : > { %1387 = vmatpush3.bf16.xpose.msra.mxu1 %v600_v51 }
 0x1c2   : > { %1408 = vmatprep.subr.bf16.mxu1 %v1516_v42 }
 0x1c8   : > { %1389 = vmatmul.mubr.msk.bf16.vlgmr.msra.gmra.mrb[4].mxu1 %vm412_vm0, %v585_v52 }
 0x1c9   : > { %1409 = vmatpush3.bf16.msra.mxu1 %v1516_v42 }
 0x1ca   : > { %1410 = vmatprep.subr.bf16.mxu1 %v865_v47 }
 0x1cd   : > { %1411 = vmatpush3.bf16.msra.mxu1 %v865_v47 }
 0x28b   : > { %v1758_v53 = vpop.f32.mrb[0].mxu1 }
 0x28c   : > { %v1760_v54 = vpop.f32.mrb[1].mxu1 }
 0x28d   : > { %v1383_v55 = vpop.f32.mrb[2].mxu1 }
 0x28e   : > { %v1762_v56 = vpop.f32.mrb[3].mxu1 }
 0x29b   : > { %v1390_v57 = vpop.f32.mrb[4].mxu1 }
 0x29c   : > { %v652_v58 = vmul.f32 0.125, %v1390_v57  ;;  %v636_v59 = vpop.f32.mrb[5].mxu1 }
 0x29d   : > { %v650_v60 = vmul.f32 0.125, %v636_v59  ;;  %v1391_v61 = vpop.f32.mrb[6].mxu1 }
 0x29e   : > { %v639_v62 = vpop.f32.mrb[7].mxu1  ;;  %v659_v63 = vsel %vm483_vm1, %v652_v58, -inf }
 0x29f   : > { %v651_v0 = vmul.f32 0.125, %v639_v62  ;;  %660 = vmax.xlane.f32.xlu0 %v659_v63  ;;  %v653_v1 = vsel %vm476_vm2, %v650_v60, -inf }
 0x2a0   : > { %654 = vmax.xlane.f32.xlu1 %v653_v1 }
 0x2a1   : > { %v656_v2 = vsel %vm476_vm2, %v651_v0, -inf }
 0x2a3   : > { %657 = vmax.xlane.f32.xlu0 %v656_v2 }
 0x2b1   : > { %684 = vrot.lane.b32.xlu1 %v1307_v29, %s1606_s12 }
 0x2b9   : > { %682 = vrot.lane.b32.xlu0 %v1512_v27, %s1606_s12  ;;  %v1315_v27 = vcombine.high %v1715_v15, %v1715_v15 }
 0x32c   : > { %v661_v3 = vpop.xlane.xlu0 %660 }
 0x32d   : > { %v664_v4 = vsub.f32 %v652_v58, %v661_v3  ;;  %v655_v5 = vpop.xlane.xlu1 %654 }
 0x32e   : > { %v662_v6 = vsub.f32 %v650_v60, %v655_v5 }
 0x32f   : > { %v669_v7 = vmul.f32 1.442695, %v664_v4 }
 0x330   : > { %v665_v8 = vmul.f32 1.442695, %v662_v6  ;;  %v658_v9 = vpop.xlane.xlu0 %657 }
 0x331   : > { %v663_v11 = vsub.f32 %v651_v0, %v658_v9  ;;  %v685_v12 = vpop.permute.xlu1 %684  ;;  %1524 = vpow2.f32 %v669_v7 }
 0x332   : > { %v694_v14 = vand.u32 %v685_v12, %v1735_v31  ;;  %1526 = vpow2.f32 %v665_v8 }
 0x333   : > { %v667_v13 = vmul.f32 1.442695, %v663_v11 }
 0x334   : > { %v683_v16 = vpop.permute.xlu0 %682 }
 0x335   : > { %1528 = vpow2.f32 %v667_v13  ;;  %1392 = vmatprep.subr.bf16.mxu0 %v683_v16 }
 0x336   : > { %1393 = vmatpush3.bf16.msra.mxu0 %v683_v16 }
 0x337   : > { %1394 = vmatprep.subr.bf16.mxu0 %v694_v14 }
 0x33a   : > { %1395 = vmatpush3.bf16.msra.mxu0 %v694_v14 }
 0x33b   : > { %1436 = vmatprep.subr.msk.bf16.mxu0 %vm412_vm0, %v1505_v17  ;;  %v1772_v18 = vpop.eup %1524 }
 0x33c   : > { %v1774_v19 = vpop.eup %1526  ;;  %v681_v23 = vpack.c.bf16 %v1772_v18, %v1772_v18 }
 0x33f   : > { %v1776_v20 = vpop.eup %1528 }
 0x340   : > { %v680_v22 = vpack.c.bf16 %v1776_v20, %v1774_v19 }
 0x342   : > { %1396 = vmatprep.mubr.msk.bf16.mxu0 %vm476_vm2, %v680_v22 }
 0x343   : > { %1397 = vmatmul.mubr.msk.bf16.vlgmr.msra.gmra.mrb[4].mxu0 %vm476_vm2, %v681_v23 }
 0x344   : > { %1401 = vmatpush3.bf16.xpose.msra.mxu0 %v767_v24  ;;  %1404 = vmatprep.mubr.msk.bf16.mxu0 %vm412_vm0, %v1509_v21 }
 0x345   : > { %1437 = vmatprep.subr.msk.bf16.mxu0 %vm412_vm0, %v1317_v25 }
 0x34c   : > { %1403 = vmatpush3.bf16.xpose.msra.mxu0 %v770_v26  ;;  %v671_v26 = vsel %vm476_vm2, %v1774_v19, 0.0 }
 0x353   : > { %1405 = vmatmul.mubr.msk.bf16.vlgmr.msra.gmra.mrb[8].mxu0 %vm412_vm0, %v1315_v27 }
 0x416   : > { %v1794_v29 = vpop.f32.mrb[4].mxu0 }
 0x417   : > { %v1796_v10 = vpop.f32.mrb[5].mxu0 }
 0x418   : > { %v1399_v30 = vpop.f32.mrb[6].mxu0 }
 0x419   : > { %v1798_v32 = vpop.f32.mrb[7].mxu0 }
 0x426   : > { %v1406_v33 = vpop.f32.mrb[8].mxu0 }
 0x427   : > { %v806_v34 = vpop.f32.mrb[9].mxu0  ;;  %v822_v15 = vmul.f32 0.125, %v1406_v33 }
 0x428   : > { %v820_v35 = vmul.f32 0.125, %v806_v34  ;;  %v1407_v36 = vpop.f32.mrb[10].mxu0 }
 0x429   : > { %v809_v37 = vpop.f32.mrb[11].mxu0  ;;  %v829_v41 = vsel %vm483_vm1, %v822_v15, -inf }
 0x42a   : > { %v821_v38 = vmul.f32 0.125, %v809_v37  ;;  %v823_v39 = vsel %vm476_vm2, %v820_v35, -inf }
 0x42b   : > { %824 = vmax.xlane.f32.xlu1 %v823_v39 }
 0x42c   : > { %v826_v40 = vsel %vm476_vm2, %v821_v38, -inf }
 0x42d   : > { %827 = vmax.xlane.f32.xlu0 %v826_v40 }
 0x431   : > { %830 = vmax.xlane.f32.xlu0 %v829_v41 }
 0x43c   : > { %925 = vrot.lane.b32.xlu1 %v1505_v17, %s1606_s12 }
 0x440   : > { %921 = vrot.lane.b32.xlu1 %v1509_v21, %s1606_s12 }
 0x444   : > { %923 = vrot.lane.b32.xlu1 %v1315_v27, %s1606_s12  ;;  %v674_v27 = vsel %vm476_vm2, %v1776_v20, 0.0 }
 0x447   : > { %927 = vrot.lane.b32.xlu0 %v1317_v25, %s1606_s12  ;;  %v677_v25 = vsel %vm483_vm1, %v1772_v18, 0.0 }
 0x4b8   : > { %v825_v48 = vpop.xlane.xlu1 %824 }
 0x4b9   : > { %v832_v49 = vsub.f32 %v820_v35, %v825_v48 }
 0x4ba   : > { %v828_v50 = vpop.xlane.xlu0 %827 }
 0x4bb   : > { %v835_v51 = vmul.f32 1.442695, %v832_v49  ;;  %v833_v52 = vsub.f32 %v821_v38, %v828_v50  ;;  %v502_v50 = vsel %vm483_vm1, %v1741_v43, 0.0 }
 0x4bc   : > { %v926_v55 = vpop.permute.xlu1 %925 }
 0x4bd   : > { %v837_v57 = vmul.f32 1.442695, %v833_v52  ;;  %1438 = vmatprep.subr.msk.bf16.mxu1 %vm412_vm0, %v926_v55  ;;  %1530 = vpow2.f32 %v835_v51  ;;  %v936_v0 = vsel %vm412_vm0, %v926_v55, 0  ;;  %v496_v52 = vsel %vm476_vm2, %v1743_v44, 0.0 }
 0x4be   : > { %v831_v28 = vpop.xlane.xlu0 %830  ;;  %v499_v55 = vsel %vm476_vm2, %v1745_v45, 0.0 }
 0x4bf   : > { %1532 = vpow2.f32 %v837_v57  ;;  %v834_v58 = vsub.f32 %v822_v15, %v831_v28 }
 0x4c0   : > { %v922_v2 = vpop.permute.xlu1 %921 }
 0x4c1   : > { %v839_v59 = vmul.f32 1.442695, %v834_v58 }
 0x4c2   : > { %v928_v3 = vpop.permute.xlu0 %927 }
 0x4c3   : > { %1534 = vpow2.f32 %v839_v59  ;;  %v939_v4 = vsel %vm412_vm0, %v928_v3, 0 }
 0x4c4   : > { %v924_v5 = vpop.permute.xlu1 %923 }
 0x4c7   : > { %v1812_v60 = vpop.eup %1530 }
 0x4c8   : > { %v841_v57 = vsel %vm476_vm2, %v1812_v60, 0.0 }
 0x4c9   : > { %v1814_v61 = vpop.eup %1532 }
 0x4ca   : > { %v850_v62 = vpack.c.bf16 %v1814_v61, %v1812_v60  ;;  %v844_v28 = vsel %vm476_vm2, %v1814_v61, 0.0 }
 0x4cc   : > { %1412 = vmatprep.mubr.msk.bf16.mxu1 %vm476_vm2, %v850_v62 }
 0x4cd   : > { %v1819_v63 = vpop.eup %1534 }
 0x4ce   : > { %v851_v1 = vpack.c.bf16 %v1819_v63, %v1819_v63  ;;  %v847_v51 = vsel %vm483_vm1, %v1819_v63, 0.0 }
 0x4d0   : > { %1413 = vmatmul.mubr.msk.bf16.vlgmr.msra.gmra.mrb[8].mxu1 %vm476_vm2, %v851_v1 }
 0x4d1   : > { %1417 = vmatpush3.bf16.xpose.msra.mxu1 %v936_v0  ;;  %1420 = vmatprep.mubr.msk.bf16.mxu1 %vm412_vm0, %v922_v2 }
 0x4d2   : > { %1439 = vmatprep.subr.msk.bf16.mxu1 %vm412_vm0, %v928_v3 }
 0x4d9   : > { %1419 = vmatpush3.bf16.xpose.msra.mxu1 %v939_v4 }
 0x4e0   : > { %1421 = vmatmul.mubr.msk.bf16.vlgmr.msra.gmra.mrb[12].mxu1 %vm412_vm0, %v924_v5 }
 0x5a3   : > { %v1829_v6 = vpop.f32.mrb[8].mxu1 }
 0x5a4   : > { %v1831_v7 = vpop.f32.mrb[9].mxu1 }
 0x5a5   : > { %v1415_v8 = vpop.f32.mrb[10].mxu1 }
 0x5a6   : > { %v1833_v9 = vpop.f32.mrb[11].mxu1 }
 0x5b3   : > { %v1422_v11 = vpop.f32.mrb[12].mxu1 }
 0x5b4   : > { %v991_v12 = vmul.f32 0.125, %v1422_v11  ;;  %v975_v13 = vpop.f32.mrb[13].mxu1 }
 0x5b5   : > { %v989_v14 = vmul.f32 0.125, %v975_v13  ;;  %v1423_v16 = vpop.f32.mrb[14].mxu1 }
 0x5b6   : > { %v978_v17 = vpop.f32.mrb[15].mxu1  ;;  %v998_v21 = vsel %vm483_vm1, %v991_v12, -inf }
 0x5b7   : > { %v990_v22 = vmul.f32 0.125, %v978_v17  ;;  %999 = vmax.xlane.f32.xlu0 %v998_v21  ;;  %v992_v23 = vsel %vm476_vm2, %v989_v14, -inf }
 0x5b8   : > { %993 = vmax.xlane.f32.xlu1 %v992_v23 }
 0x5b9   : > { %v995_v24 = vsel %vm476_vm2, %v990_v22, -inf }
 0x5bb   : > { %996 = vmax.xlane.f32.xlu0 %v995_v24 }
 0x5c9   : > { %1023 = vrot.lane.b32.xlu1 %v1321_v46, %s1606_s12 }
 0x5d1   : > { %1021 = vrot.lane.b32.xlu0 %v1516_v42, %s1606_s12 }
 0x5ed   : > { %678 = vadd.xlane.f32.xlu1 %v677_v25 }
 0x5f0   : > { %672 = vadd.xlane.f32.xlu0 %v671_v26 }
 0x5f1   : > { %675 = vadd.xlane.f32.xlu1 %v674_v27 }
 0x644   : > { %v1000_v30 = vpop.xlane.xlu0 %999 }
 0x645   : > { %v1003_v33 = vsub.f32 %v991_v12, %v1000_v30  ;;  %v994_v34 = vpop.xlane.xlu1 %993 }
 0x646   : > { %v1001_v35 = vsub.f32 %v989_v14, %v994_v34 }
 0x647   : > { %v1008_v36 = vmul.f32 1.442695, %v1003_v33 }
 0x648   : > { %v1004_v37 = vmul.f32 1.442695, %v1001_v35  ;;  %v997_v38 = vpop.xlane.xlu0 %996 }
 0x649   : > { %1536 = vpow2.f32 %v1008_v36  ;;  %v1002_v39 = vsub.f32 %v990_v22, %v997_v38  ;;  %v1024_v15 = vpop.permute.xlu1 %1023 }
 0x64a   : > { %1538 = vpow2.f32 %v1004_v37  ;;  %v1033_v40 = vand.u32 %v1024_v15, %v1735_v31 }
 0x64b   : > { %v1006_v18 = vmul.f32 1.442695, %v1002_v39 }
 0x64c   : > { %v1022_v19 = vpop.permute.xlu0 %1021 }
 0x64d   : > { %1540 = vpow2.f32 %v1006_v18  ;;  %1424 = vmatprep.subr.bf16.mxu0 %v1022_v19 }
 0x64e   : > { %1425 = vmatpush3.bf16.msra.mxu0 %v1022_v19 }
 0x64f   : > { %1426 = vmatprep.subr.bf16.mxu0 %v1033_v40 }
 0x652   : > { %1427 = vmatpush3.bf16.msra.mxu0 %v1033_v40 }
 0x653   : > { %v1537_v20 = vpop.eup %1536 }
 0x654   : > { %v1016_v41 = vsel %vm483_vm1, %v1537_v20, 0.0  ;;  %v1539_v42 = vpop.eup %1538  ;;  %v1020_v31 = vpack.c.bf16 %v1537_v20, %v1537_v20 }
 0x655   : > { %1017 = vadd.xlane.f32.xlu0 %v1016_v41  ;;  %v1010_v47 = vsel %vm476_vm2, %v1539_v42, 0.0 }
 0x657   : > { %v1541_v46 = vpop.eup %1540 }
 0x658   : > { %v1013_v48 = vsel %vm476_vm2, %v1541_v46, 0.0  ;;  %v1019_v49 = vpack.c.bf16 %v1541_v46, %v1539_v42 }
 0x659   : > { %1011 = vadd.xlane.f32.xlu0 %v1010_v47  ;;  %1014 = vadd.xlane.f32.xlu1 %v1013_v48  ;;  %v1148_v48 = vld [vmem:[%s384_s14 + $0x10] sm:$0x11] }
 0x65a   : > { %1428 = vmatprep.mubr.msk.bf16.mxu0 %vm476_vm2, %v1019_v49 }
 0x65b   : > { %1429 = vmatmul.mubr.msk.bf16.vlgmr.msra.gmra.mrb[12].mxu0 %vm476_vm2, %v1020_v31 }
 0x65d   : > { %503 = vadd.xlane.f32.xlu0 %v502_v50  ;;  %848 = vadd.xlane.f32.xlu1 %v847_v51 }
 0x661   : > { %497 = vadd.xlane.f32.xlu0 %v496_v52  ;;  %500 = vadd.xlane.f32.xlu1 %v499_v55 }
 0x665   : > { %842 = vadd.xlane.f32.xlu0 %v841_v57  ;;  %845 = vadd.xlane.f32.xlu1 %v844_v28 }
 0x67a   : > { %v679_v43 = vpop.xlane.xlu1 %678 }
 0x67b   : > { %1542 = vrcp.f32 %v679_v43 }
 0x67d   : > { %v673_v58 = vpop.xlane.xlu0 %672 }
 0x67e   : > { %1544 = vrcp.f32 %v673_v58  ;;  %v676_v59 = vpop.xlane.xlu1 %675 }
 0x67f   : > { %1546 = vrcp.f32 %v676_v59 }
 0x685   : > { %v1543_v44 = vpop.eup %1542 }
 0x686   : > { %v749_v62 = vmul.f32 %v1543_v44, %v1794_v29 }
 0x688   : > { %v1545_v45 = vpop.eup %1544 }
 0x689   : > { %v1547_v63 = vpop.eup %1546  ;;  %v745_v0 = vmul.f32 %v1545_v45, %v1796_v10 }
 0x68a   : > { %v747_v60 = vmul.f32 %v1547_v63, %v1798_v32 }
 0x68c   : > { %v1493_v1 = vpack.i.bf16 %v747_v60, %v745_v0 }
 0x68e   : > { %1494 = vrot.lane.b32.xlu1 %v1493_v1, %s1606_s12 }
 0x6e2   : > { %v1018_v61 = vpop.xlane.xlu0 %1017 }
 0x6e3   : > { %1548 = vrcp.f32 %v1018_v61 }
 0x6e6   : > { %v1015_v2 = vpop.xlane.xlu1 %1014  ;;  %v1012_v3 = vpop.xlane.xlu0 %1011 }
 0x6e7   : > { %1550 = vrcp.f32 %v1015_v2 }
 0x6e8   : > { %1552 = vrcp.f32 %v1012_v3 }
 0x6ea   : > { %v849_v21 = vpop.xlane.xlu1 %848  ;;  %v504_v22 = vpop.xlane.xlu0 %503 }
 0x6eb   : > { %1554 = vrcp.f32 %v849_v21 }
 0x6ec   : > { %1556 = vrcp.f32 %v504_v22 }
 0x6ed   : > { %v1549_v4 = vpop.eup %1548 }
 0x6ee   : > { %v501_v23 = vpop.xlane.xlu1 %500  ;;  %v498_v24 = vpop.xlane.xlu0 %497 }
 0x6ef   : > { %1558 = vrcp.f32 %v501_v23 }
 0x6f0   : > { %1560 = vrcp.f32 %v498_v24 }
 0x6f1   : > { %v1551_v29 = vpop.eup %1550 }
 0x6f2   : > { %v1553_v13 = vpop.eup %1552  ;;  %v846_v25 = vpop.xlane.xlu1 %845 }
 0x6f3   : > { %v843_v26 = vpop.xlane.xlu0 %842  ;;  %1562 = vrcp.f32 %v846_v25 }
 0x6f4   : > { %1564 = vrcp.f32 %v843_v26 }
 0x6f5   : > { %v1555_v27 = vpop.eup %1554 }
 0x6f6   : > { %v1557_v30 = vpop.eup %1556  ;;  %v920_v39 = vmul.f32 %v1555_v27, %v1829_v6 }
 0x6f7   : > { %v581_v19 = vmul.f32 %v1557_v30, %v1758_v53 }
 0x6f9   : > { %v1559_v33 = vpop.eup %1558 }
 0x6fa   : > { %v1561_v35 = vpop.eup %1560  ;;  %v579_v42 = vmul.f32 %v1559_v33, %v1762_v56 }
 0x6fb   : > { %v577_v47 = vmul.f32 %v1561_v35, %v1760_v54 }
 0x6fd   : > { %v1563_v37 = vpop.eup %1562 }
 0x6fe   : > { %v1565_v18 = vpop.eup %1564  ;;  %v918_v31 = vmul.f32 %v1563_v37, %v1833_v9 }
 0x6ff   : > { %v916_v56 = vmul.f32 %v1565_v18, %v1831_v7 }
 0x700   : > { %v1495_v34 = vpop.permute.xlu1 %1494 }
 0x701   : > { %v1497_v40 = vunpack.i.h.bf16 %v1495_v34  ;;  %v1496_v46 = vunpack.i.l.bf16 %v1495_v34 }
 0x703   : > { %v1114_v55 = vsel %vm412_vm0, %v579_v42, %v1497_v40  ;;  %v1113_v57 = vsel %vm412_vm0, %v577_v47, %v1496_v46 }
 0x72e   : > { %v1430_v5 = vpop.f32.mrb[12].mxu0 }
 0x72f   : > { %v1088_v8 = vmul.f32 %v1549_v4, %v1430_v5  ;;  %v1069_v11 = vpop.f32.mrb[13].mxu0 }
 0x730   : > { %v1431_v12 = vpop.f32.mrb[14].mxu0  ;;  %v1084_v32 = vmul.f32 %v1553_v13, %v1069_v11 }
 0x731   : > { %v1488_v14 = vpack.i.bf16 %v1088_v8, %v749_v62  ;;  %v1072_v10 = vpop.f32.mrb[15].mxu0 }
 0x732   : > { %v1086_v16 = vmul.f32 %v1551_v29, %v1072_v10 }
 0x733   : > { %1489 = vrot.lane.b32.xlu0 %v1488_v14, %s1606_s12 }
 0x734   : > { %v1498_v17 = vpack.i.bf16 %v1086_v16, %v1084_v32 }
 0x736   : > { %1499 = vrot.lane.b32.xlu1 %v1498_v17, %s1606_s12 }
 0x7a5   : > { %v1490_v15 = vpop.permute.xlu0 %1489 }
 0x7a6   : > { %v1492_v20 = vunpack.i.h.bf16 %v1490_v15  ;;  %v1491_v41 = vunpack.i.l.bf16 %v1490_v15 }
 0x7a8   : > { %v1118_v6 = vsel %vm412_vm0, %v920_v39, %v1492_v20  ;;  %v1115_v49 = vsel %vm412_vm0, %v581_v19, %v1491_v41  ;;  %v1500_v53 = vpop.permute.xlu1 %1499 }
 0x7a9   : > { %v1335_v50 = vpack.c.bf16 %v1118_v6, %v1115_v49  ;;  %v1502_v51 = vunpack.i.h.bf16 %v1500_v53  ;;  %v1501_v52 = vunpack.i.l.bf16 %v1500_v53 }
 0x7ab   : > { %v1149_v28 = vsel %vm1147_vm9, %v1335_v50, %v1148_v48  ;;  %v1117_v54 = vsel %vm412_vm0, %v918_v31, %v1502_v51  ;;  %v1116_v43 = vsel %vm412_vm0, %v916_v56, %v1501_v52 }
 0x7ac   : > { %1150 = vst [vmem:[%s384_s14 + $0x10] sm:$0x11] %v1149_v28  ;;  %v1334_v58 = vpack.c.bf16 %v1117_v54, %v1114_v55  ;;  %v1333_v59 = vpack.c.bf16 %v1116_v43, %v1113_v57 }
 0x7ae   : > { %1140 = vst [vmem:[%s384_s14 + $0x8] sm:$0xff] %v1334_v58  ;;  %1139 = vst [vmem:[%s384_s14] sm:$0xff] %v1333_v59 }
 0x7af PF: > { %s13_s16 = sadd.s32 1, %s1604_s16   ;;  %s1924_s12 = smov %s1592_s13 }
 0x7b0   : > { %p10_p10 = scmp.ge.s32.totalorder %s13_s16, 4   ;;  %s1925_s13 = smov %s1667_s21 }
 0x7b1   : > { %s1926_s14 = smov %s1600_s15  ;;  %s1927_s15 = smov %s1929_s17 }
 0x7b2   :  { %12 = sbr.rel (!%p10_p10) target bundleno = 3 (0x3), region = 197 }

// kernel: clip_vision_transformer.15
= control target key start
LH: loop header
LB: loop body
LE: loop exit
PB: predicated region body
PF: predicated region fallthrough
CT: control target
= control target key end

     0   :  { %v57_v39 = vlaneseq  ;;  %s694_s1 = inlined_call_operand.vmem [shape: bf16[256,256], index: 1, kind: input, shape index: {}]   ;;  %s695_s0 = inlined_call_operand.vmem [shape: bf16[34,256], index: 0, kind: input, shape index: {}]   ;;  %s696_s2 = inlined_call_operand.vmem [shape: bf16[1,256], index: 2, kind: input, shape index: {}]   ;;  %s697_s3 = inlined_call_operand.vmem [shape: bf16[34,256], index: 3, kind: input, shape index: {}]   ;;  %s698_s4 = inlined_call_operand.vmem [shape: bf16[34,256], index: 4, kind: output, shape index: {}]  }
   0x1   :  { %v469_v0 = vld [vmem:[%s694_s1 + $0x4] ss:$8 sps:$4 sm:$0xff]   ;;  %v471_v1 = vld [vmem:[%s694_s1] ss:$8 sps:$4 sm:$0xff]   ;;  %v472_v2 = vld [vmem:[%s694_s1 + $0x14] ss:$8 sps:$4 sm:$0xff]  }
   0x2   :  { %437 = vmatprep.subr.bf16.mxu1 %v469_v0  ;;  %262 = vmatprep.subr.bf16.mxu0 %v469_v0  ;;  %v474_v3 = vld [vmem:[%s694_s1 + $0x10] ss:$8 sps:$4 sm:$0xff]   ;;  %v475_v4 = vld [vmem:[%s694_s1 + $0x24] ss:$8 sps:$4 sm:$0xff]   ;;  %v477_v5 = vld [vmem:[%s694_s1 + $0x20] ss:$8 sps:$4 sm:$0xff]  }
   0x3   :  { %453 = vmatpush1.bf16.msra.mxu1 %v471_v1  ;;  %263 = vmatpush1.bf16.msra.mxu0 %v471_v1  ;;  %v478_v6 = vld [vmem:[%s694_s1 + $0x34] ss:$8 sps:$4 sm:$0xff]   ;;  %v480_v7 = vld [vmem:[%s694_s1 + $0x30] ss:$8 sps:$4 sm:$0xff]   ;;  %v481_v8 = vld [vmem:[%s694_s1 + $0x44] ss:$8 sps:$4 sm:$0xff]  }
   0x4   :  { %438 = vmatprep.subr.bf16.mxu1 %v472_v2  ;;  %264 = vmatprep.subr.bf16.mxu0 %v472_v2  ;;  %v483_v9 = vld [vmem:[%s694_s1 + $0x40] ss:$8 sps:$4 sm:$0xff]   ;;  %v484_v10 = vld [vmem:[%s694_s1 + $0x54] ss:$8 sps:$4 sm:$0xff]   ;;  %v486_v11 = vld [vmem:[%s694_s1 + $0x50] ss:$8 sps:$4 sm:$0xff]  }
   0x5   :  { %v487_v12 = vld [vmem:[%s694_s1 + $0x64] ss:$8 sps:$4 sm:$0xff]   ;;  %v519_v13 = vld [vmem:[%s695_s0 + $0x14] ss:$8 sps:$4 sm:$0xff]   ;;  %v489_v14 = vld [vmem:[%s694_s1 + $0x60] ss:$8 sps:$4 sm:$0xff]  }
   0x6   :  { %v522_v15 = vld [vmem:[%s695_s0 + $0x4] ss:$8 sps:$4 sm:$0xff]   ;;  %v490_v16 = vld [vmem:[%s694_s1 + $0x74] ss:$8 sps:$4 sm:$0xff]   ;;  %304 = vmatprep.mubr.bf16.mxu1 %v519_v13  ;;  %v492_v17 = vld [vmem:[%s694_s1 + $0x70] ss:$8 sps:$4 sm:$0xff]  }
   0x7   :  { %454 = vmatpush1.bf16.msra.mxu1 %v474_v3  ;;  %265 = vmatpush1.bf16.msra.mxu0 %v474_v3  ;;  %v493_v18 = vld [vmem:[%s694_s1 + $0x84] ss:$8 sps:$4 sm:$0xff]   ;;  %v495_v19 = vld [vmem:[%s694_s1 + $0x80] ss:$8 sps:$4 sm:$0xff]   ;;  %v496_v20 = vld [vmem:[%s694_s1 + $0x94] ss:$8 sps:$4 sm:$0xff]  }
   0x8   :  { %439 = vmatprep.subr.bf16.mxu1 %v475_v4  ;;  %266 = vmatprep.subr.bf16.mxu0 %v475_v4  ;;  %v498_v21 = vld [vmem:[%s694_s1 + $0x90] ss:$8 sps:$4 sm:$0xff]   ;;  %v499_v22 = vld [vmem:[%s694_s1 + $0xa4] ss:$8 sps:$4 sm:$0xff]   ;;  %v501_v23 = vld [vmem:[%s694_s1 + $0xa0] ss:$8 sps:$4 sm:$0xff]  }
   0x9   :  { %294 = vmatprep.mubr.bf16.mxu0 %v522_v15  ;;  %v502_v24 = vld [vmem:[%s694_s1 + $0xb4] ss:$8 sps:$4 sm:$0xff]   ;;  %v504_v25 = vld [vmem:[%s694_s1 + $0xb0] ss:$8 sps:$4 sm:$0xff]   ;;  %v505_v26 = vld [vmem:[%s694_s1 + $0xc4] ss:$8 sps:$4 sm:$0xff]  }
   0xa   :  { %v507_v27 = vld [vmem:[%s694_s1 + $0xc0] ss:$8 sps:$4 sm:$0xff]   ;;  %v508_v28 = vld [vmem:[%s694_s1 + $0xd4] ss:$8 sps:$4 sm:$0xff]   ;;  %v510_v29 = vld [vmem:[%s694_s1 + $0xd0] ss:$8 sps:$4 sm:$0xff]  }
   0xb   :  { %455 = vmatpush1.bf16.msra.mxu1 %v477_v5  ;;  %267 = vmatpush1.bf16.msra.mxu0 %v477_v5  ;;  %v511_v30 = vld [vmem:[%s694_s1 + $0xe4] ss:$8 sps:$4 sm:$0xff]   ;;  %v513_v31 = vld [vmem:[%s694_s1 + $0xe0] ss:$8 sps:$4 sm:$0xff]   ;;  %v514_v32 = vld [vmem:[%s694_s1 + $0xf4] ss:$8 sps:$4 sm:$0xff]  }
   0xc   :  { %440 = vmatprep.subr.bf16.mxu1 %v478_v6  ;;  %268 = vmatprep.subr.bf16.mxu0 %v478_v6  ;;  %v516_v33 = vld [vmem:[%s694_s1 + $0xf0] ss:$8 sps:$4 sm:$0xff]   ;;  %v21_v34 = vld [vmem:[%s695_s0 + $0x20] sm:$0x11]  ;;  %v58_v40 = vshrl.u32 %v57_v39, 7  ;;  %v324_v52 = vld [vmem:[%s697_s3 + $0x8] sm:$0xff] }
   0xd   :  { %v517_v35 = vld [vmem:[%s695_s0 + $0x10] ss:$8 sps:$4 sm:$0xff]   ;;  %v520_v36 = vld [vmem:[%s695_s0] ss:$8 sps:$4 sm:$0xff]   ;;  %v394_v37 = vcombine.high %v21_v34, %v21_v34  ;;  %v393_v38 = vcombine.low %v21_v34, %v21_v34  ;;  %v330_v0 = vunpack.c.l.bf16 %v324_v52  ;;  %v331_v6 = vunpack.c.h.bf16 %v324_v52 }
   0xe   :  { %v54_v41 = vld [vmem:[%s696_s2] sm:$0x3]  ;;  %v59_v43 = vsub.s32 0, %v58_v40  ;;  %v63_v44 = vsub.s32 2, %v58_v40  ;;  %v325_v47 = vld [vmem:[%s697_s3 + $0x10] sm:$0xff]  ;;  %v326_v51 = vld [vmem:[%s697_s3 + $0x18] sm:$0xff] }
   0xf   :  { %456 = vmatpush1.bf16.msra.mxu1 %v480_v7  ;;  %269 = vmatpush1.bf16.msra.mxu0 %v480_v7  ;;  %v55_v42 = vunpack.c.l.bf16 %v54_v41  ;;  %v323_v48 = vld [vmem:[%s697_s3] sm:$0xff]  ;;  %v332_v53 = vunpack.c.l.bf16 %v325_v47  ;;  %v333_v56 = vunpack.c.h.bf16 %v325_v47  ;;  %v334_v61 = vunpack.c.l.bf16 %v326_v51 }
  0x10   :  { %441 = vmatprep.subr.bf16.mxu1 %v481_v8  ;;  %270 = vmatprep.subr.bf16.mxu0 %v481_v8  ;;  %v328_v54 = vunpack.c.l.bf16 %v323_v48  ;;  %v329_v58 = vunpack.c.h.bf16 %v323_v48  ;;  %v335_v3 = vunpack.c.h.bf16 %v326_v51 }
  0x11   :  { %v60_v45 = vrot.slane %v55_v42, %v59_v43  ;;  %v64_v46 = vrot.slane %v55_v42, %v63_v44 }
  0x13   :  { %457 = vmatpush1.bf16.msra.mxu1 %v483_v9  ;;  %271 = vmatpush1.bf16.msra.mxu0 %v483_v9  ;;  %v70_v49 = vrot.slane %v60_v45, %v59_v43  ;;  %v74_v50 = vrot.slane %v64_v46, %v59_v43 }
  0x14   :  { %442 = vmatprep.subr.bf16.mxu1 %v484_v10  ;;  %272 = vmatprep.subr.bf16.mxu0 %v484_v10 }
  0x17   :  { %458 = vmatpush1.bf16.msra.mxu1 %v486_v11  ;;  %273 = vmatpush1.bf16.msra.mxu0 %v486_v11 }
  0x18   :  { %443 = vmatprep.subr.bf16.mxu1 %v487_v12  ;;  %274 = vmatprep.subr.bf16.mxu0 %v487_v12 }
  0x1b   :  { %459 = vmatpush1.bf16.msra.mxu1 %v489_v14  ;;  %275 = vmatpush1.bf16.msra.mxu0 %v489_v14 }
  0x1c   :  { %444 = vmatprep.subr.bf16.mxu1 %v490_v16  ;;  %276 = vmatprep.subr.bf16.mxu0 %v490_v16 }
  0x1f   :  { %460 = vmatpush1.bf16.msra.mxu1 %v492_v17  ;;  %277 = vmatpush1.bf16.msra.mxu0 %v492_v17  ;;  %v327_v17 = vld [vmem:[%s697_s3 + $0x20] sm:$0x11] }
  0x20   :  { %445 = vmatprep.subr.bf16.mxu1 %v493_v18  ;;  %278 = vmatprep.subr.bf16.mxu0 %v493_v18 }
  0x23   :  { %461 = vmatpush1.bf16.msra.mxu1 %v495_v19  ;;  %279 = vmatpush1.bf16.msra.mxu0 %v495_v19 }
  0x24   :  { %446 = vmatprep.subr.bf16.mxu1 %v496_v20  ;;  %280 = vmatprep.subr.bf16.mxu0 %v496_v20 }
  0x27   :  { %462 = vmatpush1.bf16.msra.mxu1 %v498_v21  ;;  %281 = vmatpush1.bf16.msra.mxu0 %v498_v21 }
  0x28   :  { %447 = vmatprep.subr.bf16.mxu1 %v499_v22  ;;  %282 = vmatprep.subr.bf16.mxu0 %v499_v22 }
  0x2b   :  { %463 = vmatpush1.bf16.msra.mxu1 %v501_v23  ;;  %283 = vmatpush1.bf16.msra.mxu0 %v501_v23 }
  0x2c   :  { %448 = vmatprep.subr.bf16.mxu1 %v502_v24  ;;  %284 = vmatprep.subr.bf16.mxu0 %v502_v24  ;;  %v336_v24 = vunpack.c.l.bf16 %v327_v17 }
  0x2f   :  { %464 = vmatpush1.bf16.msra.mxu1 %v504_v25  ;;  %285 = vmatpush1.bf16.msra.mxu0 %v504_v25 }
  0x30   :  { %449 = vmatprep.subr.bf16.mxu1 %v505_v26  ;;  %286 = vmatprep.subr.bf16.mxu0 %v505_v26 }
  0x33   :  { %465 = vmatpush1.bf16.msra.mxu1 %v507_v27  ;;  %287 = vmatpush1.bf16.msra.mxu0 %v507_v27 }
  0x34   :  { %450 = vmatprep.subr.bf16.mxu1 %v508_v28  ;;  %288 = vmatprep.subr.bf16.mxu0 %v508_v28  ;;  %v337_v28 = vunpack.c.h.bf16 %v327_v17 }
  0x37   :  { %466 = vmatpush1.bf16.msra.mxu1 %v510_v29  ;;  %289 = vmatpush1.bf16.msra.mxu0 %v510_v29 }
  0x38   :  { %451 = vmatprep.subr.bf16.mxu1 %v511_v30  ;;  %290 = vmatprep.subr.bf16.mxu0 %v511_v30 }
  0x3b   :  { %467 = vmatpush1.bf16.msra.mxu1 %v513_v31  ;;  %291 = vmatpush1.bf16.msra.mxu0 %v513_v31 }
  0x3c   :  { %452 = vmatprep.subr.bf16.mxu1 %v514_v32  ;;  %292 = vmatprep.subr.bf16.mxu0 %v514_v32 }
  0x3f   :  { %468 = vmatpush1.bf16.msra.mxu1 %v516_v33  ;;  %293 = vmatpush1.bf16.msra.mxu0 %v516_v33 }
  0x42   :  { %305 = vmatmul.mubr.bf16.vlgmr.msra.gmra.mrb[0].mxu1 %v517_v35  ;;  %295 = vmatmul.mubr.bf16.vlgmr.msra.gmra.mrb[0].mxu0 %v520_v36 }
  0x43   :  { %314 = vmatprep.mubr.bf16.mxu1 %v394_v37 }
  0x4a   :  { %315 = vmatmul.mubr.bf16.gmra.mrb[4].mxu1 %v393_v38 }
 0x115   :  { %v306_v55 = vpop.f32.mrb[0].mxu1  ;;  %v296_v57 = vpop.f32.mrb[0].mxu0 }
 0x116   :  { %v307_v59 = vadd.f32 %v306_v55, %v70_v49  ;;  %v308_v60 = vpop.f32.mrb[1].mxu1  ;;  %v297_v62 = vadd.f32 %v296_v57, %v70_v49  ;;  %v298_v63 = vpop.f32.mrb[1].mxu0 }
 0x117   :  { %v309_v1 = vadd.f32 %v308_v60, %v74_v50  ;;  %v310_v2 = vpop.f32.mrb[2].mxu1  ;;  %v299_v4 = vadd.f32 %v298_v63, %v74_v50  ;;  %v300_v5 = vpop.f32.mrb[2].mxu0 }
 0x118   :  { %v342_v7 = vadd.f32 %v332_v53, %v307_v59  ;;  %v311_v8 = vadd.f32 %v310_v2, %v70_v49  ;;  %v338_v9 = vadd.f32 %v328_v54, %v297_v62  ;;  %v312_v10 = vpop.f32.mrb[3].mxu1  ;;  %v301_v11 = vadd.f32 %v300_v5, %v70_v49  ;;  %v302_v12 = vpop.f32.mrb[3].mxu0 }
 0x119   :  { %v343_v13 = vadd.f32 %v333_v56, %v309_v1  ;;  %v313_v14 = vadd.f32 %v312_v10, %v74_v50  ;;  %v339_v15 = vadd.f32 %v329_v58, %v299_v4  ;;  %v303_v16 = vadd.f32 %v302_v12, %v74_v50 }
 0x11a   :  { %v344_v18 = vadd.f32 %v334_v61, %v311_v8  ;;  %v340_v19 = vadd.f32 %v330_v0, %v301_v11 }
 0x11b   :  { %v434_v20 = vpack.c.bf16 %v343_v13, %v342_v7  ;;  %v345_v21 = vadd.f32 %v335_v3, %v313_v14  ;;  %v432_v22 = vpack.c.bf16 %v339_v15, %v338_v9  ;;  %v341_v23 = vadd.f32 %v331_v6, %v303_v16 }
 0x11d   :  { %382 = vst [vmem:[%s698_s4 + $0x10] sm:$0xff] %v434_v20  ;;  %v435_v25 = vpack.c.bf16 %v345_v21, %v344_v18  ;;  %380 = vst [vmem:[%s698_s4] sm:$0xff] %v432_v22  ;;  %v433_v26 = vpack.c.bf16 %v341_v23, %v340_v19  ;;  %v316_v27 = vpop.f32.mrb[4].mxu1 }
 0x11e   :  { %v317_v29 = vadd.f32 %v316_v27, %v70_v49  ;;  %v318_v30 = vpop.f32.mrb[5].mxu1 }
 0x11f   :  { %383 = vst [vmem:[%s698_s4 + $0x18] sm:$0xff] %v435_v25  ;;  %381 = vst [vmem:[%s698_s4 + $0x8] sm:$0xff] %v433_v26  ;;  %v319_v31 = vadd.f32 %v318_v30, %v74_v50  ;;  %v320_v32 = vpop.f32.mrb[6].mxu1 }
 0x120   :  { %v346_v33 = vadd.f32 %v336_v24, %v317_v29  ;;  %v321_v34 = vpop.f32.mrb[7].mxu1 }
 0x121   :  { %v347_v35 = vadd.f32 %v337_v28, %v319_v31 }
 0x123   :  { %v436_v36 = vpack.c.bf16 %v347_v35, %v346_v33 }
 0x125   :  { %384 = vst [vmem:[%s698_s4 + $0x20] sm:$0x11] %v436_v36 }

// kernel: clip_vision_transformer.21
= control target key start
LH: loop header
LB: loop body
LE: loop exit
PB: predicated region body
PF: predicated region fallthrough
CT: control target
= control target key end

     0   :  { %v21_v1 = vlaneseq  ;;  %v220_v2 = vmov 1983009808   ;;  %s269_s0 = inlined_call_operand.vmem [shape: bf16[2,256], index: 0, kind: input, shape index: {}]   ;;  %s270_s1 = inlined_call_operand.vmem [shape: bf16[1,256], index: 1, kind: input, shape index: {}]   ;;  %s271_s2 = inlined_call_operand.vmem [shape: bf16[1,256], index: 2, kind: input, shape index: {}]   ;;  %s272_s3 = inlined_call_operand.hbm [shape: bf16[2,256], index: 3, kind: output, shape index: {}]  }
   0x1   :  { %v15_v0 = vld [vmem:[%s269_s0] sm:$0x3]  ;;  %v19_v3 = vunpack.c.l.s4 %v220_v2 }
   0x2   :  { %8 = vsyncpa [#allocation3], 0  ;;  %v22_v4 = vshrl.u32 %v21_v1, 7  ;;  %v16_v5 = vunpack.c.l.bf16 %v15_v0  ;;  %vm28_vm0 = vcmask 1041408   ;;  %v221_v13 = vmov 269488144  }
   0x3   :  { %v20_v6 = vunpack.c.0.s8 %v19_v3  ;;  %v38_v14 = vunpack.c.l.s4 %v221_v13  ;;  %v76_v27 = vld [vmem:[%s270_s1] sm:$0x3]  ;;  %v222_v51 = vmov 1966171168   ;;  %s223_s1 = smov [#allocation2]  }
   0x4   :  { %v109_v28 = vld [vmem:[%s271_s2] sm:$0x3]  ;;  %v77_v30 = vunpack.c.l.bf16 %v76_v27  ;;  %v81_v31 = vsub.s32 0, %v22_v4  ;;  %v85_v32 = vsub.s32 2, %v22_v4  ;;  %v159_v52 = vunpack.c.l.s4 %v222_v51  ;;  %s180_s2 = sshll.u32 %s223_s1, 4  ;;  %s181_s2 = int_to_ptr.vmem [resolvable:$true] %s180_s2 }
   0x5   :  { %v23_v7 = vsub.s32 %v20_v6, %v22_v4  ;;  %v39_v15 = vunpack.c.0.s8 %v38_v14  ;;  %v110_v34 = vunpack.c.l.bf16 %v109_v28  ;;  %s196_s17 = scalar_lea.vmem %s181_s2, 32  ;;  %p201_p1 = scmp.lt.s32.totalorder %s181_s2, %s181_s2 }
   0x6   :  { %v82_v36 = vrot.slane %v77_v30, %v81_v31  ;;  %v86_v37 = vrot.slane %v77_v30, %v85_v32  ;;  %v160_v55 = vunpack.c.0.s8 %v159_v52  ;;  %p197_p0 = scmp.ne.s32.totalorder %s181_s2, %s196_s17  ;;  %p202_p2 = scmp.lt.s32.totalorder %s196_s17, %s196_s17 }
   0x7   :  { %v24_v8 = vrot.slane %v16_v5, %v23_v7  ;;  %v42_v16 = vsub.s32 %v39_v15, %v22_v4  ;;  %v115_v38 = vrot.slane %v110_v34, %v81_v31  ;;  %v119_v39 = vrot.slane %v110_v34, %v85_v32 }
   0x8   :  { %v92_v40 = vrot.slane %v82_v36, %v81_v31  ;;  %v96_v41 = vrot.slane %v86_v37, %v81_v31  ;;  %v163_v58 = vsub.s32 %v160_v55, %v22_v4  ;;  %p203_p3 = por %p202_p2, %p201_p1 }
   0x9   :  { %v25_v9 = vcombine.high %v24_v8, %v24_v8  ;;  %v29_v10 = vsel %vm28_vm0, %v24_v8, 0.0  ;;  %v125_v42 = vrot.slane %v115_v38, %v81_v31  ;;  %v129_v43 = vrot.slane %v119_v39, %v81_v31 }
   0xa   :  { %v99_v44 = vcombine.low %v92_v40, %v96_v41  ;;  %p204_p4 = pnand %p203_p3, %p197_p0 }
   0xb   :  { %v30_v11 = vsel %vm28_vm0, %v25_v9, 0.0  ;;  %v132_v45 = vcombine.low %v125_v42, %v129_v43 }
   0xc   :  { %v31_v12 = vadd.f32 %v30_v11, %v29_v10  ;;  %v106_v48 = vrot.slane %v99_v44, %v23_v7 }
   0xd   :  { %v139_v50 = vrot.slane %v132_v45, %v23_v7 }
   0xe   :  { %32 = vadd.xlane.f32.xlu0 %v31_v12 }
  0x9b   :  { %v33_v17 = vpop.xlane.xlu0 %32 }
  0x9c   :  { %v35_v18 = vmul.f32 0.00390625, %v33_v17 }
  0x9e   :  { %v43_v19 = vrot.slane %v35_v18, %v42_v16 }
  0xa0   :  { %v45_v20 = vsub.f32 %v16_v5, %v43_v19 }
  0xa2   :  { %v46_v21 = vmul.f32 %v45_v20, %v45_v20 }
  0xa4   :  { %v54_v22 = vrot.slane %v46_v21, %v23_v7 }
  0xa6   :  { %v55_v23 = vcombine.high %v54_v22, %v54_v22  ;;  %v58_v24 = vsel %vm28_vm0, %v54_v22, 0.0 }
  0xa8   :  { %v59_v25 = vsel %vm28_vm0, %v55_v23, 0.0 }
  0xa9   :  { %v60_v26 = vadd.f32 %v59_v25, %v58_v24 }
  0xab   :  { %61 = vadd.xlane.f32.xlu0 %v60_v26 }
 0x138   :  { %v62_v29 = vpop.xlane.xlu0 %61 }
 0x139   :  { %v63_v33 = vmul.f32 0.00390625, %v62_v29 }
 0x13b   :  { %v64_v35 = vadd.f32 1e-05, %v63_v33 }
 0x13d   :  { %194 = vrsqrt.f32 %v64_v35 }
 0x147   :  { %v195_v46 = vpop.eup %194 }
 0x148   :  { %v73_v47 = vrot.slane %v195_v46, %v42_v16 }
 0x14a   :  { %v75_v49 = vmul.f32 %v73_v47, %v45_v20 }
 0x14c   :  { %v108_v53 = vmul.f32 %v106_v48, %v75_v49 }
 0x14e   :  { %v141_v54 = vadd.f32 %v139_v50, %v108_v53 }
 0x150   :  { %v149_v56 = vrot.slane %v141_v54, %v23_v7 }
 0x152   :  { %v150_v57 = vcombine.high %v149_v56, %v149_v56 }
 0x154   :  { %v188_v59 = vpack.c.bf16 %v150_v57, %v149_v56 }
 0x156   :  { %v164_v60 = vrot.slane %v188_v59, %v163_v58 }
 0x158   :  { %189 = vst.sshfl [vmem:[#allocation2] sm:$0x5 pattern:$0x73625140] %v164_v60 }
 0x159   :  { %207 = shalt.err (!%p204_p4)
}
 0x15a   :  { %s208_s20 = scalar_lea.hbm %s272_s3, 32 }
 0x15b   :  { %p209_p5 = scmp.ne.s32.totalorder %s272_s3, %s208_s20  ;;  %p212_p6 = scmp.lt.u32.totalorder %s208_s20, %s272_s3 }
 0x15d   :  { %p214_p7 = pnand %p212_p6, %p209_p5 }
 0x15f   :  { %217 = shalt.err (!%p214_p7)
}
 0x160   :  { %183 = dma.vmem_to_hbm [thread:$0]  %s181_s2, 32, %s272_s3, [#allocation3]  }
 0x161   :  { %218 = dma.done.wait [#allocation3], 32  }
 0x162   :  { %219 = vsyncadd [#allocation3], 4294967264 }
 0x163   :  { %187 = vsyncpa [#allocation3], 1 }

// kernel: clip_vision_transformer.16
= control target key start
LH: loop header
LB: loop body
LE: loop exit
PB: predicated region body
PF: predicated region fallthrough
CT: control target
= control target key end

     0   :  { %s2837_s24 = smov 0   ;;  %s2839_s25 = smov 0   ;;  %s3417_s0 = inlined_call_operand.vmem [shape: bf16[34,256], index: 0, kind: input, shape index: {}]   ;;  %s3418_s1 = inlined_call_operand.vmem [shape: bf16[1,256], index: 1, kind: input, shape index: {}]   ;;  %s3419_s2 = inlined_call_operand.vmem [shape: bf16[1,256], index: 2, kind: input, shape index: {}]   ;;  %s3420_s3 = inlined_call_operand.vmem [shape: bf16[256,1024], index: 3, kind: input, shape index: {}]   ;;  %s3421_s4 = inlined_call_operand.vmem [shape: bf16[1,1024], index: 4, kind: input, shape index: {}]   ;;  %s3422_s5 = inlined_call_operand.vmem [shape: bf16[1024,256], index: 5, kind: input, shape index: {}]   ;;  %s3423_s6 = inlined_call_operand.vmem [shape: bf16[1,256], index: 6, kind: input, shape index: {}]   ;;  %s3424_s7 = inlined_call_operand.vmem [shape: bf16[34,256], index: 7, kind: output, shape index: {}]  }
   0x1   :  { %s2841_s26 = smov 0   ;;  %s2843_s27 = smov 0  }
   0x2   :  { %s2845_s28 = smov 0  }
   0x3 LB: > { %s26_s29 = sadd.s32 1, %s2790_s27  ;;  %p111_p1 = scmp.ne.s32.totalorder %s2782_s25, %s2778_s24  ;;  %s2794_s28 = sphi %s2845_s28, %s17_s28   ;;  %s2790_s27 = sphi %s2843_s27, %s3428_s27   ;;  %s2786_s26 = sphi %s2841_s26, %s3427_s26   ;;  %s2782_s25 = sphi %s2839_s25, %s3426_s25   ;;  %s2778_s24 = sphi %s2837_s24, %s3425_s24  }
   0x4   : > { %p27_p0 = scmp.ge.s32.totalorder %s26_s29, 2  ;;  %p112_p2 = scmp.eq.s32.totalorder %s2794_s28, 0 }
   0x5   : > { %s104_s8 = sadd.s32 1, %s2782_s25  ;;  %p2225_p5 = scmp.ge.s32.totalorder %s2794_s28, 2 }
   0x6   : > { %s3430_s29 = smov (%p27_p0, %s26_s29), 0  ;;  %p113_p3 = por %p112_p2, %p111_p1 }
   0x7   : > { %s101_s30 = ssub.s32 %s2790_s27, %s3430_s29  ;;  %255 = sbr.rel (%p2225_p5) target bundleno = 50 (0x32), region = 32 }
   0x8   : > { %p102_p4 = scmp.eq.s32.totalorder %s101_s30, 0 }
   0xa   : > { %s2872_s9 = scalar_select %p102_p4, %s2782_s25, %s104_s8  }
   0xe   : > { %258 = sbr.rel (!%p113_p3) target bundleno = 50 (0x32), region = 36  ;;  %s260_s10 = sand.u32 (%p113_p3), 1, %s2782_s25  }
   0xf   : > { %s2405_s11 = sshll.u32 (%p113_p3), %s2790_s27, 4  ;;  %s2226_s12 = sshll.u32 (%p113_p3), %s260_s10, 9 }
  0x10   : > { %s2880_s15 = scalar_lea.vmem (%p113_p3), %s3420_s3, %s2405_s11  ;;  %s2885_s16 = scalar_lea.vmem (%p113_p3), [#allocation4], %s2226_s12 }
  0x11   : > { %v278_v0 = vld [vmem:[%s2880_s15] sm:$0xff] (%p113_p3)  ;;  %v280_v1 = vld [vmem:[%s2880_s15 + $0x8] sm:$0xff] (%p113_p3) }
  0x12   : > { %v282_v2 = vld [vmem:[%s2880_s15 + $0x20] sm:$0xff] (%p113_p3)  ;;  %279 = vst [vmem:[%s2885_s16] sm:$0xff] (%p113_p3), %v278_v0  ;;  %281 = vst [vmem:[%s2885_s16 + $0x8] sm:$0xff] (%p113_p3), %v280_v1  ;;  %v284_v3 = vld [vmem:[%s2880_s15 + $0x28] sm:$0xff] (%p113_p3) }
  0x13   : > { %283 = vst [vmem:[%s2885_s16 + $0x10] sm:$0xff] (%p113_p3), %v282_v2  ;;  %v286_v4 = vld [vmem:[%s2880_s15 + $0x40] sm:$0xff] (%p113_p3)  ;;  %v288_v5 = vld [vmem:[%s2880_s15 + $0x48] sm:$0xff] (%p113_p3)  ;;  %285 = vst [vmem:[%s2885_s16 + $0x18] sm:$0xff] (%p113_p3), %v284_v3 }
  0x14   : > { %287 = vst [vmem:[%s2885_s16 + $0x20] sm:$0xff] (%p113_p3), %v286_v4  ;;  %289 = vst [vmem:[%s2885_s16 + $0x28] sm:$0xff] (%p113_p3), %v288_v5  ;;  %v290_v6 = vld [vmem:[%s2880_s15 + $0x60] sm:$0xff] (%p113_p3)  ;;  %v292_v7 = vld [vmem:[%s2880_s15 + $0x68] sm:$0xff] (%p113_p3) }
  0x15   : > { %v294_v8 = vld [vmem:[%s2880_s15 + $0x80] sm:$0xff]  ;;  %291 = vst [vmem:[%s2885_s16 + $0x30] sm:$0xff] %v290_v6  ;;  %293 = vst [vmem:[%s2885_s16 + $0x38] sm:$0xff] %v292_v7  ;;  %v296_v9 = vld [vmem:[%s2880_s15 + $0x88] sm:$0xff] }
  0x16   : > { %295 = vst [vmem:[%s2885_s16 + $0x40] sm:$0xff] %v294_v8  ;;  %v298_v10 = vld [vmem:[%s2880_s15 + $0xa0] sm:$0xff]  ;;  %v300_v11 = vld [vmem:[%s2880_s15 + $0xa8] sm:$0xff]  ;;  %297 = vst [vmem:[%s2885_s16 + $0x48] sm:$0xff] %v296_v9 }
  0x17   : > { %299 = vst [vmem:[%s2885_s16 + $0x50] sm:$0xff] %v298_v10  ;;  %301 = vst [vmem:[%s2885_s16 + $0x58] sm:$0xff] %v300_v11  ;;  %v302_v12 = vld [vmem:[%s2880_s15 + $0xc0] sm:$0xff]  ;;  %v304_v13 = vld [vmem:[%s2880_s15 + $0xc8] sm:$0xff] }
  0x18   : > { %v306_v14 = vld [vmem:[%s2880_s15 + $0xe0] sm:$0xff]  ;;  %303 = vst [vmem:[%s2885_s16 + $0x60] sm:$0xff] %v302_v12  ;;  %305 = vst [vmem:[%s2885_s16 + $0x68] sm:$0xff] %v304_v13  ;;  %v308_v15 = vld [vmem:[%s2880_s15 + $0xe8] sm:$0xff] }
  0x19   : > { %307 = vst [vmem:[%s2885_s16 + $0x70] sm:$0xff] %v306_v14  ;;  %v310_v16 = vld [vmem:[%s2880_s15 + $0x100] sm:$0xff]  ;;  %v312_v17 = vld [vmem:[%s2880_s15 + $0x108] sm:$0xff]  ;;  %309 = vst [vmem:[%s2885_s16 + $0x78] sm:$0xff] %v308_v15 }
  0x1a   : > { %311 = vst [vmem:[%s2885_s16 + $0x80] sm:$0xff] %v310_v16  ;;  %313 = vst [vmem:[%s2885_s16 + $0x88] sm:$0xff] %v312_v17  ;;  %v314_v18 = vld [vmem:[%s2880_s15 + $0x120] sm:$0xff]  ;;  %v316_v19 = vld [vmem:[%s2880_s15 + $0x128] sm:$0xff] }
  0x1b   : > { %v318_v20 = vld [vmem:[%s2880_s15 + $0x140] sm:$0xff]  ;;  %315 = vst [vmem:[%s2885_s16 + $0x90] sm:$0xff] %v314_v18  ;;  %317 = vst [vmem:[%s2885_s16 + $0x98] sm:$0xff] %v316_v19  ;;  %v320_v21 = vld [vmem:[%s2880_s15 + $0x148] sm:$0xff] }
  0x1c   : > { %319 = vst [vmem:[%s2885_s16 + $0xa0] sm:$0xff] %v318_v20  ;;  %v322_v22 = vld [vmem:[%s2880_s15 + $0x160] sm:$0xff]  ;;  %v324_v23 = vld [vmem:[%s2880_s15 + $0x168] sm:$0xff]  ;;  %321 = vst [vmem:[%s2885_s16 + $0xa8] sm:$0xff] %v320_v21 }
  0x1d   : > { %323 = vst [vmem:[%s2885_s16 + $0xb0] sm:$0xff] %v322_v22  ;;  %325 = vst [vmem:[%s2885_s16 + $0xb8] sm:$0xff] %v324_v23  ;;  %v326_v24 = vld [vmem:[%s2880_s15 + $0x180] sm:$0xff]  ;;  %v328_v25 = vld [vmem:[%s2880_s15 + $0x188] sm:$0xff] }
  0x1e   : > { %v330_v26 = vld [vmem:[%s2880_s15 + $0x1a0] sm:$0xff]  ;;  %327 = vst [vmem:[%s2885_s16 + $0xc0] sm:$0xff] %v326_v24  ;;  %329 = vst [vmem:[%s2885_s16 + $0xc8] sm:$0xff] %v328_v25  ;;  %v332_v27 = vld [vmem:[%s2880_s15 + $0x1a8] sm:$0xff] }
  0x1f   : > { %331 = vst [vmem:[%s2885_s16 + $0xd0] sm:$0xff] %v330_v26  ;;  %v334_v28 = vld [vmem:[%s2880_s15 + $0x1c0] sm:$0xff]  ;;  %v336_v29 = vld [vmem:[%s2880_s15 + $0x1c8] sm:$0xff]  ;;  %333 = vst [vmem:[%s2885_s16 + $0xd8] sm:$0xff] %v332_v27 }
  0x20   : > { %335 = vst [vmem:[%s2885_s16 + $0xe0] sm:$0xff] %v334_v28  ;;  %337 = vst [vmem:[%s2885_s16 + $0xe8] sm:$0xff] %v336_v29  ;;  %v338_v30 = vld [vmem:[%s2880_s15 + $0x1e0] sm:$0xff]  ;;  %v340_v31 = vld [vmem:[%s2880_s15 + $0x1e8] sm:$0xff] }
  0x21   : > { %v342_v32 = vld [vmem:[%s2880_s15 + $0x200] sm:$0xff]  ;;  %339 = vst [vmem:[%s2885_s16 + $0xf0] sm:$0xff] %v338_v30  ;;  %341 = vst [vmem:[%s2885_s16 + $0xf8] sm:$0xff] %v340_v31  ;;  %v344_v33 = vld [vmem:[%s2880_s15 + $0x208] sm:$0xff] }
  0x22   : > { %343 = vst [vmem:[%s2885_s16 + $0x100] sm:$0xff] %v342_v32  ;;  %v346_v34 = vld [vmem:[%s2880_s15 + $0x220] sm:$0xff]  ;;  %v348_v35 = vld [vmem:[%s2880_s15 + $0x228] sm:$0xff]  ;;  %345 = vst [vmem:[%s2885_s16 + $0x108] sm:$0xff] %v344_v33 }
  0x23   : > { %347 = vst [vmem:[%s2885_s16 + $0x110] sm:$0xff] %v346_v34  ;;  %349 = vst [vmem:[%s2885_s16 + $0x118] sm:$0xff] %v348_v35  ;;  %v350_v36 = vld [vmem:[%s2880_s15 + $0x240] sm:$0xff]  ;;  %v352_v37 = vld [vmem:[%s2880_s15 + $0x248] sm:$0xff] }
  0x24   : > { %v354_v38 = vld [vmem:[%s2880_s15 + $0x260] sm:$0xff]  ;;  %351 = vst [vmem:[%s2885_s16 + $0x120] sm:$0xff] %v350_v36  ;;  %353 = vst [vmem:[%s2885_s16 + $0x128] sm:$0xff] %v352_v37  ;;  %v356_v39 = vld [vmem:[%s2880_s15 + $0x268] sm:$0xff] }
  0x25   : > { %355 = vst [vmem:[%s2885_s16 + $0x130] sm:$0xff] %v354_v38  ;;  %v358_v40 = vld [vmem:[%s2880_s15 + $0x280] sm:$0xff]  ;;  %v360_v41 = vld [vmem:[%s2880_s15 + $0x288] sm:$0xff]  ;;  %357 = vst [vmem:[%s2885_s16 + $0x138] sm:$0xff] %v356_v39 }
  0x26   : > { %359 = vst [vmem:[%s2885_s16 + $0x140] sm:$0xff] %v358_v40  ;;  %361 = vst [vmem:[%s2885_s16 + $0x148] sm:$0xff] %v360_v41  ;;  %v362_v42 = vld [vmem:[%s2880_s15 + $0x2a0] sm:$0xff]  ;;  %v364_v43 = vld [vmem:[%s2880_s15 + $0x2a8] sm:$0xff] }
  0x27   : > { %v366_v44 = vld [vmem:[%s2880_s15 + $0x2c0] sm:$0xff]  ;;  %363 = vst [vmem:[%s2885_s16 + $0x150] sm:$0xff] %v362_v42  ;;  %365 = vst [vmem:[%s2885_s16 + $0x158] sm:$0xff] %v364_v43  ;;  %v368_v45 = vld [vmem:[%s2880_s15 + $0x2c8] sm:$0xff] }
  0x28   : > { %367 = vst [vmem:[%s2885_s16 + $0x160] sm:$0xff] %v366_v44  ;;  %v370_v46 = vld [vmem:[%s2880_s15 + $0x2e0] sm:$0xff]  ;;  %v372_v47 = vld [vmem:[%s2880_s15 + $0x2e8] sm:$0xff]  ;;  %369 = vst [vmem:[%s2885_s16 + $0x168] sm:$0xff] %v368_v45 }
  0x29   : > { %371 = vst [vmem:[%s2885_s16 + $0x170] sm:$0xff] %v370_v46  ;;  %373 = vst [vmem:[%s2885_s16 + $0x178] sm:$0xff] %v372_v47  ;;  %v374_v48 = vld [vmem:[%s2880_s15 + $0x300] sm:$0xff]  ;;  %v376_v49 = vld [vmem:[%s2880_s15 + $0x308] sm:$0xff] }
  0x2a   : > { %v378_v50 = vld [vmem:[%s2880_s15 + $0x320] sm:$0xff]  ;;  %375 = vst [vmem:[%s2885_s16 + $0x180] sm:$0xff] %v374_v48  ;;  %377 = vst [vmem:[%s2885_s16 + $0x188] sm:$0xff] %v376_v49  ;;  %v380_v51 = vld [vmem:[%s2880_s15 + $0x328] sm:$0xff] }
  0x2b   : > { %379 = vst [vmem:[%s2885_s16 + $0x190] sm:$0xff] %v378_v50  ;;  %v382_v52 = vld [vmem:[%s2880_s15 + $0x340] sm:$0xff]  ;;  %v384_v53 = vld [vmem:[%s2880_s15 + $0x348] sm:$0xff]  ;;  %381 = vst [vmem:[%s2885_s16 + $0x198] sm:$0xff] %v380_v51 }
  0x2c   : > { %383 = vst [vmem:[%s2885_s16 + $0x1a0] sm:$0xff] %v382_v52  ;;  %385 = vst [vmem:[%s2885_s16 + $0x1a8] sm:$0xff] %v384_v53  ;;  %v386_v54 = vld [vmem:[%s2880_s15 + $0x360] sm:$0xff]  ;;  %v388_v55 = vld [vmem:[%s2880_s15 + $0x368] sm:$0xff] }
  0x2d   : > { %v390_v56 = vld [vmem:[%s2880_s15 + $0x380] sm:$0xff]  ;;  %387 = vst [vmem:[%s2885_s16 + $0x1b0] sm:$0xff] %v386_v54  ;;  %389 = vst [vmem:[%s2885_s16 + $0x1b8] sm:$0xff] %v388_v55  ;;  %v392_v57 = vld [vmem:[%s2880_s15 + $0x388] sm:$0xff] }
  0x2e   : > { %391 = vst [vmem:[%s2885_s16 + $0x1c0] sm:$0xff] %v390_v56  ;;  %v394_v58 = vld [vmem:[%s2880_s15 + $0x3a0] sm:$0xff]  ;;  %v396_v59 = vld [vmem:[%s2880_s15 + $0x3a8] sm:$0xff]  ;;  %393 = vst [vmem:[%s2885_s16 + $0x1c8] sm:$0xff] %v392_v57 }
  0x2f   : > { %395 = vst [vmem:[%s2885_s16 + $0x1d0] sm:$0xff] %v394_v58  ;;  %397 = vst [vmem:[%s2885_s16 + $0x1d8] sm:$0xff] %v396_v59  ;;  %v398_v60 = vld [vmem:[%s2880_s15 + $0x3c0] sm:$0xff]  ;;  %v400_v61 = vld [vmem:[%s2880_s15 + $0x3c8] sm:$0xff] }
  0x30   : > { %v402_v62 = vld [vmem:[%s2880_s15 + $0x3e0] sm:$0xff]  ;;  %399 = vst [vmem:[%s2885_s16 + $0x1e0] sm:$0xff] %v398_v60  ;;  %401 = vst [vmem:[%s2885_s16 + $0x1e8] sm:$0xff] %v400_v61  ;;  %v404_v63 = vld [vmem:[%s2880_s15 + $0x3e8] sm:$0xff] }
  0x31   : > { %403 = vst [vmem:[%s2885_s16 + $0x1f0] sm:$0xff] %v402_v62  ;;  %405 = vst [vmem:[%s2885_s16 + $0x1f8] sm:$0xff] %v404_v63 }
  0x32 PF: > { %p2229_p6 = scmp.ge.s32.totalorder %s2794_s28, 1  ;;  %p428_p7 = scmp.lt.s32.totalorder %s2794_s28, 3 }
  0x34   : > { %p429_p8 = pnand %p2229_p6, %p428_p7 }
  0x35   : > { %s435_s17 = sand.u32 (!%p429_p8), 1, %s2778_s24   ;;  %s2231_s18 = sshll.u32 (!%p429_p8), %s2786_s26, 2 }
  0x36   : > { %432 = sbr.rel (%p429_p8) target bundleno = 1019 (0x3fb), region = 67  ;;  %s2230_s19 = sshll.u32 (!%p429_p8), %s435_s17, 9 }
  0x37   : > { %p492_p9 = scmp.lt.s32.totalorder (!%p429_p8), %s2231_s18, 7  ;;  %s2232_s20 = sshll.u32 (!%p429_p8), %s2786_s26, 6 }
  0x38   : > { %p497_p10 = scmp.lt.s32.totalorder (!%p429_p8), %s2232_s20, 127  ;;  %s3028_s24 = scalar_lea.vmem (!%p429_p8), [#allocation4], %s2230_s19 }
  0x39   : > { %p2235_p11 = scmp.ne.s32.totalorder (!%p429_p8), %s2786_s26, 0 }
  0x3d   : > { %s3432_s18 = smov (!%p492_p9, %s2231_s18), 7  ;;  %s3434_s20 = smov (!%p497_p10, %s2232_s20), 127 }
  0x3e   : > { %s494_s23 = scalar_lea.vmem %s3421_s4, %s3432_s18  ;;  %s2406_s30 = sshll.u32 %s3434_s20, 3  ;;  %v515_v0 = vld [vmem:[%s3417_s0 + $0x8] sm:$0xff] (!%p2235_p11)  ;;  %v514_v1 = vld [vmem:[%s3417_s0] sm:$0xff] (!%p2235_p11)  ;;  %v516_v2 = vld [vmem:[%s3417_s0 + $0x10] sm:$0xff] (!%p2235_p11)  ;;  %vm541_vm0 = vcmask (!%p2235_p11), 1041408   ;;  %v2796_v59 = vmov (!%p2235_p11), 0.0   ;;  %v618_v60 = vlaneseq (!%p2235_p11) }
  0x3f   : > { %s3026_s11 = scalar_lea.vmem %s3422_s5, %s2406_s30  ;;  %513 = sbr.rel (%p2235_p11) target bundleno = 392 (0x188), region = 75  ;;  %v521_v3 = vunpack.c.l.bf16 (!%p2235_p11), %v515_v0  ;;  %v522_v4 = vunpack.c.h.bf16 (!%p2235_p11), %v515_v0  ;;  %v519_v5 = vunpack.c.l.bf16 (!%p2235_p11), %v514_v1  ;;  %v520_v6 = vunpack.c.h.bf16 (!%p2235_p11), %v514_v1  ;;  %v518_v7 = vld [vmem:[%s3417_s0 + $0x20] sm:$0x11] (!%p2235_p11)  ;;  %v517_v12 = vld [vmem:[%s3417_s0 + $0x18] sm:$0xff] (!%p2235_p11)  ;;  %714 = vst [vmem:[#allocation3] sm:$0xff] (!%p2235_p11), %v2796_v59  ;;  %715 = vst [vmem:[#allocation3 + $0x8] sm:$0xff] (!%p2235_p11), %v2796_v59 }
  0x40   : > { %v523_v8 = vunpack.c.l.bf16 (!%p2235_p11), %v516_v2  ;;  %v524_v9 = vunpack.c.h.bf16 (!%p2235_p11), %v516_v2  ;;  %v527_v10 = vunpack.c.l.bf16 (!%p2235_p11), %v518_v7  ;;  %v528_v11 = vunpack.c.h.bf16 (!%p2235_p11), %v518_v7  ;;  %716 = vst [vmem:[#allocation3 + $0x10] sm:$0xff] (!%p2235_p11), %v2796_v59  ;;  %717 = vst [vmem:[#allocation3 + $0x18] sm:$0xff] (!%p2235_p11), %v2796_v59  ;;  %v615_v2 = vld [vmem:[%s3418_s1] sm:$0x3] (!%p2235_p11) }
  0x41   : > { %v532_v13 = vadd.f32 (!%p2235_p11), %v522_v4, %v521_v3  ;;  %v529_v14 = vadd.f32 (!%p2235_p11), %v520_v6, %v519_v5  ;;  %v525_v19 = vunpack.c.l.bf16 (!%p2235_p11), %v517_v12  ;;  %v526_v20 = vunpack.c.h.bf16 (!%p2235_p11), %v517_v12  ;;  %718 = vst [vmem:[#allocation3 + $0x20] sm:$0xff] (!%p2235_p11), %v2796_v59  ;;  %719 = vst [vmem:[#allocation3 + $0x28] sm:$0xff] (!%p2235_p11), %v2796_v59 }
  0x42   : > { %v542_v15 = vsel (!%p2235_p11), %vm541_vm0, %v527_v10, 0.0  ;;  %v543_v16 = vsel (!%p2235_p11), %vm541_vm0, %v528_v11, 0.0  ;;  %v535_v17 = vadd.f32 (!%p2235_p11), %v524_v9, %v523_v8  ;;  %720 = vst [vmem:[#allocation3 + $0x30] sm:$0xff] (!%p2235_p11), %v2796_v59  ;;  %721 = vst [vmem:[#allocation3 + $0x38] sm:$0xff] (!%p2235_p11), %v2796_v59  ;;  %v619_v1 = vshrl.u32 (!%p2235_p11), %v618_v60, 7 }
  0x43   : > { %533 = vadd.xlane.f32.xlu1 (!%p2235_p11), %v532_v13  ;;  %530 = vadd.xlane.f32.xlu0 (!%p2235_p11), %v529_v14  ;;  %v544_v18 = vadd.f32 (!%p2235_p11), %v543_v16, %v542_v15  ;;  %v538_v21 = vadd.f32 (!%p2235_p11), %v526_v20, %v525_v19  ;;  %722 = vst [vmem:[#allocation3 + $0x40] sm:$0x3] (!%p2235_p11), %v2796_v59  ;;  %723 = vst [vmem:[#allocation3 + $0x48] sm:$0x3] (!%p2235_p11), %v2796_v59 }
  0x47   : > { %536 = vadd.xlane.f32.xlu1 %v535_v17  ;;  %545 = vadd.xlane.f32.xlu0 %v544_v18 }
  0x4b   : > { %539 = vadd.xlane.f32.xlu0 %v538_v21 }
  0xd0   : > { %v534_v22 = vpop.xlane.xlu1 %533  ;;  %v531_v23 = vpop.xlane.xlu0 %530 }
  0xd1   : > { %v549_v24 = vmul.f32 0.00390625, %v534_v22  ;;  %v548_v25 = vmul.f32 0.00390625, %v531_v23 }
  0xd3   : > { %v3048_v26 = vsub.f32 %v521_v3, %v549_v24  ;;  %v3050_v27 = vsub.f32 %v522_v4, %v549_v24  ;;  %v3052_v28 = vsub.f32 %v519_v5, %v548_v25  ;;  %v3054_v29 = vsub.f32 %v520_v6, %v548_v25  ;;  %v646_v6 = vld [vmem:[%s3419_s2] sm:$0x3] }
  0xd4   : > { %v537_v30 = vpop.xlane.xlu1 %536  ;;  %v546_v31 = vpop.xlane.xlu0 %545  ;;  %v647_v13 = vunpack.c.l.bf16 %v646_v6 }
  0xd5   : > { %v550_v32 = vmul.f32 0.00390625, %v537_v30  ;;  %v552_v33 = vmul.f32 0.00390625, %v546_v31  ;;  %v565_v34 = vmul.f32 %v3048_v26, %v3048_v26  ;;  %v566_v35 = vmul.f32 %v3050_v27, %v3050_v27 }
  0xd6   : > { %v563_v36 = vmul.f32 %v3052_v28, %v3052_v28  ;;  %v564_v37 = vmul.f32 %v3054_v29, %v3054_v29 }
  0xd7   : > { %v3064_v38 = vsub.f32 %v523_v8, %v550_v32  ;;  %v3066_v39 = vsub.f32 %v524_v9, %v550_v32  ;;  %v3068_v40 = vsub.f32 %v527_v10, %v552_v33  ;;  %v3070_v41 = vsub.f32 %v528_v11, %v552_v33 }
  0xd8   : > { %v540_v42 = vpop.xlane.xlu0 %539  ;;  %v576_v43 = vadd.f32 %v566_v35, %v565_v34  ;;  %v573_v44 = vadd.f32 %v564_v37, %v563_v36  ;;  %v616_v8 = vunpack.c.l.bf16 %v615_v2  ;;  %v620_v9 = vsub.s32 0, %v619_v1 }
  0xd9   : > { %v551_v45 = vmul.f32 0.00390625, %v540_v42  ;;  %v567_v46 = vmul.f32 %v3064_v38, %v3064_v38  ;;  %v568_v47 = vmul.f32 %v3066_v39, %v3066_v39  ;;  %v571_v48 = vmul.f32 %v3068_v40, %v3068_v40 }
  0xda   : > { %577 = vadd.xlane.f32.xlu0 %v576_v43  ;;  %574 = vadd.xlane.f32.xlu1 %v573_v44  ;;  %v572_v49 = vmul.f32 %v3070_v41, %v3070_v41  ;;  %v624_v10 = vsub.s32 2, %v619_v1  ;;  %v621_v17 = vrot.slane %v616_v8, %v620_v9  ;;  %v652_v21 = vrot.slane %v647_v13, %v620_v9 }
  0xdb   : > { %v3080_v50 = vsub.f32 %v525_v19, %v551_v45  ;;  %v3082_v51 = vsub.f32 %v526_v20, %v551_v45  ;;  %v579_v52 = vadd.f32 %v568_v47, %v567_v46  ;;  %v585_v53 = vsel %vm541_vm0, %v571_v48, 0.0 }
  0xdc   : > { %v586_v54 = vsel %vm541_vm0, %v572_v49, 0.0  ;;  %v625_v18 = vrot.slane %v616_v8, %v624_v10  ;;  %v656_v22 = vrot.slane %v647_v13, %v624_v10  ;;  %v631_v23 = vrot.slane %v621_v17, %v620_v9 }
  0xdd   : > { %v569_v55 = vmul.f32 %v3080_v50, %v3080_v50  ;;  %v570_v56 = vmul.f32 %v3082_v51, %v3082_v51  ;;  %v587_v58 = vadd.f32 %v586_v54, %v585_v53  ;;  %v662_v31 = vrot.slane %v652_v21, %v620_v9 }
  0xde   : > { %580 = vadd.xlane.f32.xlu1 %v579_v52  ;;  %v635_v24 = vrot.slane %v625_v18, %v620_v9  ;;  %v666_v32 = vrot.slane %v656_v22, %v620_v9 }
  0xdf   : > { %v582_v57 = vadd.f32 %v570_v56, %v569_v55 }
  0xe1   : > { %583 = vadd.xlane.f32.xlu0 %v582_v57 }
  0xe2   : > { %588 = vadd.xlane.f32.xlu1 %v587_v58 }
 0x167   : > { %v575_v61 = vpop.xlane.xlu1 %574  ;;  %v578_v62 = vpop.xlane.xlu0 %577 }
 0x168   : > { %v590_v63 = vmul.f32 0.00390625, %v575_v61  ;;  %v591_v0 = vmul.f32 0.00390625, %v578_v62 }
 0x16a   : > { %v595_v3 = vadd.f32 1e-05, %v590_v63  ;;  %v596_v4 = vadd.f32 1e-05, %v591_v0 }
 0x16b   : > { %v581_v5 = vpop.xlane.xlu1 %580 }
 0x16c   : > { %2466 = vrsqrt.f32 %v595_v3  ;;  %v592_v7 = vmul.f32 0.00390625, %v581_v5 }
 0x16d   : > { %2468 = vrsqrt.f32 %v596_v4 }
 0x16e   : > { %v597_v11 = vadd.f32 1e-05, %v592_v7  ;;  %v584_v12 = vpop.xlane.xlu0 %583 }
 0x16f   : > { %v589_v14 = vpop.xlane.xlu1 %588  ;;  %v593_v15 = vmul.f32 0.00390625, %v584_v12 }
 0x170   : > { %2470 = vrsqrt.f32 %v597_v11  ;;  %v594_v16 = vmul.f32 0.00390625, %v589_v14 }
 0x171   : > { %v598_v19 = vadd.f32 1e-05, %v593_v15 }
 0x172   : > { %v599_v20 = vadd.f32 1e-05, %v594_v16 }
 0x173   : > { %2472 = vrsqrt.f32 %v598_v19 }
 0x174   : > { %2474 = vrsqrt.f32 %v599_v20 }
 0x176   : > { %v2467_v25 = vpop.eup %2466 }
 0x177   : > { %v2469_v30 = vpop.eup %2468  ;;  %v605_v33 = vmul.f32 %v2467_v25, %v3052_v28  ;;  %v606_v34 = vmul.f32 %v2467_v25, %v3054_v29 }
 0x178   : > { %v607_v35 = vmul.f32 %v2469_v30, %v3048_v26  ;;  %v608_v36 = vmul.f32 %v2469_v30, %v3050_v27 }
 0x179   : > { %v636_v37 = vmul.f32 %v631_v23, %v605_v33  ;;  %v637_v42 = vmul.f32 %v635_v24, %v606_v34 }
 0x17a   : > { %v2471_v43 = vpop.eup %2470  ;;  %v638_v44 = vmul.f32 %v631_v23, %v607_v35  ;;  %v639_v45 = vmul.f32 %v635_v24, %v608_v36 }
 0x17b   : > { %v667_v46 = vadd.f32 %v662_v31, %v636_v37  ;;  %v668_v47 = vadd.f32 %v666_v32, %v637_v42  ;;  %v609_v48 = vmul.f32 %v2471_v43, %v3064_v38  ;;  %v610_v49 = vmul.f32 %v2471_v43, %v3066_v39 }
 0x17c   : > { %v669_v52 = vadd.f32 %v662_v31, %v638_v44  ;;  %v670_v53 = vadd.f32 %v666_v32, %v639_v45 }
 0x17d   : > { %v2473_v28 = vpop.eup %2472  ;;  %v2407_v54 = vpack.c.bf16 %v668_v47, %v667_v46  ;;  %v640_v29 = vmul.f32 %v631_v23, %v609_v48  ;;  %v641_v55 = vmul.f32 %v635_v24, %v610_v49 }
 0x17e   : > { %v2475_v26 = vpop.eup %2474  ;;  %v2408_v56 = vpack.c.bf16 %v670_v53, %v669_v52  ;;  %v611_v27 = vmul.f32 %v2473_v28, %v3080_v50  ;;  %v612_v57 = vmul.f32 %v2473_v28, %v3082_v51 }
 0x17f   : > { %709 = vst [vmem:[#allocation2] sm:$0xff] %v2407_v54  ;;  %v671_v58 = vadd.f32 %v662_v31, %v640_v29  ;;  %v672_v59 = vadd.f32 %v666_v32, %v641_v55  ;;  %v613_v60 = vmul.f32 %v2475_v26, %v3068_v40  ;;  %v614_v38 = vmul.f32 %v2475_v26, %v3070_v41 }
 0x180   : > { %710 = vst [vmem:[#allocation2 + $0x8] sm:$0xff] %v2408_v56  ;;  %v642_v39 = vmul.f32 %v631_v23, %v611_v27  ;;  %v643_v61 = vmul.f32 %v635_v24, %v612_v57 }
 0x181   : > { %v2409_v62 = vpack.c.bf16 %v672_v59, %v671_v58  ;;  %v644_v63 = vmul.f32 %v631_v23, %v613_v60  ;;  %v645_v0 = vmul.f32 %v635_v24, %v614_v38 }
 0x182   : > { %v673_v1 = vadd.f32 %v662_v31, %v642_v39  ;;  %v674_v2 = vadd.f32 %v666_v32, %v643_v61 }
 0x183   : > { %711 = vst [vmem:[#allocation2 + $0x10] sm:$0xff] %v2409_v62  ;;  %v675_v3 = vadd.f32 %v662_v31, %v644_v63  ;;  %v676_v50 = vadd.f32 %v666_v32, %v645_v0 }
 0x184   : > { %v2410_v4 = vpack.c.bf16 %v674_v2, %v673_v1 }
 0x185   : > { %v2411_v51 = vpack.c.bf16 %v676_v50, %v675_v3 }
 0x186   : > { %712 = vst [vmem:[#allocation2 + $0x18] sm:$0xff] %v2410_v4 }
 0x187   : > { %713 = vst [vmem:[#allocation2 + $0x20] sm:$0x11] %v2411_v51 }
 0x188 PF: > { %v2476_v40 = vld [vmem:[%s3028_s24 + $0x4] ss:$16 sps:$4 sm:$0xff]   ;;  %v2478_v41 = vld [vmem:[%s3028_s24] ss:$16 sps:$4 sm:$0xff]   ;;  %v2529_v54 = vld [vmem:[%s3028_s24 + $0xc] ss:$16 sps:$4 sm:$0xff]  }
 0x189   : > { %1179 = vmatprep.subr.bf16.mxu1 %v2476_v40  ;;  %v2479_v5 = vld [vmem:[%s3028_s24 + $0x24] ss:$16 sps:$4 sm:$0xff]   ;;  %v2481_v6 = vld [vmem:[%s3028_s24 + $0x20] ss:$16 sps:$4 sm:$0xff]   ;;  %v2527_v56 = vld [vmem:[%s3028_s24 + $0x8] ss:$16 sps:$4 sm:$0xff]  }
 0x18a   : > { %1180 = vmatpush1.bf16.msra.mxu1 %v2478_v41  ;;  %v2482_v7 = vld [vmem:[%s3028_s24 + $0x44] ss:$16 sps:$4 sm:$0xff]   ;;  %v2484_v8 = vld [vmem:[%s3028_s24 + $0x40] ss:$16 sps:$4 sm:$0xff]   ;;  %v2532_v57 = vld [vmem:[%s3028_s24 + $0x2c] ss:$16 sps:$4 sm:$0xff]  }
 0x18b   : > { %1181 = vmatprep.subr.bf16.mxu1 %v2479_v5  ;;  %v2485_v9 = vld [vmem:[%s3028_s24 + $0x64] ss:$16 sps:$4 sm:$0xff]   ;;  %v2487_v10 = vld [vmem:[%s3028_s24 + $0x60] ss:$16 sps:$4 sm:$0xff]   ;;  %v2530_v60 = vld [vmem:[%s3028_s24 + $0x28] ss:$16 sps:$4 sm:$0xff]  }
 0x18c   : > { %v2488_v11 = vld [vmem:[%s3028_s24 + $0x84] ss:$16 sps:$4 sm:$0xff]   ;;  %v2490_v12 = vld [vmem:[%s3028_s24 + $0x80] ss:$16 sps:$4 sm:$0xff]   ;;  %v2535_v38 = vld [vmem:[%s3028_s24 + $0x4c] ss:$16 sps:$4 sm:$0xff]  }
 0x18d   : > { %v2491_v13 = vld [vmem:[%s3028_s24 + $0xa4] ss:$16 sps:$4 sm:$0xff]   ;;  %v2493_v14 = vld [vmem:[%s3028_s24 + $0xa0] ss:$16 sps:$4 sm:$0xff]   ;;  %v2533_v62 = vld [vmem:[%s3028_s24 + $0x48] ss:$16 sps:$4 sm:$0xff]  }
 0x18e   : > { %1182 = vmatpush1.bf16.msra.mxu1 %v2481_v6  ;;  %v2494_v15 = vld [vmem:[%s3028_s24 + $0xc4] ss:$16 sps:$4 sm:$0xff]   ;;  %v2496_v17 = vld [vmem:[%s3028_s24 + $0xc0] ss:$16 sps:$4 sm:$0xff]   ;;  %v728_v39 = vld [vmem:[#allocation2 + $0x20] sm:$0x11] }
 0x18f   : > { %1183 = vmatprep.subr.bf16.mxu1 %v2482_v7  ;;  %v3119_v16 = vld [vmem:[#allocation2 + $0x4] ss:$8 sps:$4 sm:$0xff]   ;;  %v2499_v19 = vld [vmem:[%s3028_s24 + $0xe0] ss:$16 sps:$4 sm:$0xff]   ;;  %v2583_v36 = vld [vmem:[%s3026_s11 + $0x14] ss:$8 sps:$4 sm:$0xff]   ;;  %v2246_v63 = vcombine.high %v728_v39, %v728_v39  ;;  %v2245_v3 = vcombine.low %v728_v39, %v728_v39 }
 0x190   : > { %v2497_v18 = vld [vmem:[%s3028_s24 + $0xe4] ss:$16 sps:$4 sm:$0xff]   ;;  %1211 = vmatprep.mubr.bf16.mxu1 %v3119_v16  ;;  %v2502_v21 = vld [vmem:[%s3028_s24 + $0x100] ss:$16 sps:$4 sm:$0xff]   ;;  %v2540_v0 = vld [vmem:[%s3028_s24 + $0x6c] ss:$16 sps:$4 sm:$0xff]  }
 0x191   : > { %v2500_v20 = vld [vmem:[%s3028_s24 + $0x104] ss:$16 sps:$4 sm:$0xff]   ;;  %v2505_v23 = vld [vmem:[%s3028_s24 + $0x120] ss:$16 sps:$4 sm:$0xff]   ;;  %v2538_v1 = vld [vmem:[%s3028_s24 + $0x68] ss:$16 sps:$4 sm:$0xff]  }
 0x192   : > { %1184 = vmatpush1.bf16.msra.mxu1 %v2484_v8  ;;  %v2503_v22 = vld [vmem:[%s3028_s24 + $0x124] ss:$16 sps:$4 sm:$0xff]   ;;  %v2508_v25 = vld [vmem:[%s3028_s24 + $0x140] ss:$16 sps:$4 sm:$0xff]   ;;  %v2544_v2 = vld [vmem:[%s3028_s24 + $0x8c] ss:$16 sps:$4 sm:$0xff]  }
 0x193   : > { %1185 = vmatprep.subr.bf16.mxu1 %v2485_v9  ;;  %v2506_v24 = vld [vmem:[%s3028_s24 + $0x144] ss:$16 sps:$4 sm:$0xff]   ;;  %v2511_v31 = vld [vmem:[%s3028_s24 + $0x160] ss:$16 sps:$4 sm:$0xff]   ;;  %v2542_v50 = vld [vmem:[%s3028_s24 + $0x88] ss:$16 sps:$4 sm:$0xff]  }
 0x194   : > { %v2509_v30 = vld [vmem:[%s3028_s24 + $0x164] ss:$16 sps:$4 sm:$0xff]   ;;  %v2514_v33 = vld [vmem:[%s3028_s24 + $0x180] ss:$16 sps:$4 sm:$0xff]   ;;  %v2547_v4 = vld [vmem:[%s3028_s24 + $0xac] ss:$16 sps:$4 sm:$0xff]  }
 0x195   : > { %v2512_v32 = vld [vmem:[%s3028_s24 + $0x184] ss:$16 sps:$4 sm:$0xff]   ;;  %v2582_v35 = vld [vmem:[%s3026_s11] ss:$8 sps:$4 sm:$0xff]   ;;  %v2585_v42 = vld [vmem:[%s3026_s11 + $0x10] ss:$8 sps:$4 sm:$0xff]  }
 0x196   : > { %1186 = vmatpush1.bf16.msra.mxu1 %v2487_v10  ;;  %v2580_v34 = vld [vmem:[%s3026_s11 + $0x4] ss:$8 sps:$4 sm:$0xff]   ;;  %v2517_v44 = vld [vmem:[%s3028_s24 + $0x1a0] ss:$16 sps:$4 sm:$0xff]   ;;  %v2589_v49 = vld [vmem:[%s3026_s11 + $0x34] ss:$8 sps:$4 sm:$0xff]  }
 0x197   : > { %1187 = vmatprep.subr.bf16.mxu1 %v2488_v11  ;;  %v2515_v37 = vld [vmem:[%s3028_s24 + $0x1a4] ss:$16 sps:$4 sm:$0xff]   ;;  %1867 = vmatprep.subr.bf16.mxu0 %v2580_v34  ;;  %v2520_v46 = vld [vmem:[%s3028_s24 + $0x1c0] ss:$16 sps:$4 sm:$0xff]   ;;  %v2545_v51 = vld [vmem:[%s3028_s24 + $0xa8] ss:$16 sps:$4 sm:$0xff]  }
 0x198   : > { %1868 = vmatpush1.bf16.msra.mxu0 %v2582_v35  ;;  %v2586_v43 = vld [vmem:[%s3026_s11 + $0x24] ss:$8 sps:$4 sm:$0xff]   ;;  %v2588_v47 = vld [vmem:[%s3026_s11 + $0x20] ss:$8 sps:$4 sm:$0xff]   ;;  %v2591_v52 = vld [vmem:[%s3026_s11 + $0x30] ss:$8 sps:$4 sm:$0xff]  }
 0x199   : > { %1869 = vmatprep.subr.bf16.mxu0 %v2583_v36  ;;  %v2518_v45 = vld [vmem:[%s3028_s24 + $0x1c4] ss:$16 sps:$4 sm:$0xff]   ;;  %v2523_v28 = vld [vmem:[%s3028_s24 + $0x1e0] ss:$16 sps:$4 sm:$0xff]   ;;  %v2552_v40 = vld [vmem:[%s3028_s24 + $0xcc] ss:$16 sps:$4 sm:$0xff]  }
 0x19a   : > { %1188 = vmatpush1.bf16.msra.mxu1 %v2490_v12  ;;  %v2521_v48 = vld [vmem:[%s3028_s24 + $0x1e4] ss:$16 sps:$4 sm:$0xff]   ;;  %v2594_v29 = vld [vmem:[%s3026_s11 + $0x40] ss:$8 sps:$4 sm:$0xff]   ;;  %v2597_v58 = vld [vmem:[%s3026_s11 + $0x50] ss:$8 sps:$4 sm:$0xff]  }
 0x19b   : > { %1189 = vmatprep.subr.bf16.mxu1 %v2491_v13  ;;  %v2592_v53 = vld [vmem:[%s3026_s11 + $0x44] ss:$8 sps:$4 sm:$0xff]   ;;  %v3152_v55 = vld [vmem:[#allocation2] ss:$8 sps:$4 sm:$0xff]   ;;  %v2595_v26 = vld [vmem:[%s3026_s11 + $0x54] ss:$8 sps:$4 sm:$0xff]  }
 0x19c   : > { %1870 = vmatpush1.bf16.msra.mxu0 %v2585_v42  ;;  %v3156_v27 = vld [vmem:[#allocation2 + $0x14] ss:$8 sps:$4 sm:$0xff]   ;;  %v2598_v59 = vld [vmem:[%s3026_s11 + $0x64] ss:$8 sps:$4 sm:$0xff]   ;;  %v3165_v61 = vld [vmem:[#allocation2 + $0x10] ss:$8 sps:$4 sm:$0xff]  }
 0x19d   : > { %1871 = vmatprep.subr.bf16.mxu0 %v2586_v43  ;;  %v2550_v41 = vld [vmem:[%s3028_s24 + $0xc8] ss:$16 sps:$4 sm:$0xff]   ;;  %v2555_v5 = vld [vmem:[%s3028_s24 + $0xec] ss:$16 sps:$4 sm:$0xff]   ;;  %p2395_p12 = scmp.ne.s32.totalorder %s2786_s26, 1 }
 0x19e   : > { %1190 = vmatpush1.bf16.msra.mxu1 %v2493_v14  ;;  %v2553_v6 = vld [vmem:[%s3028_s24 + $0xe8] ss:$16 sps:$4 sm:$0xff]   ;;  %v2558_v7 = vld [vmem:[%s3028_s24 + $0x10c] ss:$16 sps:$4 sm:$0xff]  }
 0x19f   : > { %1191 = vmatprep.subr.bf16.mxu1 %v2494_v15  ;;  %v2556_v8 = vld [vmem:[%s3028_s24 + $0x108] ss:$16 sps:$4 sm:$0xff]   ;;  %v2561_v9 = vld [vmem:[%s3028_s24 + $0x12c] ss:$16 sps:$4 sm:$0xff]  }
 0x1a0   : > { %1872 = vmatpush1.bf16.msra.mxu0 %v2588_v47  ;;  %v2559_v10 = vld [vmem:[%s3028_s24 + $0x128] ss:$16 sps:$4 sm:$0xff]   ;;  %v2564_v11 = vld [vmem:[%s3028_s24 + $0x14c] ss:$16 sps:$4 sm:$0xff]  }
 0x1a1   : > { %1873 = vmatprep.subr.bf16.mxu0 %v2589_v49  ;;  %v2562_v12 = vld [vmem:[%s3028_s24 + $0x148] ss:$16 sps:$4 sm:$0xff]   ;;  %v2567_v13 = vld [vmem:[%s3028_s24 + $0x16c] ss:$16 sps:$4 sm:$0xff]  }
 0x1a2   : > { %1192 = vmatpush1.bf16.msra.mxu1 %v2496_v17  ;;  %v2565_v14 = vld [vmem:[%s3028_s24 + $0x168] ss:$16 sps:$4 sm:$0xff]   ;;  %v2570_v15 = vld [vmem:[%s3028_s24 + $0x18c] ss:$16 sps:$4 sm:$0xff]  }
 0x1a3   : > { %1193 = vmatprep.subr.bf16.mxu1 %v2497_v18  ;;  %v2573_v17 = vld [vmem:[%s3028_s24 + $0x1ac] ss:$16 sps:$4 sm:$0xff]   ;;  %v2571_v18 = vld [vmem:[%s3028_s24 + $0x1a8] ss:$16 sps:$4 sm:$0xff]  }
 0x1a4   : > { %1874 = vmatpush1.bf16.msra.mxu0 %v2591_v52  ;;  %v2610_v34 = vld [vmem:[%s3026_s11 + $0xa4] ss:$8 sps:$4 sm:$0xff]   ;;  %v2612_v35 = vld [vmem:[%s3026_s11 + $0xa0] ss:$8 sps:$4 sm:$0xff]   ;;  %v2613_v36 = vld [vmem:[%s3026_s11 + $0xb4] ss:$8 sps:$4 sm:$0xff]  }
 0x1a5   : > { %1875 = vmatprep.subr.bf16.mxu0 %v2592_v53  ;;  %v2616_v42 = vld [vmem:[%s3026_s11 + $0xc4] ss:$8 sps:$4 sm:$0xff]   ;;  %v2618_v43 = vld [vmem:[%s3026_s11 + $0xc0] ss:$8 sps:$4 sm:$0xff]   ;;  %v2627_v49 = vld [vmem:[%s3026_s11 + $0xf0] ss:$8 sps:$4 sm:$0xff]   ;;  %v796_v53 = vlaneseq }
 0x1a6   : > { %1194 = vmatpush1.bf16.msra.mxu1 %v2499_v19  ;;  %v2576_v19 = vld [vmem:[%s3028_s24 + $0x1cc] ss:$16 sps:$4 sm:$0xff]   ;;  %v2624_v47 = vld [vmem:[%s3026_s11 + $0xe0] ss:$8 sps:$4 sm:$0xff]  }
 0x1a7   : > { %1195 = vmatprep.subr.bf16.mxu1 %v2500_v20  ;;  %v2574_v20 = vld [vmem:[%s3028_s24 + $0x1c8] ss:$16 sps:$4 sm:$0xff]   ;;  %v2630_v52 = vld [vmem:[%s3026_s11 + $0x104] ss:$8 sps:$4 sm:$0xff]  }
 0x1a8   : > { %1876 = vmatpush1.bf16.msra.mxu0 %v2594_v29 }
 0x1a9   : > { %1877 = vmatprep.subr.bf16.mxu0 %v2595_v26 }
 0x1aa   : > { %1196 = vmatpush1.bf16.msra.mxu1 %v2502_v21  ;;  %v2579_v21 = vld [vmem:[%s3028_s24 + $0x1ec] ss:$16 sps:$4 sm:$0xff]  }
 0x1ab   : > { %1197 = vmatprep.subr.bf16.mxu1 %v2503_v22  ;;  %v2577_v22 = vld [vmem:[%s3028_s24 + $0x1e8] ss:$16 sps:$4 sm:$0xff]  }
 0x1ac   : > { %1878 = vmatpush1.bf16.msra.mxu0 %v2597_v58 }
 0x1ad   : > { %1879 = vmatprep.subr.bf16.mxu0 %v2598_v59 }
 0x1ae   : > { %1198 = vmatpush1.bf16.msra.mxu1 %v2505_v23  ;;  %v2600_v23 = vld [vmem:[%s3026_s11 + $0x60] ss:$8 sps:$4 sm:$0xff]  }
 0x1af   : > { %1199 = vmatprep.subr.bf16.mxu1 %v2506_v24  ;;  %v2601_v24 = vld [vmem:[%s3026_s11 + $0x74] ss:$8 sps:$4 sm:$0xff]  }
 0x1b0   : > { %1880 = vmatpush1.bf16.msra.mxu0 %v2600_v23 }
 0x1b1   : > { %1881 = vmatprep.subr.bf16.mxu0 %v2601_v24 }
 0x1b2   : > { %1200 = vmatpush1.bf16.msra.mxu1 %v2508_v25  ;;  %v2603_v25 = vld [vmem:[%s3026_s11 + $0x70] ss:$8 sps:$4 sm:$0xff]  }
 0x1b3   : > { %1201 = vmatprep.subr.bf16.mxu1 %v2509_v30  ;;  %v2604_v30 = vld [vmem:[%s3026_s11 + $0x84] ss:$8 sps:$4 sm:$0xff]  }
 0x1b4   : > { %1882 = vmatpush1.bf16.msra.mxu0 %v2603_v25 }
 0x1b5   : > { %1883 = vmatprep.subr.bf16.mxu0 %v2604_v30 }
 0x1b6   : > { %1202 = vmatpush1.bf16.msra.mxu1 %v2511_v31  ;;  %v2606_v31 = vld [vmem:[%s3026_s11 + $0x80] ss:$8 sps:$4 sm:$0xff]  }
 0x1b7   : > { %1203 = vmatprep.subr.bf16.mxu1 %v2512_v32  ;;  %v2607_v32 = vld [vmem:[%s3026_s11 + $0x94] ss:$8 sps:$4 sm:$0xff]  }
 0x1b8   : > { %1884 = vmatpush1.bf16.msra.mxu0 %v2606_v31 }
 0x1b9   : > { %1885 = vmatprep.subr.bf16.mxu0 %v2607_v32 }
 0x1ba   : > { %1204 = vmatpush1.bf16.msra.mxu1 %v2514_v33  ;;  %v2609_v33 = vld [vmem:[%s3026_s11 + $0x90] ss:$8 sps:$4 sm:$0xff]  }
 0x1bb   : > { %1205 = vmatprep.subr.bf16.mxu1 %v2515_v37  ;;  %v2615_v37 = vld [vmem:[%s3026_s11 + $0xb0] ss:$8 sps:$4 sm:$0xff]  }
 0x1bc   : > { %1886 = vmatpush1.bf16.msra.mxu0 %v2609_v33 }
 0x1bd   : > { %1887 = vmatprep.subr.bf16.mxu0 %v2610_v34 }
 0x1be   : > { %1206 = vmatpush1.bf16.msra.mxu1 %v2517_v44  ;;  %v2619_v44 = vld [vmem:[%s3026_s11 + $0xd4] ss:$8 sps:$4 sm:$0xff]  }
 0x1bf   : > { %1207 = vmatprep.subr.bf16.mxu1 %v2518_v45  ;;  %v2621_v45 = vld [vmem:[%s3026_s11 + $0xd0] ss:$8 sps:$4 sm:$0xff]  }
 0x1c0   : > { %1888 = vmatpush1.bf16.msra.mxu0 %v2612_v35 }
 0x1c1   : > { %1889 = vmatprep.subr.bf16.mxu0 %v2613_v36 }
 0x1c2   : > { %1208 = vmatpush1.bf16.msra.mxu1 %v2520_v46  ;;  %v2622_v46 = vld [vmem:[%s3026_s11 + $0xe4] ss:$8 sps:$4 sm:$0xff]  }
 0x1c3   : > { %1209 = vmatprep.subr.bf16.mxu1 %v2521_v48  ;;  %v2625_v48 = vld [vmem:[%s3026_s11 + $0xf4] ss:$8 sps:$4 sm:$0xff]  }
 0x1c4   : > { %1890 = vmatpush1.bf16.msra.mxu0 %v2615_v37 }
 0x1c5   : > { %1891 = vmatprep.subr.bf16.mxu0 %v2616_v42 }
 0x1c6   : > { %1210 = vmatpush1.bf16.msra.mxu1 %v2523_v28  ;;  %v3219_v28 = vshrl.u32 %v796_v53, 7 }
 0x1c7   : > { %1240 = vmatprep.subr.bf16.mxu1 %v2529_v54  ;;  %v793_v54 = vld [vmem:[%s494_s23] sm:$0xf] }
 0x1c8   : > { %1892 = vmatpush1.bf16.msra.mxu0 %v2618_v43  ;;  %v3226_v29 = vunpack.c.l.bf16 %v793_v54  ;;  %v802_v26 = vsub.s32 2, %v3219_v28 }
 0x1c9   : > { %1212 = vmatmul.mubr.bf16.vlgmr.msra.gmra.mrb[0].mxu1 %v3152_v55  ;;  %1893 = vmatprep.subr.bf16.mxu0 %v2619_v44 }
 0x1ca   : > { %1241 = vmatpush1.bf16.msra.mxu1 %v2527_v56  ;;  %1221 = vmatprep.mubr.bf16.mxu1 %v3156_v27 }
 0x1cb   : > { %1242 = vmatprep.subr.bf16.mxu1 %v2532_v57 }
 0x1cc   : > { %1894 = vmatpush1.bf16.msra.mxu0 %v2621_v45 }
 0x1cd   : > { %1895 = vmatprep.subr.bf16.mxu0 %v2622_v46 }
 0x1ce   : > { %1243 = vmatpush1.bf16.msra.mxu1 %v2530_v60 }
 0x1cf   : > { %1244 = vmatprep.subr.bf16.mxu1 %v2535_v38 }
 0x1d0   : > { %1896 = vmatpush1.bf16.msra.mxu0 %v2624_v47 }
 0x1d1   : > { %1222 = vmatmul.mubr.bf16.gmra.mrb[4].mxu1 %v3165_v61  ;;  %1897 = vmatprep.subr.bf16.mxu0 %v2625_v48 }
 0x1d2   : > { %1245 = vmatpush1.bf16.msra.mxu1 %v2533_v62  ;;  %1231 = vmatprep.mubr.bf16.mxu1 %v2246_v63 }
 0x1d3   : > { %1246 = vmatprep.subr.bf16.mxu1 %v2540_v0 }
 0x1d4   : > { %1898 = vmatpush1.bf16.msra.mxu0 %v2627_v49 }
 0x1d5   : > { %1928 = vmatprep.subr.bf16.mxu0 %v2630_v52 }
 0x1d6   : > { %1247 = vmatpush1.bf16.msra.mxu1 %v2538_v1 }
 0x1d7   : > { %1248 = vmatprep.subr.bf16.mxu1 %v2544_v2 }
 0x1d9   : > { %1232 = vmatmul.mubr.bf16.gmra.mrb[8].mxu1 %v2245_v3 }
 0x1da   : > { %1249 = vmatpush1.bf16.msra.mxu1 %v2542_v50  ;;  %1272 = vmatprep.mubr.bf16.mxu1 %v3119_v16  ;;  %v2568_v16 = vld [vmem:[%s3028_s24 + $0x188] ss:$16 sps:$4 sm:$0xff]  }
 0x1db   : > { %1250 = vmatprep.subr.bf16.mxu1 %v2547_v4 }
 0x1de   : > { %1251 = vmatpush1.bf16.msra.mxu1 %v2545_v51 }
 0x1df   : > { %1252 = vmatprep.subr.bf16.mxu1 %v2552_v40 }
 0x1e2   : > { %1253 = vmatpush1.bf16.msra.mxu1 %v2550_v41 }
 0x1e3   : > { %1254 = vmatprep.subr.bf16.mxu1 %v2555_v5 }
 0x1e6   : > { %1255 = vmatpush1.bf16.msra.mxu1 %v2553_v6 }
 0x1e7   : > { %1256 = vmatprep.subr.bf16.mxu1 %v2558_v7 }
 0x1ea   : > { %1257 = vmatpush1.bf16.msra.mxu1 %v2556_v8 }
 0x1eb   : > { %1258 = vmatprep.subr.bf16.mxu1 %v2561_v9 }
 0x1ee   : > { %1259 = vmatpush1.bf16.msra.mxu1 %v2559_v10 }
 0x1ef   : > { %1260 = vmatprep.subr.bf16.mxu1 %v2564_v11 }
 0x1f2   : > { %1261 = vmatpush1.bf16.msra.mxu1 %v2562_v12 }
 0x1f3   : > { %1262 = vmatprep.subr.bf16.mxu1 %v2567_v13 }
 0x1f6   : > { %1263 = vmatpush1.bf16.msra.mxu1 %v2565_v14 }
 0x1f7   : > { %1264 = vmatprep.subr.bf16.mxu1 %v2570_v15 }
 0x1fa   : > { %1265 = vmatpush1.bf16.msra.mxu1 %v2568_v16 }
 0x1fb   : > { %1266 = vmatprep.subr.bf16.mxu1 %v2573_v17 }
 0x1fe   : > { %1267 = vmatpush1.bf16.msra.mxu1 %v2571_v18 }
 0x1ff   : > { %1268 = vmatprep.subr.bf16.mxu1 %v2576_v19 }
 0x202   : > { %1269 = vmatpush1.bf16.msra.mxu1 %v2574_v20 }
 0x203   : > { %1270 = vmatprep.subr.bf16.mxu1 %v2579_v21 }
 0x206   : > { %1271 = vmatpush1.bf16.msra.mxu1 %v2577_v22 }
 0x209   : > { %1273 = vmatmul.mubr.bf16.vlgmr.msra.gmra.mrb[12].mxu1 %v3152_v55  ;;  %v3229_v55 = vsub.s32 0, %v3219_v28 }
 0x20a   : > { %1282 = vmatprep.mubr.bf16.mxu1 %v3156_v27  ;;  %v803_v27 = vrot.slane %v3226_v29, %v802_v26 }
 0x20b   : > { %v799_v56 = vrot.slane %v3226_v29, %v3229_v55 }
 0x20c   : > { %v823_v58 = vrot.slane %v803_v27, %v3229_v55 }
 0x20d   : > { %v819_v57 = vrot.slane %v799_v56, %v3229_v55 }
 0x211   : > { %1283 = vmatmul.mubr.bf16.gmra.mrb[16].mxu1 %v3165_v61 }
 0x212   : > { %1292 = vmatprep.mubr.bf16.mxu1 %v2246_v63 }
 0x219   : > { %1293 = vmatmul.mubr.bf16.gmra.mrb[20].mxu1 %v2245_v3 }
 0x29c   : > { %v1213_v59 = vpop.f32.mrb[0].mxu1 }
 0x29d   : > { %v3239_v60 = vadd.f32 %v1213_v59, %v819_v57  ;;  %v1215_v38 = vpop.f32.mrb[1].mxu1 }
 0x29e   : > { %v3241_v39 = vadd.f32 %v1215_v38, %v823_v58  ;;  %v1217_v61 = vpop.f32.mrb[2].mxu1 }
 0x29f   : > { %v2311_v62 = vmul.f32 -1.702, %v3239_v60  ;;  %v3244_v63 = vadd.f32 %v1217_v61, %v819_v57  ;;  %v1219_v0 = vpop.f32.mrb[3].mxu1 }
 0x2a0   : > { %v2312_v1 = vmul.f32 -1.702, %v3241_v39  ;;  %v3247_v2 = vadd.f32 %v1219_v0, %v823_v58 }
 0x2a1   : > { %v1341_v3 = vmul.f32 1.442695, %v2311_v62  ;;  %v2315_v50 = vmul.f32 -1.702, %v3244_v63 }
 0x2a2   : > { %v1343_v4 = vmul.f32 1.442695, %v2312_v1  ;;  %v2316_v51 = vmul.f32 -1.702, %v3247_v2 }
 0x2a3   : > { %2676 = vpow2.f32 %v1341_v3  ;;  %v1349_v40 = vmul.f32 1.442695, %v2315_v50 }
 0x2a4   : > { %2678 = vpow2.f32 %v1343_v4  ;;  %v1351_v41 = vmul.f32 1.442695, %v2316_v51  ;;  %v1223_v5 = vpop.f32.mrb[4].mxu1 }
 0x2a5   : > { %2680 = vpow2.f32 %v1349_v40  ;;  %v3251_v6 = vadd.f32 %v1223_v5, %v819_v57  ;;  %v1225_v7 = vpop.f32.mrb[5].mxu1  ;;  %v2628_v5 = vld [vmem:[%s3026_s11 + $0x100] ss:$8 sps:$4 sm:$0xff]  }
 0x2a6   : > { %2682 = vpow2.f32 %v1351_v41  ;;  %v3253_v8 = vadd.f32 %v1225_v7, %v823_v58  ;;  %v1227_v9 = vpop.f32.mrb[6].mxu1  ;;  %v2633_v7 = vld [vmem:[%s3026_s11 + $0x114] ss:$8 sps:$4 sm:$0xff]  }
 0x2a7   : > { %v2319_v10 = vmul.f32 -1.702, %v3251_v6  ;;  %v3256_v11 = vadd.f32 %v1227_v9, %v819_v57  ;;  %v1229_v12 = vpop.f32.mrb[7].mxu1 }
 0x2a8   : > { %v2320_v13 = vmul.f32 -1.702, %v3253_v8  ;;  %v3259_v14 = vadd.f32 %v1229_v12, %v823_v58 }
 0x2a9   : > { %v1357_v15 = vmul.f32 1.442695, %v2319_v10  ;;  %v2323_v16 = vmul.f32 -1.702, %v3256_v11  ;;  %v2631_v10 = vld [vmem:[%s3026_s11 + $0x110] ss:$8 sps:$4 sm:$0xff]  }
 0x2aa   : > { %v1359_v17 = vmul.f32 1.442695, %v2320_v13  ;;  %v2324_v18 = vmul.f32 -1.702, %v3259_v14 }
 0x2ab   : > { %2684 = vpow2.f32 %v1357_v15  ;;  %v1365_v19 = vmul.f32 1.442695, %v2323_v16  ;;  %v2636_v15 = vld [vmem:[%s3026_s11 + $0x124] ss:$8 sps:$4 sm:$0xff]  }
 0x2ac   : > { %2686 = vpow2.f32 %v1359_v17  ;;  %v1367_v20 = vmul.f32 1.442695, %v2324_v18  ;;  %v1233_v21 = vpop.f32.mrb[8].mxu1  ;;  %v2634_v18 = vld [vmem:[%s3026_s11 + $0x120] ss:$8 sps:$4 sm:$0xff]  }
 0x2ad   : > { %v2677_v22 = vpop.eup %2676  ;;  %2688 = vpow2.f32 %v1365_v19  ;;  %v3263_v23 = vadd.f32 %v1233_v21, %v819_v57  ;;  %v1235_v24 = vpop.f32.mrb[9].mxu1  ;;  %v2639_v19 = vld [vmem:[%s3026_s11 + $0x134] ss:$8 sps:$4 sm:$0xff]   ;;  %v2637_v21 = vld [vmem:[%s3026_s11 + $0x130] ss:$8 sps:$4 sm:$0xff]  }
 0x2ae   : > { %v2679_v25 = vpop.eup %2678  ;;  %v1381_v30 = vadd.f32 1.0, %v2677_v22  ;;  %2690 = vpow2.f32 %v1367_v20  ;;  %v3265_v31 = vadd.f32 %v1235_v24, %v823_v58  ;;  %v1237_v32 = vpop.f32.mrb[10].mxu1  ;;  %v2642_v22 = vld [vmem:[%s3026_s11 + $0x144] ss:$8 sps:$4 sm:$0xff]  }
 0x2af   : > { %v2681_v33 = vpop.eup %2680  ;;  %v1382_v34 = vadd.f32 1.0, %v2679_v25  ;;  %v2327_v35 = vmul.f32 -1.702, %v3263_v23  ;;  %v1238_v36 = vpop.f32.mrb[11].mxu1  ;;  %v2645_v32 = vld [vmem:[%s3026_s11 + $0x154] ss:$8 sps:$4 sm:$0xff]  }
 0x2b0   : > { %v2683_v37 = vpop.eup %2682  ;;  %2692 = vrcp.f32 %v1381_v30  ;;  %v1385_v42 = vadd.f32 1.0, %v2681_v33  ;;  %v2328_v43 = vmul.f32 -1.702, %v3265_v31  ;;  %v2640_v30 = vld [vmem:[%s3026_s11 + $0x140] ss:$8 sps:$4 sm:$0xff]   ;;  %v806_v33 = vsub.s32 4, %v3219_v28 }
 0x2b1   : > { %2694 = vrcp.f32 %v1382_v34  ;;  %v1386_v44 = vadd.f32 1.0, %v2683_v37  ;;  %v1373_v45 = vmul.f32 1.442695, %v2327_v35  ;;  %v2648_v34 = vld [vmem:[%s3026_s11 + $0x164] ss:$8 sps:$4 sm:$0xff]  }
 0x2b2   : > { %2696 = vrcp.f32 %v1385_v42  ;;  %v1375_v46 = vmul.f32 1.442695, %v2328_v43  ;;  %v807_v35 = vrot.slane %v3226_v29, %v806_v33  ;;  %v2646_v37 = vld [vmem:[%s3026_s11 + $0x160] ss:$8 sps:$4 sm:$0xff]   ;;  %v2651_v43 = vld [vmem:[%s3026_s11 + $0x174] ss:$8 sps:$4 sm:$0xff]  }
 0x2b3   : > { %2698 = vrcp.f32 %v1386_v44 }
 0x2b4   : > { %2700 = vpow2.f32 %v1373_v45  ;;  %v827_v42 = vrot.slane %v807_v35, %v3229_v55 }
 0x2b5   : > { %v2685_v47 = vpop.eup %2684  ;;  %2702 = vpow2.f32 %v1375_v46  ;;  %v2649_v46 = vld [vmem:[%s3026_s11 + $0x170] ss:$8 sps:$4 sm:$0xff]  }
 0x2b6   : > { %v2687_v48 = vpop.eup %2686  ;;  %v1389_v49 = vadd.f32 1.0, %v2685_v47 }
 0x2b7   : > { %v2689_v52 = vpop.eup %2688  ;;  %v1390_v53 = vadd.f32 1.0, %v2687_v48 }
 0x2b8   : > { %v2691_v54 = vpop.eup %2690  ;;  %2704 = vrcp.f32 %v1389_v49  ;;  %v1393_v56 = vadd.f32 1.0, %v2689_v52  ;;  %v2654_v49 = vld [vmem:[%s3026_s11 + $0x184] ss:$8 sps:$4 sm:$0xff]  }
 0x2b9   : > { %2706 = vrcp.f32 %v1390_v53  ;;  %v1394_v27 = vadd.f32 1.0, %v2691_v54 }
 0x2ba   : > { %v2693_v57 = vpop.eup %2692  ;;  %2708 = vrcp.f32 %v1393_v56 }
 0x2bb   : > { %v2695_v58 = vpop.eup %2694  ;;  %2710 = vrcp.f32 %v1394_v27  ;;  %v1441_v61 = vmul.f32 %v2693_v57, %v3239_v60 }
 0x2bc   : > { %v2697_v59 = vpop.eup %2696  ;;  %v1442_v1 = vmul.f32 %v2695_v58, %v3241_v39  ;;  %v2652_v58 = vld [vmem:[%s3026_s11 + $0x180] ss:$8 sps:$4 sm:$0xff]  }
 0x2bd   : > { %v2699_v38 = vpop.eup %2698  ;;  %v1445_v62 = vmul.f32 %v2697_v59, %v3244_v63 }
 0x2be   : > { %v2701_v0 = vpop.eup %2700  ;;  %v1446_v3 = vmul.f32 %v2699_v38, %v3247_v2 }
 0x2bf   : > { %v2703_v50 = vpop.eup %2702  ;;  %v1397_v4 = vadd.f32 1.0, %v2701_v0  ;;  %v1471_v51 = vpack.c.bf16 %v1445_v62, %v1441_v61  ;;  %v2657_v61 = vld [vmem:[%s3026_s11 + $0x194] ss:$8 sps:$4 sm:$0xff]  }
 0x2c0   : > { %v1398_v40 = vadd.f32 1.0, %v2703_v50  ;;  %v1472_v41 = vpack.c.bf16 %v1446_v3, %v1442_v1 }
 0x2c1   : > { %2712 = vrcp.f32 %v1397_v4  ;;  %v2655_v4 = vld [vmem:[%s3026_s11 + $0x190] ss:$8 sps:$4 sm:$0xff]  }
 0x2c2   : > { %v2705_v9 = vpop.eup %2704  ;;  %2714 = vrcp.f32 %v1398_v40  ;;  %1899 = vmatprep.mubr.bf16.mxu0 %v1472_v41  ;;  %v2660_v41 = vld [vmem:[%s3026_s11 + $0x1a4] ss:$8 sps:$4 sm:$0xff]  }
 0x2c3   : > { %v2707_v60 = vpop.eup %2706  ;;  %v1449_v63 = vmul.f32 %v2705_v9, %v3251_v6  ;;  %1900 = vmatmul.mubr.bf16.vlgmr.msra.gmra.mrb[0].mxu0 %v1471_v51 }
 0x2c4   : > { %v2709_v39 = vpop.eup %2708  ;;  %v1450_v2 = vmul.f32 %v2707_v60, %v3253_v8  ;;  %1929 = vmatpush1.bf16.msra.mxu0 %v2628_v5 }
 0x2c5   : > { %v2711_v12 = vpop.eup %2710  ;;  %v1453_v13 = vmul.f32 %v2709_v39, %v3256_v11  ;;  %1930 = vmatprep.subr.bf16.mxu0 %v2633_v7 }
 0x2c6   : > { %v1454_v16 = vmul.f32 %v2711_v12, %v3259_v14 }
 0x2c7   : > { %v1475_v17 = vpack.c.bf16 %v1453_v13, %v1449_v63 }
 0x2c8   : > { %1931 = vmatpush1.bf16.msra.mxu0 %v2631_v10  ;;  %v1476_v6 = vpack.c.bf16 %v1454_v16, %v1450_v2  ;;  %v2658_v10 = vld [vmem:[%s3026_s11 + $0x1a0] ss:$8 sps:$4 sm:$0xff]  }
 0x2c9   : > { %1932 = vmatprep.subr.bf16.mxu0 %v2636_v15  ;;  %v2663_v15 = vld [vmem:[%s3026_s11 + $0x1b4] ss:$8 sps:$4 sm:$0xff]  }
 0x2ca   : > { %1909 = vmatprep.mubr.bf16.mxu0 %v1476_v6 }
 0x2cb   : > { %v2713_v8 = vpop.eup %2712  ;;  %1910 = vmatmul.mubr.bf16.gmra.mrb[4].mxu0 %v1475_v17 }
 0x2cc   : > { %v2715_v20 = vpop.eup %2714  ;;  %v1457_v11 = vmul.f32 %v2713_v8, %v3263_v23  ;;  %1933 = vmatpush1.bf16.msra.mxu0 %v2634_v18  ;;  %v810_v23 = vsub.s32 6, %v3219_v28  ;;  %v2661_v8 = vld [vmem:[%s3026_s11 + $0x1b0] ss:$8 sps:$4 sm:$0xff]  }
 0x2cd   : > { %v1458_v14 = vmul.f32 %v2715_v20, %v3265_v31  ;;  %1934 = vmatprep.subr.bf16.mxu0 %v2639_v19  ;;  %v2643_v31 = vld [vmem:[%s3026_s11 + $0x150] ss:$8 sps:$4 sm:$0xff]  }
 0x2ce   : > { %v1479_v24 = vpack.c.bf16 %v1457_v11, %v1457_v11  ;;  %v811_v36 = vrot.slane %v3226_v29, %v810_v23 }
 0x2cf   : > { %v1480_v25 = vpack.c.bf16 %v1458_v14, %v1458_v14  ;;  %v2666_v14 = vld [vmem:[%s3026_s11 + $0x1c4] ss:$8 sps:$4 sm:$0xff]  }
 0x2d0   : > { %1935 = vmatpush1.bf16.msra.mxu0 %v2637_v21  ;;  %v3299_v44 = vrot.slane %v811_v36, %v3229_v55 }
 0x2d1   : > { %1936 = vmatprep.subr.bf16.mxu0 %v2642_v22  ;;  %1919 = vmatprep.mubr.bf16.mxu0 %v1480_v25 }
 0x2d3   : > { %1920 = vmatmul.mubr.bf16.gmra.mrb[8].mxu0 %v1479_v24 }
 0x2d4   : > { %1937 = vmatpush1.bf16.msra.mxu0 %v2640_v30 }
 0x2d5   : > { %1938 = vmatprep.subr.bf16.mxu0 %v2645_v32 }
 0x2d8   : > { %1939 = vmatpush1.bf16.msra.mxu0 %v2643_v31 }
 0x2d9   : > { %1940 = vmatprep.subr.bf16.mxu0 %v2648_v34 }
 0x2dc   : > { %v1274_v45 = vpop.f32.mrb[12].mxu1  ;;  %1941 = vmatpush1.bf16.msra.mxu0 %v2646_v37  ;;  %v2664_v37 = vld [vmem:[%s3026_s11 + $0x1c0] ss:$8 sps:$4 sm:$0xff]  }
 0x2dd   : > { %v3302_v47 = vadd.f32 %v1274_v45, %v827_v42  ;;  %v1276_v48 = vpop.f32.mrb[13].mxu1  ;;  %1942 = vmatprep.subr.bf16.mxu0 %v2651_v43 }
 0x2de   : > { %v3306_v29 = vadd.f32 %v1276_v48, %v3299_v44  ;;  %v1278_v52 = vpop.f32.mrb[14].mxu1 }
 0x2df   : > { %v2313_v53 = vmul.f32 -1.702, %v3302_v47  ;;  %v3309_v54 = vadd.f32 %v1278_v52, %v827_v42  ;;  %v1280_v56 = vpop.f32.mrb[15].mxu1 }
 0x2e0   : > { %v2314_v27 = vmul.f32 -1.702, %v3306_v29  ;;  %v3313_v57 = vadd.f32 %v1280_v56, %v3299_v44  ;;  %1943 = vmatpush1.bf16.msra.mxu0 %v2649_v46  ;;  %v2667_v46 = vld [vmem:[%s3026_s11 + $0x1d0] ss:$8 sps:$4 sm:$0xff]  }
 0x2e1   : > { %v1345_v59 = vmul.f32 1.442695, %v2313_v53  ;;  %v2317_v38 = vmul.f32 -1.702, %v3309_v54  ;;  %1944 = vmatprep.subr.bf16.mxu0 %v2654_v49  ;;  %v2672_v49 = vld [vmem:[%s3026_s11 + $0x1e4] ss:$8 sps:$4 sm:$0xff]  }
 0x2e2   : > { %v1347_v62 = vmul.f32 1.442695, %v2314_v27  ;;  %v2318_v0 = vmul.f32 -1.702, %v3313_v57 }
 0x2e3   : > { %2716 = vpow2.f32 %v1345_v59  ;;  %v1353_v1 = vmul.f32 1.442695, %v2317_v38  ;;  %v2670_v38 = vld [vmem:[%s3026_s11 + $0x1e0] ss:$8 sps:$4 sm:$0xff]  }
 0x2e4   : > { %2718 = vpow2.f32 %v1347_v62  ;;  %v1355_v3 = vmul.f32 1.442695, %v2318_v0  ;;  %v1284_v50 = vpop.f32.mrb[16].mxu1  ;;  %1945 = vmatpush1.bf16.msra.mxu0 %v2652_v58  ;;  %v2675_v62 = vld [vmem:[%s3026_s11 + $0x1f4] ss:$8 sps:$4 sm:$0xff]  }
 0x2e5   : > { %2720 = vpow2.f32 %v1353_v1  ;;  %v3320_v51 = vadd.f32 %v1284_v50, %v827_v42  ;;  %v1286_v40 = vpop.f32.mrb[17].mxu1  ;;  %1946 = vmatprep.subr.bf16.mxu0 %v2657_v61  ;;  %v2673_v50 = vld [vmem:[%s3026_s11 + $0x1f0] ss:$8 sps:$4 sm:$0xff]  }
 0x2e6   : > { %2722 = vpow2.f32 %v1355_v3  ;;  %v3324_v5 = vadd.f32 %v1286_v40, %v3299_v44  ;;  %v1288_v7 = vpop.f32.mrb[18].mxu1 }
 0x2e7   : > { %v2321_v9 = vmul.f32 -1.702, %v3320_v51  ;;  %v3327_v60 = vadd.f32 %v1288_v7, %v827_v42  ;;  %v1290_v63 = vpop.f32.mrb[19].mxu1 }
 0x2e8   : > { %v2322_v39 = vmul.f32 -1.702, %v3324_v5  ;;  %v3331_v2 = vadd.f32 %v1290_v63, %v3299_v44  ;;  %1947 = vmatpush1.bf16.msra.mxu0 %v2655_v4 }
 0x2e9   : > { %v1361_v12 = vmul.f32 1.442695, %v2321_v9  ;;  %v2325_v13 = vmul.f32 -1.702, %v3327_v60  ;;  %1948 = vmatprep.subr.bf16.mxu0 %v2660_v41 }
 0x2ea   : > { %v1363_v16 = vmul.f32 1.442695, %v2322_v39  ;;  %v2326_v17 = vmul.f32 -1.702, %v3331_v2 }
 0x2eb   : > { %2724 = vpow2.f32 %v1361_v12  ;;  %v1369_v18 = vmul.f32 1.442695, %v2325_v13 }
 0x2ec   : > { %2726 = vpow2.f32 %v1363_v16  ;;  %v1371_v6 = vmul.f32 1.442695, %v2326_v17  ;;  %v1294_v19 = vpop.f32.mrb[20].mxu1  ;;  %1949 = vmatpush1.bf16.msra.mxu0 %v2658_v10 }
 0x2ed   : > { %v2717_v20 = vpop.eup %2716  ;;  %2728 = vpow2.f32 %v1369_v18  ;;  %v3338_v11 = vadd.f32 %v1294_v19, %v827_v42  ;;  %v1296_v21 = vpop.f32.mrb[21].mxu1  ;;  %1950 = vmatprep.subr.bf16.mxu0 %v2663_v15 }
 0x2ee   : > { %v2719_v22 = vpop.eup %2718  ;;  %v1383_v24 = vadd.f32 1.0, %v2717_v20  ;;  %2730 = vpow2.f32 %v1371_v6  ;;  %v3342_v25 = vadd.f32 %v1296_v21, %v3299_v44  ;;  %v1298_v30 = vpop.f32.mrb[22].mxu1  ;;  %v2669_v44 = vld [vmem:[%s3026_s11 + $0x1d4] ss:$8 sps:$4 sm:$0xff]  }
 0x2ef   : > { %v2721_v32 = vpop.eup %2720  ;;  %v1384_v33 = vadd.f32 1.0, %v2719_v22  ;;  %v2329_v23 = vmul.f32 -1.702, %v3338_v11  ;;  %v1299_v31 = vpop.f32.mrb[23].mxu1 }
 0x2f0   : > { %v2723_v34 = vpop.eup %2722  ;;  %2732 = vrcp.f32 %v1383_v24  ;;  %v1387_v35 = vadd.f32 1.0, %v2721_v32  ;;  %v2330_v36 = vmul.f32 -1.702, %v3342_v25  ;;  %1951 = vmatpush1.bf16.msra.mxu0 %v2661_v8  ;;  %v1463_v31 = vld [vmem:[#allocation3 + $0x10] sm:$0xff] }
 0x2f1   : > { %2734 = vrcp.f32 %v1384_v33  ;;  %v1388_v42 = vadd.f32 1.0, %v2723_v34  ;;  %v1377_v43 = vmul.f32 1.442695, %v2329_v23  ;;  %1952 = vmatprep.subr.bf16.mxu0 %v2666_v14  ;;  %v1461_v33 = vld [vmem:[#allocation3] sm:$0xff] }
 0x2f2   : > { %2736 = vrcp.f32 %v1387_v35  ;;  %v1379_v45 = vmul.f32 1.442695, %v2330_v36  ;;  %v1464_v36 = vld [vmem:[#allocation3 + $0x18] sm:$0xff] }
 0x2f3   : > { %2738 = vrcp.f32 %v1388_v42 }
 0x2f4   : > { %2740 = vpow2.f32 %v1377_v43  ;;  %1953 = vmatpush1.bf16.msra.mxu0 %v2664_v37 }
 0x2f5   : > { %v2725_v48 = vpop.eup %2724  ;;  %2742 = vpow2.f32 %v1379_v45  ;;  %1954 = vmatprep.subr.bf16.mxu0 %v2669_v44  ;;  %v1465_v44 = vld [vmem:[#allocation3 + $0x20] sm:$0xff]  ;;  %v1466_v45 = vld [vmem:[#allocation3 + $0x28] sm:$0xff] }
 0x2f6   : > { %v2727_v52 = vpop.eup %2726  ;;  %v1391_v53 = vadd.f32 1.0, %v2725_v48  ;;  %v1467_v48 = vld [vmem:[#allocation3 + $0x30] sm:$0xff] }
 0x2f7   : > { %v2729_v56 = vpop.eup %2728  ;;  %v1392_v27 = vadd.f32 1.0, %v2727_v52 }
 0x2f8   : > { %v2731_v58 = vpop.eup %2730  ;;  %2744 = vrcp.f32 %v1391_v53  ;;  %v1395_v59 = vadd.f32 1.0, %v2729_v56  ;;  %1955 = vmatpush1.bf16.msra.mxu0 %v2667_v46  ;;  %v1468_v53 = vld [vmem:[#allocation3 + $0x38] sm:$0xff] }
 0x2f9   : > { %2746 = vrcp.f32 %v1392_v27  ;;  %v1396_v61 = vadd.f32 1.0, %v2731_v58  ;;  %1956 = vmatprep.subr.bf16.mxu0 %v2672_v49 }
 0x2fa   : > { %v2733_v0 = vpop.eup %2732  ;;  %2748 = vrcp.f32 %v1395_v59 }
 0x2fb   : > { %v2735_v1 = vpop.eup %2734  ;;  %2750 = vrcp.f32 %v1396_v61  ;;  %v1443_v40 = vmul.f32 %v2733_v0, %v3302_v47  ;;  %v1469_v61 = vld [vmem:[#allocation3 + $0x40] sm:$0x3] }
 0x2fc   : > { %v2737_v3 = vpop.eup %2736  ;;  %1957 = vmatpush1.bf16.msra.mxu0 %v2670_v38  ;;  %v1444_v9 = vmul.f32 %v2735_v1, %v3306_v29  ;;  %v1470_v1 = vld [vmem:[#allocation3 + $0x48] sm:$0x3] }
 0x2fd   : > { %v2739_v4 = vpop.eup %2738  ;;  %v1447_v41 = vmul.f32 %v2737_v3, %v3309_v54  ;;  %1958 = vmatprep.subr.bf16.mxu0 %v2675_v62 }
 0x2fe   : > { %v2741_v7 = vpop.eup %2740  ;;  %v1448_v63 = vmul.f32 %v2739_v4, %v3313_v57 }
 0x2ff   : > { %v2743_v39 = vpop.eup %2742  ;;  %v1473_v10 = vpack.c.bf16 %v1447_v41, %v1443_v40  ;;  %v1399_v12 = vadd.f32 1.0, %v2741_v7 }
 0x300   : > { %v1400_v13 = vadd.f32 1.0, %v2743_v39  ;;  %1959 = vmatpush1.bf16.msra.mxu0 %v2673_v50  ;;  %v1474_v15 = vpack.c.bf16 %v1448_v63, %v1444_v9  ;;  %v2023_v9 = vld [vmem:[%s3423_s6] sm:$0x3] (!%p2395_p12) }
 0x301   : > { %2752 = vrcp.f32 %v1399_v12  ;;  %v2024_v63 = vunpack.c.l.bf16 (!%p2395_p12), %v2023_v9  ;;  %v2054_v39 = vld [vmem:[%s3417_s0] sm:$0xff] (!%p2395_p12) }
 0x302   : > { %v2745_v16 = vpop.eup %2744  ;;  %2754 = vrcp.f32 %v1400_v13  ;;  %1960 = vmatprep.mubr.bf16.mxu0 %v1474_v15  ;;  %v2055_v13 = vld [vmem:[%s3417_s0 + $0x8] sm:$0xff] (!%p2395_p12) }
 0x303   : > { %v2747_v17 = vpop.eup %2746  ;;  %1961 = vmatmul.mubr.bf16.vlgmr.msra.gmra.mrb[0].mxu0 %v1473_v10  ;;  %v1451_v18 = vmul.f32 %v2745_v16, %v3320_v51  ;;  %v2029_v15 = vrot.slane (!%p2395_p12), %v2024_v63, %v3229_v55  ;;  %v2033_v16 = vrot.slane (!%p2395_p12), %v2024_v63, %v802_v26 }
 0x304   : > { %v2749_v47 = vpop.eup %2748  ;;  %v1452_v57 = vmul.f32 %v2747_v17, %v3324_v5 }
 0x305   : > { %v2751_v54 = vpop.eup %2750  ;;  %v1455_v29 = vmul.f32 %v2749_v47, %v3327_v60  ;;  %v2043_v28 = vrot.slane (!%p2395_p12), %v2033_v16, %v3229_v55 }
 0x306   : > { %v1456_v6 = vmul.f32 %v2751_v54, %v3331_v2  ;;  %v1462_v2 = vld [vmem:[#allocation3 + $0x8] sm:$0xff] }
 0x307   : > { %v1477_v19 = vpack.c.bf16 %v1455_v29, %v1451_v18  ;;  %v2056_v54 = vld [vmem:[%s3417_s0 + $0x10] sm:$0xff] (!%p2395_p12)  ;;  %v2059_v18 = vunpack.c.l.bf16 (!%p2395_p12), %v2054_v39  ;;  %v2060_v29 = vunpack.c.h.bf16 (!%p2395_p12), %v2054_v39 }
 0x308   : > { %v1478_v8 = vpack.c.bf16 %v1456_v6, %v1452_v57  ;;  %v2061_v57 = vunpack.c.l.bf16 (!%p2395_p12), %v2055_v13  ;;  %v2062_v6 = vunpack.c.h.bf16 (!%p2395_p12), %v2055_v13  ;;  %v2063_v26 = vunpack.c.l.bf16 (!%p2395_p12), %v2056_v54 }
 0x30a   : > { %1970 = vmatprep.mubr.bf16.mxu0 %v1478_v8 }
 0x30b   : > { %v2753_v20 = vpop.eup %2752  ;;  %1971 = vmatmul.mubr.bf16.gmra.mrb[4].mxu0 %v1477_v19 }
 0x30c   : > { %v2755_v21 = vpop.eup %2754  ;;  %v1459_v14 = vmul.f32 %v2753_v20, %v3338_v11  ;;  %v2057_v20 = vld [vmem:[%s3417_s0 + $0x18] sm:$0xff] (!%p2395_p12) }
 0x30d   : > { %v1460_v22 = vmul.f32 %v2755_v21, %v3342_v25  ;;  %v2039_v21 = vrot.slane (!%p2395_p12), %v2029_v15, %v3229_v55 }
 0x30e   : > { %v1481_v30 = vpack.c.bf16 %v1459_v14, %v1459_v14  ;;  %v2064_v14 = vunpack.c.h.bf16 (!%p2395_p12), %v2056_v54 }
 0x30f   : > { %v1482_v24 = vpack.c.bf16 %v1460_v22, %v1460_v22 }
 0x311   : > { %1980 = vmatprep.mubr.bf16.mxu0 %v1482_v24 }
 0x313   : > { %1981 = vmatmul.mubr.bf16.gmra.mrb[12].mxu0 %v1481_v30  ;;  %v2058_v30 = vld [vmem:[%s3417_s0 + $0x20] sm:$0x11] (!%p2395_p12) }
 0x3a6   : > { %v1921_v51 = vpop.f32.mrb[8].mxu0 }
 0x3a7   : > { %v1923_v60 = vpop.f32.mrb[9].mxu0 }
 0x3a8   : > { %v1925_v32 = vpop.f32.mrb[10].mxu0 }
 0x3a9   : > { %v1926_v5 = vpop.f32.mrb[11].mxu0  ;;  %v2067_v32 = vunpack.c.l.bf16 (!%p2395_p12), %v2058_v30 }
 0x3aa   : > { %v2068_v5 = vunpack.c.h.bf16 (!%p2395_p12), %v2058_v30 }
 0x3d6   : > { %v1962_v23 = vpop.f32.mrb[0].mxu0 }
 0x3d7   : > { %v1989_v34 = vadd.f32 %v1962_v23, %v1461_v33  ;;  %v1964_v35 = vpop.f32.mrb[1].mxu0 }
 0x3d8   : > { %v1990_v37 = vadd.f32 %v1964_v35, %v1462_v2  ;;  %v1966_v42 = vpop.f32.mrb[2].mxu0 }
 0x3d9   : > { %1999 = vst [vmem:[#allocation3] sm:$0xff] %v1989_v34  ;;  %v1991_v11 = vadd.f32 %v1966_v42, %v1463_v31  ;;  %v1968_v25 = vpop.f32.mrb[3].mxu0 }
 0x3da   : > { %2000 = vst [vmem:[#allocation3 + $0x8] sm:$0xff] %v1990_v37  ;;  %v1992_v43 = vadd.f32 %v1968_v25, %v1464_v36 }
 0x3db   : > { %2001 = vst [vmem:[#allocation3 + $0x10] sm:$0xff] %v1991_v11 }
 0x3dc   : > { %2002 = vst [vmem:[#allocation3 + $0x18] sm:$0xff] %v1992_v43 }
 0x3de   : > { %v1972_v46 = vpop.f32.mrb[4].mxu0 }
 0x3df   : > { %v1993_v49 = vadd.f32 %v1972_v46, %v1465_v44  ;;  %v1974_v52 = vpop.f32.mrb[5].mxu0 }
 0x3e0   : > { %v1994_v56 = vadd.f32 %v1974_v52, %v1466_v45  ;;  %v1976_v27 = vpop.f32.mrb[6].mxu0  ;;  %v2013_v10 = vld [vmem:[#allocation3] sm:$0xff] (!%p2395_p12) }
 0x3e1   : > { %2003 = vst [vmem:[#allocation3 + $0x20] sm:$0xff] %v1993_v49  ;;  %v1995_v58 = vadd.f32 %v1976_v27, %v1467_v48  ;;  %v1978_v59 = vpop.f32.mrb[7].mxu0  ;;  %v2014_v12 = vld [vmem:[#allocation3 + $0x8] sm:$0xff] (!%p2395_p12)  ;;  %v2044_v33 = vadd.f32 (!%p2395_p12), %v2039_v21, %v2013_v10 }
 0x3e2   : > { %2004 = vst [vmem:[#allocation3 + $0x28] sm:$0xff] %v1994_v56  ;;  %v1996_v38 = vadd.f32 %v1978_v59, %v1468_v53  ;;  %v2015_v17 = vld [vmem:[#allocation3 + $0x10] sm:$0xff] (!%p2395_p12)  ;;  %v2045_v2 = vadd.f32 (!%p2395_p12), %v2043_v28, %v2014_v12 }
 0x3e3   : > { %2005 = vst [vmem:[#allocation3 + $0x30] sm:$0xff] %v1995_v58  ;;  %v2016_v47 = vld [vmem:[#allocation3 + $0x18] sm:$0xff] (!%p2395_p12)  ;;  %v2046_v23 = vadd.f32 (!%p2395_p12), %v2039_v21, %v2015_v17  ;;  %v2069_v11 = vadd.f32 (!%p2395_p12), %v2059_v18, %v2044_v33 }
 0x3e4   : > { %2006 = vst [vmem:[#allocation3 + $0x38] sm:$0xff] %v1996_v38  ;;  %v2047_v31 = vadd.f32 (!%p2395_p12), %v2043_v28, %v2016_v47  ;;  %v2070_v25 = vadd.f32 (!%p2395_p12), %v2060_v29, %v2045_v2 }
 0x3e5   : > { %v2071_v43 = vadd.f32 (!%p2395_p12), %v2061_v57, %v2046_v23 }
 0x3e6   : > { %v1982_v62 = vpop.f32.mrb[12].mxu0  ;;  %2012 = sbr.rel (%p2395_p12) target bundleno = 1019 (0x3fb), region = 79  ;;  %v2072_v44 = vadd.f32 (!%p2395_p12), %v2062_v6, %v2047_v31  ;;  %v2412_v52 = vpack.c.bf16 (!%p2395_p12), %v2070_v25, %v2069_v11 }
 0x3e7   : > { %v1983_v0 = vadd.f32 %v1982_v62, %v1921_v51  ;;  %v1984_v3 = vpop.f32.mrb[13].mxu0  ;;  %v2065_v51 = vunpack.c.l.bf16 (!%p2395_p12), %v2057_v20 }
 0x3e8   : > { %v1985_v50 = vadd.f32 %v1984_v3, %v1923_v60  ;;  %v1986_v4 = vpop.f32.mrb[14].mxu0  ;;  %v2017_v19 = vld [vmem:[#allocation3 + $0x20] sm:$0xff] (!%p2395_p12)  ;;  %v2066_v60 = vunpack.c.h.bf16 (!%p2395_p12), %v2057_v20  ;;  %v2413_v53 = vpack.c.bf16 (!%p2395_p12), %v2072_v44, %v2071_v43  ;;  %2111 = vst [vmem:[%s3424_s7] sm:$0xff] (!%p2395_p12), %v2412_v52 }
 0x3e9   : > { %v1997_v40 = vadd.f32 %v1983_v0, %v1469_v61  ;;  %v1987_v41 = vpop.f32.mrb[15].mxu0  ;;  %v2018_v8 = vld [vmem:[#allocation3 + $0x28] sm:$0xff] (!%p2395_p12)  ;;  %v2048_v34 = vadd.f32 (!%p2395_p12), %v2039_v21, %v2017_v19 }
 0x3ea   : > { %v1998_v7 = vadd.f32 %v1985_v50, %v1470_v1  ;;  %v2019_v22 = vld [vmem:[#allocation3 + $0x30] sm:$0xff] (!%p2395_p12)  ;;  %v2049_v35 = vadd.f32 (!%p2395_p12), %v2043_v28, %v2018_v8  ;;  %2112 = vst [vmem:[%s3424_s7 + $0x8] sm:$0xff] (!%p2395_p12), %v2413_v53 }
 0x3eb   : > { %2007 = vst [vmem:[#allocation3 + $0x40] sm:$0x3] %v1997_v40  ;;  %v2020_v24 = vld [vmem:[#allocation3 + $0x38] sm:$0xff] (!%p2395_p12)  ;;  %v2050_v36 = vadd.f32 (!%p2395_p12), %v2039_v21, %v2019_v22  ;;  %v2073_v45 = vadd.f32 (!%p2395_p12), %v2063_v26, %v2048_v34 }
 0x3ec   : > { %2008 = vst [vmem:[#allocation3 + $0x48] sm:$0x3] %v1998_v7  ;;  %v2051_v55 = vadd.f32 (!%p2395_p12), %v2043_v28, %v2020_v24  ;;  %v2074_v46 = vadd.f32 (!%p2395_p12), %v2064_v14, %v2049_v35 }
 0x3ed   : > { %v2075_v48 = vadd.f32 %v2065_v51, %v2050_v36 }
 0x3ee   : > { %v2076_v49 = vadd.f32 %v2066_v60, %v2051_v55  ;;  %v2414_v58 = vpack.c.bf16 %v2074_v46, %v2073_v45 }
 0x3f0   : > { %v2415_v59 = vpack.c.bf16 %v2076_v49, %v2075_v48  ;;  %2113 = vst [vmem:[%s3424_s7 + $0x10] sm:$0xff] %v2414_v58 }
 0x3f2   : > { %v2021_v37 = vld [vmem:[#allocation3 + $0x40] sm:$0x3]  ;;  %2114 = vst [vmem:[%s3424_s7 + $0x18] sm:$0xff] %v2415_v59 }
 0x3f3   : > { %v2022_v42 = vld [vmem:[#allocation3 + $0x48] sm:$0x3]  ;;  %v2052_v56 = vadd.f32 %v2039_v21, %v2021_v37 }
 0x3f4   : > { %v2053_v27 = vadd.f32 %v2043_v28, %v2022_v42 }
 0x3f5   : > { %v2077_v38 = vadd.f32 %v2067_v32, %v2052_v56 }
 0x3f6   : > { %v2078_v61 = vadd.f32 %v2068_v5, %v2053_v27 }
 0x3f8   : > { %v2416_v62 = vpack.c.bf16 %v2078_v61, %v2077_v38 }
 0x3fa   : > { %2115 = vst [vmem:[%s3424_s7 + $0x20] sm:$0x11] %v2416_v62 }
 0x3fb PF: > { %s17_s28 = sadd.s32 1, %s2794_s28   ;;  %s3425_s24 = smov %s2782_s25 }
 0x3fc   : > { %p14_p13 = scmp.ge.s32.totalorder %s17_s28, 4   ;;  %s3426_s25 = smov %s2872_s9 }
 0x3fd   : > { %s3427_s26 = smov %s2790_s27  ;;  %s3428_s27 = smov %s3430_s29 }
 0x3fe   :  { %16 = sbr.rel (!%p14_p13) target bundleno = 3 (0x3), region = 123 }

</bundles_post_ra>
